<compile_context>
chip_gen: v7x
topology: tpu7x:2x2x1
jax: 0.10.0
libtpu: 0.0.40
codegen_flags: <defaults>
</compile_context>

<pallas_src>
import jax
import jax.numpy as jnp
from jax.experimental import pallas as pl
from jax.experimental.pallas import tpu as pltpu

BN_EPS = 1e-5

# (Cin, Cout, activation) for the six layers of Analyser.__init__
_LAYERS = [
    (8192, 256, "relu"),
    (256, 128, "relu"),
    (128, 128, "relu"),
    (128, 128, "relu"),
    (128, 256, "relu"),
    (256, 8203, "sigmoid"),
]

C6 = 8203               # true Cout of the last layer
TILE6 = 1408            # 11 * 128 lanes per grid step
N_CORE_GROUPS = 2       # outer "parallel" grid axis (v7x megacore sharding)
TILES_PER_GROUP = 3     # inner "arbitrary" grid axis
C6_PAD = N_CORE_GROUPS * TILES_PER_GROUP * TILE6   # 8448 = 66 * 128


def _bn(y, gamma, beta):
    """Training-mode BatchNorm over the row (N*H*W) axis, biased variance."""
    mean = jnp.mean(y, axis=0, keepdims=True)
    var = jnp.mean(jnp.square(y - mean), axis=0, keepdims=True)
    return (y - mean) * jax.lax.rsqrt(var + BN_EPS) * gamma + beta


def _analyser_kernel(x_ref, *refs):
    """Fused 6-layer forward.

    refs = (w, gamma, beta) * 6, then o_ref, then h_scratch.
    Grid = (core_group, cout_tile).  The layer 1-5 trunk is computed once per
    core group (inner index 0), cached in VMEM scratch, and reused for every
    layer-6 Cout tile of that group.
    """
    o_ref = refs[-2]
    h_scratch = refs[-1]
    layer_refs = refs[:-2]

    # Layers 1-5: 1x1 conv (MXU matmul) + BN + ReLU, computed once per core
    # group and cached in VMEM scratch (M x 256, tiny).
    @pl.when(pl.program_id(1) == 0)
    def _():
        h = x_ref[...]                       # already bf16 (cast in wrapper)
        for i in range(5):
            w_ref, g_ref, b_ref = layer_refs[3 * i:3 * i + 3]
            y = jnp.dot(h, w_ref[...], preferred_element_type=jnp.float32)
            y = jnp.maximum(_bn(y, g_ref[...], b_ref[...]), 0.0)
            h = y.astype(jnp.bfloat16)
        h_scratch[...] = h.astype(jnp.float32)

    # Layer 6: only the current 1408-lane Cout tile of the weight is resident.
    # BN is per-channel, so the Cout split is exact.
    w6_ref, g6_ref, b6_ref = layer_refs[15:18]
    h6 = h_scratch[...].astype(jnp.bfloat16)
    y = jnp.dot(h6, w6_ref[...], preferred_element_type=jnp.float32)
    y = _bn(y, g6_ref[...], b6_ref[...])
    o_ref[...] = jax.nn.sigmoid(y)


def init_params(key):
    """Deterministic synthetic parameters (shapes match the PyTorch module)."""
    params = []
    for i, (cin, cout, _) in enumerate(_LAYERS):
        k_w, k_b, k_g, k_be, key = jax.random.split(jax.random.fold_in(key, i), 5)
        w = jax.random.normal(k_w, (cin, cout), jnp.float32) * (1.0 / jnp.sqrt(cin))
        b = jax.random.normal(k_b, (1, cout), jnp.float32) * 0.01
        gamma = 1.0 + 0.1 * jax.random.normal(k_g, (1, cout), jnp.float32)
        beta = 0.01 * jax.random.normal(k_be, (1, cout), jnp.float32)
        params.append((w, b, gamma, beta))
    return params


def prepare_params(params):
    """One-time prep: bf16 weights, pad layer 6 to lane-dense C6_PAD, drop bias."""
    ws, gs, bs = [], [], []
    for i, (w, b, gamma, beta) in enumerate(params):
        # Conv bias is exactly cancelled by the train-mode BN mean subtraction.
        del b
        if i == 5:
            pad = C6_PAD - C6
            w = jnp.pad(w, ((0, 0), (0, pad)))                       # zeros
            # Keep gamma = 1 on padded channels so padded BN output stays 0.
            gamma = jnp.pad(gamma, ((0, 0), (0, pad)), constant_values=1.0)
            beta = jnp.pad(beta, ((0, 0), (0, pad)))                 # zeros
        ws.append(w.astype(jnp.bfloat16))
        gs.append(gamma.astype(jnp.float32))
        bs.append(beta.astype(jnp.float32))
    return ws, gs, bs


def analyser_forward(x_nchw, prepared):
    """x_nchw: (N, 8192, H, W) f32 -> (N, 8203, H, W) f32."""
    ws, gs, bs = prepared
    N, C, H, W_ = x_nchw.shape
    M = N * H * W_
    # NCHW -> NHWC -> (M, C): rows = spatial positions, lanes = channels.
    # bf16 halves the x DMA and removes an in-kernel convert pass.
    # TODO(synk): fold this transpose into the pallas_call input DMA
    # (allow_input_fusion) to avoid a separate small XLA op per call.
    x = jnp.transpose(x_nchw, (0, 2, 3, 1)).reshape(M, C).astype(jnp.bfloat16)

    # TODO(synk): if M grows beyond a few hundred rows, tile M with a grid and
    # accumulate BN sum/sumsq in VMEM scratch across an "arbitrary" axis
    # instead of keeping the whole (M, 8192) activation resident in VMEM.

    def full_spec(shape):
        return pl.BlockSpec(shape, lambda c, t: (0,) * len(shape))

    def tiled6_spec(rows):
        return pl.BlockSpec((rows, TILE6),
                            lambda c, t: (0, c * TILES_PER_GROUP + t))

    in_specs = [full_spec((M, C))]
    flat_args = [x]
    for i, (cin, cout, _) in enumerate(_LAYERS):
        if i < 5:
            in_specs += [full_spec((cin, cout)),
                         full_spec((1, cout)),
                         full_spec((1, cout))]
        else:
            in_specs += [tiled6_spec(cin),
                         tiled6_spec(1),
                         tiled6_spec(1)]
        flat_args += [ws[i], gs[i], bs[i]]

    out = pl.pallas_call(
        _analyser_kernel,
        out_shape=jax.ShapeDtypeStruct((M, C6_PAD), jnp.float32),
        grid=(N_CORE_GROUPS, TILES_PER_GROUP),
        in_specs=in_specs,
        out_specs=tiled6_spec(M),
        scratch_shapes=[pltpu.VMEM((M, 256), jnp.float32)],
        compiler_params=pltpu.CompilerParams(
            dimension_semantics=("parallel", "arbitrary"),
            vmem_limit_bytes=32 * 1024 * 1024,
        ),
    )(*flat_args)

    out = out[:, :C6]
    return out.reshape(N, H, W_, C6).transpose(0, 3, 1, 2)


def reference_forward(x_nchw, params):
    """Pure-JAX reference mimicking the kernel's bf16 matmuls (keeps bias)."""
    N, C, H, W_ = x_nchw.shape
    h = jnp.transpose(x_nchw, (0, 2, 3, 1)).reshape(-1, C)
    for i, (w, b, gamma, beta) in enumerate(params):
        y = jnp.dot(h.astype(jnp.bfloat16), w.astype(jnp.bfloat16),
                    preferred_element_type=jnp.float32)
        y = y + b  # kept here to confirm train-mode BN cancels the conv bias
        y = _bn(y, gamma, beta)
        h = jnp.maximum(y, 0.0) if i < 5 else jax.nn.sigmoid(y)
    c_out = h.shape[-1]
    return h.reshape(N, H, W_, c_out).transpose(0, 3, 1, 2)


if __name__ == "__main__":
    key = jax.random.PRNGKey(0)
    k_x, k_p = jax.random.split(key)

    # Small shapes consistent with the module: in_channels is fixed at 8192.
    N, C_IN, H, W = 2, 8192, 2, 2
    x = jax.random.normal(k_x, (N, C_IN, H, W), jnp.float32)

    params = init_params(k_p)
    prepared = prepare_params(params)

    fwd = jax.jit(analyser_forward)
    out = jax.block_until_ready(fwd(x, prepared))

    assert out.shape == (N, 8203, H, W), out.shape
    assert out.dtype == jnp.float32
    assert bool(jnp.all(jnp.isfinite(out)))
    # Sigmoid output lies in [0, 1] (f32 rounding can hit the endpoints).
    assert bool(jnp.all((out >= 0.0) & (out <= 1.0)))

    ref = jax.block_until_ready(reference_forward(x, params))
    assert bool(jnp.max(jnp.abs(out - ref)) < 1e-2), float(jnp.max(jnp.abs(out - ref)))

    print("KERNEL_OK")
</pallas_src>

<mosaic_0001>
module attributes {stable_mosaic.version = 11 : i64} {
  func.func @_analyser_kernel(%arg0: i32, %arg1: i32, %arg2: memref<8x8192xbf16, #tpu.memory_space<vmem>>, %arg3: memref<8192x256xbf16, #tpu.memory_space<vmem>>, %arg4: memref<1x256xf32, #tpu.memory_space<vmem>>, %arg5: memref<1x256xf32, #tpu.memory_space<vmem>>, %arg6: memref<256x128xbf16, #tpu.memory_space<vmem>>, %arg7: memref<1x128xf32, #tpu.memory_space<vmem>>, %arg8: memref<1x128xf32, #tpu.memory_space<vmem>>, %arg9: memref<128x128xbf16, #tpu.memory_space<vmem>>, %arg10: memref<1x128xf32, #tpu.memory_space<vmem>>, %arg11: memref<1x128xf32, #tpu.memory_space<vmem>>, %arg12: memref<128x128xbf16, #tpu.memory_space<vmem>>, %arg13: memref<1x128xf32, #tpu.memory_space<vmem>>, %arg14: memref<1x128xf32, #tpu.memory_space<vmem>>, %arg15: memref<128x256xbf16, #tpu.memory_space<vmem>>, %arg16: memref<1x256xf32, #tpu.memory_space<vmem>>, %arg17: memref<1x256xf32, #tpu.memory_space<vmem>>, %arg18: memref<256x1408xbf16, #tpu.memory_space<vmem>>, %arg19: memref<1x1408xf32, #tpu.memory_space<vmem>>, %arg20: memref<1x1408xf32, #tpu.memory_space<vmem>>, %arg21: memref<8x1408xf32, #tpu.memory_space<vmem>>, %arg22: memref<8x256xf32, #tpu.memory_space<vmem>>) attributes {dimension_semantics = [#tpu.dimension_semantics<parallel>, #tpu.dimension_semantics<arbitrary>], iteration_bounds = array<i64: 2, 3>, scalar_prefetch = 0 : i64, scratch_operands = 1 : i64, tpu.core_type = #tpu.core_type<tc>, window_params = [{pipeline_mode = #tpu.pipeline_mode<synchronous>, transform_indices = @transform_0, window_bounds = array<i64: 8, 8192>}, {pipeline_mode = #tpu.pipeline_mode<synchronous>, transform_indices = @transform_1, window_bounds = array<i64: 8192, 256>}, {pipeline_mode = #tpu.pipeline_mode<synchronous>, transform_indices = @transform_2, window_bounds = array<i64: 1, 256>}, {pipeline_mode = #tpu.pipeline_mode<synchronous>, transform_indices = @transform_3, window_bounds = array<i64: 1, 256>}, {pipeline_mode = #tpu.pipeline_mode<synchronous>, transform_indices = @transform_4, window_bounds = array<i64: 256, 128>}, {pipeline_mode = #tpu.pipeline_mode<synchronous>, transform_indices = @transform_5, window_bounds = array<i64: 1, 128>}, {pipeline_mode = #tpu.pipeline_mode<synchronous>, transform_indices = @transform_6, window_bounds = array<i64: 1, 128>}, {pipeline_mode = #tpu.pipeline_mode<synchronous>, transform_indices = @transform_7, window_bounds = array<i64: 128, 128>}, {pipeline_mode = #tpu.pipeline_mode<synchronous>, transform_indices = @transform_8, window_bounds = array<i64: 1, 128>}, {pipeline_mode = #tpu.pipeline_mode<synchronous>, transform_indices = @transform_9, window_bounds = array<i64: 1, 128>}, {pipeline_mode = #tpu.pipeline_mode<synchronous>, transform_indices = @transform_10, window_bounds = array<i64: 128, 128>}, {pipeline_mode = #tpu.pipeline_mode<synchronous>, transform_indices = @transform_11, window_bounds = array<i64: 1, 128>}, {pipeline_mode = #tpu.pipeline_mode<synchronous>, transform_indices = @transform_12, window_bounds = array<i64: 1, 128>}, {pipeline_mode = #tpu.pipeline_mode<synchronous>, transform_indices = @transform_13, window_bounds = array<i64: 128, 256>}, {pipeline_mode = #tpu.pipeline_mode<synchronous>, transform_indices = @transform_14, window_bounds = array<i64: 1, 256>}, {pipeline_mode = #tpu.pipeline_mode<synchronous>, transform_indices = @transform_15, window_bounds = array<i64: 1, 256>}, {transform_indices = @transform_16, window_bounds = array<i64: 256, 1408>}, {transform_indices = @transform_17, window_bounds = array<i64: 1, 1408>}, {transform_indices = @transform_18, window_bounds = array<i64: 1, 1408>}, {transform_indices = @transform_19, window_bounds = array<i64: 8, 1408>}]} {
    %c0_i32 = arith.constant 0 : i32
    %0 = arith.cmpi eq, %arg1, %c0_i32 : i32
    %1 = arith.extui %0 : i1 to i32
    %c0_i32_0 = arith.constant 0 : i32
    %2 = arith.cmpi ne, %1, %c0_i32_0 : i32
    scf.if %2 {
      %c0_16 = arith.constant 0 : index
      %c0_17 = arith.constant 0 : index
      %37 = vector.load %arg2[%c0_16, %c0_17] : memref<8x8192xbf16, #tpu.memory_space<vmem>>, vector<8x8192xbf16>
      %c0_18 = arith.constant 0 : index
      %c0_19 = arith.constant 0 : index
      %38 = vector.load %arg3[%c0_18, %c0_19] : memref<8192x256xbf16, #tpu.memory_space<vmem>>, vector<8192x256xbf16>
      %cst_20 = arith.constant dense<0.000000e+00> : vector<8x256xf32>
      %39 = tpu.matmul %37, %38, %cst_20 {dimension_numbers = #tpu.dot_dimension_numbers<[1], [0], [0], [1], [0, 0, 1, 1], [], []>} : vector<8x8192xbf16>, vector<8192x256xbf16>, vector<8x256xf32> -> vector<8x256xf32>
      %c0_21 = arith.constant 0 : index
      %c0_22 = arith.constant 0 : index
      %40 = vector.load %arg4[%c0_21, %c0_22] : memref<1x256xf32, #tpu.memory_space<vmem>>, vector<1x256xf32>
      %c0_23 = arith.constant 0 : index
      %c0_24 = arith.constant 0 : index
      %41 = vector.load %arg5[%c0_23, %c0_24] : memref<1x256xf32, #tpu.memory_space<vmem>>, vector<1x256xf32>
      %cst_25 = arith.constant dense<0.000000e+00> : vector<256xf32>
      %42 = vector.multi_reduction <add>, %39, %cst_25 [0] : vector<8x256xf32> to vector<256xf32>
      %43 = vector.shape_cast %42 : vector<256xf32> to vector<1x256xf32>
      %cst_26 = arith.constant 8.000000e+00 : f32
      %44 = vector.broadcast %cst_26 : f32 to vector<1x256xf32>
      %45 = arith.divf %43, %44 : vector<1x256xf32>
      %46 = vector.broadcast %45 : vector<1x256xf32> to vector<8x256xf32>
      %47 = arith.subf %39, %46 : vector<8x256xf32>
      %48 = arith.mulf %47, %47 : vector<8x256xf32>
      %cst_27 = arith.constant dense<0.000000e+00> : vector<256xf32>
      %49 = vector.multi_reduction <add>, %48, %cst_27 [0] : vector<8x256xf32> to vector<256xf32>
      %50 = vector.shape_cast %49 : vector<256xf32> to vector<1x256xf32>
      %cst_28 = arith.constant 8.000000e+00 : f32
      %51 = vector.broadcast %cst_28 : f32 to vector<1x256xf32>
      %52 = arith.divf %50, %51 : vector<1x256xf32>
      %53 = vector.broadcast %45 : vector<1x256xf32> to vector<8x256xf32>
      %54 = arith.subf %39, %53 : vector<8x256xf32>
      %cst_29 = arith.constant 9.99999974E-6 : f32
      %55 = vector.broadcast %cst_29 : f32 to vector<1x256xf32>
      %56 = arith.addf %52, %55 : vector<1x256xf32>
      %57 = math.rsqrt %56 : vector<1x256xf32>
      %58 = vector.broadcast %57 : vector<1x256xf32> to vector<8x256xf32>
      %59 = arith.mulf %54, %58 : vector<8x256xf32>
      %60 = vector.broadcast %40 : vector<1x256xf32> to vector<8x256xf32>
      %61 = arith.mulf %59, %60 : vector<8x256xf32>
      %62 = vector.broadcast %41 : vector<1x256xf32> to vector<8x256xf32>
      %63 = arith.addf %61, %62 : vector<8x256xf32>
      %cst_30 = arith.constant 0.000000e+00 : f32
      %64 = vector.broadcast %cst_30 : f32 to vector<8x256xf32>
      %65 = arith.maximumf %63, %64 : vector<8x256xf32>
      %66 = arith.truncf %65 : vector<8x256xf32> to vector<8x256xbf16>
      %c0_31 = arith.constant 0 : index
      %c0_32 = arith.constant 0 : index
      %67 = vector.load %arg6[%c0_31, %c0_32] : memref<256x128xbf16, #tpu.memory_space<vmem>>, vector<256x128xbf16>
      %cst_33 = arith.constant dense<0.000000e+00> : vector<8x128xf32>
      %68 = tpu.matmul %66, %67, %cst_33 {dimension_numbers = #tpu.dot_dimension_numbers<[1], [0], [0], [1], [0, 0, 1, 1], [], []>} : vector<8x256xbf16>, vector<256x128xbf16>, vector<8x128xf32> -> vector<8x128xf32>
      %c0_34 = arith.constant 0 : index
      %c0_35 = arith.constant 0 : index
      %69 = vector.load %arg7[%c0_34, %c0_35] : memref<1x128xf32, #tpu.memory_space<vmem>>, vector<1x128xf32>
      %c0_36 = arith.constant 0 : index
      %c0_37 = arith.constant 0 : index
      %70 = vector.load %arg8[%c0_36, %c0_37] : memref<1x128xf32, #tpu.memory_space<vmem>>, vector<1x128xf32>
      %cst_38 = arith.constant dense<0.000000e+00> : vector<128xf32>
      %71 = vector.multi_reduction <add>, %68, %cst_38 [0] : vector<8x128xf32> to vector<128xf32>
      %72 = vector.shape_cast %71 : vector<128xf32> to vector<1x128xf32>
      %cst_39 = arith.constant 8.000000e+00 : f32
      %73 = vector.broadcast %cst_39 : f32 to vector<1x128xf32>
      %74 = arith.divf %72, %73 : vector<1x128xf32>
      %75 = vector.broadcast %74 : vector<1x128xf32> to vector<8x128xf32>
      %76 = arith.subf %68, %75 : vector<8x128xf32>
      %77 = arith.mulf %76, %76 : vector<8x128xf32>
      %cst_40 = arith.constant dense<0.000000e+00> : vector<128xf32>
      %78 = vector.multi_reduction <add>, %77, %cst_40 [0] : vector<8x128xf32> to vector<128xf32>
      %79 = vector.shape_cast %78 : vector<128xf32> to vector<1x128xf32>
      %cst_41 = arith.constant 8.000000e+00 : f32
      %80 = vector.broadcast %cst_41 : f32 to vector<1x128xf32>
      %81 = arith.divf %79, %80 : vector<1x128xf32>
      %82 = vector.broadcast %74 : vector<1x128xf32> to vector<8x128xf32>
      %83 = arith.subf %68, %82 : vector<8x128xf32>
      %cst_42 = arith.constant 9.99999974E-6 : f32
      %84 = vector.broadcast %cst_42 : f32 to vector<1x128xf32>
      %85 = arith.addf %81, %84 : vector<1x128xf32>
      %86 = math.rsqrt %85 : vector<1x128xf32>
      %87 = vector.broadcast %86 : vector<1x128xf32> to vector<8x128xf32>
      %88 = arith.mulf %83, %87 : vector<8x128xf32>
      %89 = vector.broadcast %69 : vector<1x128xf32> to vector<8x128xf32>
      %90 = arith.mulf %88, %89 : vector<8x128xf32>
      %91 = vector.broadcast %70 : vector<1x128xf32> to vector<8x128xf32>
      %92 = arith.addf %90, %91 : vector<8x128xf32>
      %cst_43 = arith.constant 0.000000e+00 : f32
      %93 = vector.broadcast %cst_43 : f32 to vector<8x128xf32>
      %94 = arith.maximumf %92, %93 : vector<8x128xf32>
      %95 = arith.truncf %94 : vector<8x128xf32> to vector<8x128xbf16>
      %c0_44 = arith.constant 0 : index
      %c0_45 = arith.constant 0 : index
      %96 = vector.load %arg9[%c0_44, %c0_45] : memref<128x128xbf16, #tpu.memory_space<vmem>>, vector<128x128xbf16>
      %cst_46 = arith.constant dense<0.000000e+00> : vector<8x128xf32>
      %97 = tpu.matmul %95, %96, %cst_46 {dimension_numbers = #tpu.dot_dimension_numbers<[1], [0], [0], [1], [0, 0, 1, 1], [], []>} : vector<8x128xbf16>, vector<128x128xbf16>, vector<8x128xf32> -> vector<8x128xf32>
      %c0_47 = arith.constant 0 : index
      %c0_48 = arith.constant 0 : index
      %98 = vector.load %arg10[%c0_47, %c0_48] : memref<1x128xf32, #tpu.memory_space<vmem>>, vector<1x128xf32>
      %c0_49 = arith.constant 0 : index
      %c0_50 = arith.constant 0 : index
      %99 = vector.load %arg11[%c0_49, %c0_50] : memref<1x128xf32, #tpu.memory_space<vmem>>, vector<1x128xf32>
      %cst_51 = arith.constant dense<0.000000e+00> : vector<128xf32>
      %100 = vector.multi_reduction <add>, %97, %cst_51 [0] : vector<8x128xf32> to vector<128xf32>
      %101 = vector.shape_cast %100 : vector<128xf32> to vector<1x128xf32>
      %cst_52 = arith.constant 8.000000e+00 : f32
      %102 = vector.broadcast %cst_52 : f32 to vector<1x128xf32>
      %103 = arith.divf %101, %102 : vector<1x128xf32>
      %104 = vector.broadcast %103 : vector<1x128xf32> to vector<8x128xf32>
      %105 = arith.subf %97, %104 : vector<8x128xf32>
      %106 = arith.mulf %105, %105 : vector<8x128xf32>
      %cst_53 = arith.constant dense<0.000000e+00> : vector<128xf32>
      %107 = vector.multi_reduction <add>, %106, %cst_53 [0] : vector<8x128xf32> to vector<128xf32>
      %108 = vector.shape_cast %107 : vector<128xf32> to vector<1x128xf32>
      %cst_54 = arith.constant 8.000000e+00 : f32
      %109 = vector.broadcast %cst_54 : f32 to vector<1x128xf32>
      %110 = arith.divf %108, %109 : vector<1x128xf32>
      %111 = vector.broadcast %103 : vector<1x128xf32> to vector<8x128xf32>
      %112 = arith.subf %97, %111 : vector<8x128xf32>
      %cst_55 = arith.constant 9.99999974E-6 : f32
      %113 = vector.broadcast %cst_55 : f32 to vector<1x128xf32>
      %114 = arith.addf %110, %113 : vector<1x128xf32>
      %115 = math.rsqrt %114 : vector<1x128xf32>
      %116 = vector.broadcast %115 : vector<1x128xf32> to vector<8x128xf32>
      %117 = arith.mulf %112, %116 : vector<8x128xf32>
      %118 = vector.broadcast %98 : vector<1x128xf32> to vector<8x128xf32>
      %119 = arith.mulf %117, %118 : vector<8x128xf32>
      %120 = vector.broadcast %99 : vector<1x128xf32> to vector<8x128xf32>
      %121 = arith.addf %119, %120 : vector<8x128xf32>
      %cst_56 = arith.constant 0.000000e+00 : f32
      %122 = vector.broadcast %cst_56 : f32 to vector<8x128xf32>
      %123 = arith.maximumf %121, %122 : vector<8x128xf32>
      %124 = arith.truncf %123 : vector<8x128xf32> to vector<8x128xbf16>
      %c0_57 = arith.constant 0 : index
      %c0_58 = arith.constant 0 : index
      %125 = vector.load %arg12[%c0_57, %c0_58] : memref<128x128xbf16, #tpu.memory_space<vmem>>, vector<128x128xbf16>
      %cst_59 = arith.constant dense<0.000000e+00> : vector<8x128xf32>
      %126 = tpu.matmul %124, %125, %cst_59 {dimension_numbers = #tpu.dot_dimension_numbers<[1], [0], [0], [1], [0, 0, 1, 1], [], []>} : vector<8x128xbf16>, vector<128x128xbf16>, vector<8x128xf32> -> vector<8x128xf32>
      %c0_60 = arith.constant 0 : index
      %c0_61 = arith.constant 0 : index
      %127 = vector.load %arg13[%c0_60, %c0_61] : memref<1x128xf32, #tpu.memory_space<vmem>>, vector<1x128xf32>
      %c0_62 = arith.constant 0 : index
      %c0_63 = arith.constant 0 : index
      %128 = vector.load %arg14[%c0_62, %c0_63] : memref<1x128xf32, #tpu.memory_space<vmem>>, vector<1x128xf32>
      %cst_64 = arith.constant dense<0.000000e+00> : vector<128xf32>
      %129 = vector.multi_reduction <add>, %126, %cst_64 [0] : vector<8x128xf32> to vector<128xf32>
      %130 = vector.shape_cast %129 : vector<128xf32> to vector<1x128xf32>
      %cst_65 = arith.constant 8.000000e+00 : f32
      %131 = vector.broadcast %cst_65 : f32 to vector<1x128xf32>
      %132 = arith.divf %130, %131 : vector<1x128xf32>
      %133 = vector.broadcast %132 : vector<1x128xf32> to vector<8x128xf32>
      %134 = arith.subf %126, %133 : vector<8x128xf32>
      %135 = arith.mulf %134, %134 : vector<8x128xf32>
      %cst_66 = arith.constant dense<0.000000e+00> : vector<128xf32>
      %136 = vector.multi_reduction <add>, %135, %cst_66 [0] : vector<8x128xf32> to vector<128xf32>
      %137 = vector.shape_cast %136 : vector<128xf32> to vector<1x128xf32>
      %cst_67 = arith.constant 8.000000e+00 : f32
      %138 = vector.broadcast %cst_67 : f32 to vector<1x128xf32>
      %139 = arith.divf %137, %138 : vector<1x128xf32>
      %140 = vector.broadcast %132 : vector<1x128xf32> to vector<8x128xf32>
      %141 = arith.subf %126, %140 : vector<8x128xf32>
      %cst_68 = arith.constant 9.99999974E-6 : f32
      %142 = vector.broadcast %cst_68 : f32 to vector<1x128xf32>
      %143 = arith.addf %139, %142 : vector<1x128xf32>
      %144 = math.rsqrt %143 : vector<1x128xf32>
      %145 = vector.broadcast %144 : vector<1x128xf32> to vector<8x128xf32>
      %146 = arith.mulf %141, %145 : vector<8x128xf32>
      %147 = vector.broadcast %127 : vector<1x128xf32> to vector<8x128xf32>
      %148 = arith.mulf %146, %147 : vector<8x128xf32>
      %149 = vector.broadcast %128 : vector<1x128xf32> to vector<8x128xf32>
      %150 = arith.addf %148, %149 : vector<8x128xf32>
      %cst_69 = arith.constant 0.000000e+00 : f32
      %151 = vector.broadcast %cst_69 : f32 to vector<8x128xf32>
      %152 = arith.maximumf %150, %151 : vector<8x128xf32>
      %153 = arith.truncf %152 : vector<8x128xf32> to vector<8x128xbf16>
      %c0_70 = arith.constant 0 : index
      %c0_71 = arith.constant 0 : index
      %154 = vector.load %arg15[%c0_70, %c0_71] : memref<128x256xbf16, #tpu.memory_space<vmem>>, vector<128x256xbf16>
      %cst_72 = arith.constant dense<0.000000e+00> : vector<8x256xf32>
      %155 = tpu.matmul %153, %154, %cst_72 {dimension_numbers = #tpu.dot_dimension_numbers<[1], [0], [0], [1], [0, 0, 1, 1], [], []>} : vector<8x128xbf16>, vector<128x256xbf16>, vector<8x256xf32> -> vector<8x256xf32>
      %c0_73 = arith.constant 0 : index
      %c0_74 = arith.constant 0 : index
      %156 = vector.load %arg16[%c0_73, %c0_74] : memref<1x256xf32, #tpu.memory_space<vmem>>, vector<1x256xf32>
      %c0_75 = arith.constant 0 : index
      %c0_76 = arith.constant 0 : index
      %157 = vector.load %arg17[%c0_75, %c0_76] : memref<1x256xf32, #tpu.memory_space<vmem>>, vector<1x256xf32>
      %cst_77 = arith.constant dense<0.000000e+00> : vector<256xf32>
      %158 = vector.multi_reduction <add>, %155, %cst_77 [0] : vector<8x256xf32> to vector<256xf32>
      %159 = vector.shape_cast %158 : vector<256xf32> to vector<1x256xf32>
      %cst_78 = arith.constant 8.000000e+00 : f32
      %160 = vector.broadcast %cst_78 : f32 to vector<1x256xf32>
      %161 = arith.divf %159, %160 : vector<1x256xf32>
      %162 = vector.broadcast %161 : vector<1x256xf32> to vector<8x256xf32>
      %163 = arith.subf %155, %162 : vector<8x256xf32>
      %164 = arith.mulf %163, %163 : vector<8x256xf32>
      %cst_79 = arith.constant dense<0.000000e+00> : vector<256xf32>
      %165 = vector.multi_reduction <add>, %164, %cst_79 [0] : vector<8x256xf32> to vector<256xf32>
      %166 = vector.shape_cast %165 : vector<256xf32> to vector<1x256xf32>
      %cst_80 = arith.constant 8.000000e+00 : f32
      %167 = vector.broadcast %cst_80 : f32 to vector<1x256xf32>
      %168 = arith.divf %166, %167 : vector<1x256xf32>
      %169 = vector.broadcast %161 : vector<1x256xf32> to vector<8x256xf32>
      %170 = arith.subf %155, %169 : vector<8x256xf32>
      %cst_81 = arith.constant 9.99999974E-6 : f32
      %171 = vector.broadcast %cst_81 : f32 to vector<1x256xf32>
      %172 = arith.addf %168, %171 : vector<1x256xf32>
      %173 = math.rsqrt %172 : vector<1x256xf32>
      %174 = vector.broadcast %173 : vector<1x256xf32> to vector<8x256xf32>
      %175 = arith.mulf %170, %174 : vector<8x256xf32>
      %176 = vector.broadcast %156 : vector<1x256xf32> to vector<8x256xf32>
      %177 = arith.mulf %175, %176 : vector<8x256xf32>
      %178 = vector.broadcast %157 : vector<1x256xf32> to vector<8x256xf32>
      %179 = arith.addf %177, %178 : vector<8x256xf32>
      %cst_82 = arith.constant 0.000000e+00 : f32
      %180 = vector.broadcast %cst_82 : f32 to vector<8x256xf32>
      %181 = arith.maximumf %179, %180 : vector<8x256xf32>
      %182 = arith.truncf %181 : vector<8x256xf32> to vector<8x256xbf16>
      %183 = arith.extf %182 : vector<8x256xbf16> to vector<8x256xf32>
      %c0_83 = arith.constant 0 : index
      %c0_84 = arith.constant 0 : index
      %184 = vector.load %arg22[%c0_83, %c0_84] : memref<8x256xf32, #tpu.memory_space<vmem>>, vector<8x256xf32>
      tpu.vector_store %arg22[%c0_83, %c0_84], %183 {strides = array<i32>} : memref<8x256xf32, #tpu.memory_space<vmem>>, vector<8x256xf32>,
    } else {
    }
    %c0 = arith.constant 0 : index
    %c0_1 = arith.constant 0 : index
    %3 = vector.load %arg22[%c0, %c0_1] : memref<8x256xf32, #tpu.memory_space<vmem>>, vector<8x256xf32>
    %4 = arith.truncf %3 : vector<8x256xf32> to vector<8x256xbf16>
    %c0_2 = arith.constant 0 : index
    %c0_3 = arith.constant 0 : index
    %5 = vector.load %arg18[%c0_2, %c0_3] : memref<256x1408xbf16, #tpu.memory_space<vmem>>, vector<256x1408xbf16>
    %cst = arith.constant dense<0.000000e+00> : vector<8x1408xf32>
    %6 = tpu.matmul %4, %5, %cst {dimension_numbers = #tpu.dot_dimension_numbers<[1], [0], [0], [1], [0, 0, 1, 1], [], []>} : vector<8x256xbf16>, vector<256x1408xbf16>, vector<8x1408xf32> -> vector<8x1408xf32>
    %c0_4 = arith.constant 0 : index
    %c0_5 = arith.constant 0 : index
    %7 = vector.load %arg19[%c0_4, %c0_5] : memref<1x1408xf32, #tpu.memory_space<vmem>>, vector<1x1408xf32>
    %c0_6 = arith.constant 0 : index
    %c0_7 = arith.constant 0 : index
    %8 = vector.load %arg20[%c0_6, %c0_7] : memref<1x1408xf32, #tpu.memory_space<vmem>>, vector<1x1408xf32>
    %cst_8 = arith.constant dense<0.000000e+00> : vector<1408xf32>
    %9 = vector.multi_reduction <add>, %6, %cst_8 [0] : vector<8x1408xf32> to vector<1408xf32>
    %10 = vector.shape_cast %9 : vector<1408xf32> to vector<1x1408xf32>
    %cst_9 = arith.constant 8.000000e+00 : f32
    %11 = vector.broadcast %cst_9 : f32 to vector<1x1408xf32>
    %12 = arith.divf %10, %11 : vector<1x1408xf32>
    %13 = vector.broadcast %12 : vector<1x1408xf32> to vector<8x1408xf32>
    %14 = arith.subf %6, %13 : vector<8x1408xf32>
    %15 = arith.mulf %14, %14 : vector<8x1408xf32>
    %cst_10 = arith.constant dense<0.000000e+00> : vector<1408xf32>
    %16 = vector.multi_reduction <add>, %15, %cst_10 [0] : vector<8x1408xf32> to vector<1408xf32>
    %17 = vector.shape_cast %16 : vector<1408xf32> to vector<1x1408xf32>
    %cst_11 = arith.constant 8.000000e+00 : f32
    %18 = vector.broadcast %cst_11 : f32 to vector<1x1408xf32>
    %19 = arith.divf %17, %18 : vector<1x1408xf32>
    %20 = vector.broadcast %12 : vector<1x1408xf32> to vector<8x1408xf32>
    %21 = arith.subf %6, %20 : vector<8x1408xf32>
    %cst_12 = arith.constant 9.99999974E-6 : f32
    %22 = vector.broadcast %cst_12 : f32 to vector<1x1408xf32>
    %23 = arith.addf %19, %22 : vector<1x1408xf32>
    %24 = math.rsqrt %23 : vector<1x1408xf32>
    %25 = vector.broadcast %24 : vector<1x1408xf32> to vector<8x1408xf32>
    %26 = arith.mulf %21, %25 : vector<8x1408xf32>
    %27 = vector.broadcast %7 : vector<1x1408xf32> to vector<8x1408xf32>
    %28 = arith.mulf %26, %27 : vector<8x1408xf32>
    %29 = vector.broadcast %8 : vector<1x1408xf32> to vector<8x1408xf32>
    %30 = arith.addf %28, %29 : vector<8x1408xf32>
    %31 = arith.negf %30 : vector<8x1408xf32>
    %32 = math.exp %31 : vector<8x1408xf32>
    %cst_13 = arith.constant 1.000000e+00 : f32
    %33 = vector.broadcast %cst_13 : f32 to vector<8x1408xf32>
    %34 = arith.addf %33, %32 : vector<8x1408xf32>
    %35 = arith.divf %33, %34 : vector<8x1408xf32>
    %c0_14 = arith.constant 0 : index
    %c0_15 = arith.constant 0 : index
    %36 = vector.load %arg21[%c0_14, %c0_15] : memref<8x1408xf32, #tpu.memory_space<vmem>>, vector<8x1408xf32>
    tpu.vector_store %arg21[%c0_14, %c0_15], %35 {strides = array<i32>} : memref<8x1408xf32, #tpu.memory_space<vmem>>, vector<8x1408xf32>,
    return
  }
  func.func @transform_0(%arg0: i32, %arg1: i32) -> (i32, i32) {
    %c0_i32 = arith.constant 0 : i32
    %c0_i32_0 = arith.constant 0 : i32
    %c0_i32_1 = arith.constant 0 : i32
    return %c0_i32, %c0_i32_0 : i32, i32
  }
  func.func @transform_1(%arg0: i32, %arg1: i32) -> (i32, i32) {
    %c0_i32 = arith.constant 0 : i32
    %c0_i32_0 = arith.constant 0 : i32
    %c0_i32_1 = arith.constant 0 : i32
    return %c0_i32, %c0_i32_0 : i32, i32
  }
  func.func @transform_2(%arg0: i32, %arg1: i32) -> (i32, i32) {
    %c0_i32 = arith.constant 0 : i32
    %c0_i32_0 = arith.constant 0 : i32
    %c0_i32_1 = arith.constant 0 : i32
    return %c0_i32, %c0_i32_0 : i32, i32
  }
  func.func @transform_3(%arg0: i32, %arg1: i32) -> (i32, i32) {
    %c0_i32 = arith.constant 0 : i32
    %c0_i32_0 = arith.constant 0 : i32
    %c0_i32_1 = arith.constant 0 : i32
    return %c0_i32, %c0_i32_0 : i32, i32
  }
  func.func @transform_4(%arg0: i32, %arg1: i32) -> (i32, i32) {
    %c0_i32 = arith.constant 0 : i32
    %c0_i32_0 = arith.constant 0 : i32
    %c0_i32_1 = arith.constant 0 : i32
    return %c0_i32, %c0_i32_0 : i32, i32
  }
  func.func @transform_5(%arg0: i32, %arg1: i32) -> (i32, i32) {
    %c0_i32 = arith.constant 0 : i32
    %c0_i32_0 = arith.constant 0 : i32
    %c0_i32_1 = arith.constant 0 : i32
    return %c0_i32, %c0_i32_0 : i32, i32
  }
  func.func @transform_6(%arg0: i32, %arg1: i32) -> (i32, i32) {
    %c0_i32 = arith.constant 0 : i32
    %c0_i32_0 = arith.constant 0 : i32
    %c0_i32_1 = arith.constant 0 : i32
    return %c0_i32, %c0_i32_0 : i32, i32
  }
  func.func @transform_7(%arg0: i32, %arg1: i32) -> (i32, i32) {
    %c0_i32 = arith.constant 0 : i32
    %c0_i32_0 = arith.constant 0 : i32
    %c0_i32_1 = arith.constant 0 : i32
    return %c0_i32, %c0_i32_0 : i32, i32
  }
  func.func @transform_8(%arg0: i32, %arg1: i32) -> (i32, i32) {
    %c0_i32 = arith.constant 0 : i32
    %c0_i32_0 = arith.constant 0 : i32
    %c0_i32_1 = arith.constant 0 : i32
    return %c0_i32, %c0_i32_0 : i32, i32
  }
  func.func @transform_9(%arg0: i32, %arg1: i32) -> (i32, i32) {
    %c0_i32 = arith.constant 0 : i32
    %c0_i32_0 = arith.constant 0 : i32
    %c0_i32_1 = arith.constant 0 : i32
    return %c0_i32, %c0_i32_0 : i32, i32
  }
  func.func @transform_10(%arg0: i32, %arg1: i32) -> (i32, i32) {
    %c0_i32 = arith.constant 0 : i32
    %c0_i32_0 = arith.constant 0 : i32
    %c0_i32_1 = arith.constant 0 : i32
    return %c0_i32, %c0_i32_0 : i32, i32
  }
  func.func @transform_11(%arg0: i32, %arg1: i32) -> (i32, i32) {
    %c0_i32 = arith.constant 0 : i32
    %c0_i32_0 = arith.constant 0 : i32
    %c0_i32_1 = arith.constant 0 : i32
    return %c0_i32, %c0_i32_0 : i32, i32
  }
  func.func @transform_12(%arg0: i32, %arg1: i32) -> (i32, i32) {
    %c0_i32 = arith.constant 0 : i32
    %c0_i32_0 = arith.constant 0 : i32
    %c0_i32_1 = arith.constant 0 : i32
    return %c0_i32, %c0_i32_0 : i32, i32
  }
  func.func @transform_13(%arg0: i32, %arg1: i32) -> (i32, i32) {
    %c0_i32 = arith.constant 0 : i32
    %c0_i32_0 = arith.constant 0 : i32
    %c0_i32_1 = arith.constant 0 : i32
    return %c0_i32, %c0_i32_0 : i32, i32
  }
  func.func @transform_14(%arg0: i32, %arg1: i32) -> (i32, i32) {
    %c0_i32 = arith.constant 0 : i32
    %c0_i32_0 = arith.constant 0 : i32
    %c0_i32_1 = arith.constant 0 : i32
    return %c0_i32, %c0_i32_0 : i32, i32
  }
  func.func @transform_15(%arg0: i32, %arg1: i32) -> (i32, i32) {
    %c0_i32 = arith.constant 0 : i32
    %c0_i32_0 = arith.constant 0 : i32
    %c0_i32_1 = arith.constant 0 : i32
    return %c0_i32, %c0_i32_0 : i32, i32
  }
  func.func @transform_16(%arg0: i32, %arg1: i32) -> (i32, i32) {
    %c3_i32 = arith.constant 3 : i32
    %0 = arith.muli %arg0, %c3_i32 : i32
    %1 = arith.addi %0, %arg1 : i32
    %c0_i32 = arith.constant 0 : i32
    %c0_i32_0 = arith.constant 0 : i32
    return %c0_i32, %1 : i32, i32
  }
  func.func @transform_17(%arg0: i32, %arg1: i32) -> (i32, i32) {
    %c3_i32 = arith.constant 3 : i32
    %0 = arith.muli %arg0, %c3_i32 : i32
    %1 = arith.addi %0, %arg1 : i32
    %c0_i32 = arith.constant 0 : i32
    %c0_i32_0 = arith.constant 0 : i32
    return %c0_i32, %1 : i32, i32
  }
  func.func @transform_18(%arg0: i32, %arg1: i32) -> (i32, i32) {
    %c3_i32 = arith.constant 3 : i32
    %0 = arith.muli %arg0, %c3_i32 : i32
    %1 = arith.addi %0, %arg1 : i32
    %c0_i32 = arith.constant 0 : i32
    %c0_i32_0 = arith.constant 0 : i32
    return %c0_i32, %1 : i32, i32
  }
  func.func @transform_19(%arg0: i32, %arg1: i32) -> (i32, i32) {
    %c3_i32 = arith.constant 3 : i32
    %0 = arith.muli %arg0, %c3_i32 : i32
    %1 = arith.addi %0, %arg1 : i32
    %c0_i32 = arith.constant 0 : i32
    %c0_i32_0 = arith.constant 0 : i32
    return %c0_i32, %1 : i32, i32
  }
}

</mosaic_0001>

<bundles_post_ra>
// kernel: analyser_forward.1
= control target key start
LH: loop header
LB: loop body
LE: loop exit
PB: predicated region body
PF: predicated region fallthrough
CT: control target
= control target key end

     0   :  { %s17241_s0 = inlined_call_operand.vmem [shape: bf16[8,8192], index: 0, kind: input, shape index: {}]   ;;  %s17242_s1 = inlined_call_operand.hbm [shape: bf16[8192,256], index: 1, kind: input, shape index: {}]   ;;  %s17243_s2 = inlined_call_operand.hbm [shape: f32[1,256], index: 2, kind: input, shape index: {}]   ;;  %s17244_s3 = inlined_call_operand.hbm [shape: f32[1,256], index: 3, kind: input, shape index: {}]   ;;  %s17245_s4 = inlined_call_operand.hbm [shape: bf16[256,128], index: 4, kind: input, shape index: {}]   ;;  %s17246_s5 = inlined_call_operand.hbm [shape: f32[1,128], index: 5, kind: input, shape index: {}]   ;;  %s17247_s6 = inlined_call_operand.hbm [shape: f32[1,128], index: 6, kind: input, shape index: {}]   ;;  %s17248_s7 = inlined_call_operand.hbm [shape: bf16[128,128], index: 7, kind: input, shape index: {}]   ;;  %s17249_s8 = inlined_call_operand.hbm [shape: f32[1,128], index: 8, kind: input, shape index: {}]   ;;  %s17250_s9 = inlined_call_operand.hbm [shape: f32[1,128], index: 9, kind: input, shape index: {}]   ;;  %s17251_s10 = inlined_call_operand.hbm [shape: bf16[128,128], index: 10, kind: input, shape index: {}]   ;;  %s17252_s11 = inlined_call_operand.hbm [shape: f32[1,128], index: 11, kind: input, shape index: {}]   ;;  %s17253_s12 = inlined_call_operand.hbm [shape: f32[1,128], index: 12, kind: input, shape index: {}]   ;;  %s17254_s13 = inlined_call_operand.hbm [shape: bf16[128,256], index: 13, kind: input, shape index: {}]   ;;  %s17255_s14 = inlined_call_operand.hbm [shape: f32[1,256], index: 14, kind: input, shape index: {}]   ;;  %s17256_s15 = inlined_call_operand.hbm [shape: f32[1,256], index: 15, kind: input, shape index: {}]   ;;  %s17257_s16 = inlined_call_operand.hbm [shape: bf16[256,8448], index: 16, kind: input, shape index: {}]   ;;  %s17258_s17 = inlined_call_operand.hbm [shape: f32[1,8448], index: 17, kind: input, shape index: {}]   ;;  %s17259_s18 = inlined_call_operand.hbm [shape: f32[1,8448], index: 18, kind: input, shape index: {}]   ;;  %s17260_s19 = inlined_call_operand.vmem [shape: f32[8,8448], index: 19, kind: output, shape index: {}]  }
   0x1   :  { %17300 = sst [smem:[#allocation52_spill]] %s17241_s0 }
   0x2   :  { %17301 = sst [smem:[#allocation53_spill]] %s17242_s1 }
   0x3   :  { %17302 = sst [smem:[#allocation54_spill]] %s17243_s2 }
   0x4   :  { %17303 = sst [smem:[#allocation55_spill]] %s17244_s3 }
   0x5   :  { %17304 = sst [smem:[#allocation56_spill]] %s17245_s4 }
   0x6   :  { %17305 = sst [smem:[#allocation57_spill]] %s17247_s6 }
   0x7   :  { %17306 = sst [smem:[#allocation58_spill]] %s17249_s8 }
   0x8   :  { %17307 = sst [smem:[#allocation59_spill]] %s17250_s9 }
   0x9   :  { %17308 = sst [smem:[#allocation60_spill]] %s17251_s10 }
   0xa   :  { %17309 = sst [smem:[#allocation61_spill]] %s17252_s11 }
   0xb   :  { %17310 = sst [smem:[#allocation62_spill]] %s17253_s12 }
   0xc   :  { %17311 = sst [smem:[#allocation63_spill]] %s17254_s13 }
   0xd   :  { %17312 = sst [smem:[#allocation64_spill]] %s17255_s14 }
   0xe   :  { %17313 = sst [smem:[#allocation65_spill]] %s17256_s15 }
   0xf   :  { %17314 = sst [smem:[#allocation66_spill]] %s17257_s16 }
  0x10   :  { %17315 = sst [smem:[#allocation67_spill]] %s17258_s17 }
  0x11   :  { %17316 = sst [smem:[#allocation68_spill]] %s17259_s18 }
  0x12   :  { %17317 = sst [smem:[#allocation69_spill]] %s17260_s19 }
  0x13   :  { %24 = vsyncpa [#allocation4], 0 }
  0x14   :  { %25 = vsyncpa [#allocation6], 0 }
  0x15   :  { %26 = vsyncpa [#allocation9], 0 }
  0x16   :  { %27 = vsyncpa [#allocation12], 0 }
  0x17   :  { %28 = vsyncpa [#allocation15], 0 }
  0x18   :  { %29 = vsyncpa [#allocation18], 0 }
  0x19   :  { %30 = vsyncpa [#allocation21], 0 }
  0x1a   :  { %31 = vsyncpa [#allocation24], 0 }
  0x1b   :  { %32 = vsyncpa [#allocation27], 0 }
  0x1c   :  { %34 = vsyncpa [#allocation27 + $0x1], 0 }
  0x1d   :  { %35 = vsyncpa [#allocation30], 0 }
  0x1e   :  { %37 = vsyncpa [#allocation30 + $0x1], 0  ;;  %s16052_s0 = smov 0   ;;  %s16054_s30 = smov 0  }
  0x1f   :  { %s16056_s20 = smov 0   ;;  %s16058_s21 = smov 0  }
  0x20   :  { %s16060_s1 = smov 0   ;;  %s16062_s22 = smov 0  }
  0x21   :  { %s16064_s2 = smov 0   ;;  %s16066_s23 = smov 0  }
  0x22 LB: > { %17318 = sst [smem:[#allocation41_spill]] %s15898_s30  ;;  %s15924_s24 = smov [#allocation5]   ;;  %s15922_s23 = sphi %s16066_s23, %s43_s23   ;;  %s15918_s2 = sphi %s16064_s2, %s17380_s2   ;;  %s15914_s22 = sphi %s16062_s22, %s17379_s22   ;;  %s15910_s1 = sphi %s16060_s1, %s17378_s1   ;;  %s15906_s21 = sphi %s16058_s21, %s17377_s21   ;;  %s15902_s20 = sphi %s16056_s20, %s17376_s20   ;;  %s15898_s30 = sphi %s16054_s30, %s17375_s30   ;;  %s15894_s0 = sphi %s16052_s0, %s17374_s0  }
  0x23   : > { %17319 = sst [smem:[#allocation42_spill]] %s15902_s20  ;;  %s545_s25 = sshll.u32 %s15924_s24, 4  ;;  %s546_s25 = int_to_ptr.vmem [resolvable:$true] %s545_s25 }
  0x24   : > { %17320 = sst [smem:[#allocation43_spill]] %s15906_s21  ;;  %s17265_s3 = sadd.s32 4294967295, %s15922_s23  }
  0x25   : > { %17321 = sst [smem:[#allocation44_spill]] %s15910_s1  ;;  %p11475_p0 = scmp.ge.s32.totalorder %s15922_s23, 1 }
  0x26   : > { %17322 = sst [smem:[#allocation45_spill]] %s15914_s22  ;;  %p16096_p1 = scmp.eq.s32.totalorder %s17265_s3, 0 }
  0x27   : > { %17323 = sst [smem:[#allocation46_spill]] %s15918_s2  ;;  %p516_p2 = scmp.lt.s32.totalorder %s15922_s23, 7 }
  0x28   : > { %s17324_s26 = scalar_select %p16096_p1, 1, 0 }
  0x29   : > { %p16101_p3 = pnand %p11475_p0, %p516_p2  ;;  %s15925_s28 = smov [#allocation8]  }
  0x2a   : > { %s566_s29 = sshll.u32 %s15925_s28, 4  ;;  %s15926_s3 = smov [#allocation11]   ;;  %s16107_s29 = int_to_ptr.vmem [resolvable:$true] %s566_s29 }
  0x2b   : > { %s17325_s27 = scalar_select %p16101_p3, 1, 0 }
  0x2c   : > { %p13142_p4 = pneg %p16101_p3  ;;  %s591_s19 = sshll.u32 %s15926_s3, 4  ;;  %s16115_s19 = int_to_ptr.vmem [resolvable:$true] %s591_s19 }
  0x2d   : > { %17326 = sst [smem:[#allocation47_spill]] %s17325_s27  ;;  %s17328_s18 = sld [smem:[#allocation54_spill]] }
  0x2e   : > { %p16111_p5 = pnand %p13142_p4, %p16096_p1 }
  0x30   : > { %s17327_s24 = scalar_select %p16111_p5, 1, 0 }
  0x31   : > { %p16125_p7 = pneg %p16111_p5 }
  0x33   : > { %s15310_s17 = scalar_lea.hbm %s17328_s18, 32 }
  0x34   : > { %p15311_p6 = scmp.ne.s32.totalorder %s17328_s18, %s15310_s17  ;;  %p15317_p10 = scmp.lt.u32.totalorder %s15310_s17, %s17328_s18 }
  0x35   : > { %s17329_s28 = scalar_select %p16125_p7, 1, 0 }
  0x36   : > { %p15313_p8 = pnand %p16125_p7, %p15311_p6 }
  0x38   : > { %p15314_p9 = pneg %p15313_p8 }
  0x3a   : > { %p15319_p11 = pnand %p15317_p10, %p15314_p9 }
  0x3c   : > { %15322 = shalt.err (!%p15319_p11)
}
  0x3d   : > { %s15323_s21 = scalar_lea.vmem %s546_s25, 32  ;;  %p15331_p2 = scmp.lt.s32.totalorder %s546_s25, %s546_s25 }
  0x3e   : > { %p15324_p12 = scmp.ne.s32.totalorder %s546_s25, %s15323_s21  ;;  %p15332_p4 = scmp.lt.s32.totalorder %s15323_s21, %s15323_s21 }
  0x40   : > { %p15326_p13 = pnand %p15324_p12, %p16125_p7  ;;  %p15333_p3 = por %p15332_p4, %p15331_p2 }
  0x42   : > { %p15327_p0 = pneg %p15326_p13 }
  0x44   : > { %p15334_p1 = pnand %p15333_p3, %p15327_p0 }
  0x46   : > { %15337 = shalt.err (!%p15334_p1)
}
  0x47   : > { %13148 = dma.hbm_to_vmem [thread:$0]  (!%p16111_p5), %s17328_s18, 32, %s546_s25, [#allocation6]  }
  0x48   : > { %s17330_s4 = sld [smem:[#allocation56_spill]] }
  0x4e   : > { %s15338_s27 = scalar_lea.hbm %s17330_s4, 2048 }
  0x4f   : > { %p15339_p6 = scmp.ne.s32.totalorder %s17330_s4, %s15338_s27  ;;  %p15345_p1 = scmp.lt.u32.totalorder %s15338_s27, %s17330_s4 }
  0x51   : > { %p15341_p8 = pnand %p15339_p6, %p16125_p7 }
  0x53   : > { %p15342_p9 = pneg %p15341_p8 }
  0x55   : > { %p15347_p3 = pnand %p15345_p1, %p15342_p9 }
  0x57   : > { %15350 = shalt.err (!%p15347_p3)
}
  0x58   : > { %s15351_s25 = scalar_lea.vmem %s16107_s29, 2048  ;;  %p15359_p13 = scmp.lt.s32.totalorder %s16107_s29, %s16107_s29 }
  0x59   : > { %p15352_p10 = scmp.ne.s32.totalorder %s16107_s29, %s15351_s25  ;;  %p15360_p0 = scmp.lt.s32.totalorder %s15351_s25, %s15351_s25 }
  0x5b   : > { %p15354_p11 = pnand %p15352_p10, %p16125_p7  ;;  %p15361_p2 = por %p15360_p0, %p15359_p13 }
  0x5d   : > { %p15355_p12 = pneg %p15354_p11 }
  0x5f   : > { %p15362_p4 = pnand %p15361_p2, %p15355_p12 }
  0x61   : > { %15365 = shalt.err (!%p15362_p4)
}
  0x62   : > { %s17278_s11 = smov 64   ;;  %s17280_s9 = smov 4  }
  0x63   : > { %13154 = dma.hbm_to_vmem [thread:$0]  (!%p16111_p5), %s17330_s4, 2048, %s16107_s29, [#allocation9], %s17278_s11, %s17278_s11, %s17280_s9  }
  0x64   : > { %s17331_s6 = sld [smem:[#allocation57_spill]] }
  0x6a   : > { %s15366_s27 = scalar_lea.hbm %s17331_s6, 16 }
  0x6b   : > { %p15367_p6 = scmp.ne.s32.totalorder %s17331_s6, %s15366_s27  ;;  %p15373_p1 = scmp.lt.u32.totalorder %s15366_s27, %s17331_s6 }
  0x6d   : > { %p15369_p8 = pnand %p15367_p6, %p16125_p7 }
  0x6f   : > { %p15370_p9 = pneg %p15369_p8 }
  0x71   : > { %p15375_p3 = pnand %p15373_p1, %p15370_p9 }
  0x73   : > { %15378 = shalt.err (!%p15375_p3)
}
  0x74   : > { %s15379_s29 = scalar_lea.vmem %s16115_s19, 16  ;;  %s15386_s15 = scalar_lea.vmem %s16115_s19, 32 }
  0x75   : > { %p15380_p10 = scmp.ne.s32.totalorder %s16115_s19, %s15379_s29  ;;  %p15387_p13 = scmp.lt.s32.totalorder %s16115_s19, %s16115_s19 }
  0x76   : > { %p15388_p0 = scmp.lt.s32.totalorder %s15386_s15, %s15379_s29 }
  0x77   : > { %p15382_p11 = pnand %p15380_p10, %p16125_p7 }
  0x78   : > { %p15389_p2 = por %p15388_p0, %p15387_p13 }
  0x79   : > { %p15383_p12 = pneg %p15382_p11 }
  0x7b   : > { %p15390_p4 = pnand %p15389_p2, %p15383_p12 }
  0x7d   : > { %15393 = shalt.err (!%p15390_p4)
}
  0x7e   : > { %13160 = dma.hbm_to_vmem [thread:$0]  (!%p16111_p5), %s17331_s6, 16, %s16115_s19, [#allocation12]  }
  0x7f   : > { %s15929_s13 = smov [#allocation14]   ;;  %s15930_s27 = smov [#allocation17]  }
  0x80   : > { %s615_s17 = sshll.u32 %s15929_s13, 4  ;;  %s636_s3 = sshll.u32 %s15930_s27, 4  ;;  %s616_s17 = int_to_ptr.vmem [resolvable:$true] %s615_s17  ;;  %s637_s3 = int_to_ptr.vmem [resolvable:$true] %s636_s3 }
  0x81   : > { %s17332_s8 = sld [smem:[#allocation58_spill]] }
  0x87   : > { %s15394_s29 = scalar_lea.hbm %s17332_s8, 16 }
  0x88   : > { %p15395_p6 = scmp.ne.s32.totalorder %s17332_s8, %s15394_s29  ;;  %p15401_p1 = scmp.lt.u32.totalorder %s15394_s29, %s17332_s8 }
  0x8a   : > { %p15397_p8 = pnand %p15395_p6, %p16125_p7 }
  0x8c   : > { %p15398_p9 = pneg %p15397_p8 }
  0x8e   : > { %p15403_p3 = pnand %p15401_p1, %p15398_p9 }
  0x90   : > { %15406 = shalt.err (!%p15403_p3)
}
  0x91   : > { %s15407_s19 = scalar_lea.vmem %s616_s17, 16  ;;  %s15414_s1 = scalar_lea.vmem %s616_s17, 32 }
  0x92   : > { %p15408_p10 = scmp.ne.s32.totalorder %s616_s17, %s15407_s19  ;;  %p15415_p13 = scmp.lt.s32.totalorder %s616_s17, %s616_s17 }
  0x93   : > { %p15416_p0 = scmp.lt.s32.totalorder %s15414_s1, %s15407_s19 }
  0x94   : > { %p15410_p11 = pnand %p15408_p10, %p16125_p7 }
  0x95   : > { %p15417_p2 = por %p15416_p0, %p15415_p13 }
  0x96   : > { %p15411_p12 = pneg %p15410_p11 }
  0x98   : > { %p15418_p4 = pnand %p15417_p2, %p15411_p12 }
  0x9a   : > { %15421 = shalt.err (!%p15418_p4)
}
  0x9b   : > { %13166 = dma.hbm_to_vmem [thread:$0]  (!%p16111_p5), %s17332_s8, 16, %s616_s17, [#allocation15]  }
  0x9c   : > { %s17333_s10 = sld [smem:[#allocation60_spill]] }
  0xa2   : > { %s15422_s21 = scalar_lea.hbm %s17333_s10, 1024 }
  0xa3   : > { %p15423_p6 = scmp.ne.s32.totalorder %s17333_s10, %s15422_s21  ;;  %p15429_p1 = scmp.lt.u32.totalorder %s15422_s21, %s17333_s10 }
  0xa5   : > { %p15425_p8 = pnand %p15423_p6, %p16125_p7 }
  0xa7   : > { %p15426_p9 = pneg %p15425_p8 }
  0xa9   : > { %p15431_p3 = pnand %p15429_p1, %p15426_p9 }
  0xab   : > { %15434 = shalt.err (!%p15431_p3)
}
  0xac   : > { %s15435_s19 = scalar_lea.vmem %s637_s3, 1024  ;;  %p15443_p13 = scmp.lt.s32.totalorder %s637_s3, %s637_s3 }
  0xad   : > { %p15436_p10 = scmp.ne.s32.totalorder %s637_s3, %s15435_s19  ;;  %p15444_p0 = scmp.lt.s32.totalorder %s15435_s19, %s15435_s19 }
  0xaf   : > { %p15438_p11 = pnand %p15436_p10, %p16125_p7  ;;  %p15445_p2 = por %p15444_p0, %p15443_p13 }
  0xb1   : > { %p15439_p12 = pneg %p15438_p11 }
  0xb3   : > { %p15446_p4 = pnand %p15445_p2, %p15439_p12 }
  0xb5   : > { %15449 = shalt.err (!%p15446_p4)
}
  0xb6   : > { %s17334_s17 = smov 4   ;;  %s17335_s1 = smov 64  }
  0xb7   : > { %13172 = dma.hbm_to_vmem [thread:$0]  (!%p16111_p5), %s17333_s10, 1024, %s637_s3, [#allocation18], %s17335_s1, %s17335_s1, %s17334_s17  }
  0xb8   : > { %s15931_s9 = smov [#allocation20]   ;;  %s15932_s21 = smov [#allocation23]  }
  0xb9   : > { %s661_s27 = sshll.u32 %s15931_s9, 4  ;;  %s685_s25 = sshll.u32 %s15932_s21, 4  ;;  %s662_s27 = int_to_ptr.vmem [resolvable:$true] %s661_s27  ;;  %s686_s25 = int_to_ptr.vmem [resolvable:$true] %s685_s25 }
  0xba   : > { %s17336_s12 = sld [smem:[#allocation62_spill]] }
  0xc0   : > { %s15450_s18 = scalar_lea.hbm %s17336_s12, 16 }
  0xc1   : > { %p15451_p6 = scmp.ne.s32.totalorder %s17336_s12, %s15450_s18  ;;  %p15457_p1 = scmp.lt.u32.totalorder %s15450_s18, %s17336_s12 }
  0xc3   : > { %p15453_p8 = pnand %p15451_p6, %p16125_p7 }
  0xc5   : > { %p15454_p9 = pneg %p15453_p8 }
  0xc7   : > { %p15459_p3 = pnand %p15457_p1, %p15454_p9 }
  0xc9   : > { %15462 = shalt.err (!%p15459_p3)
}
  0xca   : > { %s15463_s3 = scalar_lea.vmem %s662_s27, 16  ;;  %s15470_s13 = scalar_lea.vmem %s662_s27, 32 }
  0xcb   : > { %p15464_p10 = scmp.ne.s32.totalorder %s662_s27, %s15463_s3  ;;  %p15471_p13 = scmp.lt.s32.totalorder %s662_s27, %s662_s27 }
  0xcc   : > { %p15472_p0 = scmp.lt.s32.totalorder %s15470_s13, %s15463_s3 }
  0xcd   : > { %p15466_p11 = pnand %p15464_p10, %p16125_p7 }
  0xce   : > { %p15473_p2 = por %p15472_p0, %p15471_p13 }
  0xcf   : > { %p15467_p12 = pneg %p15466_p11 }
  0xd1   : > { %p15474_p4 = pnand %p15473_p2, %p15467_p12 }
  0xd3   : > { %15477 = shalt.err (!%p15474_p4)
}
  0xd4   : > { %13178 = dma.hbm_to_vmem [thread:$0]  (!%p16111_p5), %s17336_s12, 16, %s662_s27, [#allocation21]  }
  0xd5   : > { %s17337_s14 = sld [smem:[#allocation64_spill]] }
  0xdb   : > { %s15478_s29 = scalar_lea.hbm %s17337_s14, 32 }
  0xdc   : > { %p15479_p6 = scmp.ne.s32.totalorder %s17337_s14, %s15478_s29  ;;  %p15485_p1 = scmp.lt.u32.totalorder %s15478_s29, %s17337_s14 }
  0xde   : > { %p15481_p8 = pnand %p15479_p6, %p16125_p7 }
  0xe0   : > { %p15482_p9 = pneg %p15481_p8 }
  0xe2   : > { %p15487_p3 = pnand %p15485_p1, %p15482_p9 }
  0xe4   : > { %15490 = shalt.err (!%p15487_p3)
}
  0xe5   : > { %s15491_s3 = scalar_lea.vmem %s686_s25, 32  ;;  %p15499_p13 = scmp.lt.s32.totalorder %s686_s25, %s686_s25 }
  0xe6   : > { %p15492_p10 = scmp.ne.s32.totalorder %s686_s25, %s15491_s3  ;;  %p15500_p0 = scmp.lt.s32.totalorder %s15491_s3, %s15491_s3 }
  0xe8   : > { %p15494_p11 = pnand %p15492_p10, %p16125_p7  ;;  %p15501_p2 = por %p15500_p0, %p15499_p13 }
  0xea   : > { %p15495_p12 = pneg %p15494_p11 }
  0xec   : > { %p15502_p4 = pnand %p15501_p2, %p15495_p12 }
  0xee   : > { %15505 = shalt.err (!%p15502_p4)
}
  0xef   : > { %13184 = dma.hbm_to_vmem [thread:$0]  (!%p16111_p5), %s17337_s14, 32, %s686_s25, [#allocation24]  }
  0xf0   : > { %s52_s4 = sadd.s32 1, %s15914_s22  ;;  %s55_s9 = sadd.s32 1, %s15918_s2 }
  0xf1   : > { %p53_p6 = scmp.ge.s32.totalorder %s52_s4, 3  ;;  %s395_s6 = smul.u32 3, %s15918_s2 }
  0xf2   : > { %s402_s21 = sadd.s32 1, %s15902_s20  ;;  %p409_p8 = scmp.ne.s32.totalorder %s15902_s20, %s15898_s30 }
  0xf3   : > { %s17382_s4 = smov (%p53_p6, %s52_s4), 0  ;;  %s17384_s9 = smov (!%p53_p6, %s55_s9), %s15918_s2 }
  0xf4   : > { %17338 = sst [smem:[#allocation48_spill]] %s17382_s4  ;;  %s16274_s29 = sadd.s32 %s15914_s22, %s395_s6 }
  0xf5   : > { %p57_p9 = scmp.ge.s32.totalorder %s17384_s9, 2  ;;  %p410_p1 = scmp.eq.s32.totalorder %s15922_s23, 0 }
  0xf6   : > { %p415_p3 = scmp.ne.s32.totalorder %s15898_s30, %s15894_s0  ;;  %p13213_p10 = scmp.lt.s32.totalorder %s15922_s23, 6 }
  0xf7   : > { %s17386_s9 = smov (%p57_p9, %s17384_s9), 0  ;;  %p16284_p11 = por %p410_p1, %p409_p8 }
  0xf8   : > { %17339 = sst [smem:[#allocation49_spill]] %s17386_s9  ;;  %p17341_p12 = scmp.ne.s32.totalorder %s17324_s26, 0 }
  0xf9   : > { %s397_s18 = smul.u32 3, %s17386_s9  ;;  %s707_s19 = sand.u32 1, %s15922_s23  }
  0xfa   : > { %p16290_p13 = por %p17341_p12, %p415_p3  ;;  %s16297_s11 = sand.u32 1, %s15902_s20  }
  0xfb   : > { %s398_s0 = sadd.s32 %s397_s18, %s17382_s4  ;;  %s13071_s3 = smul.u32 1408, %s16297_s11 }
  0xfc   : > { %s17342_s15 = scalar_select %p16290_p13, 1, 0 }
  0xfd   : > { %s399_s27 = ssub.s32 %s16274_s29, %s398_s0  ;;  %s12844_s13 = smul.u32 704, %s16274_s29 }
  0xfe   : > { %17343 = sst [smem:[#allocation50_spill]] %s17342_s15  ;;  %p400_p0 = scmp.eq.s32.totalorder %s399_s27, 0 }
  0xff   : > { %s17344_s16 = sld [smem:[#allocation66_spill]]  ;;  %s711_s12 = scalar_lea.vmem [#allocation26], %s13071_s3 }
 0x100   : > { %s720_s14 = sshll.u32 %s711_s12, 4  ;;  %p16317_p2 = pnand %p13213_p10, %p16284_p11  ;;  %s16311_s14 = int_to_ptr.vmem [resolvable:$true] %s720_s14 }
 0x101   : > { %s16309_s9 = scalar_select %p400_p0, %s15902_s20, %s402_s21  }
 0x102   : > { %s17346_s18 = scalar_select %p16317_p2, 1, 0 }
 0x103   : > { %17345 = sst [smem:[#allocation51_spill]] %s16309_s9  ;;  %s16321_s8 = scalar_lea.sflag [#allocation27], %s707_s19 }
 0x104   : > { %p16327_p6 = pneg %p16317_p2 }
 0x105   : > { %s16306_s10 = scalar_lea.hbm %s17344_s16, %s12844_s13  ;;  %s15511_s25 = scalar_lea.hbm %s17344_s16, 135168 }
 0x106   : > { %s15506_s0 = scalar_lea.hbm %s16306_s10, 22528  ;;  %p15512_p1 = scmp.lt.u32.totalorder %s16306_s10, %s17344_s16 }
 0x107   : > { %p15507_p4 = scmp.ne.s32.totalorder %s16306_s10, %s15506_s0  ;;  %p15513_p3 = scmp.lt.u32.totalorder %s15511_s25, %s15506_s0 }
 0x108   : > { %s17347_s27 = scalar_select %p16327_p6, 1, 0 }
 0x109   : > { %p15509_p8 = pnand %p16327_p6, %p15507_p4  ;;  %p15514_p10 = por %p15513_p3, %p15512_p1 }
 0x10a   : > { %p15515_p11 = scmp.lt.u32.totalorder %s15506_s0, %s16306_s10 }
 0x10b   : > { %p15510_p9 = pneg %p15509_p8 }
 0x10c   : > { %p15516_p12 = por %p15515_p11, %p15514_p10 }
 0x10e   : > { %p15517_p0 = pnand %p15516_p12, %p15510_p9 }
 0x110   : > { %15520 = shalt.err (!%p15517_p0)
}
 0x111   : > { %s15521_s19 = scalar_lea.vmem %s16311_s14, 22528  ;;  %s15933_s6 = smov [#allocation26]  }
 0x112   : > { %p15522_p4 = scmp.ne.s32.totalorder %s16311_s14, %s15521_s19  ;;  %s15526_s12 = sshll.u32 %s15933_s6, 4  ;;  %s15527_s12 = int_to_ptr.vmem [resolvable:$false] %s15526_s12 }
 0x113   : > { %s15528_s21 = scalar_lea.vmem %s15527_s12, 45056  ;;  %p15529_p5 = scmp.lt.s32.totalorder %s16311_s14, %s15527_s12 }
 0x114   : > { %p15524_p8 = pnand %p15522_p4, %p16327_p6  ;;  %p15530_p7 = scmp.lt.s32.totalorder %s15528_s21, %s15521_s19 }
 0x116   : > { %p15525_p13 = pneg %p15524_p8  ;;  %p15531_p1 = por %p15530_p7, %p15529_p5 }
 0x118   : > { %p15532_p3 = pnand %p15531_p1, %p15525_p13 }
 0x11a   : > { %15535 = shalt.err (!%p15532_p3)
}
 0x11b   : > { %s15934_s0 = smov 4224   ;;  %s15935_s25 = smov 704  }
 0x11c   : > { %s15936_s3 = smov 44   ;;  %s15937_s13 = smov [#allocation3]  }
 0x11d   : > { %13191 = dma.hbm_to_vmem [thread:$0]  (!%p16317_p2), %s16306_s10, 22528, %s16311_s14, %s16321_s8, %s15934_s0, %s15935_s25, %s15936_s3  }
 0x11e   : > { %s531_s16 = sshll.u32 %s15937_s13, 4  ;;  %s17348_s12 = sld [smem:[#allocation53_spill]]  ;;  %s532_s16 = int_to_ptr.vmem [resolvable:$true] %s531_s16 }
 0x11f   : > { %p17349_p7 = scmp.ne.s32.totalorder %s17329_s28, 0 }
 0x124   : > { %s15536_s19 = scalar_lea.hbm %s17348_s12, 131072 }
 0x125   : > { %p15537_p5 = scmp.ne.s32.totalorder %s17348_s12, %s15536_s19  ;;  %p15543_p10 = scmp.lt.u32.totalorder %s15536_s19, %s17348_s12 }
 0x127   : > { %p15539_p13 = pnand %p15537_p5, %p17349_p7 }
 0x129   : > { %p15540_p9 = pneg %p15539_p13 }
 0x12b   : > { %p15545_p11 = pnand %p15543_p10, %p15540_p9 }
 0x12d   : > { %15548 = shalt.err (!%p15545_p11)
}
 0x12e   : > { %s15549_s10 = scalar_lea.vmem %s532_s16, 131072  ;;  %p15557_p8 = scmp.lt.s32.totalorder %s532_s16, %s532_s16 }
 0x12f   : > { %p15550_p12 = scmp.ne.s32.totalorder %s532_s16, %s15549_s10  ;;  %p15558_p1 = scmp.lt.s32.totalorder %s15549_s10, %s15549_s10 }
 0x131   : > { %p15552_p0 = pnand %p15550_p12, %p17349_p7  ;;  %p15559_p3 = por %p15558_p1, %p15557_p8 }
 0x133   : > { %p15553_p4 = pneg %p15552_p0 }
 0x135   : > { %p15560_p2 = pnand %p15559_p3, %p15553_p4 }
 0x137   : > { %15563 = shalt.err (!%p15560_p2)
}
 0x138   : > { %s15938_s14 = smov 128   ;;  %s15939_s2 = smov 8  }
 0x139   : > { %p17350_p5 = scmp.ne.s32.totalorder %s17327_s24, 0  ;;  %s15940_s9 = smov [#allocation7]  }
 0x13a   : > { %s556_s0 = sshll.u32 %s15940_s9, 4  ;;  %s15941_s25 = smov [#allocation10]   ;;  %s557_s0 = int_to_ptr.vmem [resolvable:$true] %s556_s0 }
 0x13b   : > { %13145 = dma.hbm_to_vmem [thread:$0]  (!%p17350_p5), %s17348_s12, 131072, %s532_s16, [#allocation4], %s15938_s14, %s15938_s14, %s15939_s2  }
 0x13c   : > { %s580_s3 = sshll.u32 %s15941_s25, 4  ;;  %s17351_s19 = sld [smem:[#allocation55_spill]]  ;;  %s581_s3 = int_to_ptr.vmem [resolvable:$true] %s580_s3 }
 0x142   : > { %s15564_s21 = scalar_lea.hbm %s17351_s19, 32 }
 0x143   : > { %p15565_p2 = scmp.ne.s32.totalorder %s17351_s19, %s15564_s21  ;;  %p15571_p10 = scmp.lt.u32.totalorder %s15564_s21, %s17351_s19 }
 0x145   : > { %p15567_p13 = pnand %p15565_p2, %p17349_p7 }
 0x147   : > { %p15568_p9 = pneg %p15567_p13 }
 0x149   : > { %p15573_p11 = pnand %p15571_p10, %p15568_p9 }
 0x14b   : > { %15576 = shalt.err (!%p15573_p11)
}
 0x14c   : > { %s15577_s16 = scalar_lea.vmem %s557_s0, 32  ;;  %p15585_p8 = scmp.lt.s32.totalorder %s557_s0, %s557_s0 }
 0x14d   : > { %p15578_p12 = scmp.ne.s32.totalorder %s557_s0, %s15577_s16  ;;  %p15586_p1 = scmp.lt.s32.totalorder %s15577_s16, %s15577_s16 }
 0x14f   : > { %p15580_p0 = pnand %p15578_p12, %p17349_p7  ;;  %p15587_p3 = por %p15586_p1, %p15585_p8 }
 0x151   : > { %p15581_p4 = pneg %p15580_p0 }
 0x153   : > { %p15588_p6 = pnand %p15587_p3, %p15581_p4 }
 0x155   : > { %15591 = shalt.err (!%p15588_p6)
}
 0x156   : > { %13151 = dma.hbm_to_vmem [thread:$0]  (!%p17350_p5), %s17351_s19, 32, %s557_s0, [#allocation6]  }
 0x157   : > { %s15592_s4 = scalar_lea.hbm %s17246_s5, 16 }
 0x158   : > { %p15593_p2 = scmp.ne.s32.totalorder %s17246_s5, %s15592_s4  ;;  %p15599_p6 = scmp.lt.u32.totalorder %s15592_s4, %s17246_s5 }
 0x15a   : > { %p15595_p13 = pnand %p15593_p2, %p17349_p7 }
 0x15c   : > { %p15596_p9 = pneg %p15595_p13 }
 0x15e   : > { %p15601_p10 = pnand %p15599_p6, %p15596_p9 }
 0x160   : > { %15604 = shalt.err (!%p15601_p10)
}
 0x161   : > { %s15605_s21 = scalar_lea.vmem %s581_s3, 16  ;;  %s15612_s0 = scalar_lea.vmem %s581_s3, 32 }
 0x162   : > { %p15606_p11 = scmp.ne.s32.totalorder %s581_s3, %s15605_s21  ;;  %p15613_p4 = scmp.lt.s32.totalorder %s581_s3, %s581_s3 }
 0x163   : > { %p15614_p8 = scmp.lt.s32.totalorder %s15612_s0, %s15605_s21 }
 0x164   : > { %p15608_p12 = pnand %p15606_p11, %p17349_p7 }
 0x165   : > { %p15615_p1 = por %p15614_p8, %p15613_p4 }
 0x166   : > { %p15609_p0 = pneg %p15608_p12 }
 0x168   : > { %p15616_p3 = pnand %p15615_p1, %p15609_p0 }
 0x16a   : > { %15619 = shalt.err (!%p15616_p3)
}
 0x16b   : > { %13157 = dma.hbm_to_vmem [thread:$0]  (!%p17350_p5), %s17246_s5, 16, %s581_s3, [#allocation9]  }
 0x16c   : > { %s15942_s20 = smov [#allocation13]   ;;  %s15943_s30 = smov [#allocation16]  }
 0x16d   : > { %s601_s22 = sshll.u32 %s15942_s20, 4  ;;  %s626_s15 = sshll.u32 %s15943_s30, 4  ;;  %s602_s22 = int_to_ptr.vmem [resolvable:$true] %s601_s22  ;;  %s627_s15 = int_to_ptr.vmem [resolvable:$true] %s626_s15 }
 0x16e   : > { %s15620_s25 = scalar_lea.hbm %s17248_s7, 1024 }
 0x16f   : > { %p15621_p2 = scmp.ne.s32.totalorder %s17248_s7, %s15620_s25  ;;  %p15627_p6 = scmp.lt.u32.totalorder %s15620_s25, %s17248_s7 }
 0x171   : > { %p15623_p13 = pnand %p15621_p2, %p17349_p7 }
 0x173   : > { %p15624_p9 = pneg %p15623_p13 }
 0x175   : > { %p15629_p10 = pnand %p15627_p6, %p15624_p9 }
 0x177   : > { %15632 = shalt.err (!%p15629_p10)
}
 0x178   : > { %s15633_s3 = scalar_lea.vmem %s602_s22, 1024  ;;  %p15641_p4 = scmp.lt.s32.totalorder %s602_s22, %s602_s22 }
 0x179   : > { %p15634_p11 = scmp.ne.s32.totalorder %s602_s22, %s15633_s3  ;;  %p15642_p8 = scmp.lt.s32.totalorder %s15633_s3, %s15633_s3 }
 0x17b   : > { %p15636_p12 = pnand %p15634_p11, %p17349_p7  ;;  %p15643_p1 = por %p15642_p8, %p15641_p4 }
 0x17d   : > { %p15637_p0 = pneg %p15636_p12 }
 0x17f   : > { %p15644_p3 = pnand %p15643_p1, %p15637_p0 }
 0x181   : > { %15647 = shalt.err (!%p15644_p3)
}
 0x182   : > { %13163 = dma.hbm_to_vmem [thread:$0]  (!%p17350_p5), %s17248_s7, 1024, %s602_s22, [#allocation12], %s17335_s1, %s17335_s1, %s17334_s17  }
 0x183   : > { %s17352_s4 = sld [smem:[#allocation59_spill]] }
 0x189   : > { %s15648_s9 = scalar_lea.hbm %s17352_s4, 16 }
 0x18a   : > { %p15649_p2 = scmp.ne.s32.totalorder %s17352_s4, %s15648_s9  ;;  %p15655_p6 = scmp.lt.u32.totalorder %s15648_s9, %s17352_s4 }
 0x18c   : > { %p15651_p13 = pnand %p15649_p2, %p17349_p7 }
 0x18e   : > { %p15652_p9 = pneg %p15651_p13 }
 0x190   : > { %p15657_p10 = pnand %p15655_p6, %p15652_p9 }
 0x192   : > { %15660 = shalt.err (!%p15657_p10)
}
 0x193   : > { %s15661_s0 = scalar_lea.vmem %s627_s15, 16  ;;  %s15668_s17 = scalar_lea.vmem %s627_s15, 32 }
 0x194   : > { %p15662_p11 = scmp.ne.s32.totalorder %s627_s15, %s15661_s0  ;;  %p15669_p4 = scmp.lt.s32.totalorder %s627_s15, %s627_s15 }
 0x195   : > { %p15670_p8 = scmp.lt.s32.totalorder %s15668_s17, %s15661_s0 }
 0x196   : > { %p15664_p12 = pnand %p15662_p11, %p17349_p7 }
 0x197   : > { %p15671_p1 = por %p15670_p8, %p15669_p4 }
 0x198   : > { %p15665_p0 = pneg %p15664_p12 }
 0x19a   : > { %p15672_p3 = pnand %p15671_p1, %p15665_p0 }
 0x19c   : > { %15675 = shalt.err (!%p15672_p3)
}
 0x19d   : > { %13169 = dma.hbm_to_vmem [thread:$0]  (!%p17350_p5), %s17352_s4, 16, %s627_s15, [#allocation15]  }
 0x19e   : > { %s15944_s3 = smov [#allocation19]   ;;  %s15945_s16 = smov [#allocation22]  }
 0x19f   : > { %s650_s10 = sshll.u32 %s15944_s3, 4  ;;  %s671_s20 = sshll.u32 %s15945_s16, 4  ;;  %s651_s10 = int_to_ptr.vmem [resolvable:$true] %s650_s10  ;;  %s672_s20 = int_to_ptr.vmem [resolvable:$true] %s671_s20 }
 0x1a0   : > { %s17353_s25 = sld [smem:[#allocation61_spill]] }
 0x1a6   : > { %s15676_s13 = scalar_lea.hbm %s17353_s25, 16 }
 0x1a7   : > { %p15677_p2 = scmp.ne.s32.totalorder %s17353_s25, %s15676_s13  ;;  %p15683_p6 = scmp.lt.u32.totalorder %s15676_s13, %s17353_s25 }
 0x1a9   : > { %p15679_p13 = pnand %p15677_p2, %p17349_p7 }
 0x1ab   : > { %p15680_p9 = pneg %p15679_p13 }
 0x1ad   : > { %p15685_p10 = pnand %p15683_p6, %p15680_p9 }
 0x1af   : > { %15688 = shalt.err (!%p15685_p10)
}
 0x1b0   : > { %s15689_s15 = scalar_lea.vmem %s651_s10, 16  ;;  %s15696_s1 = scalar_lea.vmem %s651_s10, 32 }
 0x1b1   : > { %p15690_p11 = scmp.ne.s32.totalorder %s651_s10, %s15689_s15  ;;  %p15697_p4 = scmp.lt.s32.totalorder %s651_s10, %s651_s10 }
 0x1b2   : > { %p15698_p8 = scmp.lt.s32.totalorder %s15696_s1, %s15689_s15 }
 0x1b3   : > { %p15692_p12 = pnand %p15690_p11, %p17349_p7 }
 0x1b4   : > { %p15699_p1 = por %p15698_p8, %p15697_p4 }
 0x1b5   : > { %p15693_p0 = pneg %p15692_p12 }
 0x1b7   : > { %p15700_p3 = pnand %p15699_p1, %p15693_p0 }
 0x1b9   : > { %15703 = shalt.err (!%p15700_p3)
}
 0x1ba   : > { %13175 = dma.hbm_to_vmem [thread:$0]  (!%p17350_p5), %s17353_s25, 16, %s651_s10, [#allocation18]  }
 0x1bb   : > { %s17354_s9 = sld [smem:[#allocation63_spill]] }
 0x1c1   : > { %s15704_s13 = scalar_lea.hbm %s17354_s9, 2048 }
 0x1c2   : > { %p15705_p2 = scmp.ne.s32.totalorder %s17354_s9, %s15704_s13  ;;  %p15711_p6 = scmp.lt.u32.totalorder %s15704_s13, %s17354_s9 }
 0x1c4   : > { %p15707_p13 = pnand %p15705_p2, %p17349_p7 }
 0x1c6   : > { %p15708_p9 = pneg %p15707_p13 }
 0x1c8   : > { %p15713_p10 = pnand %p15711_p6, %p15708_p9 }
 0x1ca   : > { %15716 = shalt.err (!%p15713_p10)
}
 0x1cb   : > { %s15717_s15 = scalar_lea.vmem %s672_s20, 2048  ;;  %p15725_p4 = scmp.lt.s32.totalorder %s672_s20, %s672_s20 }
 0x1cc   : > { %p15718_p11 = scmp.ne.s32.totalorder %s672_s20, %s15717_s15  ;;  %p15726_p8 = scmp.lt.s32.totalorder %s15717_s15, %s15717_s15 }
 0x1ce   : > { %p15720_p12 = pnand %p15718_p11, %p17349_p7  ;;  %p15727_p1 = por %p15726_p8, %p15725_p4 }
 0x1d0   : > { %p15721_p0 = pneg %p15720_p12 }
 0x1d2   : > { %p15728_p3 = pnand %p15727_p1, %p15721_p0 }
 0x1d4   : > { %15731 = shalt.err (!%p15728_p3)
}
 0x1d5   : > { %13181 = dma.hbm_to_vmem [thread:$0]  (!%p17350_p5), %s17354_s9, 2048, %s672_s20, [#allocation21], %s15938_s14, %s15938_s14, %s15939_s2  }
 0x1d6   : > { %s15946_s22 = smov [#allocation25]   ;;  %s13072_s16 = smul.u32 11, %s16297_s11 }
 0x1d7   : > { %s696_s3 = sshll.u32 %s15946_s22, 4  ;;  %s12845_s30 = smul.u32 176, %s16274_s29  ;;  %s697_s3 = int_to_ptr.vmem [resolvable:$true] %s696_s3 }
 0x1d8   : > { %s17355_s21 = sld [smem:[#allocation65_spill]] }
 0x1de   : > { %s17356_s17 = smov %s17355_s21  ;;  %s15732_s0 = scalar_lea.hbm %s17355_s21, 32 }
 0x1df   : > { %p15733_p2 = scmp.ne.s32.totalorder %s17356_s17, %s15732_s0  ;;  %p15739_p6 = scmp.lt.u32.totalorder %s15732_s0, %s17356_s17 }
 0x1e1   : > { %p15735_p13 = pnand %p15733_p2, %p17349_p7 }
 0x1e3   : > { %p15736_p9 = pneg %p15735_p13 }
 0x1e5   : > { %p15741_p10 = pnand %p15739_p6, %p15736_p9 }
 0x1e7   : > { %15744 = shalt.err (!%p15741_p10)
}
 0x1e8   : > { %s15745_s14 = scalar_lea.vmem %s697_s3, 32  ;;  %p15753_p4 = scmp.lt.s32.totalorder %s697_s3, %s697_s3 }
 0x1e9   : > { %p15746_p11 = scmp.ne.s32.totalorder %s697_s3, %s15745_s14  ;;  %p15754_p8 = scmp.lt.s32.totalorder %s15745_s14, %s15745_s14 }
 0x1eb   : > { %p15748_p12 = pnand %p15746_p11, %p17349_p7  ;;  %p15755_p1 = por %p15754_p8, %p15753_p4 }
 0x1ed   : > { %p15749_p0 = pneg %p15748_p12 }
 0x1ef   : > { %p15756_p3 = pnand %p15755_p1, %p15749_p0 }
 0x1f1   : > { %15759 = shalt.err (!%p15756_p3)
}
 0x1f2   : > { %13187 = dma.hbm_to_vmem [thread:$0]  (!%p17350_p5), %s17356_s17, 32, %s697_s3, [#allocation24]  }
 0x1f3   : > { %s17357_s28 = sld [smem:[#allocation67_spill]]  ;;  %s734_s6 = scalar_lea.vmem [#allocation28], %s13072_s16 }
 0x1f4   : > { %s744_s24 = sshll.u32 %s734_s6, 4  ;;  %p17358_p2 = scmp.ne.s32.totalorder %s17347_s27, 0  ;;  %s745_s24 = int_to_ptr.vmem [resolvable:$true] %s744_s24 }
 0x1f9   : > { %s16511_s13 = scalar_lea.hbm %s17357_s28, %s12845_s30  ;;  %s15765_s15 = scalar_lea.hbm %s17357_s28, 1056 }
 0x1fa   : > { %s15760_s21 = scalar_lea.hbm %s16511_s13, 176  ;;  %p15766_p5 = scmp.lt.u32.totalorder %s16511_s13, %s17357_s28 }
 0x1fb   : > { %p15761_p7 = scmp.ne.s32.totalorder %s16511_s13, %s15760_s21  ;;  %p15767_p6 = scmp.lt.u32.totalorder %s15765_s15, %s15760_s21 }
 0x1fc   : > { %p15769_p11 = scmp.lt.u32.totalorder %s15760_s21, %s16511_s13 }
 0x1fd   : > { %p15763_p13 = pnand %p15761_p7, %p17358_p2  ;;  %p15768_p10 = por %p15767_p6, %p15766_p5 }
 0x1ff   : > { %p15764_p9 = pneg %p15763_p13  ;;  %p15770_p12 = por %p15769_p11, %p15768_p10 }
 0x201   : > { %p15771_p0 = pnand %p15770_p12, %p15764_p9 }
 0x203   : > { %15774 = shalt.err (!%p15771_p0)
}
 0x204   : > { %s15775_s14 = scalar_lea.vmem %s745_s24, 176  ;;  %s15947_s2 = smov [#allocation28]  }
 0x205   : > { %p15776_p4 = scmp.ne.s32.totalorder %s745_s24, %s15775_s14  ;;  %s15780_s4 = sshll.u32 %s15947_s2, 4  ;;  %s15781_s4 = int_to_ptr.vmem [resolvable:$false] %s15780_s4 }
 0x206   : > { %s15782_s20 = scalar_lea.vmem %s15781_s4, 352  ;;  %p15783_p3 = scmp.lt.s32.totalorder %s745_s24, %s15781_s4 }
 0x207   : > { %p15778_p8 = pnand %p15776_p4, %p17358_p2  ;;  %p15784_p7 = scmp.lt.s32.totalorder %s15782_s20, %s15775_s14 }
 0x209   : > { %p15779_p1 = pneg %p15778_p8  ;;  %p15785_p13 = por %p15784_p7, %p15783_p3 }
 0x20b   : > { %p15786_p5 = pnand %p15785_p13, %p15779_p1 }
 0x20d   : > { %15789 = shalt.err (!%p15786_p5)
}
 0x20e   : > { %p17359_p6 = scmp.ne.s32.totalorder %s17346_s18, 0  ;;  %s17360_s21 = sld [smem:[#allocation68_spill]] }
 0x20f   : > { %s755_s15 = scalar_lea.vmem [#allocation29], %s13072_s16  ;;  %s752_s1 = scalar_lea.sflag [#allocation30], %s16297_s11 }
 0x210   : > { %13194 = dma.hbm_to_vmem [thread:$0]  (!%p17359_p6), %s16511_s13, 176, %s745_s24, %s16321_s8  }
 0x211   : > { %s765_s10 = sshll.u32 %s755_s15, 4  ;;  %s766_s10 = int_to_ptr.vmem [resolvable:$true] %s765_s10 }
 0x214   : > { %s17361_s3 = smov %s17360_s21  ;;  %s16538_s0 = scalar_lea.hbm %s17360_s21, %s12845_s30 }
 0x215   : > { %s15790_s14 = scalar_lea.hbm %s16538_s0, 176  ;;  %s15795_s13 = scalar_lea.hbm %s17361_s3, 1056 }
 0x216   : > { %p15791_p9 = scmp.ne.s32.totalorder %s16538_s0, %s15790_s14  ;;  %p15796_p12 = scmp.lt.u32.totalorder %s16538_s0, %s17361_s3 }
 0x217   : > { %p15797_p0 = scmp.lt.u32.totalorder %s15795_s13, %s15790_s14  ;;  %p15799_p8 = scmp.lt.u32.totalorder %s15790_s14, %s16538_s0 }
 0x218   : > { %p15793_p10 = pnand %p15791_p9, %p17358_p2 }
 0x219   : > { %p15798_p4 = por %p15797_p0, %p15796_p12 }
 0x21a   : > { %p15794_p11 = pneg %p15793_p10 }
 0x21b   : > { %p15800_p1 = por %p15799_p8, %p15798_p4 }
 0x21d   : > { %p15801_p3 = pnand %p15800_p1, %p15794_p11 }
 0x21f   : > { %15804 = shalt.err (!%p15801_p3)
}
 0x220   : > { %s15805_s11 = scalar_lea.vmem %s766_s10, 176  ;;  %s15948_s16 = smov [#allocation29]  }
 0x221   : > { %p15806_p7 = scmp.ne.s32.totalorder %s766_s10, %s15805_s11  ;;  %s15810_s2 = sshll.u32 %s15948_s16, 4  ;;  %s15811_s2 = int_to_ptr.vmem [resolvable:$false] %s15810_s2 }
 0x222   : > { %s15812_s4 = scalar_lea.vmem %s15811_s2, 352  ;;  %p15813_p9 = scmp.lt.s32.totalorder %s766_s10, %s15811_s2 }
 0x223   : > { %p15808_p13 = pnand %p15806_p7, %p17358_p2  ;;  %p15814_p10 = scmp.lt.s32.totalorder %s15812_s4, %s15805_s11 }
 0x225   : > { %p15809_p5 = pneg %p15808_p13  ;;  %p15815_p6 = por %p15814_p10, %p15813_p9 }
 0x227   : > { %p15816_p0 = pnand %p15815_p6, %p15809_p5 }
 0x229   : > { %15819 = shalt.err (!%p15816_p0)
}
 0x22a   : > { %p17362_p12 = scmp.ne.s32.totalorder %s17346_s18, 0  ;;  %s17363_s20 = sld [smem:[#allocation47_spill]] }
 0x22c   : > { %13197 = dma.hbm_to_vmem [thread:$0]  (!%p17362_p12), %s16538_s0, 176, %s766_s10, %s752_s1  }
 0x230   : > { %p17364_p11 = scmp.ne.s32.totalorder %s17363_s20, 0 }
 0x231   : > { %p17365_p4 = scmp.ne.s32.totalorder (!%p17364_p11), %s17324_s26, 0 }
 0x232   : > { %774 = sbr.rel (%p17364_p11) target bundleno = 3526 (0xdc6), region = 96 }
 0x239   : > { %15853 = dma.done.wait (%p17365_p4), [#allocation4], 131072  }
 0x23a   : > { %15855 = vsyncadd (%p17365_p4), [#allocation4], 4294836224 }
 0x23b   : > { %15857 = dma.done.wait (%p17365_p4), [#allocation6], 64  }
 0x23c   : > { %15859 = vsyncadd (%p17365_p4), [#allocation6], 4294967232 }
 0x23d   : > { %15861 = dma.done.wait (%p17365_p4), [#allocation9], 2064  }
 0x23e   : > { %15863 = vsyncadd (%p17365_p4), [#allocation9], 4294965232 }
 0x23f   : > { %15865 = dma.done.wait (%p17365_p4), [#allocation12], 1040  }
 0x240   : > { %15867 = vsyncadd (%p17365_p4), [#allocation12], 4294966256 }
 0x241   : > { %15869 = dma.done.wait (%p17365_p4), [#allocation15], 32  }
 0x242   : > { %15871 = vsyncadd (%p17365_p4), [#allocation15], 4294967264 }
 0x243   : > { %15873 = dma.done.wait (%p17365_p4), [#allocation18], 1040  }
 0x244   : > { %15875 = vsyncadd (%p17365_p4), [#allocation18], 4294966256 }
 0x245   : > { %15877 = dma.done.wait (%p17365_p4), [#allocation21], 2064  }
 0x246   : > { %15879 = vsyncadd (%p17365_p4), [#allocation21], 4294965232 }
 0x247   : > { %15881 = dma.done.wait (%p17365_p4), [#allocation24], 64  }
 0x248   : > { %15883 = vsyncadd (%p17365_p4), [#allocation24], 4294967232  ;;  %s17366_s18 = sadd.s32 4294967295, %s15922_s23   ;;  %s17367_s27 = sld [smem:[#allocation41_spill]] }
 0x249   : > { %s17368_s22 = sld [smem:[#allocation50_spill]]  ;;  %s836_s6 = sand.u32 1, %s17366_s18  }
 0x24a   : > { %s837_s15 = scalar_lea.sflag [#allocation27], %s836_s6 }
 0x24e   : > { %s838_s21 = sand.u32 1, %s17367_s27  }
 0x24f   : > { %s13074_s0 = smul.u32 1408, %s838_s21  ;;  %p17369_p2 = scmp.ne.s32.totalorder %s17368_s22, 0 }
 0x251   : > { %s16597_s10 = scalar_lea.vmem [#allocation26], %s13074_s0 }
 0x252   : > { %15885 = dma.done.wait (%p17369_p2), %s837_s15, 22704  }
 0x253   : > { %15887 = vsyncadd (%p17369_p2), %s837_s15, 4294944592  ;;  %s13075_s1 = smul.u32 11, %s838_s21  ;;  %s855_s26 = scalar_lea.sflag [#allocation30], %s838_s21 }
 0x255   : > { %s16603_s14 = scalar_lea.vmem [#allocation28], %s13075_s1  ;;  %s16605_s29 = scalar_lea.vmem [#allocation29], %s13075_s1 }
 0x256   : > { %15889 = dma.done.wait (%p17369_p2), %s855_s26, 176  }
 0x257   : > { %15891 = vsyncadd (%p17369_p2), %s855_s26, 4294967120  ;;  %s17370_s8 = sld [smem:[#allocation44_spill]]  ;;  %s17371_s13 = sld [smem:[#allocation43_spill]] }
 0x258   : > { %s17372_s20 = sld [smem:[#allocation69_spill]] }
 0x25d   : > { %s934_s30 = smul.u32 3, %s17370_s8  ;;  %p11512_p8 = scmp.ne.s32.totalorder %s17371_s13, 0 }
 0x25e   : > { %v13318_v0 = vld [vmem:[#allocation3 + $0x4] ss:$8 sps:$4 sm:$0xff] (!%p11512_p8)   ;;  %v13322_v2 = vld [vmem:[#allocation3] ss:$8 sps:$4 sm:$0xff] (!%p11512_p8)   ;;  %v13324_v4 = vld [vmem:[#allocation3 + $0x14] ss:$8 sps:$4 sm:$0xff] (!%p11512_p8)  }
 0x25f   : > { %s935_s24 = sadd.s32 %s17371_s13, %s934_s30  ;;  %v13320_v1 = vld [vmem:[#allocation3 + $0xf04] ss:$8 sps:$4 sm:$0xff] (!%p11512_p8)   ;;  %7349 = vmatprep.subr.bf16.mxu1 (!%p11512_p8), %v13318_v0  ;;  %v13323_v3 = vld [vmem:[#allocation3 + $0xf00] ss:$8 sps:$4 sm:$0xff] (!%p11512_p8)   ;;  %v13326_v5 = vld [vmem:[#allocation3 + $0xf14] ss:$8 sps:$4 sm:$0xff] (!%p11512_p8)  }
 0x260   : > { %s936_s11 = smul.u32 11, %s935_s24  ;;  %7964 = vmatprep.subr.bf16.mxu0 (!%p11512_p8), %v13320_v1  ;;  %7350 = vmatpush1.bf16.msra.mxu1 (!%p11512_p8), %v13322_v2  ;;  %v13328_v6 = vld [vmem:[#allocation3 + $0x10] ss:$8 sps:$4 sm:$0xff] (!%p11512_p8)   ;;  %v13330_v8 = vld [vmem:[#allocation3 + $0x24] ss:$8 sps:$4 sm:$0xff] (!%p11512_p8)   ;;  %s17373_s6 = sld [smem:[#allocation52_spill]] (!%p11512_p8) }
 0x261   : > { %948 = sbr.rel (%p11512_p8) target bundleno = 3042 (0xbe2), region = 172  ;;  %7965 = vmatpush1.bf16.msra.mxu0 (!%p11512_p8), %v13323_v3  ;;  %7351 = vmatprep.subr.bf16.mxu1 (!%p11512_p8), %v13324_v4  ;;  %v13329_v7 = vld [vmem:[#allocation3 + $0xf10] ss:$8 sps:$4 sm:$0xff] (!%p11512_p8)   ;;  %v13332_v9 = vld [vmem:[#allocation3 + $0xf24] ss:$8 sps:$4 sm:$0xff] (!%p11512_p8)   ;;  %vm15950_vm0 = vmmov (!%p11512_p8), 0  }
 0x262   : > { %p937_p6 = scmp.lt.s32.totalorder %s936_s11, 65  ;;  %7966 = vmatprep.subr.bf16.mxu0 (!%p11512_p8), %v13326_v5  ;;  %v13334_v10 = vld [vmem:[#allocation3 + $0x20] ss:$8 sps:$4 sm:$0xff] (!%p11512_p8)   ;;  %v13336_v12 = vld [vmem:[#allocation3 + $0x34] ss:$8 sps:$4 sm:$0xff] (!%p11512_p8)  }
 0x263   : > { %v13335_v11 = vld [vmem:[#allocation3 + $0xf20] ss:$8 sps:$4 sm:$0xff] (!%p11512_p8)   ;;  %v13338_v13 = vld [vmem:[#allocation3 + $0xf34] ss:$8 sps:$4 sm:$0xff] (!%p11512_p8)   ;;  %v13340_v14 = vld [vmem:[#allocation3 + $0x30] ss:$8 sps:$4 sm:$0xff] (!%p11512_p8)  }
 0x264   : > { %s17388_s11 = smov (!%p937_p6, %s936_s11), 65  ;;  %7352 = vmatpush1.bf16.msra.mxu1 (!%p11512_p8), %v13328_v6  ;;  %v13341_v15 = vld [vmem:[#allocation3 + $0xf30] ss:$8 sps:$4 sm:$0xff] (!%p11512_p8)   ;;  %v13342_v16 = vld [vmem:[#allocation3 + $0x44] ss:$8 sps:$4 sm:$0xff] (!%p11512_p8)  }
 0x265   : > { %s11511_s16 = sshll.u32 %s17388_s11, 3  ;;  %7967 = vmatpush1.bf16.msra.mxu0 (!%p11512_p8), %v13329_v7  ;;  %7353 = vmatprep.subr.bf16.mxu1 (!%p11512_p8), %v13330_v8  ;;  %v13344_v17 = vld [vmem:[#allocation3 + $0xf44] ss:$8 sps:$4 sm:$0xff] (!%p11512_p8)   ;;  %v13346_v18 = vld [vmem:[#allocation3 + $0x40] ss:$8 sps:$4 sm:$0xff] (!%p11512_p8)  }
 0x266   : > { %s16616_s18 = scalar_lea.vmem %s17372_s20, %s11511_s16  ;;  %7968 = vmatprep.subr.bf16.mxu0 (!%p11512_p8), %v13332_v9  ;;  %v13347_v19 = vld [vmem:[#allocation3 + $0xf40] ss:$8 sps:$4 sm:$0xff] (!%p11512_p8)   ;;  %v13348_v20 = vld [vmem:[#allocation3 + $0x54] ss:$8 sps:$4 sm:$0xff] (!%p11512_p8)   ;;  %v13352_v22 = vld [vmem:[#allocation3 + $0x50] ss:$8 sps:$4 sm:$0xff] (!%p11512_p8)  }
 0x267   : > { %v13350_v21 = vld [vmem:[#allocation3 + $0xf54] ss:$8 sps:$4 sm:$0xff] (!%p11512_p8)   ;;  %v13353_v23 = vld [vmem:[#allocation3 + $0xf50] ss:$8 sps:$4 sm:$0xff] (!%p11512_p8)   ;;  %v13354_v24 = vld [vmem:[#allocation3 + $0x64] ss:$8 sps:$4 sm:$0xff] (!%p11512_p8)  }
 0x268   : > { %7354 = vmatpush1.bf16.msra.mxu1 %v13334_v10  ;;  %v13356_v25 = vld [vmem:[#allocation3 + $0xf64] ss:$8 sps:$4 sm:$0xff]   ;;  %v13358_v26 = vld [vmem:[#allocation3 + $0x60] ss:$8 sps:$4 sm:$0xff]   ;;  %v13360_v28 = vld [vmem:[#allocation3 + $0x74] ss:$8 sps:$4 sm:$0xff]  }
 0x269   : > { %7969 = vmatpush1.bf16.msra.mxu0 %v13335_v11  ;;  %7355 = vmatprep.subr.bf16.mxu1 %v13336_v12  ;;  %v13359_v27 = vld [vmem:[#allocation3 + $0xf60] ss:$8 sps:$4 sm:$0xff]   ;;  %v13362_v29 = vld [vmem:[#allocation3 + $0xf74] ss:$8 sps:$4 sm:$0xff]   ;;  %v13364_v30 = vld [vmem:[#allocation3 + $0x70] ss:$8 sps:$4 sm:$0xff]  }
 0x26a   : > { %7970 = vmatprep.subr.bf16.mxu0 %v13338_v13  ;;  %v13365_v31 = vld [vmem:[#allocation3 + $0xf70] ss:$8 sps:$4 sm:$0xff]   ;;  %v13366_v32 = vld [vmem:[#allocation3 + $0x84] ss:$8 sps:$4 sm:$0xff]   ;;  %v13370_v34 = vld [vmem:[#allocation3 + $0x80] ss:$8 sps:$4 sm:$0xff]  }
 0x26b   : > { %v13368_v33 = vld [vmem:[#allocation3 + $0xf84] ss:$8 sps:$4 sm:$0xff]   ;;  %v13371_v35 = vld [vmem:[#allocation3 + $0xf80] ss:$8 sps:$4 sm:$0xff]   ;;  %v13372_v36 = vld [vmem:[#allocation3 + $0x94] ss:$8 sps:$4 sm:$0xff]  }
 0x26c   : > { %7356 = vmatpush1.bf16.msra.mxu1 %v13340_v14  ;;  %v13374_v37 = vld [vmem:[#allocation3 + $0xf94] ss:$8 sps:$4 sm:$0xff]   ;;  %v13376_v38 = vld [vmem:[#allocation3 + $0x90] ss:$8 sps:$4 sm:$0xff]   ;;  %v13378_v40 = vld [vmem:[#allocation3 + $0xa4] ss:$8 sps:$4 sm:$0xff]  }
 0x26d   : > { %7971 = vmatpush1.bf16.msra.mxu0 %v13341_v15  ;;  %7357 = vmatprep.subr.bf16.mxu1 %v13342_v16  ;;  %v13377_v39 = vld [vmem:[#allocation3 + $0xf90] ss:$8 sps:$4 sm:$0xff]   ;;  %v13380_v41 = vld [vmem:[#allocation3 + $0xfa4] ss:$8 sps:$4 sm:$0xff]   ;;  %v13382_v42 = vld [vmem:[#allocation3 + $0xa0] ss:$8 sps:$4 sm:$0xff]  }
 0x26e   : > { %7972 = vmatprep.subr.bf16.mxu0 %v13344_v17  ;;  %v13383_v43 = vld [vmem:[#allocation3 + $0xfa0] ss:$8 sps:$4 sm:$0xff]   ;;  %v13384_v44 = vld [vmem:[#allocation3 + $0xb4] ss:$8 sps:$4 sm:$0xff]   ;;  %v13388_v47 = vld [vmem:[#allocation3 + $0xb0] ss:$8 sps:$4 sm:$0xff]  }
 0x26f   : > { %v13386_v45 = vld [vmem:[#allocation3 + $0xfb4] ss:$8 sps:$4 sm:$0xff]   ;;  %v13389_v49 = vld [vmem:[#allocation3 + $0xfb0] ss:$8 sps:$4 sm:$0xff]   ;;  %v964_v50 = vld [vmem:[%s17373_s6 + $0x78] sm:$0xff] }
 0x270   : > { %7358 = vmatpush1.bf16.msra.mxu1 %v13346_v18  ;;  %v949_v46 = vld [vmem:[%s17373_s6] sm:$0xff]  ;;  %v13390_v51 = vld [vmem:[#allocation3 + $0xc4] ss:$8 sps:$4 sm:$0xff]   ;;  %v11544_v53 = vcombine.high %v964_v50, %v964_v50  ;;  %v13394_v54 = vld [vmem:[#allocation3 + $0xc0] ss:$8 sps:$4 sm:$0xff]   ;;  %v11543_v7 = vcombine.low %v964_v50, %v964_v50 }
 0x271   : > { %7973 = vmatpush1.bf16.msra.mxu0 %v13347_v19  ;;  %7359 = vmatprep.subr.bf16.mxu1 %v13348_v20  ;;  %v11514_v48 = vcombine.high %v949_v46, %v949_v46  ;;  %v13392_v52 = vld [vmem:[#allocation3 + $0xfc4] ss:$8 sps:$4 sm:$0xff]   ;;  %v13395_v55 = vld [vmem:[#allocation3 + $0xfc0] ss:$8 sps:$4 sm:$0xff]   ;;  %v13396_v56 = vld [vmem:[#allocation3 + $0xd4] ss:$8 sps:$4 sm:$0xff]   ;;  %v11513_v6 = vcombine.low %v949_v46, %v949_v46 }
 0x272   : > { %7974 = vmatprep.subr.bf16.mxu0 %v13350_v21  ;;  %7996 = vmatprep.mubr.bf16.mxu0 %v11544_v53  ;;  %v13398_v57 = vld [vmem:[#allocation3 + $0xfd4] ss:$8 sps:$4 sm:$0xff]   ;;  %v13400_v58 = vld [vmem:[#allocation3 + $0xd0] ss:$8 sps:$4 sm:$0xff]   ;;  %v13402_v60 = vld [vmem:[#allocation3 + $0xe4] ss:$8 sps:$4 sm:$0xff]  }
 0x273   : > { %7381 = vmatprep.mubr.bf16.mxu1 %v11514_v48  ;;  %v13401_v59 = vld [vmem:[#allocation3 + $0xfd0] ss:$8 sps:$4 sm:$0xff]   ;;  %v13404_v61 = vld [vmem:[#allocation3 + $0xfe4] ss:$8 sps:$4 sm:$0xff]   ;;  %v13406_v62 = vld [vmem:[#allocation3 + $0xe0] ss:$8 sps:$4 sm:$0xff]  }
 0x274   : > { %7360 = vmatpush1.bf16.msra.mxu1 %v13352_v22  ;;  %v13407_v63 = vld [vmem:[#allocation3 + $0xfe0] ss:$8 sps:$4 sm:$0xff]   ;;  %v13408_v0 = vld [vmem:[#allocation3 + $0xf4] ss:$8 sps:$4 sm:$0xff]   ;;  %v13412_v2 = vld [vmem:[#allocation3 + $0xf0] ss:$8 sps:$4 sm:$0xff]  }
 0x275   : > { %7975 = vmatpush1.bf16.msra.mxu0 %v13353_v23  ;;  %7361 = vmatprep.subr.bf16.mxu1 %v13354_v24  ;;  %v13410_v1 = vld [vmem:[#allocation3 + $0xff4] ss:$8 sps:$4 sm:$0xff]   ;;  %v13413_v3 = vld [vmem:[#allocation3 + $0xff0] ss:$8 sps:$4 sm:$0xff]   ;;  %v13418_v4 = vld [vmem:[#allocation3 + $0x104] ss:$8 sps:$4 sm:$0xff]  }
 0x276   : > { %7976 = vmatprep.subr.bf16.mxu0 %v13356_v25  ;;  %v13423_v5 = vld [vmem:[#allocation3 + $0x1004] ss:$8 sps:$4 sm:$0xff]   ;;  %v13416_v8 = vld [vmem:[#allocation3 + $0x100] ss:$8 sps:$4 sm:$0xff]   ;;  %v13426_v10 = vld [vmem:[#allocation3 + $0x114] ss:$8 sps:$4 sm:$0xff]  }
 0x277   : > { %v13421_v9 = vld [vmem:[#allocation3 + $0x1000] ss:$8 sps:$4 sm:$0xff]   ;;  %v13429_v11 = vld [vmem:[#allocation3 + $0x1014] ss:$8 sps:$4 sm:$0xff]   ;;  %v13424_v12 = vld [vmem:[#allocation3 + $0x110] ss:$8 sps:$4 sm:$0xff]  }
 0x278   : > { %7362 = vmatpush1.bf16.msra.mxu1 %v13358_v26  ;;  %v13427_v13 = vld [vmem:[#allocation3 + $0x1010] ss:$8 sps:$4 sm:$0xff]   ;;  %v13432_v14 = vld [vmem:[#allocation3 + $0x124] ss:$8 sps:$4 sm:$0xff]   ;;  %v13430_v16 = vld [vmem:[#allocation3 + $0x120] ss:$8 sps:$4 sm:$0xff]  }
 0x279   : > { %7977 = vmatpush1.bf16.msra.mxu0 %v13359_v27  ;;  %7363 = vmatprep.subr.bf16.mxu1 %v13360_v28  ;;  %v13435_v15 = vld [vmem:[#allocation3 + $0x1024] ss:$8 sps:$4 sm:$0xff]   ;;  %v13433_v17 = vld [vmem:[#allocation3 + $0x1020] ss:$8 sps:$4 sm:$0xff]   ;;  %v13438_v18 = vld [vmem:[#allocation3 + $0x134] ss:$8 sps:$4 sm:$0xff]  }
 0x27a   : > { %7978 = vmatprep.subr.bf16.mxu0 %v13362_v29  ;;  %v13441_v19 = vld [vmem:[#allocation3 + $0x1034] ss:$8 sps:$4 sm:$0xff]   ;;  %v13436_v20 = vld [vmem:[#allocation3 + $0x130] ss:$8 sps:$4 sm:$0xff]   ;;  %v13444_v22 = vld [vmem:[#allocation3 + $0x144] ss:$8 sps:$4 sm:$0xff]  }
 0x27b   : > { %v13439_v21 = vld [vmem:[#allocation3 + $0x1030] ss:$8 sps:$4 sm:$0xff]   ;;  %v13447_v23 = vld [vmem:[#allocation3 + $0x1044] ss:$8 sps:$4 sm:$0xff]   ;;  %v13442_v24 = vld [vmem:[#allocation3 + $0x140] ss:$8 sps:$4 sm:$0xff]  }
 0x27c   : > { %7364 = vmatpush1.bf16.msra.mxu1 %v13364_v30  ;;  %v13445_v25 = vld [vmem:[#allocation3 + $0x1040] ss:$8 sps:$4 sm:$0xff]   ;;  %v13450_v26 = vld [vmem:[#allocation3 + $0x154] ss:$8 sps:$4 sm:$0xff]   ;;  %v13448_v28 = vld [vmem:[#allocation3 + $0x150] ss:$8 sps:$4 sm:$0xff]  }
 0x27d   : > { %7979 = vmatpush1.bf16.msra.mxu0 %v13365_v31  ;;  %7365 = vmatprep.subr.bf16.mxu1 %v13366_v32  ;;  %v13453_v27 = vld [vmem:[#allocation3 + $0x1054] ss:$8 sps:$4 sm:$0xff]   ;;  %v13451_v29 = vld [vmem:[#allocation3 + $0x1050] ss:$8 sps:$4 sm:$0xff]   ;;  %v13456_v30 = vld [vmem:[#allocation3 + $0x164] ss:$8 sps:$4 sm:$0xff]  }
 0x27e   : > { %7980 = vmatprep.subr.bf16.mxu0 %v13368_v33  ;;  %v13459_v31 = vld [vmem:[#allocation3 + $0x1064] ss:$8 sps:$4 sm:$0xff]   ;;  %v16628_v32 = vld [vmem:[%s17373_s6 + $0x8] sm:$0xff]  ;;  %v13454_v33 = vld [vmem:[#allocation3 + $0x160] ss:$8 sps:$4 sm:$0xff]  }
 0x27f   : > { %v13474_v46 = vld [vmem:[#allocation3 + $0x194] ss:$8 sps:$4 sm:$0xff]   ;;  %v13472_v48 = vld [vmem:[#allocation3 + $0x190] ss:$8 sps:$4 sm:$0xff]   ;;  %v13480_v50 = vld [vmem:[#allocation3 + $0x1a4] ss:$8 sps:$4 sm:$0xff]  }
 0x280   : > { %7366 = vmatpush1.bf16.msra.mxu1 %v13370_v34  ;;  %v13457_v34 = vld [vmem:[#allocation3 + $0x1060] ss:$8 sps:$4 sm:$0xff]  }
 0x281   : > { %7981 = vmatpush1.bf16.msra.mxu0 %v13371_v35  ;;  %7367 = vmatprep.subr.bf16.mxu1 %v13372_v36  ;;  %v11516_v35 = vcombine.high %v16628_v32, %v16628_v32  ;;  %v16635_v36 = vld [vmem:[%s17373_s6 + $0x80] sm:$0xff]  ;;  %v13481_v53 = vld [vmem:[#allocation3 + $0x10a0] ss:$8 sps:$4 sm:$0xff]  }
 0x282   : > { %7982 = vmatprep.subr.bf16.mxu0 %v13374_v37  ;;  %v13462_v37 = vld [vmem:[#allocation3 + $0x174] ss:$8 sps:$4 sm:$0xff]  }
 0x284   : > { %7368 = vmatpush1.bf16.msra.mxu1 %v13376_v38  ;;  %v11546_v38 = vcombine.high %v16635_v36, %v16635_v36 }
 0x285   : > { %7983 = vmatpush1.bf16.msra.mxu0 %v13377_v39  ;;  %7369 = vmatprep.subr.bf16.mxu1 %v13378_v40  ;;  %v13465_v39 = vld [vmem:[#allocation3 + $0x1074] ss:$8 sps:$4 sm:$0xff]   ;;  %v13460_v40 = vld [vmem:[#allocation3 + $0x170] ss:$8 sps:$4 sm:$0xff]  }
 0x286   : > { %7984 = vmatprep.subr.bf16.mxu0 %v13380_v41  ;;  %v13463_v41 = vld [vmem:[#allocation3 + $0x1070] ss:$8 sps:$4 sm:$0xff]  }
 0x288   : > { %7370 = vmatpush1.bf16.msra.mxu1 %v13382_v42  ;;  %v13468_v42 = vld [vmem:[#allocation3 + $0x184] ss:$8 sps:$4 sm:$0xff]  }
 0x289   : > { %7985 = vmatpush1.bf16.msra.mxu0 %v13383_v43  ;;  %7371 = vmatprep.subr.bf16.mxu1 %v13384_v44  ;;  %v13471_v43 = vld [vmem:[#allocation3 + $0x1084] ss:$8 sps:$4 sm:$0xff]   ;;  %v13466_v44 = vld [vmem:[#allocation3 + $0x180] ss:$8 sps:$4 sm:$0xff]  }
 0x28a   : > { %7986 = vmatprep.subr.bf16.mxu0 %v13386_v45  ;;  %v13469_v45 = vld [vmem:[#allocation3 + $0x1080] ss:$8 sps:$4 sm:$0xff]  }
 0x28c   : > { %7372 = vmatpush1.bf16.msra.mxu1 %v13388_v47  ;;  %v13477_v47 = vld [vmem:[#allocation3 + $0x1094] ss:$8 sps:$4 sm:$0xff]  }
 0x28d   : > { %7987 = vmatpush1.bf16.msra.mxu0 %v13389_v49  ;;  %7373 = vmatprep.subr.bf16.mxu1 %v13390_v51  ;;  %v13475_v49 = vld [vmem:[#allocation3 + $0x1090] ss:$8 sps:$4 sm:$0xff]   ;;  %v13483_v51 = vld [vmem:[#allocation3 + $0x10a4] ss:$8 sps:$4 sm:$0xff]  }
 0x28e   : > { %7988 = vmatprep.subr.bf16.mxu0 %v13392_v52  ;;  %v13478_v52 = vld [vmem:[#allocation3 + $0x1a0] ss:$8 sps:$4 sm:$0xff]  }
 0x290   : > { %7374 = vmatpush1.bf16.msra.mxu1 %v13394_v54  ;;  %v13486_v54 = vld [vmem:[#allocation3 + $0x1b4] ss:$8 sps:$4 sm:$0xff]  }
 0x291   : > { %7989 = vmatpush1.bf16.msra.mxu0 %v13395_v55  ;;  %7375 = vmatprep.subr.bf16.mxu1 %v13396_v56  ;;  %v13489_v55 = vld [vmem:[#allocation3 + $0x10b4] ss:$8 sps:$4 sm:$0xff]   ;;  %v13484_v56 = vld [vmem:[#allocation3 + $0x1b0] ss:$8 sps:$4 sm:$0xff]  }
 0x292   : > { %7990 = vmatprep.subr.bf16.mxu0 %v13398_v57  ;;  %v13487_v57 = vld [vmem:[#allocation3 + $0x10b0] ss:$8 sps:$4 sm:$0xff]  }
 0x294   : > { %7376 = vmatpush1.bf16.msra.mxu1 %v13400_v58  ;;  %v13492_v58 = vld [vmem:[#allocation3 + $0x1c4] ss:$8 sps:$4 sm:$0xff]  }
 0x295   : > { %7991 = vmatpush1.bf16.msra.mxu0 %v13401_v59  ;;  %7377 = vmatprep.subr.bf16.mxu1 %v13402_v60  ;;  %v13495_v59 = vld [vmem:[#allocation3 + $0x10c4] ss:$8 sps:$4 sm:$0xff]   ;;  %v13490_v60 = vld [vmem:[#allocation3 + $0x1c0] ss:$8 sps:$4 sm:$0xff]  }
 0x296   : > { %7992 = vmatprep.subr.bf16.mxu0 %v13404_v61  ;;  %v13493_v61 = vld [vmem:[#allocation3 + $0x10c0] ss:$8 sps:$4 sm:$0xff]  }
 0x298   : > { %7378 = vmatpush1.bf16.msra.mxu1 %v13406_v62  ;;  %v13498_v62 = vld [vmem:[#allocation3 + $0x1d4] ss:$8 sps:$4 sm:$0xff]  }
 0x299   : > { %7993 = vmatpush1.bf16.msra.mxu0 %v13407_v63  ;;  %7379 = vmatprep.subr.bf16.mxu1 %v13408_v0  ;;  %v13501_v63 = vld [vmem:[#allocation3 + $0x10d4] ss:$8 sps:$4 sm:$0xff]   ;;  %v13496_v0 = vld [vmem:[#allocation3 + $0x1d0] ss:$8 sps:$4 sm:$0xff]  }
 0x29a   : > { %7994 = vmatprep.subr.bf16.mxu0 %v13410_v1  ;;  %v13499_v1 = vld [vmem:[#allocation3 + $0x10d0] ss:$8 sps:$4 sm:$0xff]  }
 0x29c   : > { %7380 = vmatpush1.bf16.msra.mxu1 %v13412_v2  ;;  %v13504_v2 = vld [vmem:[#allocation3 + $0x1e4] ss:$8 sps:$4 sm:$0xff]  }
 0x29d   : > { %7995 = vmatpush1.bf16.msra.mxu0 %v13413_v3  ;;  %7390 = vmatprep.subr.bf16.mxu1 %v13418_v4  ;;  %v13507_v3 = vld [vmem:[#allocation3 + $0x10e4] ss:$8 sps:$4 sm:$0xff]   ;;  %v13502_v4 = vld [vmem:[#allocation3 + $0x1e0] ss:$8 sps:$4 sm:$0xff]  }
 0x29e   : > { %8005 = vmatprep.subr.bf16.mxu0 %v13423_v5  ;;  %v13505_v5 = vld [vmem:[#allocation3 + $0x10e0] ss:$8 sps:$4 sm:$0xff]  }
 0x29f   : > { %7382 = vmatmul.mubr.bf16.vlgmr.msra.gmra.mrb[0].mxu1 %v11513_v6  ;;  %v13510_v6 = vld [vmem:[#allocation3 + $0x1f4] ss:$8 sps:$4 sm:$0xff]  }
 0x2a0   : > { %7997 = vmatmul.mubr.bf16.vlgmr.msra.gmra.mrb[0].mxu0 %v11543_v7  ;;  %7391 = vmatpush1.bf16.msra.mxu1 %v13416_v8  ;;  %v13513_v7 = vld [vmem:[#allocation3 + $0x10f4] ss:$8 sps:$4 sm:$0xff]   ;;  %v13508_v8 = vld [vmem:[#allocation3 + $0x1f0] ss:$8 sps:$4 sm:$0xff]  }
 0x2a1   : > { %8006 = vmatpush1.bf16.msra.mxu0 %v13421_v9  ;;  %7392 = vmatprep.subr.bf16.mxu1 %v13426_v10  ;;  %v13511_v9 = vld [vmem:[#allocation3 + $0x10f0] ss:$8 sps:$4 sm:$0xff]   ;;  %v13518_v10 = vld [vmem:[#allocation3 + $0x204] ss:$8 sps:$4 sm:$0xff]  }
 0x2a2   : > { %8007 = vmatprep.subr.bf16.mxu0 %v13429_v11  ;;  %7422 = vmatprep.mubr.bf16.mxu1 %v11516_v35  ;;  %v13523_v11 = vld [vmem:[#allocation3 + $0x1104] ss:$8 sps:$4 sm:$0xff]   ;;  %v13545_v35 = vld [vmem:[#allocation3 + $0x1140] ss:$8 sps:$4 sm:$0xff]  }
 0x2a3   : > { %8037 = vmatprep.mubr.bf16.mxu0 %v11546_v38  ;;  %v13548_v38 = vld [vmem:[#allocation3 + $0x250] ss:$8 sps:$4 sm:$0xff]  }
 0x2a4   : > { %7393 = vmatpush1.bf16.msra.mxu1 %v13424_v12  ;;  %v11515_v12 = vcombine.low %v16628_v32, %v16628_v32  ;;  %v13544_v32 = vld [vmem:[#allocation3 + $0x244] ss:$8 sps:$4 sm:$0xff]  }
 0x2a5   : > { %8008 = vmatpush1.bf16.msra.mxu0 %v13427_v13  ;;  %7394 = vmatprep.subr.bf16.mxu1 %v13432_v14  ;;  %v13516_v13 = vld [vmem:[#allocation3 + $0x200] ss:$8 sps:$4 sm:$0xff]   ;;  %v11545_v14 = vcombine.low %v16635_v36, %v16635_v36  ;;  %v13550_v36 = vld [vmem:[#allocation3 + $0x254] ss:$8 sps:$4 sm:$0xff]  }
 0x2a6   : > { %8009 = vmatprep.subr.bf16.mxu0 %v13435_v15  ;;  %v13521_v15 = vld [vmem:[#allocation3 + $0x1100] ss:$8 sps:$4 sm:$0xff]  }
 0x2a8   : > { %7395 = vmatpush1.bf16.msra.mxu1 %v13430_v16  ;;  %v13526_v16 = vld [vmem:[#allocation3 + $0x214] ss:$8 sps:$4 sm:$0xff]  }
 0x2a9   : > { %8010 = vmatpush1.bf16.msra.mxu0 %v13433_v17  ;;  %7396 = vmatprep.subr.bf16.mxu1 %v13438_v18  ;;  %v13529_v17 = vld [vmem:[#allocation3 + $0x1114] ss:$8 sps:$4 sm:$0xff]   ;;  %v16646_v18 = vld [vmem:[%s17373_s6 + $0x10] sm:$0xff] }
 0x2aa   : > { %8011 = vmatprep.subr.bf16.mxu0 %v13441_v19  ;;  %v11518_v19 = vcombine.high %v16646_v18, %v16646_v18 }
 0x2ac   : > { %7397 = vmatpush1.bf16.msra.mxu1 %v13436_v20  ;;  %v16653_v20 = vld [vmem:[%s17373_s6 + $0x88] sm:$0xff] }
 0x2ad   : > { %8012 = vmatpush1.bf16.msra.mxu0 %v13439_v21  ;;  %7398 = vmatprep.subr.bf16.mxu1 %v13444_v22  ;;  %v13524_v21 = vld [vmem:[#allocation3 + $0x210] ss:$8 sps:$4 sm:$0xff]  }
 0x2ae   : > { %8013 = vmatprep.subr.bf16.mxu0 %v13447_v23  ;;  %v13527_v22 = vld [vmem:[#allocation3 + $0x1110] ss:$8 sps:$4 sm:$0xff]   ;;  %v11548_v23 = vcombine.high %v16653_v20, %v16653_v20 }
 0x2b0   : > { %7399 = vmatpush1.bf16.msra.mxu1 %v13442_v24  ;;  %v13532_v24 = vld [vmem:[#allocation3 + $0x224] ss:$8 sps:$4 sm:$0xff]  }
 0x2b1   : > { %8014 = vmatpush1.bf16.msra.mxu0 %v13445_v25  ;;  %7400 = vmatprep.subr.bf16.mxu1 %v13450_v26  ;;  %v13535_v25 = vld [vmem:[#allocation3 + $0x1124] ss:$8 sps:$4 sm:$0xff]   ;;  %v13530_v26 = vld [vmem:[#allocation3 + $0x220] ss:$8 sps:$4 sm:$0xff]  }
 0x2b2   : > { %8015 = vmatprep.subr.bf16.mxu0 %v13453_v27  ;;  %v13533_v27 = vld [vmem:[#allocation3 + $0x1120] ss:$8 sps:$4 sm:$0xff]  }
 0x2b4   : > { %7401 = vmatpush1.bf16.msra.mxu1 %v13448_v28  ;;  %v13538_v28 = vld [vmem:[#allocation3 + $0x234] ss:$8 sps:$4 sm:$0xff]  }
 0x2b5   : > { %8016 = vmatpush1.bf16.msra.mxu0 %v13451_v29  ;;  %7402 = vmatprep.subr.bf16.mxu1 %v13456_v30  ;;  %v13541_v29 = vld [vmem:[#allocation3 + $0x1134] ss:$8 sps:$4 sm:$0xff]   ;;  %v13536_v30 = vld [vmem:[#allocation3 + $0x230] ss:$8 sps:$4 sm:$0xff]  }
 0x2b6   : > { %8017 = vmatprep.subr.bf16.mxu0 %v13459_v31  ;;  %v13539_v31 = vld [vmem:[#allocation3 + $0x1130] ss:$8 sps:$4 sm:$0xff]  }
 0x2b8   : > { %7403 = vmatpush1.bf16.msra.mxu1 %v13454_v33  ;;  %v13547_v33 = vld [vmem:[#allocation3 + $0x1144] ss:$8 sps:$4 sm:$0xff]  }
 0x2b9   : > { %8018 = vmatpush1.bf16.msra.mxu0 %v13457_v34  ;;  %7404 = vmatprep.subr.bf16.mxu1 %v13462_v37  ;;  %v13542_v34 = vld [vmem:[#allocation3 + $0x240] ss:$8 sps:$4 sm:$0xff]   ;;  %v13553_v37 = vld [vmem:[#allocation3 + $0x1154] ss:$8 sps:$4 sm:$0xff]  }
 0x2ba   : > { %8019 = vmatprep.subr.bf16.mxu0 %v13465_v39  ;;  %v13551_v39 = vld [vmem:[#allocation3 + $0x1150] ss:$8 sps:$4 sm:$0xff]  }
 0x2bc   : > { %7405 = vmatpush1.bf16.msra.mxu1 %v13460_v40  ;;  %v13556_v40 = vld [vmem:[#allocation3 + $0x264] ss:$8 sps:$4 sm:$0xff]  }
 0x2bd   : > { %8020 = vmatpush1.bf16.msra.mxu0 %v13463_v41  ;;  %7406 = vmatprep.subr.bf16.mxu1 %v13468_v42  ;;  %v13559_v41 = vld [vmem:[#allocation3 + $0x1164] ss:$8 sps:$4 sm:$0xff]   ;;  %v13554_v42 = vld [vmem:[#allocation3 + $0x260] ss:$8 sps:$4 sm:$0xff]  }
 0x2be   : > { %8021 = vmatprep.subr.bf16.mxu0 %v13471_v43  ;;  %v13557_v43 = vld [vmem:[#allocation3 + $0x1160] ss:$8 sps:$4 sm:$0xff]  }
 0x2c0   : > { %7407 = vmatpush1.bf16.msra.mxu1 %v13466_v44  ;;  %v13562_v44 = vld [vmem:[#allocation3 + $0x274] ss:$8 sps:$4 sm:$0xff]  }
 0x2c1   : > { %8022 = vmatpush1.bf16.msra.mxu0 %v13469_v45  ;;  %7408 = vmatprep.subr.bf16.mxu1 %v13474_v46  ;;  %v13565_v45 = vld [vmem:[#allocation3 + $0x1174] ss:$8 sps:$4 sm:$0xff]   ;;  %v13560_v46 = vld [vmem:[#allocation3 + $0x270] ss:$8 sps:$4 sm:$0xff]  }
 0x2c2   : > { %8023 = vmatprep.subr.bf16.mxu0 %v13477_v47  ;;  %v13563_v47 = vld [vmem:[#allocation3 + $0x1170] ss:$8 sps:$4 sm:$0xff]  }
 0x2c4   : > { %7409 = vmatpush1.bf16.msra.mxu1 %v13472_v48  ;;  %v13568_v48 = vld [vmem:[#allocation3 + $0x284] ss:$8 sps:$4 sm:$0xff]  }
 0x2c5   : > { %8024 = vmatpush1.bf16.msra.mxu0 %v13475_v49  ;;  %7410 = vmatprep.subr.bf16.mxu1 %v13480_v50  ;;  %v13571_v49 = vld [vmem:[#allocation3 + $0x1184] ss:$8 sps:$4 sm:$0xff]   ;;  %v13566_v50 = vld [vmem:[#allocation3 + $0x280] ss:$8 sps:$4 sm:$0xff]  }
 0x2c6   : > { %8025 = vmatprep.subr.bf16.mxu0 %v13483_v51  ;;  %v13569_v51 = vld [vmem:[#allocation3 + $0x1180] ss:$8 sps:$4 sm:$0xff]  }
 0x2c8   : > { %7411 = vmatpush1.bf16.msra.mxu1 %v13478_v52  ;;  %v13574_v52 = vld [vmem:[#allocation3 + $0x294] ss:$8 sps:$4 sm:$0xff]  }
 0x2c9   : > { %8026 = vmatpush1.bf16.msra.mxu0 %v13481_v53  ;;  %7412 = vmatprep.subr.bf16.mxu1 %v13486_v54  ;;  %v13577_v53 = vld [vmem:[#allocation3 + $0x1194] ss:$8 sps:$4 sm:$0xff]   ;;  %v13572_v54 = vld [vmem:[#allocation3 + $0x290] ss:$8 sps:$4 sm:$0xff]  }
 0x2ca   : > { %8027 = vmatprep.subr.bf16.mxu0 %v13489_v55  ;;  %v13575_v55 = vld [vmem:[#allocation3 + $0x1190] ss:$8 sps:$4 sm:$0xff]  }
 0x2cc   : > { %7413 = vmatpush1.bf16.msra.mxu1 %v13484_v56  ;;  %v13580_v56 = vld [vmem:[#allocation3 + $0x2a4] ss:$8 sps:$4 sm:$0xff]  }
 0x2cd   : > { %8028 = vmatpush1.bf16.msra.mxu0 %v13487_v57  ;;  %7414 = vmatprep.subr.bf16.mxu1 %v13492_v58  ;;  %v13583_v57 = vld [vmem:[#allocation3 + $0x11a4] ss:$8 sps:$4 sm:$0xff]   ;;  %v13578_v58 = vld [vmem:[#allocation3 + $0x2a0] ss:$8 sps:$4 sm:$0xff]  }
 0x2ce   : > { %8029 = vmatprep.subr.bf16.mxu0 %v13495_v59  ;;  %v13581_v59 = vld [vmem:[#allocation3 + $0x11a0] ss:$8 sps:$4 sm:$0xff]  }
 0x2d0   : > { %7415 = vmatpush1.bf16.msra.mxu1 %v13490_v60  ;;  %v13586_v60 = vld [vmem:[#allocation3 + $0x2b4] ss:$8 sps:$4 sm:$0xff]  }
 0x2d1   : > { %8030 = vmatpush1.bf16.msra.mxu0 %v13493_v61  ;;  %7416 = vmatprep.subr.bf16.mxu1 %v13498_v62  ;;  %v13589_v61 = vld [vmem:[#allocation3 + $0x11b4] ss:$8 sps:$4 sm:$0xff]   ;;  %v13584_v62 = vld [vmem:[#allocation3 + $0x2b0] ss:$8 sps:$4 sm:$0xff]  }
 0x2d2   : > { %8031 = vmatprep.subr.bf16.mxu0 %v13501_v63  ;;  %v13587_v63 = vld [vmem:[#allocation3 + $0x11b0] ss:$8 sps:$4 sm:$0xff]  }
 0x2d4   : > { %7417 = vmatpush1.bf16.msra.mxu1 %v13496_v0  ;;  %v13592_v0 = vld [vmem:[#allocation3 + $0x2c4] ss:$8 sps:$4 sm:$0xff]  }
 0x2d5   : > { %8032 = vmatpush1.bf16.msra.mxu0 %v13499_v1  ;;  %7418 = vmatprep.subr.bf16.mxu1 %v13504_v2  ;;  %v13595_v1 = vld [vmem:[#allocation3 + $0x11c4] ss:$8 sps:$4 sm:$0xff]   ;;  %v13590_v2 = vld [vmem:[#allocation3 + $0x2c0] ss:$8 sps:$4 sm:$0xff]  }
 0x2d6   : > { %8033 = vmatprep.subr.bf16.mxu0 %v13507_v3  ;;  %v13593_v3 = vld [vmem:[#allocation3 + $0x11c0] ss:$8 sps:$4 sm:$0xff]  }
 0x2d8   : > { %7419 = vmatpush1.bf16.msra.mxu1 %v13502_v4  ;;  %v13598_v4 = vld [vmem:[#allocation3 + $0x2d4] ss:$8 sps:$4 sm:$0xff]  }
 0x2d9   : > { %8034 = vmatpush1.bf16.msra.mxu0 %v13505_v5  ;;  %7420 = vmatprep.subr.bf16.mxu1 %v13510_v6  ;;  %v13601_v5 = vld [vmem:[#allocation3 + $0x11d4] ss:$8 sps:$4 sm:$0xff]   ;;  %v13596_v6 = vld [vmem:[#allocation3 + $0x2d0] ss:$8 sps:$4 sm:$0xff]  }
 0x2da   : > { %8035 = vmatprep.subr.bf16.mxu0 %v13513_v7  ;;  %v13599_v7 = vld [vmem:[#allocation3 + $0x11d0] ss:$8 sps:$4 sm:$0xff]  }
 0x2dc   : > { %7421 = vmatpush1.bf16.msra.mxu1 %v13508_v8  ;;  %v13604_v8 = vld [vmem:[#allocation3 + $0x2e4] ss:$8 sps:$4 sm:$0xff]  }
 0x2dd   : > { %8036 = vmatpush1.bf16.msra.mxu0 %v13511_v9  ;;  %7431 = vmatprep.subr.bf16.mxu1 %v13518_v10  ;;  %v13607_v9 = vld [vmem:[#allocation3 + $0x11e4] ss:$8 sps:$4 sm:$0xff]   ;;  %v13602_v10 = vld [vmem:[#allocation3 + $0x2e0] ss:$8 sps:$4 sm:$0xff]  }
 0x2de   : > { %8046 = vmatprep.subr.bf16.mxu0 %v13523_v11  ;;  %v13605_v11 = vld [vmem:[#allocation3 + $0x11e0] ss:$8 sps:$4 sm:$0xff]  }
 0x2df   : > { %7423 = vmatmul.mubr.bf16.vlgmr.msra.gmra.mrb[0].mxu1 %v11515_v12  ;;  %v13610_v12 = vld [vmem:[#allocation3 + $0x2f4] ss:$8 sps:$4 sm:$0xff]  }
 0x2e0   : > { %8038 = vmatmul.mubr.bf16.vlgmr.msra.gmra.mrb[0].mxu0 %v11545_v14  ;;  %7432 = vmatpush1.bf16.msra.mxu1 %v13516_v13  ;;  %v13613_v13 = vld [vmem:[#allocation3 + $0x11f4] ss:$8 sps:$4 sm:$0xff]   ;;  %v13608_v14 = vld [vmem:[#allocation3 + $0x2f0] ss:$8 sps:$4 sm:$0xff]  }
 0x2e1   : > { %8047 = vmatpush1.bf16.msra.mxu0 %v13521_v15  ;;  %7433 = vmatprep.subr.bf16.mxu1 %v13526_v16  ;;  %v13611_v15 = vld [vmem:[#allocation3 + $0x11f0] ss:$8 sps:$4 sm:$0xff]   ;;  %v13618_v16 = vld [vmem:[#allocation3 + $0x304] ss:$8 sps:$4 sm:$0xff]  }
 0x2e2   : > { %8048 = vmatprep.subr.bf16.mxu0 %v13529_v17  ;;  %7463 = vmatprep.mubr.bf16.mxu1 %v11518_v19  ;;  %v13623_v17 = vld [vmem:[#allocation3 + $0x1204] ss:$8 sps:$4 sm:$0xff]   ;;  %v13616_v19 = vld [vmem:[#allocation3 + $0x300] ss:$8 sps:$4 sm:$0xff]  }
 0x2e3   : > { %8078 = vmatprep.mubr.bf16.mxu0 %v11548_v23  ;;  %v11547_v23 = vcombine.low %v16653_v20, %v16653_v20 }
 0x2e4   : > { %7434 = vmatpush1.bf16.msra.mxu1 %v13524_v21  ;;  %v13621_v21 = vld [vmem:[#allocation3 + $0x1200] ss:$8 sps:$4 sm:$0xff]  }
 0x2e5   : > { %8049 = vmatpush1.bf16.msra.mxu0 %v13527_v22  ;;  %7435 = vmatprep.subr.bf16.mxu1 %v13532_v24  ;;  %v11517_v22 = vcombine.low %v16646_v18, %v16646_v18  ;;  %v16664_v24 = vld [vmem:[%s17373_s6 + $0x18] sm:$0xff] }
 0x2e6   : > { %8050 = vmatprep.subr.bf16.mxu0 %v13535_v25  ;;  %v16669_v25 = vld [vmem:[%s17373_s6 + $0x90] sm:$0xff]  ;;  %v11520_v18 = vcombine.high %v16664_v24, %v16664_v24 }
 0x2e7   : > { %v11550_v20 = vcombine.high %v16669_v25, %v16669_v25 }
 0x2e8   : > { %7436 = vmatpush1.bf16.msra.mxu1 %v13530_v26  ;;  %v13626_v26 = vld [vmem:[#allocation3 + $0x314] ss:$8 sps:$4 sm:$0xff]  }
 0x2e9   : > { %8051 = vmatpush1.bf16.msra.mxu0 %v13533_v27  ;;  %7437 = vmatprep.subr.bf16.mxu1 %v13538_v28  ;;  %v13629_v27 = vld [vmem:[#allocation3 + $0x1214] ss:$8 sps:$4 sm:$0xff]   ;;  %v13624_v28 = vld [vmem:[#allocation3 + $0x310] ss:$8 sps:$4 sm:$0xff]  }
 0x2ea   : > { %8052 = vmatprep.subr.bf16.mxu0 %v13541_v29  ;;  %v13627_v29 = vld [vmem:[#allocation3 + $0x1210] ss:$8 sps:$4 sm:$0xff]  }
 0x2ec   : > { %7438 = vmatpush1.bf16.msra.mxu1 %v13536_v30  ;;  %v13632_v30 = vld [vmem:[#allocation3 + $0x324] ss:$8 sps:$4 sm:$0xff]  }
 0x2ed   : > { %8053 = vmatpush1.bf16.msra.mxu0 %v13539_v31  ;;  %7439 = vmatprep.subr.bf16.mxu1 %v13544_v32  ;;  %v13635_v31 = vld [vmem:[#allocation3 + $0x1224] ss:$8 sps:$4 sm:$0xff]   ;;  %v13630_v32 = vld [vmem:[#allocation3 + $0x320] ss:$8 sps:$4 sm:$0xff]  }
 0x2ee   : > { %8054 = vmatprep.subr.bf16.mxu0 %v13547_v33  ;;  %v13633_v33 = vld [vmem:[#allocation3 + $0x1220] ss:$8 sps:$4 sm:$0xff]  }
 0x2f0   : > { %7440 = vmatpush1.bf16.msra.mxu1 %v13542_v34  ;;  %v13638_v34 = vld [vmem:[#allocation3 + $0x334] ss:$8 sps:$4 sm:$0xff]  }
 0x2f1   : > { %8055 = vmatpush1.bf16.msra.mxu0 %v13545_v35  ;;  %7441 = vmatprep.subr.bf16.mxu1 %v13550_v36  ;;  %v13641_v35 = vld [vmem:[#allocation3 + $0x1234] ss:$8 sps:$4 sm:$0xff]   ;;  %v13636_v36 = vld [vmem:[#allocation3 + $0x330] ss:$8 sps:$4 sm:$0xff]  }
 0x2f2   : > { %8056 = vmatprep.subr.bf16.mxu0 %v13553_v37  ;;  %v13639_v37 = vld [vmem:[#allocation3 + $0x1230] ss:$8 sps:$4 sm:$0xff]  }
 0x2f4   : > { %7442 = vmatpush1.bf16.msra.mxu1 %v13548_v38  ;;  %v13644_v38 = vld [vmem:[#allocation3 + $0x344] ss:$8 sps:$4 sm:$0xff]  }
 0x2f5   : > { %8057 = vmatpush1.bf16.msra.mxu0 %v13551_v39  ;;  %7443 = vmatprep.subr.bf16.mxu1 %v13556_v40  ;;  %v13647_v39 = vld [vmem:[#allocation3 + $0x1244] ss:$8 sps:$4 sm:$0xff]   ;;  %v13642_v40 = vld [vmem:[#allocation3 + $0x340] ss:$8 sps:$4 sm:$0xff]  }
 0x2f6   : > { %8058 = vmatprep.subr.bf16.mxu0 %v13559_v41  ;;  %v13645_v41 = vld [vmem:[#allocation3 + $0x1240] ss:$8 sps:$4 sm:$0xff]  }
 0x2f8   : > { %7444 = vmatpush1.bf16.msra.mxu1 %v13554_v42  ;;  %v13650_v42 = vld [vmem:[#allocation3 + $0x354] ss:$8 sps:$4 sm:$0xff]  }
 0x2f9   : > { %8059 = vmatpush1.bf16.msra.mxu0 %v13557_v43  ;;  %7445 = vmatprep.subr.bf16.mxu1 %v13562_v44  ;;  %v13653_v43 = vld [vmem:[#allocation3 + $0x1254] ss:$8 sps:$4 sm:$0xff]   ;;  %v13648_v44 = vld [vmem:[#allocation3 + $0x350] ss:$8 sps:$4 sm:$0xff]  }
 0x2fa   : > { %8060 = vmatprep.subr.bf16.mxu0 %v13565_v45  ;;  %v13651_v45 = vld [vmem:[#allocation3 + $0x1250] ss:$8 sps:$4 sm:$0xff]  }
 0x2fc   : > { %7446 = vmatpush1.bf16.msra.mxu1 %v13560_v46  ;;  %v13656_v46 = vld [vmem:[#allocation3 + $0x364] ss:$8 sps:$4 sm:$0xff]  }
 0x2fd   : > { %8061 = vmatpush1.bf16.msra.mxu0 %v13563_v47  ;;  %7447 = vmatprep.subr.bf16.mxu1 %v13568_v48  ;;  %v13659_v47 = vld [vmem:[#allocation3 + $0x1264] ss:$8 sps:$4 sm:$0xff]   ;;  %v13654_v48 = vld [vmem:[#allocation3 + $0x360] ss:$8 sps:$4 sm:$0xff]  }
 0x2fe   : > { %8062 = vmatprep.subr.bf16.mxu0 %v13571_v49  ;;  %v13657_v49 = vld [vmem:[#allocation3 + $0x1260] ss:$8 sps:$4 sm:$0xff]  }
 0x300   : > { %7448 = vmatpush1.bf16.msra.mxu1 %v13566_v50  ;;  %v13662_v50 = vld [vmem:[#allocation3 + $0x374] ss:$8 sps:$4 sm:$0xff]  }
 0x301   : > { %8063 = vmatpush1.bf16.msra.mxu0 %v13569_v51  ;;  %7449 = vmatprep.subr.bf16.mxu1 %v13574_v52  ;;  %v13665_v51 = vld [vmem:[#allocation3 + $0x1274] ss:$8 sps:$4 sm:$0xff]   ;;  %v13660_v52 = vld [vmem:[#allocation3 + $0x370] ss:$8 sps:$4 sm:$0xff]  }
 0x302   : > { %8064 = vmatprep.subr.bf16.mxu0 %v13577_v53  ;;  %v13663_v53 = vld [vmem:[#allocation3 + $0x1270] ss:$8 sps:$4 sm:$0xff]  }
 0x304   : > { %7450 = vmatpush1.bf16.msra.mxu1 %v13572_v54  ;;  %v13668_v54 = vld [vmem:[#allocation3 + $0x384] ss:$8 sps:$4 sm:$0xff]  }
 0x305   : > { %8065 = vmatpush1.bf16.msra.mxu0 %v13575_v55  ;;  %7451 = vmatprep.subr.bf16.mxu1 %v13580_v56  ;;  %v13671_v55 = vld [vmem:[#allocation3 + $0x1284] ss:$8 sps:$4 sm:$0xff]   ;;  %v13666_v56 = vld [vmem:[#allocation3 + $0x380] ss:$8 sps:$4 sm:$0xff]  }
 0x306   : > { %8066 = vmatprep.subr.bf16.mxu0 %v13583_v57  ;;  %v13669_v57 = vld [vmem:[#allocation3 + $0x1280] ss:$8 sps:$4 sm:$0xff]  }
 0x308   : > { %7452 = vmatpush1.bf16.msra.mxu1 %v13578_v58  ;;  %v13674_v58 = vld [vmem:[#allocation3 + $0x394] ss:$8 sps:$4 sm:$0xff]  }
 0x309   : > { %8067 = vmatpush1.bf16.msra.mxu0 %v13581_v59  ;;  %7453 = vmatprep.subr.bf16.mxu1 %v13586_v60  ;;  %v13677_v59 = vld [vmem:[#allocation3 + $0x1294] ss:$8 sps:$4 sm:$0xff]   ;;  %v13672_v60 = vld [vmem:[#allocation3 + $0x390] ss:$8 sps:$4 sm:$0xff]  }
 0x30a   : > { %8068 = vmatprep.subr.bf16.mxu0 %v13589_v61  ;;  %v13675_v61 = vld [vmem:[#allocation3 + $0x1290] ss:$8 sps:$4 sm:$0xff]  }
 0x30c   : > { %7454 = vmatpush1.bf16.msra.mxu1 %v13584_v62  ;;  %v13680_v62 = vld [vmem:[#allocation3 + $0x3a4] ss:$8 sps:$4 sm:$0xff]  }
 0x30d   : > { %8069 = vmatpush1.bf16.msra.mxu0 %v13587_v63  ;;  %7455 = vmatprep.subr.bf16.mxu1 %v13592_v0  ;;  %v13683_v63 = vld [vmem:[#allocation3 + $0x12a4] ss:$8 sps:$4 sm:$0xff]   ;;  %v13678_v0 = vld [vmem:[#allocation3 + $0x3a0] ss:$8 sps:$4 sm:$0xff]  }
 0x30e   : > { %8070 = vmatprep.subr.bf16.mxu0 %v13595_v1  ;;  %v13681_v1 = vld [vmem:[#allocation3 + $0x12a0] ss:$8 sps:$4 sm:$0xff]  }
 0x310   : > { %7456 = vmatpush1.bf16.msra.mxu1 %v13590_v2  ;;  %v13686_v2 = vld [vmem:[#allocation3 + $0x3b4] ss:$8 sps:$4 sm:$0xff]  }
 0x311   : > { %8071 = vmatpush1.bf16.msra.mxu0 %v13593_v3  ;;  %7457 = vmatprep.subr.bf16.mxu1 %v13598_v4  ;;  %v13689_v3 = vld [vmem:[#allocation3 + $0x12b4] ss:$8 sps:$4 sm:$0xff]   ;;  %v13684_v4 = vld [vmem:[#allocation3 + $0x3b0] ss:$8 sps:$4 sm:$0xff]  }
 0x312   : > { %8072 = vmatprep.subr.bf16.mxu0 %v13601_v5  ;;  %v13687_v5 = vld [vmem:[#allocation3 + $0x12b0] ss:$8 sps:$4 sm:$0xff]  }
 0x314   : > { %7458 = vmatpush1.bf16.msra.mxu1 %v13596_v6  ;;  %v13692_v6 = vld [vmem:[#allocation3 + $0x3c4] ss:$8 sps:$4 sm:$0xff]  }
 0x315   : > { %8073 = vmatpush1.bf16.msra.mxu0 %v13599_v7  ;;  %7459 = vmatprep.subr.bf16.mxu1 %v13604_v8  ;;  %v13695_v7 = vld [vmem:[#allocation3 + $0x12c4] ss:$8 sps:$4 sm:$0xff]   ;;  %v13690_v8 = vld [vmem:[#allocation3 + $0x3c0] ss:$8 sps:$4 sm:$0xff]  }
 0x316   : > { %8074 = vmatprep.subr.bf16.mxu0 %v13607_v9  ;;  %v13693_v9 = vld [vmem:[#allocation3 + $0x12c0] ss:$8 sps:$4 sm:$0xff]  }
 0x318   : > { %7460 = vmatpush1.bf16.msra.mxu1 %v13602_v10  ;;  %v13698_v10 = vld [vmem:[#allocation3 + $0x3d4] ss:$8 sps:$4 sm:$0xff]  }
 0x319   : > { %8075 = vmatpush1.bf16.msra.mxu0 %v13605_v11  ;;  %7461 = vmatprep.subr.bf16.mxu1 %v13610_v12  ;;  %v13701_v11 = vld [vmem:[#allocation3 + $0x12d4] ss:$8 sps:$4 sm:$0xff]   ;;  %v13696_v12 = vld [vmem:[#allocation3 + $0x3d0] ss:$8 sps:$4 sm:$0xff]  }
 0x31a   : > { %8076 = vmatprep.subr.bf16.mxu0 %v13613_v13  ;;  %v13699_v13 = vld [vmem:[#allocation3 + $0x12d0] ss:$8 sps:$4 sm:$0xff]  }
 0x31c   : > { %7462 = vmatpush1.bf16.msra.mxu1 %v13608_v14  ;;  %v13704_v14 = vld [vmem:[#allocation3 + $0x3e4] ss:$8 sps:$4 sm:$0xff]  }
 0x31d   : > { %8077 = vmatpush1.bf16.msra.mxu0 %v13611_v15  ;;  %7472 = vmatprep.subr.bf16.mxu1 %v13618_v16  ;;  %v13707_v15 = vld [vmem:[#allocation3 + $0x12e4] ss:$8 sps:$4 sm:$0xff]   ;;  %v13702_v16 = vld [vmem:[#allocation3 + $0x3e0] ss:$8 sps:$4 sm:$0xff]  }
 0x31e   : > { %8087 = vmatprep.subr.bf16.mxu0 %v13623_v17  ;;  %v13705_v17 = vld [vmem:[#allocation3 + $0x12e0] ss:$8 sps:$4 sm:$0xff]  }
 0x31f   : > { %7464 = vmatmul.mubr.bf16.vlgmr.msra.gmra.mrb[0].mxu1 %v11517_v22  ;;  %v13708_v22 = vld [vmem:[#allocation3 + $0x3f0] ss:$8 sps:$4 sm:$0xff]  }
 0x320   : > { %8079 = vmatmul.mubr.bf16.vlgmr.msra.gmra.mrb[0].mxu0 %v11547_v23  ;;  %7473 = vmatpush1.bf16.msra.mxu1 %v13616_v19  ;;  %v13710_v19 = vld [vmem:[#allocation3 + $0x3f4] ss:$8 sps:$4 sm:$0xff]   ;;  %v13711_v23 = vld [vmem:[#allocation3 + $0x12f0] ss:$8 sps:$4 sm:$0xff]  }
 0x321   : > { %8088 = vmatpush1.bf16.msra.mxu0 %v13621_v21  ;;  %7474 = vmatprep.subr.bf16.mxu1 %v13626_v26  ;;  %v13713_v21 = vld [vmem:[#allocation3 + $0x12f4] ss:$8 sps:$4 sm:$0xff]   ;;  %v13718_v26 = vld [vmem:[#allocation3 + $0x404] ss:$8 sps:$4 sm:$0xff]  }
 0x322   : > { %8089 = vmatprep.subr.bf16.mxu0 %v13629_v27  ;;  %7504 = vmatprep.mubr.bf16.mxu1 %v11520_v18  ;;  %v13723_v27 = vld [vmem:[#allocation3 + $0x1304] ss:$8 sps:$4 sm:$0xff]   ;;  %v16678_v18 = vld [vmem:[%s17373_s6 + $0x20] sm:$0xff] }
 0x323   : > { %8119 = vmatprep.mubr.bf16.mxu0 %v11550_v20  ;;  %v11519_v20 = vcombine.low %v16664_v24, %v16664_v24 }
 0x324   : > { %7475 = vmatpush1.bf16.msra.mxu1 %v13624_v28  ;;  %v11549_v28 = vcombine.low %v16669_v25, %v16669_v25  ;;  %v13724_v25 = vld [vmem:[#allocation3 + $0x410] ss:$8 sps:$4 sm:$0xff]  }
 0x325   : > { %8090 = vmatpush1.bf16.msra.mxu0 %v13627_v29  ;;  %7476 = vmatprep.subr.bf16.mxu1 %v13632_v30  ;;  %v16687_v29 = vld [vmem:[%s17373_s6 + $0x98] sm:$0xff] }
 0x326   : > { %8091 = vmatprep.subr.bf16.mxu0 %v13635_v31  ;;  %v13716_v30 = vld [vmem:[#allocation3 + $0x400] ss:$8 sps:$4 sm:$0xff]   ;;  %v11552_v24 = vcombine.high %v16687_v29, %v16687_v29 }
 0x327   : > { %v13721_v31 = vld [vmem:[#allocation3 + $0x1300] ss:$8 sps:$4 sm:$0xff]  }
 0x328   : > { %7477 = vmatpush1.bf16.msra.mxu1 %v13630_v32  ;;  %v13726_v32 = vld [vmem:[#allocation3 + $0x414] ss:$8 sps:$4 sm:$0xff]  }
 0x329   : > { %8092 = vmatpush1.bf16.msra.mxu0 %v13633_v33  ;;  %7478 = vmatprep.subr.bf16.mxu1 %v13638_v34  ;;  %v13729_v33 = vld [vmem:[#allocation3 + $0x1314] ss:$8 sps:$4 sm:$0xff]   ;;  %v11522_v34 = vcombine.high %v16678_v18, %v16678_v18 }
 0x32a   : > { %8093 = vmatprep.subr.bf16.mxu0 %v13641_v35  ;;  %v13727_v35 = vld [vmem:[#allocation3 + $0x1310] ss:$8 sps:$4 sm:$0xff]  }
 0x32c   : > { %7479 = vmatpush1.bf16.msra.mxu1 %v13636_v36  ;;  %v13732_v36 = vld [vmem:[#allocation3 + $0x424] ss:$8 sps:$4 sm:$0xff]  }
 0x32d   : > { %8094 = vmatpush1.bf16.msra.mxu0 %v13639_v37  ;;  %7480 = vmatprep.subr.bf16.mxu1 %v13644_v38  ;;  %v13735_v37 = vld [vmem:[#allocation3 + $0x1324] ss:$8 sps:$4 sm:$0xff]   ;;  %v13730_v38 = vld [vmem:[#allocation3 + $0x420] ss:$8 sps:$4 sm:$0xff]  }
 0x32e   : > { %8095 = vmatprep.subr.bf16.mxu0 %v13647_v39  ;;  %v13733_v39 = vld [vmem:[#allocation3 + $0x1320] ss:$8 sps:$4 sm:$0xff]  }
 0x330   : > { %7481 = vmatpush1.bf16.msra.mxu1 %v13642_v40  ;;  %v13738_v40 = vld [vmem:[#allocation3 + $0x434] ss:$8 sps:$4 sm:$0xff]  }
 0x331   : > { %8096 = vmatpush1.bf16.msra.mxu0 %v13645_v41  ;;  %7482 = vmatprep.subr.bf16.mxu1 %v13650_v42  ;;  %v13741_v41 = vld [vmem:[#allocation3 + $0x1334] ss:$8 sps:$4 sm:$0xff]   ;;  %v13736_v42 = vld [vmem:[#allocation3 + $0x430] ss:$8 sps:$4 sm:$0xff]  }
 0x332   : > { %8097 = vmatprep.subr.bf16.mxu0 %v13653_v43  ;;  %v13739_v43 = vld [vmem:[#allocation3 + $0x1330] ss:$8 sps:$4 sm:$0xff]  }
 0x334   : > { %7483 = vmatpush1.bf16.msra.mxu1 %v13648_v44  ;;  %v13744_v44 = vld [vmem:[#allocation3 + $0x444] ss:$8 sps:$4 sm:$0xff]  }
 0x335   : > { %8098 = vmatpush1.bf16.msra.mxu0 %v13651_v45  ;;  %7484 = vmatprep.subr.bf16.mxu1 %v13656_v46  ;;  %v13747_v45 = vld [vmem:[#allocation3 + $0x1344] ss:$8 sps:$4 sm:$0xff]   ;;  %v13742_v46 = vld [vmem:[#allocation3 + $0x440] ss:$8 sps:$4 sm:$0xff]  }
 0x336   : > { %8099 = vmatprep.subr.bf16.mxu0 %v13659_v47  ;;  %v13745_v47 = vld [vmem:[#allocation3 + $0x1340] ss:$8 sps:$4 sm:$0xff]  }
 0x338   : > { %7485 = vmatpush1.bf16.msra.mxu1 %v13654_v48  ;;  %v13750_v48 = vld [vmem:[#allocation3 + $0x454] ss:$8 sps:$4 sm:$0xff]  }
 0x339   : > { %8100 = vmatpush1.bf16.msra.mxu0 %v13657_v49  ;;  %7486 = vmatprep.subr.bf16.mxu1 %v13662_v50  ;;  %v13753_v49 = vld [vmem:[#allocation3 + $0x1354] ss:$8 sps:$4 sm:$0xff]   ;;  %v13748_v50 = vld [vmem:[#allocation3 + $0x450] ss:$8 sps:$4 sm:$0xff]  }
 0x33a   : > { %8101 = vmatprep.subr.bf16.mxu0 %v13665_v51  ;;  %v13751_v51 = vld [vmem:[#allocation3 + $0x1350] ss:$8 sps:$4 sm:$0xff]  }
 0x33c   : > { %7487 = vmatpush1.bf16.msra.mxu1 %v13660_v52  ;;  %v13756_v52 = vld [vmem:[#allocation3 + $0x464] ss:$8 sps:$4 sm:$0xff]  }
 0x33d   : > { %8102 = vmatpush1.bf16.msra.mxu0 %v13663_v53  ;;  %7488 = vmatprep.subr.bf16.mxu1 %v13668_v54  ;;  %v13759_v53 = vld [vmem:[#allocation3 + $0x1364] ss:$8 sps:$4 sm:$0xff]   ;;  %v13754_v54 = vld [vmem:[#allocation3 + $0x460] ss:$8 sps:$4 sm:$0xff]  }
 0x33e   : > { %8103 = vmatprep.subr.bf16.mxu0 %v13671_v55  ;;  %v13757_v55 = vld [vmem:[#allocation3 + $0x1360] ss:$8 sps:$4 sm:$0xff]  }
 0x340   : > { %7489 = vmatpush1.bf16.msra.mxu1 %v13666_v56  ;;  %v13762_v56 = vld [vmem:[#allocation3 + $0x474] ss:$8 sps:$4 sm:$0xff]  }
 0x341   : > { %8104 = vmatpush1.bf16.msra.mxu0 %v13669_v57  ;;  %7490 = vmatprep.subr.bf16.mxu1 %v13674_v58  ;;  %v13765_v57 = vld [vmem:[#allocation3 + $0x1374] ss:$8 sps:$4 sm:$0xff]   ;;  %v13760_v58 = vld [vmem:[#allocation3 + $0x470] ss:$8 sps:$4 sm:$0xff]  }
 0x342   : > { %8105 = vmatprep.subr.bf16.mxu0 %v13677_v59  ;;  %v13763_v59 = vld [vmem:[#allocation3 + $0x1370] ss:$8 sps:$4 sm:$0xff]  }
 0x344   : > { %7491 = vmatpush1.bf16.msra.mxu1 %v13672_v60  ;;  %v13768_v60 = vld [vmem:[#allocation3 + $0x484] ss:$8 sps:$4 sm:$0xff]  }
 0x345   : > { %8106 = vmatpush1.bf16.msra.mxu0 %v13675_v61  ;;  %7492 = vmatprep.subr.bf16.mxu1 %v13680_v62  ;;  %v13771_v61 = vld [vmem:[#allocation3 + $0x1384] ss:$8 sps:$4 sm:$0xff]   ;;  %v13766_v62 = vld [vmem:[#allocation3 + $0x480] ss:$8 sps:$4 sm:$0xff]  }
 0x346   : > { %8107 = vmatprep.subr.bf16.mxu0 %v13683_v63  ;;  %v13769_v63 = vld [vmem:[#allocation3 + $0x1380] ss:$8 sps:$4 sm:$0xff]  }
 0x348   : > { %7493 = vmatpush1.bf16.msra.mxu1 %v13678_v0  ;;  %v13774_v0 = vld [vmem:[#allocation3 + $0x494] ss:$8 sps:$4 sm:$0xff]  }
 0x349   : > { %8108 = vmatpush1.bf16.msra.mxu0 %v13681_v1  ;;  %7494 = vmatprep.subr.bf16.mxu1 %v13686_v2  ;;  %v13777_v1 = vld [vmem:[#allocation3 + $0x1394] ss:$8 sps:$4 sm:$0xff]   ;;  %v13772_v2 = vld [vmem:[#allocation3 + $0x490] ss:$8 sps:$4 sm:$0xff]  }
 0x34a   : > { %8109 = vmatprep.subr.bf16.mxu0 %v13689_v3  ;;  %v13775_v3 = vld [vmem:[#allocation3 + $0x1390] ss:$8 sps:$4 sm:$0xff]  }
 0x34c   : > { %7495 = vmatpush1.bf16.msra.mxu1 %v13684_v4  ;;  %v13780_v4 = vld [vmem:[#allocation3 + $0x4a4] ss:$8 sps:$4 sm:$0xff]  }
 0x34d   : > { %8110 = vmatpush1.bf16.msra.mxu0 %v13687_v5  ;;  %7496 = vmatprep.subr.bf16.mxu1 %v13692_v6  ;;  %v13783_v5 = vld [vmem:[#allocation3 + $0x13a4] ss:$8 sps:$4 sm:$0xff]   ;;  %v13778_v6 = vld [vmem:[#allocation3 + $0x4a0] ss:$8 sps:$4 sm:$0xff]  }
 0x34e   : > { %8111 = vmatprep.subr.bf16.mxu0 %v13695_v7  ;;  %v13781_v7 = vld [vmem:[#allocation3 + $0x13a0] ss:$8 sps:$4 sm:$0xff]  }
 0x350   : > { %7497 = vmatpush1.bf16.msra.mxu1 %v13690_v8  ;;  %v13786_v8 = vld [vmem:[#allocation3 + $0x4b4] ss:$8 sps:$4 sm:$0xff]  }
 0x351   : > { %8112 = vmatpush1.bf16.msra.mxu0 %v13693_v9  ;;  %7498 = vmatprep.subr.bf16.mxu1 %v13698_v10  ;;  %v13789_v9 = vld [vmem:[#allocation3 + $0x13b4] ss:$8 sps:$4 sm:$0xff]   ;;  %v13784_v10 = vld [vmem:[#allocation3 + $0x4b0] ss:$8 sps:$4 sm:$0xff]  }
 0x352   : > { %8113 = vmatprep.subr.bf16.mxu0 %v13701_v11  ;;  %v13787_v11 = vld [vmem:[#allocation3 + $0x13b0] ss:$8 sps:$4 sm:$0xff]  }
 0x354   : > { %7499 = vmatpush1.bf16.msra.mxu1 %v13696_v12  ;;  %v13792_v12 = vld [vmem:[#allocation3 + $0x4c4] ss:$8 sps:$4 sm:$0xff]  }
 0x355   : > { %8114 = vmatpush1.bf16.msra.mxu0 %v13699_v13  ;;  %7500 = vmatprep.subr.bf16.mxu1 %v13704_v14  ;;  %v13795_v13 = vld [vmem:[#allocation3 + $0x13c4] ss:$8 sps:$4 sm:$0xff]   ;;  %v13790_v14 = vld [vmem:[#allocation3 + $0x4c0] ss:$8 sps:$4 sm:$0xff]  }
 0x356   : > { %8115 = vmatprep.subr.bf16.mxu0 %v13707_v15  ;;  %v13793_v15 = vld [vmem:[#allocation3 + $0x13c0] ss:$8 sps:$4 sm:$0xff]  }
 0x358   : > { %7501 = vmatpush1.bf16.msra.mxu1 %v13702_v16  ;;  %v13798_v16 = vld [vmem:[#allocation3 + $0x4d4] ss:$8 sps:$4 sm:$0xff]  }
 0x359   : > { %8116 = vmatpush1.bf16.msra.mxu0 %v13705_v17  ;;  %7502 = vmatprep.subr.bf16.mxu1 %v13710_v19  ;;  %v13801_v17 = vld [vmem:[#allocation3 + $0x13d4] ss:$8 sps:$4 sm:$0xff]   ;;  %v13796_v19 = vld [vmem:[#allocation3 + $0x4d0] ss:$8 sps:$4 sm:$0xff]  }
 0x35a   : > { %8117 = vmatprep.subr.bf16.mxu0 %v13713_v21  ;;  %v13799_v21 = vld [vmem:[#allocation3 + $0x13d0] ss:$8 sps:$4 sm:$0xff]  }
 0x35c   : > { %7503 = vmatpush1.bf16.msra.mxu1 %v13708_v22  ;;  %v13804_v22 = vld [vmem:[#allocation3 + $0x4e4] ss:$8 sps:$4 sm:$0xff]  }
 0x35d   : > { %8118 = vmatpush1.bf16.msra.mxu0 %v13711_v23  ;;  %7513 = vmatprep.subr.bf16.mxu1 %v13718_v26  ;;  %v13807_v23 = vld [vmem:[#allocation3 + $0x13e4] ss:$8 sps:$4 sm:$0xff]   ;;  %v13802_v26 = vld [vmem:[#allocation3 + $0x4e0] ss:$8 sps:$4 sm:$0xff]  }
 0x35e   : > { %8128 = vmatprep.subr.bf16.mxu0 %v13723_v27  ;;  %v13805_v27 = vld [vmem:[#allocation3 + $0x13e0] ss:$8 sps:$4 sm:$0xff]  }
 0x35f   : > { %7505 = vmatmul.mubr.bf16.vlgmr.msra.gmra.mrb[0].mxu1 %v11519_v20  ;;  %v13810_v20 = vld [vmem:[#allocation3 + $0x4f4] ss:$8 sps:$4 sm:$0xff]  }
 0x360   : > { %8120 = vmatmul.mubr.bf16.vlgmr.msra.gmra.mrb[0].mxu0 %v11549_v28  ;;  %7514 = vmatpush1.bf16.msra.mxu1 %v13716_v30  ;;  %v13813_v28 = vld [vmem:[#allocation3 + $0x13f4] ss:$8 sps:$4 sm:$0xff]   ;;  %v13808_v30 = vld [vmem:[#allocation3 + $0x4f0] ss:$8 sps:$4 sm:$0xff]  }
 0x361   : > { %8129 = vmatpush1.bf16.msra.mxu0 %v13721_v31  ;;  %7515 = vmatprep.subr.bf16.mxu1 %v13726_v32  ;;  %v13811_v31 = vld [vmem:[#allocation3 + $0x13f0] ss:$8 sps:$4 sm:$0xff]   ;;  %v13818_v32 = vld [vmem:[#allocation3 + $0x504] ss:$8 sps:$4 sm:$0xff]  }
 0x362   : > { %8130 = vmatprep.subr.bf16.mxu0 %v13729_v33  ;;  %7545 = vmatprep.mubr.bf16.mxu1 %v11522_v34  ;;  %v13823_v33 = vld [vmem:[#allocation3 + $0x1404] ss:$8 sps:$4 sm:$0xff]   ;;  %v16696_v34 = vld [vmem:[%s17373_s6 + $0x28] sm:$0xff] }
 0x363   : > { %8160 = vmatprep.mubr.bf16.mxu0 %v11552_v24  ;;  %v16701_v24 = vld [vmem:[%s17373_s6 + $0xa0] sm:$0xff] }
 0x364   : > { %7516 = vmatpush1.bf16.msra.mxu1 %v13724_v25  ;;  %v11521_v25 = vcombine.low %v16678_v18, %v16678_v18  ;;  %v13824_v18 = vld [vmem:[#allocation3 + $0x510] ss:$8 sps:$4 sm:$0xff]  }
 0x365   : > { %8131 = vmatpush1.bf16.msra.mxu0 %v13727_v35  ;;  %7517 = vmatprep.subr.bf16.mxu1 %v13732_v36  ;;  %v11551_v35 = vcombine.low %v16687_v29, %v16687_v29  ;;  %v13816_v36 = vld [vmem:[#allocation3 + $0x500] ss:$8 sps:$4 sm:$0xff]   ;;  %v13827_v29 = vld [vmem:[#allocation3 + $0x1410] ss:$8 sps:$4 sm:$0xff]  }
 0x366   : > { %8132 = vmatprep.subr.bf16.mxu0 %v13735_v37  ;;  %v13821_v37 = vld [vmem:[#allocation3 + $0x1400] ss:$8 sps:$4 sm:$0xff]  }
 0x368   : > { %7518 = vmatpush1.bf16.msra.mxu1 %v13730_v38  ;;  %v13826_v38 = vld [vmem:[#allocation3 + $0x514] ss:$8 sps:$4 sm:$0xff]  }
 0x369   : > { %8133 = vmatpush1.bf16.msra.mxu0 %v13733_v39  ;;  %7519 = vmatprep.subr.bf16.mxu1 %v13738_v40  ;;  %v13829_v39 = vld [vmem:[#allocation3 + $0x1414] ss:$8 sps:$4 sm:$0xff]   ;;  %v11524_v40 = vcombine.high %v16696_v34, %v16696_v34 }
 0x36a   : > { %8134 = vmatprep.subr.bf16.mxu0 %v13741_v41  ;;  %v11554_v41 = vcombine.high %v16701_v24, %v16701_v24 }
 0x36c   : > { %7520 = vmatpush1.bf16.msra.mxu1 %v13736_v42  ;;  %v13832_v42 = vld [vmem:[#allocation3 + $0x524] ss:$8 sps:$4 sm:$0xff]  }
 0x36d   : > { %8135 = vmatpush1.bf16.msra.mxu0 %v13739_v43  ;;  %7521 = vmatprep.subr.bf16.mxu1 %v13744_v44  ;;  %v13835_v43 = vld [vmem:[#allocation3 + $0x1424] ss:$8 sps:$4 sm:$0xff]   ;;  %v13830_v44 = vld [vmem:[#allocation3 + $0x520] ss:$8 sps:$4 sm:$0xff]  }
 0x36e   : > { %8136 = vmatprep.subr.bf16.mxu0 %v13747_v45  ;;  %v13833_v45 = vld [vmem:[#allocation3 + $0x1420] ss:$8 sps:$4 sm:$0xff]  }
 0x370   : > { %7522 = vmatpush1.bf16.msra.mxu1 %v13742_v46  ;;  %v13838_v46 = vld [vmem:[#allocation3 + $0x534] ss:$8 sps:$4 sm:$0xff]  }
 0x371   : > { %8137 = vmatpush1.bf16.msra.mxu0 %v13745_v47  ;;  %7523 = vmatprep.subr.bf16.mxu1 %v13750_v48  ;;  %v13841_v47 = vld [vmem:[#allocation3 + $0x1434] ss:$8 sps:$4 sm:$0xff]   ;;  %v13836_v48 = vld [vmem:[#allocation3 + $0x530] ss:$8 sps:$4 sm:$0xff]  }
 0x372   : > { %8138 = vmatprep.subr.bf16.mxu0 %v13753_v49  ;;  %v13839_v49 = vld [vmem:[#allocation3 + $0x1430] ss:$8 sps:$4 sm:$0xff]  }
 0x374   : > { %7524 = vmatpush1.bf16.msra.mxu1 %v13748_v50  ;;  %v13844_v50 = vld [vmem:[#allocation3 + $0x544] ss:$8 sps:$4 sm:$0xff]  }
 0x375   : > { %8139 = vmatpush1.bf16.msra.mxu0 %v13751_v51  ;;  %7525 = vmatprep.subr.bf16.mxu1 %v13756_v52  ;;  %v13847_v51 = vld [vmem:[#allocation3 + $0x1444] ss:$8 sps:$4 sm:$0xff]   ;;  %v13842_v52 = vld [vmem:[#allocation3 + $0x540] ss:$8 sps:$4 sm:$0xff]  }
 0x376   : > { %8140 = vmatprep.subr.bf16.mxu0 %v13759_v53  ;;  %v13845_v53 = vld [vmem:[#allocation3 + $0x1440] ss:$8 sps:$4 sm:$0xff]  }
 0x378   : > { %7526 = vmatpush1.bf16.msra.mxu1 %v13754_v54  ;;  %v13850_v54 = vld [vmem:[#allocation3 + $0x554] ss:$8 sps:$4 sm:$0xff]  }
 0x379   : > { %8141 = vmatpush1.bf16.msra.mxu0 %v13757_v55  ;;  %7527 = vmatprep.subr.bf16.mxu1 %v13762_v56  ;;  %v13853_v55 = vld [vmem:[#allocation3 + $0x1454] ss:$8 sps:$4 sm:$0xff]   ;;  %v13848_v56 = vld [vmem:[#allocation3 + $0x550] ss:$8 sps:$4 sm:$0xff]  }
 0x37a   : > { %8142 = vmatprep.subr.bf16.mxu0 %v13765_v57  ;;  %v13851_v57 = vld [vmem:[#allocation3 + $0x1450] ss:$8 sps:$4 sm:$0xff]  }
 0x37c   : > { %7528 = vmatpush1.bf16.msra.mxu1 %v13760_v58  ;;  %v13856_v58 = vld [vmem:[#allocation3 + $0x564] ss:$8 sps:$4 sm:$0xff]  }
 0x37d   : > { %8143 = vmatpush1.bf16.msra.mxu0 %v13763_v59  ;;  %7529 = vmatprep.subr.bf16.mxu1 %v13768_v60  ;;  %v13859_v59 = vld [vmem:[#allocation3 + $0x1464] ss:$8 sps:$4 sm:$0xff]   ;;  %v13854_v60 = vld [vmem:[#allocation3 + $0x560] ss:$8 sps:$4 sm:$0xff]  }
 0x37e   : > { %8144 = vmatprep.subr.bf16.mxu0 %v13771_v61  ;;  %v13857_v61 = vld [vmem:[#allocation3 + $0x1460] ss:$8 sps:$4 sm:$0xff]  }
 0x380   : > { %7530 = vmatpush1.bf16.msra.mxu1 %v13766_v62  ;;  %v13862_v62 = vld [vmem:[#allocation3 + $0x574] ss:$8 sps:$4 sm:$0xff]  }
 0x381   : > { %8145 = vmatpush1.bf16.msra.mxu0 %v13769_v63  ;;  %7531 = vmatprep.subr.bf16.mxu1 %v13774_v0  ;;  %v13865_v63 = vld [vmem:[#allocation3 + $0x1474] ss:$8 sps:$4 sm:$0xff]   ;;  %v13860_v0 = vld [vmem:[#allocation3 + $0x570] ss:$8 sps:$4 sm:$0xff]  }
 0x382   : > { %8146 = vmatprep.subr.bf16.mxu0 %v13777_v1  ;;  %v13863_v1 = vld [vmem:[#allocation3 + $0x1470] ss:$8 sps:$4 sm:$0xff]  }
 0x384   : > { %7532 = vmatpush1.bf16.msra.mxu1 %v13772_v2  ;;  %v13868_v2 = vld [vmem:[#allocation3 + $0x584] ss:$8 sps:$4 sm:$0xff]  }
 0x385   : > { %8147 = vmatpush1.bf16.msra.mxu0 %v13775_v3  ;;  %7533 = vmatprep.subr.bf16.mxu1 %v13780_v4  ;;  %v13871_v3 = vld [vmem:[#allocation3 + $0x1484] ss:$8 sps:$4 sm:$0xff]   ;;  %v13866_v4 = vld [vmem:[#allocation3 + $0x580] ss:$8 sps:$4 sm:$0xff]  }
 0x386   : > { %8148 = vmatprep.subr.bf16.mxu0 %v13783_v5  ;;  %v13869_v5 = vld [vmem:[#allocation3 + $0x1480] ss:$8 sps:$4 sm:$0xff]  }
 0x388   : > { %7534 = vmatpush1.bf16.msra.mxu1 %v13778_v6  ;;  %v13874_v6 = vld [vmem:[#allocation3 + $0x594] ss:$8 sps:$4 sm:$0xff]  }
 0x389   : > { %8149 = vmatpush1.bf16.msra.mxu0 %v13781_v7  ;;  %7535 = vmatprep.subr.bf16.mxu1 %v13786_v8  ;;  %v13877_v7 = vld [vmem:[#allocation3 + $0x1494] ss:$8 sps:$4 sm:$0xff]   ;;  %v13872_v8 = vld [vmem:[#allocation3 + $0x590] ss:$8 sps:$4 sm:$0xff]  }
 0x38a   : > { %8150 = vmatprep.subr.bf16.mxu0 %v13789_v9  ;;  %v13875_v9 = vld [vmem:[#allocation3 + $0x1490] ss:$8 sps:$4 sm:$0xff]  }
 0x38c   : > { %7536 = vmatpush1.bf16.msra.mxu1 %v13784_v10  ;;  %v13880_v10 = vld [vmem:[#allocation3 + $0x5a4] ss:$8 sps:$4 sm:$0xff]  }
 0x38d   : > { %8151 = vmatpush1.bf16.msra.mxu0 %v13787_v11  ;;  %7537 = vmatprep.subr.bf16.mxu1 %v13792_v12  ;;  %v13883_v11 = vld [vmem:[#allocation3 + $0x14a4] ss:$8 sps:$4 sm:$0xff]   ;;  %v13878_v12 = vld [vmem:[#allocation3 + $0x5a0] ss:$8 sps:$4 sm:$0xff]  }
 0x38e   : > { %8152 = vmatprep.subr.bf16.mxu0 %v13795_v13  ;;  %v13881_v13 = vld [vmem:[#allocation3 + $0x14a0] ss:$8 sps:$4 sm:$0xff]  }
 0x390   : > { %7538 = vmatpush1.bf16.msra.mxu1 %v13790_v14  ;;  %v13886_v14 = vld [vmem:[#allocation3 + $0x5b4] ss:$8 sps:$4 sm:$0xff]  }
 0x391   : > { %8153 = vmatpush1.bf16.msra.mxu0 %v13793_v15  ;;  %7539 = vmatprep.subr.bf16.mxu1 %v13798_v16  ;;  %v13889_v15 = vld [vmem:[#allocation3 + $0x14b4] ss:$8 sps:$4 sm:$0xff]   ;;  %v13884_v16 = vld [vmem:[#allocation3 + $0x5b0] ss:$8 sps:$4 sm:$0xff]  }
 0x392   : > { %8154 = vmatprep.subr.bf16.mxu0 %v13801_v17  ;;  %v13887_v17 = vld [vmem:[#allocation3 + $0x14b0] ss:$8 sps:$4 sm:$0xff]  }
 0x394   : > { %7540 = vmatpush1.bf16.msra.mxu1 %v13796_v19  ;;  %v13892_v19 = vld [vmem:[#allocation3 + $0x5c4] ss:$8 sps:$4 sm:$0xff]  }
 0x395   : > { %8155 = vmatpush1.bf16.msra.mxu0 %v13799_v21  ;;  %7541 = vmatprep.subr.bf16.mxu1 %v13804_v22  ;;  %v13895_v21 = vld [vmem:[#allocation3 + $0x14c4] ss:$8 sps:$4 sm:$0xff]   ;;  %v13890_v22 = vld [vmem:[#allocation3 + $0x5c0] ss:$8 sps:$4 sm:$0xff]  }
 0x396   : > { %8156 = vmatprep.subr.bf16.mxu0 %v13807_v23  ;;  %v13893_v23 = vld [vmem:[#allocation3 + $0x14c0] ss:$8 sps:$4 sm:$0xff]  }
 0x398   : > { %7542 = vmatpush1.bf16.msra.mxu1 %v13802_v26  ;;  %v13898_v26 = vld [vmem:[#allocation3 + $0x5d4] ss:$8 sps:$4 sm:$0xff]  }
 0x399   : > { %8157 = vmatpush1.bf16.msra.mxu0 %v13805_v27  ;;  %7543 = vmatprep.subr.bf16.mxu1 %v13810_v20  ;;  %v13901_v27 = vld [vmem:[#allocation3 + $0x14d4] ss:$8 sps:$4 sm:$0xff]   ;;  %v13896_v20 = vld [vmem:[#allocation3 + $0x5d0] ss:$8 sps:$4 sm:$0xff]  }
 0x39a   : > { %8158 = vmatprep.subr.bf16.mxu0 %v13813_v28  ;;  %v13899_v28 = vld [vmem:[#allocation3 + $0x14d0] ss:$8 sps:$4 sm:$0xff]  }
 0x39c   : > { %7544 = vmatpush1.bf16.msra.mxu1 %v13808_v30  ;;  %v13904_v30 = vld [vmem:[#allocation3 + $0x5e4] ss:$8 sps:$4 sm:$0xff]  }
 0x39d   : > { %8159 = vmatpush1.bf16.msra.mxu0 %v13811_v31  ;;  %7554 = vmatprep.subr.bf16.mxu1 %v13818_v32  ;;  %v13907_v31 = vld [vmem:[#allocation3 + $0x14e4] ss:$8 sps:$4 sm:$0xff]   ;;  %v13902_v32 = vld [vmem:[#allocation3 + $0x5e0] ss:$8 sps:$4 sm:$0xff]  }
 0x39e   : > { %8169 = vmatprep.subr.bf16.mxu0 %v13823_v33  ;;  %v13905_v33 = vld [vmem:[#allocation3 + $0x14e0] ss:$8 sps:$4 sm:$0xff]  }
 0x39f   : > { %7546 = vmatmul.mubr.bf16.vlgmr.msra.gmra.mrb[0].mxu1 %v11521_v25  ;;  %v13910_v25 = vld [vmem:[#allocation3 + $0x5f4] ss:$8 sps:$4 sm:$0xff]  }
 0x3a0   : > { %8161 = vmatmul.mubr.bf16.vlgmr.msra.gmra.mrb[0].mxu0 %v11551_v35  ;;  %7555 = vmatpush1.bf16.msra.mxu1 %v13816_v36  ;;  %v13913_v35 = vld [vmem:[#allocation3 + $0x14f4] ss:$8 sps:$4 sm:$0xff]   ;;  %v13908_v36 = vld [vmem:[#allocation3 + $0x5f0] ss:$8 sps:$4 sm:$0xff]  }
 0x3a1   : > { %8170 = vmatpush1.bf16.msra.mxu0 %v13821_v37  ;;  %7556 = vmatprep.subr.bf16.mxu1 %v13826_v38  ;;  %v13911_v37 = vld [vmem:[#allocation3 + $0x14f0] ss:$8 sps:$4 sm:$0xff]   ;;  %v13918_v38 = vld [vmem:[#allocation3 + $0x604] ss:$8 sps:$4 sm:$0xff]  }
 0x3a2   : > { %8171 = vmatprep.subr.bf16.mxu0 %v13829_v39  ;;  %7586 = vmatprep.mubr.bf16.mxu1 %v11524_v40  ;;  %v13923_v39 = vld [vmem:[#allocation3 + $0x1504] ss:$8 sps:$4 sm:$0xff]  }
 0x3a3   : > { %8201 = vmatprep.mubr.bf16.mxu0 %v11554_v41  ;;  %v16714_v40 = vld [vmem:[%s17373_s6 + $0x30] sm:$0xff]  ;;  %v16719_v41 = vld [vmem:[%s17373_s6 + $0xa8] sm:$0xff] }
 0x3a4   : > { %7557 = vmatpush1.bf16.msra.mxu1 %v13824_v18  ;;  %v11523_v18 = vcombine.low %v16696_v34, %v16696_v34  ;;  %v13924_v34 = vld [vmem:[#allocation3 + $0x610] ss:$8 sps:$4 sm:$0xff]  }
 0x3a5   : > { %8172 = vmatpush1.bf16.msra.mxu0 %v13827_v29  ;;  %7558 = vmatprep.subr.bf16.mxu1 %v13832_v42  ;;  %v11553_v29 = vcombine.low %v16701_v24, %v16701_v24  ;;  %v13916_v42 = vld [vmem:[#allocation3 + $0x600] ss:$8 sps:$4 sm:$0xff]   ;;  %v13927_v24 = vld [vmem:[#allocation3 + $0x1510] ss:$8 sps:$4 sm:$0xff]  }
 0x3a6   : > { %8173 = vmatprep.subr.bf16.mxu0 %v13835_v43  ;;  %v13921_v43 = vld [vmem:[#allocation3 + $0x1500] ss:$8 sps:$4 sm:$0xff]  }
 0x3a8   : > { %7559 = vmatpush1.bf16.msra.mxu1 %v13830_v44  ;;  %v13926_v44 = vld [vmem:[#allocation3 + $0x614] ss:$8 sps:$4 sm:$0xff]  }
 0x3a9   : > { %8174 = vmatpush1.bf16.msra.mxu0 %v13833_v45  ;;  %7560 = vmatprep.subr.bf16.mxu1 %v13838_v46  ;;  %v13929_v45 = vld [vmem:[#allocation3 + $0x1514] ss:$8 sps:$4 sm:$0xff]   ;;  %v11526_v46 = vcombine.high %v16714_v40, %v16714_v40 }
 0x3aa   : > { %8175 = vmatprep.subr.bf16.mxu0 %v13841_v47  ;;  %v11556_v47 = vcombine.high %v16719_v41, %v16719_v41 }
 0x3ac   : > { %7561 = vmatpush1.bf16.msra.mxu1 %v13836_v48  ;;  %v13932_v48 = vld [vmem:[#allocation3 + $0x624] ss:$8 sps:$4 sm:$0xff]  }
 0x3ad   : > { %8176 = vmatpush1.bf16.msra.mxu0 %v13839_v49  ;;  %7562 = vmatprep.subr.bf16.mxu1 %v13844_v50  ;;  %v13935_v49 = vld [vmem:[#allocation3 + $0x1524] ss:$8 sps:$4 sm:$0xff]   ;;  %v13930_v50 = vld [vmem:[#allocation3 + $0x620] ss:$8 sps:$4 sm:$0xff]  }
 0x3ae   : > { %8177 = vmatprep.subr.bf16.mxu0 %v13847_v51  ;;  %v13933_v51 = vld [vmem:[#allocation3 + $0x1520] ss:$8 sps:$4 sm:$0xff]  }
 0x3b0   : > { %7563 = vmatpush1.bf16.msra.mxu1 %v13842_v52  ;;  %v13938_v52 = vld [vmem:[#allocation3 + $0x634] ss:$8 sps:$4 sm:$0xff]  }
 0x3b1   : > { %8178 = vmatpush1.bf16.msra.mxu0 %v13845_v53  ;;  %7564 = vmatprep.subr.bf16.mxu1 %v13850_v54  ;;  %v13941_v53 = vld [vmem:[#allocation3 + $0x1534] ss:$8 sps:$4 sm:$0xff]   ;;  %v13936_v54 = vld [vmem:[#allocation3 + $0x630] ss:$8 sps:$4 sm:$0xff]  }
 0x3b2   : > { %8179 = vmatprep.subr.bf16.mxu0 %v13853_v55  ;;  %v13939_v55 = vld [vmem:[#allocation3 + $0x1530] ss:$8 sps:$4 sm:$0xff]  }
 0x3b4   : > { %7565 = vmatpush1.bf16.msra.mxu1 %v13848_v56  ;;  %v13944_v56 = vld [vmem:[#allocation3 + $0x644] ss:$8 sps:$4 sm:$0xff]  }
 0x3b5   : > { %8180 = vmatpush1.bf16.msra.mxu0 %v13851_v57  ;;  %7566 = vmatprep.subr.bf16.mxu1 %v13856_v58  ;;  %v13947_v57 = vld [vmem:[#allocation3 + $0x1544] ss:$8 sps:$4 sm:$0xff]   ;;  %v13942_v58 = vld [vmem:[#allocation3 + $0x640] ss:$8 sps:$4 sm:$0xff]  }
 0x3b6   : > { %8181 = vmatprep.subr.bf16.mxu0 %v13859_v59  ;;  %v13945_v59 = vld [vmem:[#allocation3 + $0x1540] ss:$8 sps:$4 sm:$0xff]  }
 0x3b8   : > { %7567 = vmatpush1.bf16.msra.mxu1 %v13854_v60  ;;  %v13950_v60 = vld [vmem:[#allocation3 + $0x654] ss:$8 sps:$4 sm:$0xff]  }
 0x3b9   : > { %8182 = vmatpush1.bf16.msra.mxu0 %v13857_v61  ;;  %7568 = vmatprep.subr.bf16.mxu1 %v13862_v62  ;;  %v13953_v61 = vld [vmem:[#allocation3 + $0x1554] ss:$8 sps:$4 sm:$0xff]   ;;  %v13948_v62 = vld [vmem:[#allocation3 + $0x650] ss:$8 sps:$4 sm:$0xff]  }
 0x3ba   : > { %8183 = vmatprep.subr.bf16.mxu0 %v13865_v63  ;;  %v13951_v63 = vld [vmem:[#allocation3 + $0x1550] ss:$8 sps:$4 sm:$0xff]  }
 0x3bc   : > { %7569 = vmatpush1.bf16.msra.mxu1 %v13860_v0  ;;  %v13956_v0 = vld [vmem:[#allocation3 + $0x664] ss:$8 sps:$4 sm:$0xff]  }
 0x3bd   : > { %8184 = vmatpush1.bf16.msra.mxu0 %v13863_v1  ;;  %7570 = vmatprep.subr.bf16.mxu1 %v13868_v2  ;;  %v13959_v1 = vld [vmem:[#allocation3 + $0x1564] ss:$8 sps:$4 sm:$0xff]   ;;  %v13954_v2 = vld [vmem:[#allocation3 + $0x660] ss:$8 sps:$4 sm:$0xff]  }
 0x3be   : > { %8185 = vmatprep.subr.bf16.mxu0 %v13871_v3  ;;  %v13957_v3 = vld [vmem:[#allocation3 + $0x1560] ss:$8 sps:$4 sm:$0xff]  }
 0x3c0   : > { %7571 = vmatpush1.bf16.msra.mxu1 %v13866_v4  ;;  %v13962_v4 = vld [vmem:[#allocation3 + $0x674] ss:$8 sps:$4 sm:$0xff]  }
 0x3c1   : > { %8186 = vmatpush1.bf16.msra.mxu0 %v13869_v5  ;;  %7572 = vmatprep.subr.bf16.mxu1 %v13874_v6  ;;  %v13965_v5 = vld [vmem:[#allocation3 + $0x1574] ss:$8 sps:$4 sm:$0xff]   ;;  %v13960_v6 = vld [vmem:[#allocation3 + $0x670] ss:$8 sps:$4 sm:$0xff]  }
 0x3c2   : > { %8187 = vmatprep.subr.bf16.mxu0 %v13877_v7  ;;  %v13963_v7 = vld [vmem:[#allocation3 + $0x1570] ss:$8 sps:$4 sm:$0xff]  }
 0x3c4   : > { %7573 = vmatpush1.bf16.msra.mxu1 %v13872_v8  ;;  %v13968_v8 = vld [vmem:[#allocation3 + $0x684] ss:$8 sps:$4 sm:$0xff]  }
 0x3c5   : > { %8188 = vmatpush1.bf16.msra.mxu0 %v13875_v9  ;;  %7574 = vmatprep.subr.bf16.mxu1 %v13880_v10  ;;  %v13971_v9 = vld [vmem:[#allocation3 + $0x1584] ss:$8 sps:$4 sm:$0xff]   ;;  %v13966_v10 = vld [vmem:[#allocation3 + $0x680] ss:$8 sps:$4 sm:$0xff]  }
 0x3c6   : > { %8189 = vmatprep.subr.bf16.mxu0 %v13883_v11  ;;  %v13969_v11 = vld [vmem:[#allocation3 + $0x1580] ss:$8 sps:$4 sm:$0xff]  }
 0x3c8   : > { %7575 = vmatpush1.bf16.msra.mxu1 %v13878_v12  ;;  %v13974_v12 = vld [vmem:[#allocation3 + $0x694] ss:$8 sps:$4 sm:$0xff]  }
 0x3c9   : > { %8190 = vmatpush1.bf16.msra.mxu0 %v13881_v13  ;;  %7576 = vmatprep.subr.bf16.mxu1 %v13886_v14  ;;  %v13977_v13 = vld [vmem:[#allocation3 + $0x1594] ss:$8 sps:$4 sm:$0xff]   ;;  %v13972_v14 = vld [vmem:[#allocation3 + $0x690] ss:$8 sps:$4 sm:$0xff]  }
 0x3ca   : > { %8191 = vmatprep.subr.bf16.mxu0 %v13889_v15  ;;  %v13975_v15 = vld [vmem:[#allocation3 + $0x1590] ss:$8 sps:$4 sm:$0xff]  }
 0x3cc   : > { %7577 = vmatpush1.bf16.msra.mxu1 %v13884_v16  ;;  %v13980_v16 = vld [vmem:[#allocation3 + $0x6a4] ss:$8 sps:$4 sm:$0xff]  }
 0x3cd   : > { %8192 = vmatpush1.bf16.msra.mxu0 %v13887_v17  ;;  %7578 = vmatprep.subr.bf16.mxu1 %v13892_v19  ;;  %v13983_v17 = vld [vmem:[#allocation3 + $0x15a4] ss:$8 sps:$4 sm:$0xff]   ;;  %v13978_v19 = vld [vmem:[#allocation3 + $0x6a0] ss:$8 sps:$4 sm:$0xff]  }
 0x3ce   : > { %8193 = vmatprep.subr.bf16.mxu0 %v13895_v21  ;;  %v13981_v21 = vld [vmem:[#allocation3 + $0x15a0] ss:$8 sps:$4 sm:$0xff]  }
 0x3d0   : > { %7579 = vmatpush1.bf16.msra.mxu1 %v13890_v22  ;;  %v13986_v22 = vld [vmem:[#allocation3 + $0x6b4] ss:$8 sps:$4 sm:$0xff]  }
 0x3d1   : > { %8194 = vmatpush1.bf16.msra.mxu0 %v13893_v23  ;;  %7580 = vmatprep.subr.bf16.mxu1 %v13898_v26  ;;  %v13989_v23 = vld [vmem:[#allocation3 + $0x15b4] ss:$8 sps:$4 sm:$0xff]   ;;  %v13984_v26 = vld [vmem:[#allocation3 + $0x6b0] ss:$8 sps:$4 sm:$0xff]  }
 0x3d2   : > { %8195 = vmatprep.subr.bf16.mxu0 %v13901_v27  ;;  %v13987_v27 = vld [vmem:[#allocation3 + $0x15b0] ss:$8 sps:$4 sm:$0xff]  }
 0x3d4   : > { %7581 = vmatpush1.bf16.msra.mxu1 %v13896_v20  ;;  %v13992_v20 = vld [vmem:[#allocation3 + $0x6c4] ss:$8 sps:$4 sm:$0xff]  }
 0x3d5   : > { %8196 = vmatpush1.bf16.msra.mxu0 %v13899_v28  ;;  %7582 = vmatprep.subr.bf16.mxu1 %v13904_v30  ;;  %v13995_v28 = vld [vmem:[#allocation3 + $0x15c4] ss:$8 sps:$4 sm:$0xff]   ;;  %v13990_v30 = vld [vmem:[#allocation3 + $0x6c0] ss:$8 sps:$4 sm:$0xff]  }
 0x3d6   : > { %8197 = vmatprep.subr.bf16.mxu0 %v13907_v31  ;;  %v13993_v31 = vld [vmem:[#allocation3 + $0x15c0] ss:$8 sps:$4 sm:$0xff]  }
 0x3d8   : > { %7583 = vmatpush1.bf16.msra.mxu1 %v13902_v32  ;;  %v13998_v32 = vld [vmem:[#allocation3 + $0x6d4] ss:$8 sps:$4 sm:$0xff]  }
 0x3d9   : > { %8198 = vmatpush1.bf16.msra.mxu0 %v13905_v33  ;;  %7584 = vmatprep.subr.bf16.mxu1 %v13910_v25  ;;  %v14001_v33 = vld [vmem:[#allocation3 + $0x15d4] ss:$8 sps:$4 sm:$0xff]   ;;  %v13996_v25 = vld [vmem:[#allocation3 + $0x6d0] ss:$8 sps:$4 sm:$0xff]  }
 0x3da   : > { %8199 = vmatprep.subr.bf16.mxu0 %v13913_v35  ;;  %v13999_v35 = vld [vmem:[#allocation3 + $0x15d0] ss:$8 sps:$4 sm:$0xff]  }
 0x3dc   : > { %7585 = vmatpush1.bf16.msra.mxu1 %v13908_v36  ;;  %v14004_v36 = vld [vmem:[#allocation3 + $0x6e4] ss:$8 sps:$4 sm:$0xff]  }
 0x3dd   : > { %8200 = vmatpush1.bf16.msra.mxu0 %v13911_v37  ;;  %7595 = vmatprep.subr.bf16.mxu1 %v13918_v38  ;;  %v14007_v37 = vld [vmem:[#allocation3 + $0x15e4] ss:$8 sps:$4 sm:$0xff]   ;;  %v14002_v38 = vld [vmem:[#allocation3 + $0x6e0] ss:$8 sps:$4 sm:$0xff]  }
 0x3de   : > { %8210 = vmatprep.subr.bf16.mxu0 %v13923_v39  ;;  %v14005_v39 = vld [vmem:[#allocation3 + $0x15e0] ss:$8 sps:$4 sm:$0xff]  }
 0x3df   : > { %7587 = vmatmul.mubr.bf16.vlgmr.msra.gmra.mrb[0].mxu1 %v11523_v18  ;;  %v14010_v18 = vld [vmem:[#allocation3 + $0x6f4] ss:$8 sps:$4 sm:$0xff]  }
 0x3e0   : > { %8202 = vmatmul.mubr.bf16.vlgmr.msra.gmra.mrb[0].mxu0 %v11553_v29  ;;  %7596 = vmatpush1.bf16.msra.mxu1 %v13916_v42  ;;  %v14013_v29 = vld [vmem:[#allocation3 + $0x15f4] ss:$8 sps:$4 sm:$0xff]   ;;  %v14008_v42 = vld [vmem:[#allocation3 + $0x6f0] ss:$8 sps:$4 sm:$0xff]  }
 0x3e1   : > { %8211 = vmatpush1.bf16.msra.mxu0 %v13921_v43  ;;  %7597 = vmatprep.subr.bf16.mxu1 %v13926_v44  ;;  %v14011_v43 = vld [vmem:[#allocation3 + $0x15f0] ss:$8 sps:$4 sm:$0xff]   ;;  %v14018_v44 = vld [vmem:[#allocation3 + $0x704] ss:$8 sps:$4 sm:$0xff]  }
 0x3e2   : > { %8212 = vmatprep.subr.bf16.mxu0 %v13929_v45  ;;  %7627 = vmatprep.mubr.bf16.mxu1 %v11526_v46  ;;  %v14023_v45 = vld [vmem:[#allocation3 + $0x1604] ss:$8 sps:$4 sm:$0xff]  }
 0x3e3   : > { %8242 = vmatprep.mubr.bf16.mxu0 %v11556_v47  ;;  %v16732_v46 = vld [vmem:[%s17373_s6 + $0x38] sm:$0xff]  ;;  %v16737_v47 = vld [vmem:[%s17373_s6 + $0xb0] sm:$0xff] }
 0x3e4   : > { %7598 = vmatpush1.bf16.msra.mxu1 %v13924_v34  ;;  %v11525_v34 = vcombine.low %v16714_v40, %v16714_v40  ;;  %v14024_v40 = vld [vmem:[#allocation3 + $0x710] ss:$8 sps:$4 sm:$0xff]  }
 0x3e5   : > { %8213 = vmatpush1.bf16.msra.mxu0 %v13927_v24  ;;  %7599 = vmatprep.subr.bf16.mxu1 %v13932_v48  ;;  %v11555_v24 = vcombine.low %v16719_v41, %v16719_v41  ;;  %v14016_v48 = vld [vmem:[#allocation3 + $0x700] ss:$8 sps:$4 sm:$0xff]   ;;  %v14027_v41 = vld [vmem:[#allocation3 + $0x1610] ss:$8 sps:$4 sm:$0xff]  }
 0x3e6   : > { %8214 = vmatprep.subr.bf16.mxu0 %v13935_v49  ;;  %v14021_v49 = vld [vmem:[#allocation3 + $0x1600] ss:$8 sps:$4 sm:$0xff]  }
 0x3e8   : > { %7600 = vmatpush1.bf16.msra.mxu1 %v13930_v50  ;;  %v14026_v50 = vld [vmem:[#allocation3 + $0x714] ss:$8 sps:$4 sm:$0xff]  }
 0x3e9   : > { %8215 = vmatpush1.bf16.msra.mxu0 %v13933_v51  ;;  %7601 = vmatprep.subr.bf16.mxu1 %v13938_v52  ;;  %v14029_v51 = vld [vmem:[#allocation3 + $0x1614] ss:$8 sps:$4 sm:$0xff]   ;;  %v11528_v52 = vcombine.high %v16732_v46, %v16732_v46 }
 0x3ea   : > { %8216 = vmatprep.subr.bf16.mxu0 %v13941_v53  ;;  %v11558_v53 = vcombine.high %v16737_v47, %v16737_v47 }
 0x3ec   : > { %7602 = vmatpush1.bf16.msra.mxu1 %v13936_v54  ;;  %v14032_v54 = vld [vmem:[#allocation3 + $0x724] ss:$8 sps:$4 sm:$0xff]  }
 0x3ed   : > { %8217 = vmatpush1.bf16.msra.mxu0 %v13939_v55  ;;  %7603 = vmatprep.subr.bf16.mxu1 %v13944_v56  ;;  %v14035_v55 = vld [vmem:[#allocation3 + $0x1624] ss:$8 sps:$4 sm:$0xff]   ;;  %v14030_v56 = vld [vmem:[#allocation3 + $0x720] ss:$8 sps:$4 sm:$0xff]  }
 0x3ee   : > { %8218 = vmatprep.subr.bf16.mxu0 %v13947_v57  ;;  %v14033_v57 = vld [vmem:[#allocation3 + $0x1620] ss:$8 sps:$4 sm:$0xff]  }
 0x3f0   : > { %7604 = vmatpush1.bf16.msra.mxu1 %v13942_v58  ;;  %v14038_v58 = vld [vmem:[#allocation3 + $0x734] ss:$8 sps:$4 sm:$0xff]  }
 0x3f1   : > { %8219 = vmatpush1.bf16.msra.mxu0 %v13945_v59  ;;  %7605 = vmatprep.subr.bf16.mxu1 %v13950_v60  ;;  %v14041_v59 = vld [vmem:[#allocation3 + $0x1634] ss:$8 sps:$4 sm:$0xff]   ;;  %v14036_v60 = vld [vmem:[#allocation3 + $0x730] ss:$8 sps:$4 sm:$0xff]  }
 0x3f2   : > { %8220 = vmatprep.subr.bf16.mxu0 %v13953_v61  ;;  %v14039_v61 = vld [vmem:[#allocation3 + $0x1630] ss:$8 sps:$4 sm:$0xff]  }
 0x3f4   : > { %7606 = vmatpush1.bf16.msra.mxu1 %v13948_v62  ;;  %v14044_v62 = vld [vmem:[#allocation3 + $0x744] ss:$8 sps:$4 sm:$0xff]  }
 0x3f5   : > { %8221 = vmatpush1.bf16.msra.mxu0 %v13951_v63  ;;  %7607 = vmatprep.subr.bf16.mxu1 %v13956_v0  ;;  %v14047_v63 = vld [vmem:[#allocation3 + $0x1644] ss:$8 sps:$4 sm:$0xff]   ;;  %v14042_v0 = vld [vmem:[#allocation3 + $0x740] ss:$8 sps:$4 sm:$0xff]  }
 0x3f6   : > { %8222 = vmatprep.subr.bf16.mxu0 %v13959_v1  ;;  %v14045_v1 = vld [vmem:[#allocation3 + $0x1640] ss:$8 sps:$4 sm:$0xff]  }
 0x3f8   : > { %7608 = vmatpush1.bf16.msra.mxu1 %v13954_v2  ;;  %v14050_v2 = vld [vmem:[#allocation3 + $0x754] ss:$8 sps:$4 sm:$0xff]  }
 0x3f9   : > { %8223 = vmatpush1.bf16.msra.mxu0 %v13957_v3  ;;  %7609 = vmatprep.subr.bf16.mxu1 %v13962_v4  ;;  %v14053_v3 = vld [vmem:[#allocation3 + $0x1654] ss:$8 sps:$4 sm:$0xff]   ;;  %v14048_v4 = vld [vmem:[#allocation3 + $0x750] ss:$8 sps:$4 sm:$0xff]  }
 0x3fa   : > { %8224 = vmatprep.subr.bf16.mxu0 %v13965_v5  ;;  %v14051_v5 = vld [vmem:[#allocation3 + $0x1650] ss:$8 sps:$4 sm:$0xff]  }
 0x3fc   : > { %7610 = vmatpush1.bf16.msra.mxu1 %v13960_v6  ;;  %v14056_v6 = vld [vmem:[#allocation3 + $0x764] ss:$8 sps:$4 sm:$0xff]  }
 0x3fd   : > { %8225 = vmatpush1.bf16.msra.mxu0 %v13963_v7  ;;  %7611 = vmatprep.subr.bf16.mxu1 %v13968_v8  ;;  %v14059_v7 = vld [vmem:[#allocation3 + $0x1664] ss:$8 sps:$4 sm:$0xff]   ;;  %v14054_v8 = vld [vmem:[#allocation3 + $0x760] ss:$8 sps:$4 sm:$0xff]  }
 0x3fe   : > { %8226 = vmatprep.subr.bf16.mxu0 %v13971_v9  ;;  %v14057_v9 = vld [vmem:[#allocation3 + $0x1660] ss:$8 sps:$4 sm:$0xff]  }
 0x400   : > { %7612 = vmatpush1.bf16.msra.mxu1 %v13966_v10  ;;  %v14062_v10 = vld [vmem:[#allocation3 + $0x774] ss:$8 sps:$4 sm:$0xff]  }
 0x401   : > { %8227 = vmatpush1.bf16.msra.mxu0 %v13969_v11  ;;  %7613 = vmatprep.subr.bf16.mxu1 %v13974_v12  ;;  %v14065_v11 = vld [vmem:[#allocation3 + $0x1674] ss:$8 sps:$4 sm:$0xff]   ;;  %v14060_v12 = vld [vmem:[#allocation3 + $0x770] ss:$8 sps:$4 sm:$0xff]  }
 0x402   : > { %8228 = vmatprep.subr.bf16.mxu0 %v13977_v13  ;;  %v14063_v13 = vld [vmem:[#allocation3 + $0x1670] ss:$8 sps:$4 sm:$0xff]  }
 0x404   : > { %7614 = vmatpush1.bf16.msra.mxu1 %v13972_v14  ;;  %v14068_v14 = vld [vmem:[#allocation3 + $0x784] ss:$8 sps:$4 sm:$0xff]  }
 0x405   : > { %8229 = vmatpush1.bf16.msra.mxu0 %v13975_v15  ;;  %7615 = vmatprep.subr.bf16.mxu1 %v13980_v16  ;;  %v14071_v15 = vld [vmem:[#allocation3 + $0x1684] ss:$8 sps:$4 sm:$0xff]   ;;  %v14066_v16 = vld [vmem:[#allocation3 + $0x780] ss:$8 sps:$4 sm:$0xff]  }
 0x406   : > { %8230 = vmatprep.subr.bf16.mxu0 %v13983_v17  ;;  %v14069_v17 = vld [vmem:[#allocation3 + $0x1680] ss:$8 sps:$4 sm:$0xff]  }
 0x408   : > { %7616 = vmatpush1.bf16.msra.mxu1 %v13978_v19  ;;  %v14074_v19 = vld [vmem:[#allocation3 + $0x794] ss:$8 sps:$4 sm:$0xff]  }
 0x409   : > { %8231 = vmatpush1.bf16.msra.mxu0 %v13981_v21  ;;  %7617 = vmatprep.subr.bf16.mxu1 %v13986_v22  ;;  %v14077_v21 = vld [vmem:[#allocation3 + $0x1694] ss:$8 sps:$4 sm:$0xff]   ;;  %v14072_v22 = vld [vmem:[#allocation3 + $0x790] ss:$8 sps:$4 sm:$0xff]  }
 0x40a   : > { %8232 = vmatprep.subr.bf16.mxu0 %v13989_v23  ;;  %v14075_v23 = vld [vmem:[#allocation3 + $0x1690] ss:$8 sps:$4 sm:$0xff]  }
 0x40c   : > { %7618 = vmatpush1.bf16.msra.mxu1 %v13984_v26  ;;  %v14080_v26 = vld [vmem:[#allocation3 + $0x7a4] ss:$8 sps:$4 sm:$0xff]  }
 0x40d   : > { %8233 = vmatpush1.bf16.msra.mxu0 %v13987_v27  ;;  %7619 = vmatprep.subr.bf16.mxu1 %v13992_v20  ;;  %v14083_v27 = vld [vmem:[#allocation3 + $0x16a4] ss:$8 sps:$4 sm:$0xff]   ;;  %v14078_v20 = vld [vmem:[#allocation3 + $0x7a0] ss:$8 sps:$4 sm:$0xff]  }
 0x40e   : > { %8234 = vmatprep.subr.bf16.mxu0 %v13995_v28  ;;  %v14081_v28 = vld [vmem:[#allocation3 + $0x16a0] ss:$8 sps:$4 sm:$0xff]  }
 0x410   : > { %7620 = vmatpush1.bf16.msra.mxu1 %v13990_v30  ;;  %v14086_v30 = vld [vmem:[#allocation3 + $0x7b4] ss:$8 sps:$4 sm:$0xff]  }
 0x411   : > { %8235 = vmatpush1.bf16.msra.mxu0 %v13993_v31  ;;  %7621 = vmatprep.subr.bf16.mxu1 %v13998_v32  ;;  %v14089_v31 = vld [vmem:[#allocation3 + $0x16b4] ss:$8 sps:$4 sm:$0xff]   ;;  %v14084_v32 = vld [vmem:[#allocation3 + $0x7b0] ss:$8 sps:$4 sm:$0xff]  }
 0x412   : > { %8236 = vmatprep.subr.bf16.mxu0 %v14001_v33  ;;  %v14087_v33 = vld [vmem:[#allocation3 + $0x16b0] ss:$8 sps:$4 sm:$0xff]  }
 0x414   : > { %7622 = vmatpush1.bf16.msra.mxu1 %v13996_v25  ;;  %v14092_v25 = vld [vmem:[#allocation3 + $0x7c4] ss:$8 sps:$4 sm:$0xff]  }
 0x415   : > { %8237 = vmatpush1.bf16.msra.mxu0 %v13999_v35  ;;  %7623 = vmatprep.subr.bf16.mxu1 %v14004_v36  ;;  %v14095_v35 = vld [vmem:[#allocation3 + $0x16c4] ss:$8 sps:$4 sm:$0xff]   ;;  %v14090_v36 = vld [vmem:[#allocation3 + $0x7c0] ss:$8 sps:$4 sm:$0xff]  }
 0x416   : > { %8238 = vmatprep.subr.bf16.mxu0 %v14007_v37  ;;  %v14093_v37 = vld [vmem:[#allocation3 + $0x16c0] ss:$8 sps:$4 sm:$0xff]  }
 0x418   : > { %7624 = vmatpush1.bf16.msra.mxu1 %v14002_v38  ;;  %v14098_v38 = vld [vmem:[#allocation3 + $0x7d4] ss:$8 sps:$4 sm:$0xff]  }
 0x419   : > { %8239 = vmatpush1.bf16.msra.mxu0 %v14005_v39  ;;  %7625 = vmatprep.subr.bf16.mxu1 %v14010_v18  ;;  %v14101_v39 = vld [vmem:[#allocation3 + $0x16d4] ss:$8 sps:$4 sm:$0xff]   ;;  %v14096_v18 = vld [vmem:[#allocation3 + $0x7d0] ss:$8 sps:$4 sm:$0xff]  }
 0x41a   : > { %8240 = vmatprep.subr.bf16.mxu0 %v14013_v29  ;;  %v14099_v29 = vld [vmem:[#allocation3 + $0x16d0] ss:$8 sps:$4 sm:$0xff]  }
 0x41c   : > { %7626 = vmatpush1.bf16.msra.mxu1 %v14008_v42  ;;  %v14104_v42 = vld [vmem:[#allocation3 + $0x7e4] ss:$8 sps:$4 sm:$0xff]  }
 0x41d   : > { %8241 = vmatpush1.bf16.msra.mxu0 %v14011_v43  ;;  %7636 = vmatprep.subr.bf16.mxu1 %v14018_v44  ;;  %v14107_v43 = vld [vmem:[#allocation3 + $0x16e4] ss:$8 sps:$4 sm:$0xff]   ;;  %v14102_v44 = vld [vmem:[#allocation3 + $0x7e0] ss:$8 sps:$4 sm:$0xff]  }
 0x41e   : > { %8251 = vmatprep.subr.bf16.mxu0 %v14023_v45  ;;  %v14105_v45 = vld [vmem:[#allocation3 + $0x16e0] ss:$8 sps:$4 sm:$0xff]  }
 0x41f   : > { %7628 = vmatmul.mubr.bf16.vlgmr.msra.gmra.mrb[0].mxu1 %v11525_v34  ;;  %v14110_v34 = vld [vmem:[#allocation3 + $0x7f4] ss:$8 sps:$4 sm:$0xff]  }
 0x420   : > { %8243 = vmatmul.mubr.bf16.vlgmr.msra.gmra.mrb[0].mxu0 %v11555_v24  ;;  %7637 = vmatpush1.bf16.msra.mxu1 %v14016_v48  ;;  %v14113_v24 = vld [vmem:[#allocation3 + $0x16f4] ss:$8 sps:$4 sm:$0xff]   ;;  %v14108_v48 = vld [vmem:[#allocation3 + $0x7f0] ss:$8 sps:$4 sm:$0xff]  }
 0x421   : > { %8252 = vmatpush1.bf16.msra.mxu0 %v14021_v49  ;;  %7638 = vmatprep.subr.bf16.mxu1 %v14026_v50  ;;  %v14111_v49 = vld [vmem:[#allocation3 + $0x16f0] ss:$8 sps:$4 sm:$0xff]   ;;  %v14118_v50 = vld [vmem:[#allocation3 + $0x804] ss:$8 sps:$4 sm:$0xff]  }
 0x422   : > { %8253 = vmatprep.subr.bf16.mxu0 %v14029_v51  ;;  %7668 = vmatprep.mubr.bf16.mxu1 %v11528_v52  ;;  %v14123_v51 = vld [vmem:[#allocation3 + $0x1704] ss:$8 sps:$4 sm:$0xff]   ;;  %v16750_v52 = vld [vmem:[%s17373_s6 + $0x40] sm:$0xff] }
 0x423   : > { %8283 = vmatprep.mubr.bf16.mxu0 %v11558_v53  ;;  %v16755_v53 = vld [vmem:[%s17373_s6 + $0xb8] sm:$0xff] }
 0x424   : > { %7639 = vmatpush1.bf16.msra.mxu1 %v14024_v40  ;;  %v11527_v40 = vcombine.low %v16732_v46, %v16732_v46  ;;  %v14124_v46 = vld [vmem:[#allocation3 + $0x810] ss:$8 sps:$4 sm:$0xff]  }
 0x425   : > { %8254 = vmatpush1.bf16.msra.mxu0 %v14027_v41  ;;  %7640 = vmatprep.subr.bf16.mxu1 %v14032_v54  ;;  %v11557_v41 = vcombine.low %v16737_v47, %v16737_v47  ;;  %v14116_v54 = vld [vmem:[#allocation3 + $0x800] ss:$8 sps:$4 sm:$0xff]   ;;  %v14127_v47 = vld [vmem:[#allocation3 + $0x1710] ss:$8 sps:$4 sm:$0xff]  }
 0x426   : > { %8255 = vmatprep.subr.bf16.mxu0 %v14035_v55  ;;  %v14121_v55 = vld [vmem:[#allocation3 + $0x1700] ss:$8 sps:$4 sm:$0xff]  }
 0x428   : > { %7641 = vmatpush1.bf16.msra.mxu1 %v14030_v56  ;;  %v14126_v56 = vld [vmem:[#allocation3 + $0x814] ss:$8 sps:$4 sm:$0xff]  }
 0x429   : > { %8256 = vmatpush1.bf16.msra.mxu0 %v14033_v57  ;;  %7642 = vmatprep.subr.bf16.mxu1 %v14038_v58  ;;  %v14129_v57 = vld [vmem:[#allocation3 + $0x1714] ss:$8 sps:$4 sm:$0xff]   ;;  %v11530_v58 = vcombine.high %v16750_v52, %v16750_v52 }
 0x42a   : > { %8257 = vmatprep.subr.bf16.mxu0 %v14041_v59  ;;  %v11560_v59 = vcombine.high %v16755_v53, %v16755_v53 }
 0x42c   : > { %7643 = vmatpush1.bf16.msra.mxu1 %v14036_v60  ;;  %v14132_v60 = vld [vmem:[#allocation3 + $0x824] ss:$8 sps:$4 sm:$0xff]  }
 0x42d   : > { %8258 = vmatpush1.bf16.msra.mxu0 %v14039_v61  ;;  %7644 = vmatprep.subr.bf16.mxu1 %v14044_v62  ;;  %v14135_v61 = vld [vmem:[#allocation3 + $0x1724] ss:$8 sps:$4 sm:$0xff]   ;;  %v14130_v62 = vld [vmem:[#allocation3 + $0x820] ss:$8 sps:$4 sm:$0xff]  }
 0x42e   : > { %8259 = vmatprep.subr.bf16.mxu0 %v14047_v63  ;;  %v14133_v63 = vld [vmem:[#allocation3 + $0x1720] ss:$8 sps:$4 sm:$0xff]  }
 0x430   : > { %7645 = vmatpush1.bf16.msra.mxu1 %v14042_v0  ;;  %v14138_v0 = vld [vmem:[#allocation3 + $0x834] ss:$8 sps:$4 sm:$0xff]  }
 0x431   : > { %8260 = vmatpush1.bf16.msra.mxu0 %v14045_v1  ;;  %7646 = vmatprep.subr.bf16.mxu1 %v14050_v2  ;;  %v14141_v1 = vld [vmem:[#allocation3 + $0x1734] ss:$8 sps:$4 sm:$0xff]   ;;  %v14136_v2 = vld [vmem:[#allocation3 + $0x830] ss:$8 sps:$4 sm:$0xff]  }
 0x432   : > { %8261 = vmatprep.subr.bf16.mxu0 %v14053_v3  ;;  %v14139_v3 = vld [vmem:[#allocation3 + $0x1730] ss:$8 sps:$4 sm:$0xff]  }
 0x434   : > { %7647 = vmatpush1.bf16.msra.mxu1 %v14048_v4  ;;  %v14144_v4 = vld [vmem:[#allocation3 + $0x844] ss:$8 sps:$4 sm:$0xff]  }
 0x435   : > { %8262 = vmatpush1.bf16.msra.mxu0 %v14051_v5  ;;  %7648 = vmatprep.subr.bf16.mxu1 %v14056_v6  ;;  %v14147_v5 = vld [vmem:[#allocation3 + $0x1744] ss:$8 sps:$4 sm:$0xff]   ;;  %v14142_v6 = vld [vmem:[#allocation3 + $0x840] ss:$8 sps:$4 sm:$0xff]  }
 0x436   : > { %8263 = vmatprep.subr.bf16.mxu0 %v14059_v7  ;;  %v14145_v7 = vld [vmem:[#allocation3 + $0x1740] ss:$8 sps:$4 sm:$0xff]  }
 0x438   : > { %7649 = vmatpush1.bf16.msra.mxu1 %v14054_v8  ;;  %v14150_v8 = vld [vmem:[#allocation3 + $0x854] ss:$8 sps:$4 sm:$0xff]  }
 0x439   : > { %8264 = vmatpush1.bf16.msra.mxu0 %v14057_v9  ;;  %7650 = vmatprep.subr.bf16.mxu1 %v14062_v10  ;;  %v14153_v9 = vld [vmem:[#allocation3 + $0x1754] ss:$8 sps:$4 sm:$0xff]   ;;  %v14148_v10 = vld [vmem:[#allocation3 + $0x850] ss:$8 sps:$4 sm:$0xff]  }
 0x43a   : > { %8265 = vmatprep.subr.bf16.mxu0 %v14065_v11  ;;  %v14151_v11 = vld [vmem:[#allocation3 + $0x1750] ss:$8 sps:$4 sm:$0xff]  }
 0x43c   : > { %7651 = vmatpush1.bf16.msra.mxu1 %v14060_v12  ;;  %v14156_v12 = vld [vmem:[#allocation3 + $0x864] ss:$8 sps:$4 sm:$0xff]  }
 0x43d   : > { %8266 = vmatpush1.bf16.msra.mxu0 %v14063_v13  ;;  %7652 = vmatprep.subr.bf16.mxu1 %v14068_v14  ;;  %v14159_v13 = vld [vmem:[#allocation3 + $0x1764] ss:$8 sps:$4 sm:$0xff]   ;;  %v14154_v14 = vld [vmem:[#allocation3 + $0x860] ss:$8 sps:$4 sm:$0xff]  }
 0x43e   : > { %8267 = vmatprep.subr.bf16.mxu0 %v14071_v15  ;;  %v14157_v15 = vld [vmem:[#allocation3 + $0x1760] ss:$8 sps:$4 sm:$0xff]  }
 0x440   : > { %7653 = vmatpush1.bf16.msra.mxu1 %v14066_v16  ;;  %v14162_v16 = vld [vmem:[#allocation3 + $0x874] ss:$8 sps:$4 sm:$0xff]  }
 0x441   : > { %8268 = vmatpush1.bf16.msra.mxu0 %v14069_v17  ;;  %7654 = vmatprep.subr.bf16.mxu1 %v14074_v19  ;;  %v14165_v17 = vld [vmem:[#allocation3 + $0x1774] ss:$8 sps:$4 sm:$0xff]   ;;  %v14160_v19 = vld [vmem:[#allocation3 + $0x870] ss:$8 sps:$4 sm:$0xff]  }
 0x442   : > { %8269 = vmatprep.subr.bf16.mxu0 %v14077_v21  ;;  %v14163_v21 = vld [vmem:[#allocation3 + $0x1770] ss:$8 sps:$4 sm:$0xff]  }
 0x444   : > { %7655 = vmatpush1.bf16.msra.mxu1 %v14072_v22  ;;  %v14168_v22 = vld [vmem:[#allocation3 + $0x884] ss:$8 sps:$4 sm:$0xff]  }
 0x445   : > { %8270 = vmatpush1.bf16.msra.mxu0 %v14075_v23  ;;  %7656 = vmatprep.subr.bf16.mxu1 %v14080_v26  ;;  %v14171_v23 = vld [vmem:[#allocation3 + $0x1784] ss:$8 sps:$4 sm:$0xff]   ;;  %v14166_v26 = vld [vmem:[#allocation3 + $0x880] ss:$8 sps:$4 sm:$0xff]  }
 0x446   : > { %8271 = vmatprep.subr.bf16.mxu0 %v14083_v27  ;;  %v14169_v27 = vld [vmem:[#allocation3 + $0x1780] ss:$8 sps:$4 sm:$0xff]  }
 0x448   : > { %7657 = vmatpush1.bf16.msra.mxu1 %v14078_v20  ;;  %v14174_v20 = vld [vmem:[#allocation3 + $0x894] ss:$8 sps:$4 sm:$0xff]  }
 0x449   : > { %8272 = vmatpush1.bf16.msra.mxu0 %v14081_v28  ;;  %7658 = vmatprep.subr.bf16.mxu1 %v14086_v30  ;;  %v14177_v28 = vld [vmem:[#allocation3 + $0x1794] ss:$8 sps:$4 sm:$0xff]   ;;  %v14172_v30 = vld [vmem:[#allocation3 + $0x890] ss:$8 sps:$4 sm:$0xff]  }
 0x44a   : > { %8273 = vmatprep.subr.bf16.mxu0 %v14089_v31  ;;  %v14175_v31 = vld [vmem:[#allocation3 + $0x1790] ss:$8 sps:$4 sm:$0xff]  }
 0x44c   : > { %7659 = vmatpush1.bf16.msra.mxu1 %v14084_v32  ;;  %v14180_v32 = vld [vmem:[#allocation3 + $0x8a4] ss:$8 sps:$4 sm:$0xff]  }
 0x44d   : > { %8274 = vmatpush1.bf16.msra.mxu0 %v14087_v33  ;;  %7660 = vmatprep.subr.bf16.mxu1 %v14092_v25  ;;  %v14183_v33 = vld [vmem:[#allocation3 + $0x17a4] ss:$8 sps:$4 sm:$0xff]   ;;  %v14178_v25 = vld [vmem:[#allocation3 + $0x8a0] ss:$8 sps:$4 sm:$0xff]  }
 0x44e   : > { %8275 = vmatprep.subr.bf16.mxu0 %v14095_v35  ;;  %v14181_v35 = vld [vmem:[#allocation3 + $0x17a0] ss:$8 sps:$4 sm:$0xff]  }
 0x450   : > { %7661 = vmatpush1.bf16.msra.mxu1 %v14090_v36  ;;  %v14186_v36 = vld [vmem:[#allocation3 + $0x8b4] ss:$8 sps:$4 sm:$0xff]  }
 0x451   : > { %8276 = vmatpush1.bf16.msra.mxu0 %v14093_v37  ;;  %7662 = vmatprep.subr.bf16.mxu1 %v14098_v38  ;;  %v14189_v37 = vld [vmem:[#allocation3 + $0x17b4] ss:$8 sps:$4 sm:$0xff]   ;;  %v14184_v38 = vld [vmem:[#allocation3 + $0x8b0] ss:$8 sps:$4 sm:$0xff]  }
 0x452   : > { %8277 = vmatprep.subr.bf16.mxu0 %v14101_v39  ;;  %v14187_v39 = vld [vmem:[#allocation3 + $0x17b0] ss:$8 sps:$4 sm:$0xff]  }
 0x454   : > { %7663 = vmatpush1.bf16.msra.mxu1 %v14096_v18  ;;  %v14192_v18 = vld [vmem:[#allocation3 + $0x8c4] ss:$8 sps:$4 sm:$0xff]  }
 0x455   : > { %8278 = vmatpush1.bf16.msra.mxu0 %v14099_v29  ;;  %7664 = vmatprep.subr.bf16.mxu1 %v14104_v42  ;;  %v14195_v29 = vld [vmem:[#allocation3 + $0x17c4] ss:$8 sps:$4 sm:$0xff]   ;;  %v14190_v42 = vld [vmem:[#allocation3 + $0x8c0] ss:$8 sps:$4 sm:$0xff]  }
 0x456   : > { %8279 = vmatprep.subr.bf16.mxu0 %v14107_v43  ;;  %v14193_v43 = vld [vmem:[#allocation3 + $0x17c0] ss:$8 sps:$4 sm:$0xff]  }
 0x458   : > { %7665 = vmatpush1.bf16.msra.mxu1 %v14102_v44  ;;  %v14198_v44 = vld [vmem:[#allocation3 + $0x8d4] ss:$8 sps:$4 sm:$0xff]  }
 0x459   : > { %8280 = vmatpush1.bf16.msra.mxu0 %v14105_v45  ;;  %7666 = vmatprep.subr.bf16.mxu1 %v14110_v34  ;;  %v14201_v45 = vld [vmem:[#allocation3 + $0x17d4] ss:$8 sps:$4 sm:$0xff]   ;;  %v14196_v34 = vld [vmem:[#allocation3 + $0x8d0] ss:$8 sps:$4 sm:$0xff]  }
 0x45a   : > { %8281 = vmatprep.subr.bf16.mxu0 %v14113_v24  ;;  %v14199_v24 = vld [vmem:[#allocation3 + $0x17d0] ss:$8 sps:$4 sm:$0xff]  }
 0x45c   : > { %7667 = vmatpush1.bf16.msra.mxu1 %v14108_v48  ;;  %v14204_v48 = vld [vmem:[#allocation3 + $0x8e4] ss:$8 sps:$4 sm:$0xff]  }
 0x45d   : > { %8282 = vmatpush1.bf16.msra.mxu0 %v14111_v49  ;;  %7677 = vmatprep.subr.bf16.mxu1 %v14118_v50  ;;  %v14207_v49 = vld [vmem:[#allocation3 + $0x17e4] ss:$8 sps:$4 sm:$0xff]   ;;  %v14202_v50 = vld [vmem:[#allocation3 + $0x8e0] ss:$8 sps:$4 sm:$0xff]  }
 0x45e   : > { %8292 = vmatprep.subr.bf16.mxu0 %v14123_v51  ;;  %v14205_v51 = vld [vmem:[#allocation3 + $0x17e0] ss:$8 sps:$4 sm:$0xff]  }
 0x45f   : > { %7669 = vmatmul.mubr.bf16.vlgmr.msra.gmra.mrb[0].mxu1 %v11527_v40  ;;  %v14210_v40 = vld [vmem:[#allocation3 + $0x8f4] ss:$8 sps:$4 sm:$0xff]  }
 0x460   : > { %8284 = vmatmul.mubr.bf16.vlgmr.msra.gmra.mrb[0].mxu0 %v11557_v41  ;;  %7678 = vmatpush1.bf16.msra.mxu1 %v14116_v54  ;;  %v14213_v41 = vld [vmem:[#allocation3 + $0x17f4] ss:$8 sps:$4 sm:$0xff]   ;;  %v14208_v54 = vld [vmem:[#allocation3 + $0x8f0] ss:$8 sps:$4 sm:$0xff]  }
 0x461   : > { %8293 = vmatpush1.bf16.msra.mxu0 %v14121_v55  ;;  %7679 = vmatprep.subr.bf16.mxu1 %v14126_v56  ;;  %v14211_v55 = vld [vmem:[#allocation3 + $0x17f0] ss:$8 sps:$4 sm:$0xff]   ;;  %v14218_v56 = vld [vmem:[#allocation3 + $0x904] ss:$8 sps:$4 sm:$0xff]  }
 0x462   : > { %8294 = vmatprep.subr.bf16.mxu0 %v14129_v57  ;;  %7709 = vmatprep.mubr.bf16.mxu1 %v11530_v58  ;;  %v14223_v57 = vld [vmem:[#allocation3 + $0x1804] ss:$8 sps:$4 sm:$0xff]   ;;  %v16768_v58 = vld [vmem:[%s17373_s6 + $0x48] sm:$0xff] }
 0x463   : > { %8324 = vmatprep.mubr.bf16.mxu0 %v11560_v59  ;;  %v16773_v59 = vld [vmem:[%s17373_s6 + $0xc0] sm:$0xff] }
 0x464   : > { %7680 = vmatpush1.bf16.msra.mxu1 %v14124_v46  ;;  %v11529_v46 = vcombine.low %v16750_v52, %v16750_v52  ;;  %v14224_v52 = vld [vmem:[#allocation3 + $0x910] ss:$8 sps:$4 sm:$0xff]  }
 0x465   : > { %8295 = vmatpush1.bf16.msra.mxu0 %v14127_v47  ;;  %7681 = vmatprep.subr.bf16.mxu1 %v14132_v60  ;;  %v11559_v47 = vcombine.low %v16755_v53, %v16755_v53  ;;  %v14216_v60 = vld [vmem:[#allocation3 + $0x900] ss:$8 sps:$4 sm:$0xff]   ;;  %v14227_v53 = vld [vmem:[#allocation3 + $0x1810] ss:$8 sps:$4 sm:$0xff]  }
 0x466   : > { %8296 = vmatprep.subr.bf16.mxu0 %v14135_v61  ;;  %v14221_v61 = vld [vmem:[#allocation3 + $0x1800] ss:$8 sps:$4 sm:$0xff]  }
 0x468   : > { %7682 = vmatpush1.bf16.msra.mxu1 %v14130_v62  ;;  %v14226_v62 = vld [vmem:[#allocation3 + $0x914] ss:$8 sps:$4 sm:$0xff]  }
 0x469   : > { %8297 = vmatpush1.bf16.msra.mxu0 %v14133_v63  ;;  %7683 = vmatprep.subr.bf16.mxu1 %v14138_v0  ;;  %v14229_v63 = vld [vmem:[#allocation3 + $0x1814] ss:$8 sps:$4 sm:$0xff]   ;;  %v11532_v0 = vcombine.high %v16768_v58, %v16768_v58 }
 0x46a   : > { %8298 = vmatprep.subr.bf16.mxu0 %v14141_v1  ;;  %v11562_v1 = vcombine.high %v16773_v59, %v16773_v59 }
 0x46c   : > { %7684 = vmatpush1.bf16.msra.mxu1 %v14136_v2  ;;  %v14232_v2 = vld [vmem:[#allocation3 + $0x924] ss:$8 sps:$4 sm:$0xff]  }
 0x46d   : > { %8299 = vmatpush1.bf16.msra.mxu0 %v14139_v3  ;;  %7685 = vmatprep.subr.bf16.mxu1 %v14144_v4  ;;  %v14235_v3 = vld [vmem:[#allocation3 + $0x1824] ss:$8 sps:$4 sm:$0xff]   ;;  %v14230_v4 = vld [vmem:[#allocation3 + $0x920] ss:$8 sps:$4 sm:$0xff]  }
 0x46e   : > { %8300 = vmatprep.subr.bf16.mxu0 %v14147_v5  ;;  %v14233_v5 = vld [vmem:[#allocation3 + $0x1820] ss:$8 sps:$4 sm:$0xff]  }
 0x470   : > { %7686 = vmatpush1.bf16.msra.mxu1 %v14142_v6  ;;  %v14238_v6 = vld [vmem:[#allocation3 + $0x934] ss:$8 sps:$4 sm:$0xff]  }
 0x471   : > { %8301 = vmatpush1.bf16.msra.mxu0 %v14145_v7  ;;  %7687 = vmatprep.subr.bf16.mxu1 %v14150_v8  ;;  %v14241_v7 = vld [vmem:[#allocation3 + $0x1834] ss:$8 sps:$4 sm:$0xff]   ;;  %v14236_v8 = vld [vmem:[#allocation3 + $0x930] ss:$8 sps:$4 sm:$0xff]  }
 0x472   : > { %8302 = vmatprep.subr.bf16.mxu0 %v14153_v9  ;;  %v14239_v9 = vld [vmem:[#allocation3 + $0x1830] ss:$8 sps:$4 sm:$0xff]  }
 0x474   : > { %7688 = vmatpush1.bf16.msra.mxu1 %v14148_v10  ;;  %v14244_v10 = vld [vmem:[#allocation3 + $0x944] ss:$8 sps:$4 sm:$0xff]  }
 0x475   : > { %8303 = vmatpush1.bf16.msra.mxu0 %v14151_v11  ;;  %7689 = vmatprep.subr.bf16.mxu1 %v14156_v12  ;;  %v14247_v11 = vld [vmem:[#allocation3 + $0x1844] ss:$8 sps:$4 sm:$0xff]   ;;  %v14242_v12 = vld [vmem:[#allocation3 + $0x940] ss:$8 sps:$4 sm:$0xff]  }
 0x476   : > { %8304 = vmatprep.subr.bf16.mxu0 %v14159_v13  ;;  %v14245_v13 = vld [vmem:[#allocation3 + $0x1840] ss:$8 sps:$4 sm:$0xff]  }
 0x478   : > { %7690 = vmatpush1.bf16.msra.mxu1 %v14154_v14  ;;  %v14250_v14 = vld [vmem:[#allocation3 + $0x954] ss:$8 sps:$4 sm:$0xff]  }
 0x479   : > { %8305 = vmatpush1.bf16.msra.mxu0 %v14157_v15  ;;  %7691 = vmatprep.subr.bf16.mxu1 %v14162_v16  ;;  %v14253_v15 = vld [vmem:[#allocation3 + $0x1854] ss:$8 sps:$4 sm:$0xff]   ;;  %v14248_v16 = vld [vmem:[#allocation3 + $0x950] ss:$8 sps:$4 sm:$0xff]  }
 0x47a   : > { %8306 = vmatprep.subr.bf16.mxu0 %v14165_v17  ;;  %v14251_v17 = vld [vmem:[#allocation3 + $0x1850] ss:$8 sps:$4 sm:$0xff]  }
 0x47c   : > { %7692 = vmatpush1.bf16.msra.mxu1 %v14160_v19  ;;  %v14256_v19 = vld [vmem:[#allocation3 + $0x964] ss:$8 sps:$4 sm:$0xff]  }
 0x47d   : > { %8307 = vmatpush1.bf16.msra.mxu0 %v14163_v21  ;;  %7693 = vmatprep.subr.bf16.mxu1 %v14168_v22  ;;  %v14259_v21 = vld [vmem:[#allocation3 + $0x1864] ss:$8 sps:$4 sm:$0xff]   ;;  %v14254_v22 = vld [vmem:[#allocation3 + $0x960] ss:$8 sps:$4 sm:$0xff]  }
 0x47e   : > { %8308 = vmatprep.subr.bf16.mxu0 %v14171_v23  ;;  %v14257_v23 = vld [vmem:[#allocation3 + $0x1860] ss:$8 sps:$4 sm:$0xff]  }
 0x480   : > { %7694 = vmatpush1.bf16.msra.mxu1 %v14166_v26  ;;  %v14262_v26 = vld [vmem:[#allocation3 + $0x974] ss:$8 sps:$4 sm:$0xff]  }
 0x481   : > { %8309 = vmatpush1.bf16.msra.mxu0 %v14169_v27  ;;  %7695 = vmatprep.subr.bf16.mxu1 %v14174_v20  ;;  %v14265_v27 = vld [vmem:[#allocation3 + $0x1874] ss:$8 sps:$4 sm:$0xff]   ;;  %v14260_v20 = vld [vmem:[#allocation3 + $0x970] ss:$8 sps:$4 sm:$0xff]  }
 0x482   : > { %8310 = vmatprep.subr.bf16.mxu0 %v14177_v28  ;;  %v14263_v28 = vld [vmem:[#allocation3 + $0x1870] ss:$8 sps:$4 sm:$0xff]  }
 0x484   : > { %7696 = vmatpush1.bf16.msra.mxu1 %v14172_v30  ;;  %v14268_v30 = vld [vmem:[#allocation3 + $0x984] ss:$8 sps:$4 sm:$0xff]  }
 0x485   : > { %8311 = vmatpush1.bf16.msra.mxu0 %v14175_v31  ;;  %7697 = vmatprep.subr.bf16.mxu1 %v14180_v32  ;;  %v14271_v31 = vld [vmem:[#allocation3 + $0x1884] ss:$8 sps:$4 sm:$0xff]   ;;  %v14266_v32 = vld [vmem:[#allocation3 + $0x980] ss:$8 sps:$4 sm:$0xff]  }
 0x486   : > { %8312 = vmatprep.subr.bf16.mxu0 %v14183_v33  ;;  %v14269_v33 = vld [vmem:[#allocation3 + $0x1880] ss:$8 sps:$4 sm:$0xff]  }
 0x488   : > { %7698 = vmatpush1.bf16.msra.mxu1 %v14178_v25  ;;  %v14274_v25 = vld [vmem:[#allocation3 + $0x994] ss:$8 sps:$4 sm:$0xff]  }
 0x489   : > { %8313 = vmatpush1.bf16.msra.mxu0 %v14181_v35  ;;  %7699 = vmatprep.subr.bf16.mxu1 %v14186_v36  ;;  %v14277_v35 = vld [vmem:[#allocation3 + $0x1894] ss:$8 sps:$4 sm:$0xff]   ;;  %v14272_v36 = vld [vmem:[#allocation3 + $0x990] ss:$8 sps:$4 sm:$0xff]  }
 0x48a   : > { %8314 = vmatprep.subr.bf16.mxu0 %v14189_v37  ;;  %v14275_v37 = vld [vmem:[#allocation3 + $0x1890] ss:$8 sps:$4 sm:$0xff]  }
 0x48c   : > { %7700 = vmatpush1.bf16.msra.mxu1 %v14184_v38  ;;  %v14280_v38 = vld [vmem:[#allocation3 + $0x9a4] ss:$8 sps:$4 sm:$0xff]  }
 0x48d   : > { %8315 = vmatpush1.bf16.msra.mxu0 %v14187_v39  ;;  %7701 = vmatprep.subr.bf16.mxu1 %v14192_v18  ;;  %v14283_v39 = vld [vmem:[#allocation3 + $0x18a4] ss:$8 sps:$4 sm:$0xff]   ;;  %v14278_v18 = vld [vmem:[#allocation3 + $0x9a0] ss:$8 sps:$4 sm:$0xff]  }
 0x48e   : > { %8316 = vmatprep.subr.bf16.mxu0 %v14195_v29  ;;  %v14281_v29 = vld [vmem:[#allocation3 + $0x18a0] ss:$8 sps:$4 sm:$0xff]  }
 0x490   : > { %7702 = vmatpush1.bf16.msra.mxu1 %v14190_v42  ;;  %v14286_v42 = vld [vmem:[#allocation3 + $0x9b4] ss:$8 sps:$4 sm:$0xff]  }
 0x491   : > { %8317 = vmatpush1.bf16.msra.mxu0 %v14193_v43  ;;  %7703 = vmatprep.subr.bf16.mxu1 %v14198_v44  ;;  %v14289_v43 = vld [vmem:[#allocation3 + $0x18b4] ss:$8 sps:$4 sm:$0xff]   ;;  %v14284_v44 = vld [vmem:[#allocation3 + $0x9b0] ss:$8 sps:$4 sm:$0xff]  }
 0x492   : > { %8318 = vmatprep.subr.bf16.mxu0 %v14201_v45  ;;  %v14287_v45 = vld [vmem:[#allocation3 + $0x18b0] ss:$8 sps:$4 sm:$0xff]  }
 0x494   : > { %7704 = vmatpush1.bf16.msra.mxu1 %v14196_v34  ;;  %v14292_v34 = vld [vmem:[#allocation3 + $0x9c4] ss:$8 sps:$4 sm:$0xff]  }
 0x495   : > { %8319 = vmatpush1.bf16.msra.mxu0 %v14199_v24  ;;  %7705 = vmatprep.subr.bf16.mxu1 %v14204_v48  ;;  %v14295_v24 = vld [vmem:[#allocation3 + $0x18c4] ss:$8 sps:$4 sm:$0xff]   ;;  %v14290_v48 = vld [vmem:[#allocation3 + $0x9c0] ss:$8 sps:$4 sm:$0xff]  }
 0x496   : > { %8320 = vmatprep.subr.bf16.mxu0 %v14207_v49  ;;  %v14293_v49 = vld [vmem:[#allocation3 + $0x18c0] ss:$8 sps:$4 sm:$0xff]  }
 0x498   : > { %7706 = vmatpush1.bf16.msra.mxu1 %v14202_v50  ;;  %v14298_v50 = vld [vmem:[#allocation3 + $0x9d4] ss:$8 sps:$4 sm:$0xff]  }
 0x499   : > { %8321 = vmatpush1.bf16.msra.mxu0 %v14205_v51  ;;  %7707 = vmatprep.subr.bf16.mxu1 %v14210_v40  ;;  %v14301_v51 = vld [vmem:[#allocation3 + $0x18d4] ss:$8 sps:$4 sm:$0xff]   ;;  %v14296_v40 = vld [vmem:[#allocation3 + $0x9d0] ss:$8 sps:$4 sm:$0xff]  }
 0x49a   : > { %8322 = vmatprep.subr.bf16.mxu0 %v14213_v41  ;;  %v14299_v41 = vld [vmem:[#allocation3 + $0x18d0] ss:$8 sps:$4 sm:$0xff]  }
 0x49c   : > { %7708 = vmatpush1.bf16.msra.mxu1 %v14208_v54  ;;  %v14304_v54 = vld [vmem:[#allocation3 + $0x9e4] ss:$8 sps:$4 sm:$0xff]  }
 0x49d   : > { %8323 = vmatpush1.bf16.msra.mxu0 %v14211_v55  ;;  %7718 = vmatprep.subr.bf16.mxu1 %v14218_v56  ;;  %v14307_v55 = vld [vmem:[#allocation3 + $0x18e4] ss:$8 sps:$4 sm:$0xff]   ;;  %v14302_v56 = vld [vmem:[#allocation3 + $0x9e0] ss:$8 sps:$4 sm:$0xff]  }
 0x49e   : > { %8333 = vmatprep.subr.bf16.mxu0 %v14223_v57  ;;  %v14305_v57 = vld [vmem:[#allocation3 + $0x18e0] ss:$8 sps:$4 sm:$0xff]  }
 0x49f   : > { %7710 = vmatmul.mubr.bf16.vlgmr.msra.gmra.mrb[0].mxu1 %v11529_v46  ;;  %v14310_v46 = vld [vmem:[#allocation3 + $0x9f4] ss:$8 sps:$4 sm:$0xff]  }
 0x4a0   : > { %8325 = vmatmul.mubr.bf16.vlgmr.msra.gmra.mrb[0].mxu0 %v11559_v47  ;;  %7719 = vmatpush1.bf16.msra.mxu1 %v14216_v60  ;;  %v14313_v47 = vld [vmem:[#allocation3 + $0x18f4] ss:$8 sps:$4 sm:$0xff]   ;;  %v14308_v60 = vld [vmem:[#allocation3 + $0x9f0] ss:$8 sps:$4 sm:$0xff]  }
 0x4a1   : > { %8334 = vmatpush1.bf16.msra.mxu0 %v14221_v61  ;;  %7720 = vmatprep.subr.bf16.mxu1 %v14226_v62  ;;  %v14311_v61 = vld [vmem:[#allocation3 + $0x18f0] ss:$8 sps:$4 sm:$0xff]   ;;  %v14318_v62 = vld [vmem:[#allocation3 + $0xa04] ss:$8 sps:$4 sm:$0xff]  }
 0x4a2   : > { %8335 = vmatprep.subr.bf16.mxu0 %v14229_v63  ;;  %7750 = vmatprep.mubr.bf16.mxu1 %v11532_v0  ;;  %v14323_v63 = vld [vmem:[#allocation3 + $0x1904] ss:$8 sps:$4 sm:$0xff]   ;;  %v11531_v0 = vcombine.low %v16768_v58, %v16768_v58  ;;  %v14326_v58 = vld [vmem:[#allocation3 + $0xa14] ss:$8 sps:$4 sm:$0xff]  }
 0x4a3   : > { %8365 = vmatprep.mubr.bf16.mxu0 %v11562_v1  ;;  %v11561_v1 = vcombine.low %v16773_v59, %v16773_v59 }
 0x4a4   : > { %7721 = vmatpush1.bf16.msra.mxu1 %v14224_v52  ;;  %v16790_v52 = vld [vmem:[%s17373_s6 + $0x50] sm:$0xff] }
 0x4a5   : > { %8336 = vmatpush1.bf16.msra.mxu0 %v14227_v53  ;;  %7722 = vmatprep.subr.bf16.mxu1 %v14232_v2  ;;  %v16795_v53 = vld [vmem:[%s17373_s6 + $0xc8] sm:$0xff]  ;;  %v14316_v2 = vld [vmem:[#allocation3 + $0xa00] ss:$8 sps:$4 sm:$0xff]   ;;  %v11534_v59 = vcombine.high %v16790_v52, %v16790_v52 }
 0x4a6   : > { %8337 = vmatprep.subr.bf16.mxu0 %v14235_v3  ;;  %v14321_v3 = vld [vmem:[#allocation3 + $0x1900] ss:$8 sps:$4 sm:$0xff]  }
 0x4a8   : > { %7723 = vmatpush1.bf16.msra.mxu1 %v14230_v4  ;;  %v14329_v4 = vld [vmem:[#allocation3 + $0x1914] ss:$8 sps:$4 sm:$0xff]  }
 0x4a9   : > { %8338 = vmatpush1.bf16.msra.mxu0 %v14233_v5  ;;  %7724 = vmatprep.subr.bf16.mxu1 %v14238_v6  ;;  %v11564_v5 = vcombine.high %v16795_v53, %v16795_v53  ;;  %v14324_v6 = vld [vmem:[#allocation3 + $0xa10] ss:$8 sps:$4 sm:$0xff]  }
 0x4aa   : > { %8339 = vmatprep.subr.bf16.mxu0 %v14241_v7  ;;  %v14327_v7 = vld [vmem:[#allocation3 + $0x1910] ss:$8 sps:$4 sm:$0xff]  }
 0x4ac   : > { %7725 = vmatpush1.bf16.msra.mxu1 %v14236_v8  ;;  %v14332_v8 = vld [vmem:[#allocation3 + $0xa24] ss:$8 sps:$4 sm:$0xff]  }
 0x4ad   : > { %8340 = vmatpush1.bf16.msra.mxu0 %v14239_v9  ;;  %7726 = vmatprep.subr.bf16.mxu1 %v14244_v10  ;;  %v14335_v9 = vld [vmem:[#allocation3 + $0x1924] ss:$8 sps:$4 sm:$0xff]   ;;  %v14330_v10 = vld [vmem:[#allocation3 + $0xa20] ss:$8 sps:$4 sm:$0xff]  }
 0x4ae   : > { %8341 = vmatprep.subr.bf16.mxu0 %v14247_v11  ;;  %v14333_v11 = vld [vmem:[#allocation3 + $0x1920] ss:$8 sps:$4 sm:$0xff]  }
 0x4b0   : > { %7727 = vmatpush1.bf16.msra.mxu1 %v14242_v12  ;;  %v14338_v12 = vld [vmem:[#allocation3 + $0xa34] ss:$8 sps:$4 sm:$0xff]  }
 0x4b1   : > { %8342 = vmatpush1.bf16.msra.mxu0 %v14245_v13  ;;  %7728 = vmatprep.subr.bf16.mxu1 %v14250_v14  ;;  %v14341_v13 = vld [vmem:[#allocation3 + $0x1934] ss:$8 sps:$4 sm:$0xff]   ;;  %v14336_v14 = vld [vmem:[#allocation3 + $0xa30] ss:$8 sps:$4 sm:$0xff]  }
 0x4b2   : > { %8343 = vmatprep.subr.bf16.mxu0 %v14253_v15  ;;  %v14339_v15 = vld [vmem:[#allocation3 + $0x1930] ss:$8 sps:$4 sm:$0xff]  }
 0x4b4   : > { %7729 = vmatpush1.bf16.msra.mxu1 %v14248_v16  ;;  %v14344_v16 = vld [vmem:[#allocation3 + $0xa44] ss:$8 sps:$4 sm:$0xff]  }
 0x4b5   : > { %8344 = vmatpush1.bf16.msra.mxu0 %v14251_v17  ;;  %7730 = vmatprep.subr.bf16.mxu1 %v14256_v19  ;;  %v14347_v17 = vld [vmem:[#allocation3 + $0x1944] ss:$8 sps:$4 sm:$0xff]   ;;  %v14342_v19 = vld [vmem:[#allocation3 + $0xa40] ss:$8 sps:$4 sm:$0xff]  }
 0x4b6   : > { %8345 = vmatprep.subr.bf16.mxu0 %v14259_v21  ;;  %v14345_v21 = vld [vmem:[#allocation3 + $0x1940] ss:$8 sps:$4 sm:$0xff]  }
 0x4b8   : > { %7731 = vmatpush1.bf16.msra.mxu1 %v14254_v22  ;;  %v14350_v22 = vld [vmem:[#allocation3 + $0xa54] ss:$8 sps:$4 sm:$0xff]  }
 0x4b9   : > { %8346 = vmatpush1.bf16.msra.mxu0 %v14257_v23  ;;  %7732 = vmatprep.subr.bf16.mxu1 %v14262_v26  ;;  %v14353_v23 = vld [vmem:[#allocation3 + $0x1954] ss:$8 sps:$4 sm:$0xff]   ;;  %v14348_v26 = vld [vmem:[#allocation3 + $0xa50] ss:$8 sps:$4 sm:$0xff]  }
 0x4ba   : > { %8347 = vmatprep.subr.bf16.mxu0 %v14265_v27  ;;  %v14351_v27 = vld [vmem:[#allocation3 + $0x1950] ss:$8 sps:$4 sm:$0xff]  }
 0x4bc   : > { %7733 = vmatpush1.bf16.msra.mxu1 %v14260_v20  ;;  %v14356_v20 = vld [vmem:[#allocation3 + $0xa64] ss:$8 sps:$4 sm:$0xff]  }
 0x4bd   : > { %8348 = vmatpush1.bf16.msra.mxu0 %v14263_v28  ;;  %7734 = vmatprep.subr.bf16.mxu1 %v14268_v30  ;;  %v14359_v28 = vld [vmem:[#allocation3 + $0x1964] ss:$8 sps:$4 sm:$0xff]   ;;  %v14354_v30 = vld [vmem:[#allocation3 + $0xa60] ss:$8 sps:$4 sm:$0xff]  }
 0x4be   : > { %8349 = vmatprep.subr.bf16.mxu0 %v14271_v31  ;;  %v14357_v31 = vld [vmem:[#allocation3 + $0x1960] ss:$8 sps:$4 sm:$0xff]  }
 0x4c0   : > { %7735 = vmatpush1.bf16.msra.mxu1 %v14266_v32  ;;  %v14362_v32 = vld [vmem:[#allocation3 + $0xa74] ss:$8 sps:$4 sm:$0xff]  }
 0x4c1   : > { %8350 = vmatpush1.bf16.msra.mxu0 %v14269_v33  ;;  %7736 = vmatprep.subr.bf16.mxu1 %v14274_v25  ;;  %v14365_v33 = vld [vmem:[#allocation3 + $0x1974] ss:$8 sps:$4 sm:$0xff]   ;;  %v14360_v25 = vld [vmem:[#allocation3 + $0xa70] ss:$8 sps:$4 sm:$0xff]  }
 0x4c2   : > { %8351 = vmatprep.subr.bf16.mxu0 %v14277_v35  ;;  %v14363_v35 = vld [vmem:[#allocation3 + $0x1970] ss:$8 sps:$4 sm:$0xff]  }
 0x4c4   : > { %7737 = vmatpush1.bf16.msra.mxu1 %v14272_v36  ;;  %v14368_v36 = vld [vmem:[#allocation3 + $0xa84] ss:$8 sps:$4 sm:$0xff]  }
 0x4c5   : > { %8352 = vmatpush1.bf16.msra.mxu0 %v14275_v37  ;;  %7738 = vmatprep.subr.bf16.mxu1 %v14280_v38  ;;  %v14371_v37 = vld [vmem:[#allocation3 + $0x1984] ss:$8 sps:$4 sm:$0xff]   ;;  %v14366_v38 = vld [vmem:[#allocation3 + $0xa80] ss:$8 sps:$4 sm:$0xff]  }
 0x4c6   : > { %8353 = vmatprep.subr.bf16.mxu0 %v14283_v39  ;;  %v14369_v39 = vld [vmem:[#allocation3 + $0x1980] ss:$8 sps:$4 sm:$0xff]  }
 0x4c8   : > { %7739 = vmatpush1.bf16.msra.mxu1 %v14278_v18  ;;  %v14374_v18 = vld [vmem:[#allocation3 + $0xa94] ss:$8 sps:$4 sm:$0xff]  }
 0x4c9   : > { %8354 = vmatpush1.bf16.msra.mxu0 %v14281_v29  ;;  %7740 = vmatprep.subr.bf16.mxu1 %v14286_v42  ;;  %v14377_v29 = vld [vmem:[#allocation3 + $0x1994] ss:$8 sps:$4 sm:$0xff]   ;;  %v14372_v42 = vld [vmem:[#allocation3 + $0xa90] ss:$8 sps:$4 sm:$0xff]  }
 0x4ca   : > { %8355 = vmatprep.subr.bf16.mxu0 %v14289_v43  ;;  %v14375_v43 = vld [vmem:[#allocation3 + $0x1990] ss:$8 sps:$4 sm:$0xff]  }
 0x4cc   : > { %7741 = vmatpush1.bf16.msra.mxu1 %v14284_v44  ;;  %v14380_v44 = vld [vmem:[#allocation3 + $0xaa4] ss:$8 sps:$4 sm:$0xff]  }
 0x4cd   : > { %8356 = vmatpush1.bf16.msra.mxu0 %v14287_v45  ;;  %7742 = vmatprep.subr.bf16.mxu1 %v14292_v34  ;;  %v14383_v45 = vld [vmem:[#allocation3 + $0x19a4] ss:$8 sps:$4 sm:$0xff]   ;;  %v14378_v34 = vld [vmem:[#allocation3 + $0xaa0] ss:$8 sps:$4 sm:$0xff]  }
 0x4ce   : > { %8357 = vmatprep.subr.bf16.mxu0 %v14295_v24  ;;  %v14381_v24 = vld [vmem:[#allocation3 + $0x19a0] ss:$8 sps:$4 sm:$0xff]  }
 0x4d0   : > { %7743 = vmatpush1.bf16.msra.mxu1 %v14290_v48  ;;  %v14386_v48 = vld [vmem:[#allocation3 + $0xab4] ss:$8 sps:$4 sm:$0xff]  }
 0x4d1   : > { %8358 = vmatpush1.bf16.msra.mxu0 %v14293_v49  ;;  %7744 = vmatprep.subr.bf16.mxu1 %v14298_v50  ;;  %v14389_v49 = vld [vmem:[#allocation3 + $0x19b4] ss:$8 sps:$4 sm:$0xff]   ;;  %v14384_v50 = vld [vmem:[#allocation3 + $0xab0] ss:$8 sps:$4 sm:$0xff]  }
 0x4d2   : > { %8359 = vmatprep.subr.bf16.mxu0 %v14301_v51  ;;  %v14387_v51 = vld [vmem:[#allocation3 + $0x19b0] ss:$8 sps:$4 sm:$0xff]  }
 0x4d4   : > { %7745 = vmatpush1.bf16.msra.mxu1 %v14296_v40  ;;  %v14392_v40 = vld [vmem:[#allocation3 + $0xac4] ss:$8 sps:$4 sm:$0xff]  }
 0x4d5   : > { %8360 = vmatpush1.bf16.msra.mxu0 %v14299_v41  ;;  %7746 = vmatprep.subr.bf16.mxu1 %v14304_v54  ;;  %v14395_v41 = vld [vmem:[#allocation3 + $0x19c4] ss:$8 sps:$4 sm:$0xff]   ;;  %v14390_v54 = vld [vmem:[#allocation3 + $0xac0] ss:$8 sps:$4 sm:$0xff]  }
 0x4d6   : > { %8361 = vmatprep.subr.bf16.mxu0 %v14307_v55  ;;  %v14393_v55 = vld [vmem:[#allocation3 + $0x19c0] ss:$8 sps:$4 sm:$0xff]  }
 0x4d8   : > { %7747 = vmatpush1.bf16.msra.mxu1 %v14302_v56  ;;  %v14398_v56 = vld [vmem:[#allocation3 + $0xad4] ss:$8 sps:$4 sm:$0xff]  }
 0x4d9   : > { %8362 = vmatpush1.bf16.msra.mxu0 %v14305_v57  ;;  %7748 = vmatprep.subr.bf16.mxu1 %v14310_v46  ;;  %v14401_v57 = vld [vmem:[#allocation3 + $0x19d4] ss:$8 sps:$4 sm:$0xff]   ;;  %v14396_v46 = vld [vmem:[#allocation3 + $0xad0] ss:$8 sps:$4 sm:$0xff]  }
 0x4da   : > { %8363 = vmatprep.subr.bf16.mxu0 %v14313_v47  ;;  %v14399_v47 = vld [vmem:[#allocation3 + $0x19d0] ss:$8 sps:$4 sm:$0xff]  }
 0x4dc   : > { %7749 = vmatpush1.bf16.msra.mxu1 %v14308_v60  ;;  %v14404_v60 = vld [vmem:[#allocation3 + $0xae4] ss:$8 sps:$4 sm:$0xff]  }
 0x4dd   : > { %8364 = vmatpush1.bf16.msra.mxu0 %v14311_v61  ;;  %7759 = vmatprep.subr.bf16.mxu1 %v14318_v62  ;;  %v14407_v61 = vld [vmem:[#allocation3 + $0x19e4] ss:$8 sps:$4 sm:$0xff]   ;;  %v14402_v62 = vld [vmem:[#allocation3 + $0xae0] ss:$8 sps:$4 sm:$0xff]  }
 0x4de   : > { %8374 = vmatprep.subr.bf16.mxu0 %v14323_v63  ;;  %v14405_v63 = vld [vmem:[#allocation3 + $0x19e0] ss:$8 sps:$4 sm:$0xff]  }
 0x4df   : > { %7751 = vmatmul.mubr.bf16.vlgmr.msra.gmra.mrb[0].mxu1 %v11531_v0  ;;  %v14410_v0 = vld [vmem:[#allocation3 + $0xaf4] ss:$8 sps:$4 sm:$0xff]  }
 0x4e0   : > { %8366 = vmatmul.mubr.bf16.vlgmr.msra.gmra.mrb[0].mxu0 %v11561_v1  ;;  %7760 = vmatpush1.bf16.msra.mxu1 %v14316_v2  ;;  %v14413_v1 = vld [vmem:[#allocation3 + $0x19f4] ss:$8 sps:$4 sm:$0xff]   ;;  %v14408_v2 = vld [vmem:[#allocation3 + $0xaf0] ss:$8 sps:$4 sm:$0xff]  }
 0x4e1   : > { %8375 = vmatpush1.bf16.msra.mxu0 %v14321_v3  ;;  %7761 = vmatprep.subr.bf16.mxu1 %v14326_v58  ;;  %v14411_v3 = vld [vmem:[#allocation3 + $0x19f0] ss:$8 sps:$4 sm:$0xff]   ;;  %v14418_v58 = vld [vmem:[#allocation3 + $0xb04] ss:$8 sps:$4 sm:$0xff]  }
 0x4e2   : > { %8376 = vmatprep.subr.bf16.mxu0 %v14329_v4  ;;  %7791 = vmatprep.mubr.bf16.mxu1 %v11534_v59  ;;  %v14423_v4 = vld [vmem:[#allocation3 + $0x1a04] ss:$8 sps:$4 sm:$0xff]   ;;  %v11533_v59 = vcombine.low %v16790_v52, %v16790_v52  ;;  %v14426_v52 = vld [vmem:[#allocation3 + $0xb14] ss:$8 sps:$4 sm:$0xff]  }
 0x4e3   : > { %8406 = vmatprep.mubr.bf16.mxu0 %v11564_v5  ;;  %v11563_v5 = vcombine.low %v16795_v53, %v16795_v53 }
 0x4e4   : > { %7762 = vmatpush1.bf16.msra.mxu1 %v14324_v6  ;;  %v16808_v6 = vld [vmem:[%s17373_s6 + $0x58] sm:$0xff] }
 0x4e5   : > { %8377 = vmatpush1.bf16.msra.mxu0 %v14327_v7  ;;  %7763 = vmatprep.subr.bf16.mxu1 %v14332_v8  ;;  %v16813_v7 = vld [vmem:[%s17373_s6 + $0xd0] sm:$0xff]  ;;  %v11536_v53 = vcombine.high %v16808_v6, %v16808_v6 }
 0x4e6   : > { %8378 = vmatprep.subr.bf16.mxu0 %v14335_v9  ;;  %v14416_v8 = vld [vmem:[#allocation3 + $0xb00] ss:$8 sps:$4 sm:$0xff]  }
 0x4e7   : > { %v14421_v9 = vld [vmem:[#allocation3 + $0x1a00] ss:$8 sps:$4 sm:$0xff]  }
 0x4e8   : > { %7764 = vmatpush1.bf16.msra.mxu1 %v14330_v10  ;;  %v14429_v10 = vld [vmem:[#allocation3 + $0x1a14] ss:$8 sps:$4 sm:$0xff]  }
 0x4e9   : > { %8379 = vmatpush1.bf16.msra.mxu0 %v14333_v11  ;;  %7765 = vmatprep.subr.bf16.mxu1 %v14338_v12  ;;  %v11566_v11 = vcombine.high %v16813_v7, %v16813_v7  ;;  %v14424_v12 = vld [vmem:[#allocation3 + $0xb10] ss:$8 sps:$4 sm:$0xff]  }
 0x4ea   : > { %8380 = vmatprep.subr.bf16.mxu0 %v14341_v13  ;;  %v14427_v13 = vld [vmem:[#allocation3 + $0x1a10] ss:$8 sps:$4 sm:$0xff]  }
 0x4ec   : > { %7766 = vmatpush1.bf16.msra.mxu1 %v14336_v14  ;;  %v14432_v14 = vld [vmem:[#allocation3 + $0xb24] ss:$8 sps:$4 sm:$0xff]  }
 0x4ed   : > { %8381 = vmatpush1.bf16.msra.mxu0 %v14339_v15  ;;  %7767 = vmatprep.subr.bf16.mxu1 %v14344_v16  ;;  %v14435_v15 = vld [vmem:[#allocation3 + $0x1a24] ss:$8 sps:$4 sm:$0xff]   ;;  %v14430_v16 = vld [vmem:[#allocation3 + $0xb20] ss:$8 sps:$4 sm:$0xff]  }
 0x4ee   : > { %8382 = vmatprep.subr.bf16.mxu0 %v14347_v17  ;;  %v14433_v17 = vld [vmem:[#allocation3 + $0x1a20] ss:$8 sps:$4 sm:$0xff]  }
 0x4f0   : > { %7768 = vmatpush1.bf16.msra.mxu1 %v14342_v19  ;;  %v14438_v19 = vld [vmem:[#allocation3 + $0xb34] ss:$8 sps:$4 sm:$0xff]  }
 0x4f1   : > { %8383 = vmatpush1.bf16.msra.mxu0 %v14345_v21  ;;  %7769 = vmatprep.subr.bf16.mxu1 %v14350_v22  ;;  %v14441_v21 = vld [vmem:[#allocation3 + $0x1a34] ss:$8 sps:$4 sm:$0xff]   ;;  %v14436_v22 = vld [vmem:[#allocation3 + $0xb30] ss:$8 sps:$4 sm:$0xff]  }
 0x4f2   : > { %8384 = vmatprep.subr.bf16.mxu0 %v14353_v23  ;;  %v14439_v23 = vld [vmem:[#allocation3 + $0x1a30] ss:$8 sps:$4 sm:$0xff]  }
 0x4f4   : > { %7770 = vmatpush1.bf16.msra.mxu1 %v14348_v26  ;;  %v14444_v26 = vld [vmem:[#allocation3 + $0xb44] ss:$8 sps:$4 sm:$0xff]  }
 0x4f5   : > { %8385 = vmatpush1.bf16.msra.mxu0 %v14351_v27  ;;  %7771 = vmatprep.subr.bf16.mxu1 %v14356_v20  ;;  %v14447_v27 = vld [vmem:[#allocation3 + $0x1a44] ss:$8 sps:$4 sm:$0xff]   ;;  %v14442_v20 = vld [vmem:[#allocation3 + $0xb40] ss:$8 sps:$4 sm:$0xff]  }
 0x4f6   : > { %8386 = vmatprep.subr.bf16.mxu0 %v14359_v28  ;;  %v14445_v28 = vld [vmem:[#allocation3 + $0x1a40] ss:$8 sps:$4 sm:$0xff]  }
 0x4f8   : > { %7772 = vmatpush1.bf16.msra.mxu1 %v14354_v30  ;;  %v14450_v30 = vld [vmem:[#allocation3 + $0xb54] ss:$8 sps:$4 sm:$0xff]  }
 0x4f9   : > { %8387 = vmatpush1.bf16.msra.mxu0 %v14357_v31  ;;  %7773 = vmatprep.subr.bf16.mxu1 %v14362_v32  ;;  %v14453_v31 = vld [vmem:[#allocation3 + $0x1a54] ss:$8 sps:$4 sm:$0xff]   ;;  %v14448_v32 = vld [vmem:[#allocation3 + $0xb50] ss:$8 sps:$4 sm:$0xff]  }
 0x4fa   : > { %8388 = vmatprep.subr.bf16.mxu0 %v14365_v33  ;;  %v14451_v33 = vld [vmem:[#allocation3 + $0x1a50] ss:$8 sps:$4 sm:$0xff]  }
 0x4fc   : > { %7774 = vmatpush1.bf16.msra.mxu1 %v14360_v25  ;;  %v14456_v25 = vld [vmem:[#allocation3 + $0xb64] ss:$8 sps:$4 sm:$0xff]  }
 0x4fd   : > { %8389 = vmatpush1.bf16.msra.mxu0 %v14363_v35  ;;  %7775 = vmatprep.subr.bf16.mxu1 %v14368_v36  ;;  %v14459_v35 = vld [vmem:[#allocation3 + $0x1a64] ss:$8 sps:$4 sm:$0xff]   ;;  %v14454_v36 = vld [vmem:[#allocation3 + $0xb60] ss:$8 sps:$4 sm:$0xff]  }
 0x4fe   : > { %8390 = vmatprep.subr.bf16.mxu0 %v14371_v37  ;;  %v14457_v37 = vld [vmem:[#allocation3 + $0x1a60] ss:$8 sps:$4 sm:$0xff]  }
 0x500   : > { %7776 = vmatpush1.bf16.msra.mxu1 %v14366_v38  ;;  %v14462_v38 = vld [vmem:[#allocation3 + $0xb74] ss:$8 sps:$4 sm:$0xff]  }
 0x501   : > { %8391 = vmatpush1.bf16.msra.mxu0 %v14369_v39  ;;  %7777 = vmatprep.subr.bf16.mxu1 %v14374_v18  ;;  %v14465_v39 = vld [vmem:[#allocation3 + $0x1a74] ss:$8 sps:$4 sm:$0xff]   ;;  %v14460_v18 = vld [vmem:[#allocation3 + $0xb70] ss:$8 sps:$4 sm:$0xff]  }
 0x502   : > { %8392 = vmatprep.subr.bf16.mxu0 %v14377_v29  ;;  %v14463_v29 = vld [vmem:[#allocation3 + $0x1a70] ss:$8 sps:$4 sm:$0xff]  }
 0x504   : > { %7778 = vmatpush1.bf16.msra.mxu1 %v14372_v42  ;;  %v14468_v42 = vld [vmem:[#allocation3 + $0xb84] ss:$8 sps:$4 sm:$0xff]  }
 0x505   : > { %8393 = vmatpush1.bf16.msra.mxu0 %v14375_v43  ;;  %7779 = vmatprep.subr.bf16.mxu1 %v14380_v44  ;;  %v14471_v43 = vld [vmem:[#allocation3 + $0x1a84] ss:$8 sps:$4 sm:$0xff]   ;;  %v14466_v44 = vld [vmem:[#allocation3 + $0xb80] ss:$8 sps:$4 sm:$0xff]  }
 0x506   : > { %8394 = vmatprep.subr.bf16.mxu0 %v14383_v45  ;;  %v14469_v45 = vld [vmem:[#allocation3 + $0x1a80] ss:$8 sps:$4 sm:$0xff]  }
 0x508   : > { %7780 = vmatpush1.bf16.msra.mxu1 %v14378_v34  ;;  %v14474_v34 = vld [vmem:[#allocation3 + $0xb94] ss:$8 sps:$4 sm:$0xff]  }
 0x509   : > { %8395 = vmatpush1.bf16.msra.mxu0 %v14381_v24  ;;  %7781 = vmatprep.subr.bf16.mxu1 %v14386_v48  ;;  %v14477_v24 = vld [vmem:[#allocation3 + $0x1a94] ss:$8 sps:$4 sm:$0xff]   ;;  %v14472_v48 = vld [vmem:[#allocation3 + $0xb90] ss:$8 sps:$4 sm:$0xff]  }
 0x50a   : > { %8396 = vmatprep.subr.bf16.mxu0 %v14389_v49  ;;  %v14475_v49 = vld [vmem:[#allocation3 + $0x1a90] ss:$8 sps:$4 sm:$0xff]  }
 0x50c   : > { %7782 = vmatpush1.bf16.msra.mxu1 %v14384_v50  ;;  %v14480_v50 = vld [vmem:[#allocation3 + $0xba4] ss:$8 sps:$4 sm:$0xff]  }
 0x50d   : > { %8397 = vmatpush1.bf16.msra.mxu0 %v14387_v51  ;;  %7783 = vmatprep.subr.bf16.mxu1 %v14392_v40  ;;  %v14483_v51 = vld [vmem:[#allocation3 + $0x1aa4] ss:$8 sps:$4 sm:$0xff]   ;;  %v14478_v40 = vld [vmem:[#allocation3 + $0xba0] ss:$8 sps:$4 sm:$0xff]  }
 0x50e   : > { %8398 = vmatprep.subr.bf16.mxu0 %v14395_v41  ;;  %v14481_v41 = vld [vmem:[#allocation3 + $0x1aa0] ss:$8 sps:$4 sm:$0xff]  }
 0x510   : > { %7784 = vmatpush1.bf16.msra.mxu1 %v14390_v54  ;;  %v14486_v54 = vld [vmem:[#allocation3 + $0xbb4] ss:$8 sps:$4 sm:$0xff]  }
 0x511   : > { %8399 = vmatpush1.bf16.msra.mxu0 %v14393_v55  ;;  %7785 = vmatprep.subr.bf16.mxu1 %v14398_v56  ;;  %v14489_v55 = vld [vmem:[#allocation3 + $0x1ab4] ss:$8 sps:$4 sm:$0xff]   ;;  %v14484_v56 = vld [vmem:[#allocation3 + $0xbb0] ss:$8 sps:$4 sm:$0xff]  }
 0x512   : > { %8400 = vmatprep.subr.bf16.mxu0 %v14401_v57  ;;  %v14487_v57 = vld [vmem:[#allocation3 + $0x1ab0] ss:$8 sps:$4 sm:$0xff]  }
 0x514   : > { %7786 = vmatpush1.bf16.msra.mxu1 %v14396_v46  ;;  %v14492_v46 = vld [vmem:[#allocation3 + $0xbc4] ss:$8 sps:$4 sm:$0xff]  }
 0x515   : > { %8401 = vmatpush1.bf16.msra.mxu0 %v14399_v47  ;;  %7787 = vmatprep.subr.bf16.mxu1 %v14404_v60  ;;  %v14495_v47 = vld [vmem:[#allocation3 + $0x1ac4] ss:$8 sps:$4 sm:$0xff]   ;;  %v14490_v60 = vld [vmem:[#allocation3 + $0xbc0] ss:$8 sps:$4 sm:$0xff]  }
 0x516   : > { %8402 = vmatprep.subr.bf16.mxu0 %v14407_v61  ;;  %v14493_v61 = vld [vmem:[#allocation3 + $0x1ac0] ss:$8 sps:$4 sm:$0xff]  }
 0x518   : > { %7788 = vmatpush1.bf16.msra.mxu1 %v14402_v62  ;;  %v14498_v62 = vld [vmem:[#allocation3 + $0xbd4] ss:$8 sps:$4 sm:$0xff]  }
 0x519   : > { %8403 = vmatpush1.bf16.msra.mxu0 %v14405_v63  ;;  %7789 = vmatprep.subr.bf16.mxu1 %v14410_v0  ;;  %v14501_v63 = vld [vmem:[#allocation3 + $0x1ad4] ss:$8 sps:$4 sm:$0xff]   ;;  %v14496_v0 = vld [vmem:[#allocation3 + $0xbd0] ss:$8 sps:$4 sm:$0xff]  }
 0x51a   : > { %8404 = vmatprep.subr.bf16.mxu0 %v14413_v1  ;;  %v14499_v1 = vld [vmem:[#allocation3 + $0x1ad0] ss:$8 sps:$4 sm:$0xff]  }
 0x51c   : > { %7790 = vmatpush1.bf16.msra.mxu1 %v14408_v2  ;;  %v14504_v2 = vld [vmem:[#allocation3 + $0xbe4] ss:$8 sps:$4 sm:$0xff]  }
 0x51d   : > { %8405 = vmatpush1.bf16.msra.mxu0 %v14411_v3  ;;  %7800 = vmatprep.subr.bf16.mxu1 %v14418_v58  ;;  %v14507_v3 = vld [vmem:[#allocation3 + $0x1ae4] ss:$8 sps:$4 sm:$0xff]   ;;  %v14502_v58 = vld [vmem:[#allocation3 + $0xbe0] ss:$8 sps:$4 sm:$0xff]  }
 0x51e   : > { %8415 = vmatprep.subr.bf16.mxu0 %v14423_v4  ;;  %v14505_v4 = vld [vmem:[#allocation3 + $0x1ae0] ss:$8 sps:$4 sm:$0xff]  }
 0x51f   : > { %7792 = vmatmul.mubr.bf16.vlgmr.msra.gmra.mrb[0].mxu1 %v11533_v59  ;;  %v14510_v59 = vld [vmem:[#allocation3 + $0xbf4] ss:$8 sps:$4 sm:$0xff]  }
 0x520   : > { %8407 = vmatmul.mubr.bf16.vlgmr.msra.gmra.mrb[0].mxu0 %v11563_v5  ;;  %7801 = vmatpush1.bf16.msra.mxu1 %v14416_v8  ;;  %v14513_v5 = vld [vmem:[#allocation3 + $0x1af4] ss:$8 sps:$4 sm:$0xff]   ;;  %v14508_v8 = vld [vmem:[#allocation3 + $0xbf0] ss:$8 sps:$4 sm:$0xff]  }
 0x521   : > { %8416 = vmatpush1.bf16.msra.mxu0 %v14421_v9  ;;  %7802 = vmatprep.subr.bf16.mxu1 %v14426_v52  ;;  %v14511_v9 = vld [vmem:[#allocation3 + $0x1af0] ss:$8 sps:$4 sm:$0xff]   ;;  %v14518_v52 = vld [vmem:[#allocation3 + $0xc04] ss:$8 sps:$4 sm:$0xff]  }
 0x522   : > { %8417 = vmatprep.subr.bf16.mxu0 %v14429_v10  ;;  %7832 = vmatprep.mubr.bf16.mxu1 %v11536_v53  ;;  %v14523_v10 = vld [vmem:[#allocation3 + $0x1b04] ss:$8 sps:$4 sm:$0xff]   ;;  %v11535_v53 = vcombine.low %v16808_v6, %v16808_v6  ;;  %v14526_v6 = vld [vmem:[#allocation3 + $0xc14] ss:$8 sps:$4 sm:$0xff]  }
 0x523   : > { %8447 = vmatprep.mubr.bf16.mxu0 %v11566_v11  ;;  %v11565_v11 = vcombine.low %v16813_v7, %v16813_v7 }
 0x524   : > { %7803 = vmatpush1.bf16.msra.mxu1 %v14424_v12  ;;  %v16826_v12 = vld [vmem:[%s17373_s6 + $0x60] sm:$0xff] }
 0x525   : > { %8418 = vmatpush1.bf16.msra.mxu0 %v14427_v13  ;;  %7804 = vmatprep.subr.bf16.mxu1 %v14432_v14  ;;  %v16831_v13 = vld [vmem:[%s17373_s6 + $0xd8] sm:$0xff]  ;;  %v11538_v7 = vcombine.high %v16826_v12, %v16826_v12 }
 0x526   : > { %8419 = vmatprep.subr.bf16.mxu0 %v14435_v15  ;;  %v14516_v14 = vld [vmem:[#allocation3 + $0xc00] ss:$8 sps:$4 sm:$0xff]  }
 0x527   : > { %v14521_v15 = vld [vmem:[#allocation3 + $0x1b00] ss:$8 sps:$4 sm:$0xff]  }
 0x528   : > { %7805 = vmatpush1.bf16.msra.mxu1 %v14430_v16  ;;  %v14529_v16 = vld [vmem:[#allocation3 + $0x1b14] ss:$8 sps:$4 sm:$0xff]  }
 0x529   : > { %8420 = vmatpush1.bf16.msra.mxu0 %v14433_v17  ;;  %7806 = vmatprep.subr.bf16.mxu1 %v14438_v19  ;;  %v11568_v17 = vcombine.high %v16831_v13, %v16831_v13  ;;  %v14524_v19 = vld [vmem:[#allocation3 + $0xc10] ss:$8 sps:$4 sm:$0xff]  }
 0x52a   : > { %8421 = vmatprep.subr.bf16.mxu0 %v14441_v21  ;;  %v14527_v21 = vld [vmem:[#allocation3 + $0x1b10] ss:$8 sps:$4 sm:$0xff]  }
 0x52c   : > { %7807 = vmatpush1.bf16.msra.mxu1 %v14436_v22  ;;  %v14532_v22 = vld [vmem:[#allocation3 + $0xc24] ss:$8 sps:$4 sm:$0xff]  }
 0x52d   : > { %8422 = vmatpush1.bf16.msra.mxu0 %v14439_v23  ;;  %7808 = vmatprep.subr.bf16.mxu1 %v14444_v26  ;;  %v14535_v23 = vld [vmem:[#allocation3 + $0x1b24] ss:$8 sps:$4 sm:$0xff]   ;;  %v14530_v26 = vld [vmem:[#allocation3 + $0xc20] ss:$8 sps:$4 sm:$0xff]  }
 0x52e   : > { %8423 = vmatprep.subr.bf16.mxu0 %v14447_v27  ;;  %v14533_v27 = vld [vmem:[#allocation3 + $0x1b20] ss:$8 sps:$4 sm:$0xff]  }
 0x530   : > { %7809 = vmatpush1.bf16.msra.mxu1 %v14442_v20  ;;  %v14538_v20 = vld [vmem:[#allocation3 + $0xc34] ss:$8 sps:$4 sm:$0xff]  }
 0x531   : > { %8424 = vmatpush1.bf16.msra.mxu0 %v14445_v28  ;;  %7810 = vmatprep.subr.bf16.mxu1 %v14450_v30  ;;  %v14541_v28 = vld [vmem:[#allocation3 + $0x1b34] ss:$8 sps:$4 sm:$0xff]   ;;  %v14536_v30 = vld [vmem:[#allocation3 + $0xc30] ss:$8 sps:$4 sm:$0xff]  }
 0x532   : > { %8425 = vmatprep.subr.bf16.mxu0 %v14453_v31  ;;  %v14539_v31 = vld [vmem:[#allocation3 + $0x1b30] ss:$8 sps:$4 sm:$0xff]  }
 0x534   : > { %7811 = vmatpush1.bf16.msra.mxu1 %v14448_v32  ;;  %v14544_v32 = vld [vmem:[#allocation3 + $0xc44] ss:$8 sps:$4 sm:$0xff]  }
 0x535   : > { %8426 = vmatpush1.bf16.msra.mxu0 %v14451_v33  ;;  %7812 = vmatprep.subr.bf16.mxu1 %v14456_v25  ;;  %v14547_v33 = vld [vmem:[#allocation3 + $0x1b44] ss:$8 sps:$4 sm:$0xff]   ;;  %v14542_v25 = vld [vmem:[#allocation3 + $0xc40] ss:$8 sps:$4 sm:$0xff]  }
 0x536   : > { %8427 = vmatprep.subr.bf16.mxu0 %v14459_v35  ;;  %v14545_v35 = vld [vmem:[#allocation3 + $0x1b40] ss:$8 sps:$4 sm:$0xff]  }
 0x538   : > { %7813 = vmatpush1.bf16.msra.mxu1 %v14454_v36  ;;  %v14550_v36 = vld [vmem:[#allocation3 + $0xc54] ss:$8 sps:$4 sm:$0xff]  }
 0x539   : > { %8428 = vmatpush1.bf16.msra.mxu0 %v14457_v37  ;;  %7814 = vmatprep.subr.bf16.mxu1 %v14462_v38  ;;  %v14553_v37 = vld [vmem:[#allocation3 + $0x1b54] ss:$8 sps:$4 sm:$0xff]   ;;  %v14548_v38 = vld [vmem:[#allocation3 + $0xc50] ss:$8 sps:$4 sm:$0xff]  }
 0x53a   : > { %8429 = vmatprep.subr.bf16.mxu0 %v14465_v39  ;;  %v14551_v39 = vld [vmem:[#allocation3 + $0x1b50] ss:$8 sps:$4 sm:$0xff]  }
 0x53c   : > { %7815 = vmatpush1.bf16.msra.mxu1 %v14460_v18  ;;  %v14556_v18 = vld [vmem:[#allocation3 + $0xc64] ss:$8 sps:$4 sm:$0xff]  }
 0x53d   : > { %8430 = vmatpush1.bf16.msra.mxu0 %v14463_v29  ;;  %7816 = vmatprep.subr.bf16.mxu1 %v14468_v42  ;;  %v14559_v29 = vld [vmem:[#allocation3 + $0x1b64] ss:$8 sps:$4 sm:$0xff]   ;;  %v14554_v42 = vld [vmem:[#allocation3 + $0xc60] ss:$8 sps:$4 sm:$0xff]  }
 0x53e   : > { %8431 = vmatprep.subr.bf16.mxu0 %v14471_v43  ;;  %v14557_v43 = vld [vmem:[#allocation3 + $0x1b60] ss:$8 sps:$4 sm:$0xff]  }
 0x540   : > { %7817 = vmatpush1.bf16.msra.mxu1 %v14466_v44  ;;  %v14562_v44 = vld [vmem:[#allocation3 + $0xc74] ss:$8 sps:$4 sm:$0xff]  }
 0x541   : > { %8432 = vmatpush1.bf16.msra.mxu0 %v14469_v45  ;;  %7818 = vmatprep.subr.bf16.mxu1 %v14474_v34  ;;  %v14565_v45 = vld [vmem:[#allocation3 + $0x1b74] ss:$8 sps:$4 sm:$0xff]   ;;  %v14560_v34 = vld [vmem:[#allocation3 + $0xc70] ss:$8 sps:$4 sm:$0xff]  }
 0x542   : > { %8433 = vmatprep.subr.bf16.mxu0 %v14477_v24  ;;  %v14563_v24 = vld [vmem:[#allocation3 + $0x1b70] ss:$8 sps:$4 sm:$0xff]  }
 0x544   : > { %7819 = vmatpush1.bf16.msra.mxu1 %v14472_v48  ;;  %v14568_v48 = vld [vmem:[#allocation3 + $0xc84] ss:$8 sps:$4 sm:$0xff]  }
 0x545   : > { %8434 = vmatpush1.bf16.msra.mxu0 %v14475_v49  ;;  %7820 = vmatprep.subr.bf16.mxu1 %v14480_v50  ;;  %v14571_v49 = vld [vmem:[#allocation3 + $0x1b84] ss:$8 sps:$4 sm:$0xff]   ;;  %v14566_v50 = vld [vmem:[#allocation3 + $0xc80] ss:$8 sps:$4 sm:$0xff]  }
 0x546   : > { %8435 = vmatprep.subr.bf16.mxu0 %v14483_v51  ;;  %v14569_v51 = vld [vmem:[#allocation3 + $0x1b80] ss:$8 sps:$4 sm:$0xff]  }
 0x548   : > { %7821 = vmatpush1.bf16.msra.mxu1 %v14478_v40  ;;  %v14574_v40 = vld [vmem:[#allocation3 + $0xc94] ss:$8 sps:$4 sm:$0xff]  }
 0x549   : > { %8436 = vmatpush1.bf16.msra.mxu0 %v14481_v41  ;;  %7822 = vmatprep.subr.bf16.mxu1 %v14486_v54  ;;  %v14577_v41 = vld [vmem:[#allocation3 + $0x1b94] ss:$8 sps:$4 sm:$0xff]   ;;  %v14572_v54 = vld [vmem:[#allocation3 + $0xc90] ss:$8 sps:$4 sm:$0xff]  }
 0x54a   : > { %8437 = vmatprep.subr.bf16.mxu0 %v14489_v55  ;;  %v14575_v55 = vld [vmem:[#allocation3 + $0x1b90] ss:$8 sps:$4 sm:$0xff]  }
 0x54c   : > { %7823 = vmatpush1.bf16.msra.mxu1 %v14484_v56  ;;  %v14580_v56 = vld [vmem:[#allocation3 + $0xca4] ss:$8 sps:$4 sm:$0xff]  }
 0x54d   : > { %8438 = vmatpush1.bf16.msra.mxu0 %v14487_v57  ;;  %7824 = vmatprep.subr.bf16.mxu1 %v14492_v46  ;;  %v14583_v57 = vld [vmem:[#allocation3 + $0x1ba4] ss:$8 sps:$4 sm:$0xff]   ;;  %v14578_v46 = vld [vmem:[#allocation3 + $0xca0] ss:$8 sps:$4 sm:$0xff]  }
 0x54e   : > { %8439 = vmatprep.subr.bf16.mxu0 %v14495_v47  ;;  %v14581_v47 = vld [vmem:[#allocation3 + $0x1ba0] ss:$8 sps:$4 sm:$0xff]  }
 0x550   : > { %7825 = vmatpush1.bf16.msra.mxu1 %v14490_v60  ;;  %v14586_v60 = vld [vmem:[#allocation3 + $0xcb4] ss:$8 sps:$4 sm:$0xff]  }
 0x551   : > { %8440 = vmatpush1.bf16.msra.mxu0 %v14493_v61  ;;  %7826 = vmatprep.subr.bf16.mxu1 %v14498_v62  ;;  %v14589_v61 = vld [vmem:[#allocation3 + $0x1bb4] ss:$8 sps:$4 sm:$0xff]   ;;  %v14584_v62 = vld [vmem:[#allocation3 + $0xcb0] ss:$8 sps:$4 sm:$0xff]  }
 0x552   : > { %8441 = vmatprep.subr.bf16.mxu0 %v14501_v63  ;;  %v14587_v63 = vld [vmem:[#allocation3 + $0x1bb0] ss:$8 sps:$4 sm:$0xff]  }
 0x554   : > { %7827 = vmatpush1.bf16.msra.mxu1 %v14496_v0  ;;  %v14592_v0 = vld [vmem:[#allocation3 + $0xcc4] ss:$8 sps:$4 sm:$0xff]  }
 0x555   : > { %8442 = vmatpush1.bf16.msra.mxu0 %v14499_v1  ;;  %7828 = vmatprep.subr.bf16.mxu1 %v14504_v2  ;;  %v14595_v1 = vld [vmem:[#allocation3 + $0x1bc4] ss:$8 sps:$4 sm:$0xff]   ;;  %v14590_v2 = vld [vmem:[#allocation3 + $0xcc0] ss:$8 sps:$4 sm:$0xff]  }
 0x556   : > { %8443 = vmatprep.subr.bf16.mxu0 %v14507_v3  ;;  %v14593_v3 = vld [vmem:[#allocation3 + $0x1bc0] ss:$8 sps:$4 sm:$0xff]  }
 0x558   : > { %7829 = vmatpush1.bf16.msra.mxu1 %v14502_v58  ;;  %v14598_v58 = vld [vmem:[#allocation3 + $0xcd4] ss:$8 sps:$4 sm:$0xff]  }
 0x559   : > { %8444 = vmatpush1.bf16.msra.mxu0 %v14505_v4  ;;  %7830 = vmatprep.subr.bf16.mxu1 %v14510_v59  ;;  %v14601_v4 = vld [vmem:[#allocation3 + $0x1bd4] ss:$8 sps:$4 sm:$0xff]   ;;  %v14596_v59 = vld [vmem:[#allocation3 + $0xcd0] ss:$8 sps:$4 sm:$0xff]  }
 0x55a   : > { %8445 = vmatprep.subr.bf16.mxu0 %v14513_v5  ;;  %v14599_v5 = vld [vmem:[#allocation3 + $0x1bd0] ss:$8 sps:$4 sm:$0xff]  }
 0x55c   : > { %7831 = vmatpush1.bf16.msra.mxu1 %v14508_v8  ;;  %v14604_v8 = vld [vmem:[#allocation3 + $0xce4] ss:$8 sps:$4 sm:$0xff]  }
 0x55d   : > { %8446 = vmatpush1.bf16.msra.mxu0 %v14511_v9  ;;  %7841 = vmatprep.subr.bf16.mxu1 %v14518_v52  ;;  %v14607_v9 = vld [vmem:[#allocation3 + $0x1be4] ss:$8 sps:$4 sm:$0xff]   ;;  %v14602_v52 = vld [vmem:[#allocation3 + $0xce0] ss:$8 sps:$4 sm:$0xff]  }
 0x55e   : > { %8456 = vmatprep.subr.bf16.mxu0 %v14523_v10  ;;  %v14605_v10 = vld [vmem:[#allocation3 + $0x1be0] ss:$8 sps:$4 sm:$0xff]  }
 0x55f   : > { %7833 = vmatmul.mubr.bf16.vlgmr.msra.gmra.mrb[0].mxu1 %v11535_v53  ;;  %v14610_v53 = vld [vmem:[#allocation3 + $0xcf4] ss:$8 sps:$4 sm:$0xff]  }
 0x560   : > { %8448 = vmatmul.mubr.bf16.vlgmr.msra.gmra.mrb[0].mxu0 %v11565_v11  ;;  %7842 = vmatpush1.bf16.msra.mxu1 %v14516_v14  ;;  %v14613_v11 = vld [vmem:[#allocation3 + $0x1bf4] ss:$8 sps:$4 sm:$0xff]   ;;  %v14608_v14 = vld [vmem:[#allocation3 + $0xcf0] ss:$8 sps:$4 sm:$0xff]  }
 0x561   : > { %8457 = vmatpush1.bf16.msra.mxu0 %v14521_v15  ;;  %7843 = vmatprep.subr.bf16.mxu1 %v14526_v6  ;;  %v14611_v15 = vld [vmem:[#allocation3 + $0x1bf0] ss:$8 sps:$4 sm:$0xff]   ;;  %v14618_v6 = vld [vmem:[#allocation3 + $0xd04] ss:$8 sps:$4 sm:$0xff]  }
 0x562   : > { %8458 = vmatprep.subr.bf16.mxu0 %v14529_v16  ;;  %7873 = vmatprep.mubr.bf16.mxu1 %v11538_v7  ;;  %v14623_v16 = vld [vmem:[#allocation3 + $0x1c04] ss:$8 sps:$4 sm:$0xff]   ;;  %v11537_v7 = vcombine.low %v16826_v12, %v16826_v12  ;;  %v14626_v12 = vld [vmem:[#allocation3 + $0xd14] ss:$8 sps:$4 sm:$0xff]  }
 0x563   : > { %8488 = vmatprep.mubr.bf16.mxu0 %v11568_v17  ;;  %v11567_v17 = vcombine.low %v16831_v13, %v16831_v13 }
 0x564   : > { %7844 = vmatpush1.bf16.msra.mxu1 %v14524_v19  ;;  %v16844_v19 = vld [vmem:[%s17373_s6 + $0x68] sm:$0xff] }
 0x565   : > { %8459 = vmatpush1.bf16.msra.mxu0 %v14527_v21  ;;  %7845 = vmatprep.subr.bf16.mxu1 %v14532_v22  ;;  %v16849_v21 = vld [vmem:[%s17373_s6 + $0xe0] sm:$0xff]  ;;  %v14616_v22 = vld [vmem:[#allocation3 + $0xd00] ss:$8 sps:$4 sm:$0xff]   ;;  %v11540_v13 = vcombine.high %v16844_v19, %v16844_v19 }
 0x566   : > { %8460 = vmatprep.subr.bf16.mxu0 %v14535_v23  ;;  %v14621_v23 = vld [vmem:[#allocation3 + $0x1c00] ss:$8 sps:$4 sm:$0xff]  }
 0x568   : > { %7846 = vmatpush1.bf16.msra.mxu1 %v14530_v26  ;;  %v14629_v26 = vld [vmem:[#allocation3 + $0x1c14] ss:$8 sps:$4 sm:$0xff]  }
 0x569   : > { %8461 = vmatpush1.bf16.msra.mxu0 %v14533_v27  ;;  %7847 = vmatprep.subr.bf16.mxu1 %v14538_v20  ;;  %v11570_v27 = vcombine.high %v16849_v21, %v16849_v21  ;;  %v14624_v20 = vld [vmem:[#allocation3 + $0xd10] ss:$8 sps:$4 sm:$0xff]  }
 0x56a   : > { %8462 = vmatprep.subr.bf16.mxu0 %v14541_v28  ;;  %v14627_v28 = vld [vmem:[#allocation3 + $0x1c10] ss:$8 sps:$4 sm:$0xff]  }
 0x56c   : > { %7848 = vmatpush1.bf16.msra.mxu1 %v14536_v30  ;;  %v14632_v30 = vld [vmem:[#allocation3 + $0xd24] ss:$8 sps:$4 sm:$0xff]  }
 0x56d   : > { %8463 = vmatpush1.bf16.msra.mxu0 %v14539_v31  ;;  %7849 = vmatprep.subr.bf16.mxu1 %v14544_v32  ;;  %v14635_v31 = vld [vmem:[#allocation3 + $0x1c24] ss:$8 sps:$4 sm:$0xff]   ;;  %v14630_v32 = vld [vmem:[#allocation3 + $0xd20] ss:$8 sps:$4 sm:$0xff]  }
 0x56e   : > { %8464 = vmatprep.subr.bf16.mxu0 %v14547_v33  ;;  %v14633_v33 = vld [vmem:[#allocation3 + $0x1c20] ss:$8 sps:$4 sm:$0xff]  }
 0x570   : > { %7850 = vmatpush1.bf16.msra.mxu1 %v14542_v25  ;;  %v14638_v25 = vld [vmem:[#allocation3 + $0xd34] ss:$8 sps:$4 sm:$0xff]  }
 0x571   : > { %8465 = vmatpush1.bf16.msra.mxu0 %v14545_v35  ;;  %7851 = vmatprep.subr.bf16.mxu1 %v14550_v36  ;;  %v14641_v35 = vld [vmem:[#allocation3 + $0x1c34] ss:$8 sps:$4 sm:$0xff]   ;;  %v14636_v36 = vld [vmem:[#allocation3 + $0xd30] ss:$8 sps:$4 sm:$0xff]  }
 0x572   : > { %8466 = vmatprep.subr.bf16.mxu0 %v14553_v37  ;;  %v14639_v37 = vld [vmem:[#allocation3 + $0x1c30] ss:$8 sps:$4 sm:$0xff]  }
 0x574   : > { %7852 = vmatpush1.bf16.msra.mxu1 %v14548_v38  ;;  %v14644_v38 = vld [vmem:[#allocation3 + $0xd44] ss:$8 sps:$4 sm:$0xff]  }
 0x575   : > { %8467 = vmatpush1.bf16.msra.mxu0 %v14551_v39  ;;  %7853 = vmatprep.subr.bf16.mxu1 %v14556_v18  ;;  %v14647_v39 = vld [vmem:[#allocation3 + $0x1c44] ss:$8 sps:$4 sm:$0xff]   ;;  %v14642_v18 = vld [vmem:[#allocation3 + $0xd40] ss:$8 sps:$4 sm:$0xff]  }
 0x576   : > { %8468 = vmatprep.subr.bf16.mxu0 %v14559_v29  ;;  %v14645_v29 = vld [vmem:[#allocation3 + $0x1c40] ss:$8 sps:$4 sm:$0xff]  }
 0x578   : > { %7854 = vmatpush1.bf16.msra.mxu1 %v14554_v42  ;;  %v14650_v42 = vld [vmem:[#allocation3 + $0xd54] ss:$8 sps:$4 sm:$0xff]  }
 0x579   : > { %8469 = vmatpush1.bf16.msra.mxu0 %v14557_v43  ;;  %7855 = vmatprep.subr.bf16.mxu1 %v14562_v44  ;;  %v14653_v43 = vld [vmem:[#allocation3 + $0x1c54] ss:$8 sps:$4 sm:$0xff]   ;;  %v14648_v44 = vld [vmem:[#allocation3 + $0xd50] ss:$8 sps:$4 sm:$0xff]  }
 0x57a   : > { %8470 = vmatprep.subr.bf16.mxu0 %v14565_v45  ;;  %v14651_v45 = vld [vmem:[#allocation3 + $0x1c50] ss:$8 sps:$4 sm:$0xff]  }
 0x57c   : > { %7856 = vmatpush1.bf16.msra.mxu1 %v14560_v34  ;;  %v14656_v34 = vld [vmem:[#allocation3 + $0xd64] ss:$8 sps:$4 sm:$0xff]  }
 0x57d   : > { %8471 = vmatpush1.bf16.msra.mxu0 %v14563_v24  ;;  %7857 = vmatprep.subr.bf16.mxu1 %v14568_v48  ;;  %v14659_v24 = vld [vmem:[#allocation3 + $0x1c64] ss:$8 sps:$4 sm:$0xff]   ;;  %v14654_v48 = vld [vmem:[#allocation3 + $0xd60] ss:$8 sps:$4 sm:$0xff]  }
 0x57e   : > { %8472 = vmatprep.subr.bf16.mxu0 %v14571_v49  ;;  %v14657_v49 = vld [vmem:[#allocation3 + $0x1c60] ss:$8 sps:$4 sm:$0xff]  }
 0x580   : > { %7858 = vmatpush1.bf16.msra.mxu1 %v14566_v50  ;;  %v14662_v50 = vld [vmem:[#allocation3 + $0xd74] ss:$8 sps:$4 sm:$0xff]  }
 0x581   : > { %8473 = vmatpush1.bf16.msra.mxu0 %v14569_v51  ;;  %7859 = vmatprep.subr.bf16.mxu1 %v14574_v40  ;;  %v14665_v51 = vld [vmem:[#allocation3 + $0x1c74] ss:$8 sps:$4 sm:$0xff]   ;;  %v14660_v40 = vld [vmem:[#allocation3 + $0xd70] ss:$8 sps:$4 sm:$0xff]  }
 0x582   : > { %8474 = vmatprep.subr.bf16.mxu0 %v14577_v41  ;;  %v14663_v41 = vld [vmem:[#allocation3 + $0x1c70] ss:$8 sps:$4 sm:$0xff]  }
 0x584   : > { %7860 = vmatpush1.bf16.msra.mxu1 %v14572_v54  ;;  %v14668_v54 = vld [vmem:[#allocation3 + $0xd84] ss:$8 sps:$4 sm:$0xff]  }
 0x585   : > { %8475 = vmatpush1.bf16.msra.mxu0 %v14575_v55  ;;  %7861 = vmatprep.subr.bf16.mxu1 %v14580_v56  ;;  %v14671_v55 = vld [vmem:[#allocation3 + $0x1c84] ss:$8 sps:$4 sm:$0xff]   ;;  %v14666_v56 = vld [vmem:[#allocation3 + $0xd80] ss:$8 sps:$4 sm:$0xff]  }
 0x586   : > { %8476 = vmatprep.subr.bf16.mxu0 %v14583_v57  ;;  %v14669_v57 = vld [vmem:[#allocation3 + $0x1c80] ss:$8 sps:$4 sm:$0xff]  }
 0x588   : > { %7862 = vmatpush1.bf16.msra.mxu1 %v14578_v46  ;;  %v14674_v46 = vld [vmem:[#allocation3 + $0xd94] ss:$8 sps:$4 sm:$0xff]  }
 0x589   : > { %8477 = vmatpush1.bf16.msra.mxu0 %v14581_v47  ;;  %7863 = vmatprep.subr.bf16.mxu1 %v14586_v60  ;;  %v14677_v47 = vld [vmem:[#allocation3 + $0x1c94] ss:$8 sps:$4 sm:$0xff]   ;;  %v14672_v60 = vld [vmem:[#allocation3 + $0xd90] ss:$8 sps:$4 sm:$0xff]  }
 0x58a   : > { %8478 = vmatprep.subr.bf16.mxu0 %v14589_v61  ;;  %v14675_v61 = vld [vmem:[#allocation3 + $0x1c90] ss:$8 sps:$4 sm:$0xff]  }
 0x58c   : > { %7864 = vmatpush1.bf16.msra.mxu1 %v14584_v62  ;;  %v14680_v62 = vld [vmem:[#allocation3 + $0xda4] ss:$8 sps:$4 sm:$0xff]  }
 0x58d   : > { %8479 = vmatpush1.bf16.msra.mxu0 %v14587_v63  ;;  %7865 = vmatprep.subr.bf16.mxu1 %v14592_v0  ;;  %v14683_v63 = vld [vmem:[#allocation3 + $0x1ca4] ss:$8 sps:$4 sm:$0xff]   ;;  %v14678_v0 = vld [vmem:[#allocation3 + $0xda0] ss:$8 sps:$4 sm:$0xff]  }
 0x58e   : > { %8480 = vmatprep.subr.bf16.mxu0 %v14595_v1  ;;  %v14681_v1 = vld [vmem:[#allocation3 + $0x1ca0] ss:$8 sps:$4 sm:$0xff]  }
 0x590   : > { %7866 = vmatpush1.bf16.msra.mxu1 %v14590_v2  ;;  %v14686_v2 = vld [vmem:[#allocation3 + $0xdb4] ss:$8 sps:$4 sm:$0xff]  }
 0x591   : > { %8481 = vmatpush1.bf16.msra.mxu0 %v14593_v3  ;;  %7867 = vmatprep.subr.bf16.mxu1 %v14598_v58  ;;  %v14689_v3 = vld [vmem:[#allocation3 + $0x1cb4] ss:$8 sps:$4 sm:$0xff]   ;;  %v14684_v58 = vld [vmem:[#allocation3 + $0xdb0] ss:$8 sps:$4 sm:$0xff]  }
 0x592   : > { %8482 = vmatprep.subr.bf16.mxu0 %v14601_v4  ;;  %v14687_v4 = vld [vmem:[#allocation3 + $0x1cb0] ss:$8 sps:$4 sm:$0xff]  }
 0x594   : > { %7868 = vmatpush1.bf16.msra.mxu1 %v14596_v59  ;;  %v14692_v59 = vld [vmem:[#allocation3 + $0xdc4] ss:$8 sps:$4 sm:$0xff]  }
 0x595   : > { %8483 = vmatpush1.bf16.msra.mxu0 %v14599_v5  ;;  %7869 = vmatprep.subr.bf16.mxu1 %v14604_v8  ;;  %v14695_v5 = vld [vmem:[#allocation3 + $0x1cc4] ss:$8 sps:$4 sm:$0xff]   ;;  %v14690_v8 = vld [vmem:[#allocation3 + $0xdc0] ss:$8 sps:$4 sm:$0xff]  }
 0x596   : > { %8484 = vmatprep.subr.bf16.mxu0 %v14607_v9  ;;  %v14693_v9 = vld [vmem:[#allocation3 + $0x1cc0] ss:$8 sps:$4 sm:$0xff]  }
 0x598   : > { %7870 = vmatpush1.bf16.msra.mxu1 %v14602_v52  ;;  %v14698_v52 = vld [vmem:[#allocation3 + $0xdd4] ss:$8 sps:$4 sm:$0xff]  }
 0x599   : > { %8485 = vmatpush1.bf16.msra.mxu0 %v14605_v10  ;;  %7871 = vmatprep.subr.bf16.mxu1 %v14610_v53  ;;  %v14701_v10 = vld [vmem:[#allocation3 + $0x1cd4] ss:$8 sps:$4 sm:$0xff]   ;;  %v14696_v53 = vld [vmem:[#allocation3 + $0xdd0] ss:$8 sps:$4 sm:$0xff]  }
 0x59a   : > { %8486 = vmatprep.subr.bf16.mxu0 %v14613_v11  ;;  %v14699_v11 = vld [vmem:[#allocation3 + $0x1cd0] ss:$8 sps:$4 sm:$0xff]  }
 0x59c   : > { %7872 = vmatpush1.bf16.msra.mxu1 %v14608_v14  ;;  %v14704_v14 = vld [vmem:[#allocation3 + $0xde4] ss:$8 sps:$4 sm:$0xff]  }
 0x59d   : > { %8487 = vmatpush1.bf16.msra.mxu0 %v14611_v15  ;;  %7882 = vmatprep.subr.bf16.mxu1 %v14618_v6  ;;  %v14707_v15 = vld [vmem:[#allocation3 + $0x1ce4] ss:$8 sps:$4 sm:$0xff]   ;;  %v14702_v6 = vld [vmem:[#allocation3 + $0xde0] ss:$8 sps:$4 sm:$0xff]  }
 0x59e   : > { %8497 = vmatprep.subr.bf16.mxu0 %v14623_v16  ;;  %v14705_v16 = vld [vmem:[#allocation3 + $0x1ce0] ss:$8 sps:$4 sm:$0xff]  }
 0x59f   : > { %7874 = vmatmul.mubr.bf16.vlgmr.msra.gmra.mrb[0].mxu1 %v11537_v7  ;;  %v14710_v7 = vld [vmem:[#allocation3 + $0xdf4] ss:$8 sps:$4 sm:$0xff]  }
 0x5a0   : > { %8489 = vmatmul.mubr.bf16.vlgmr.msra.gmra.mrb[0].mxu0 %v11567_v17  ;;  %7883 = vmatpush1.bf16.msra.mxu1 %v14616_v22  ;;  %v14713_v17 = vld [vmem:[#allocation3 + $0x1cf4] ss:$8 sps:$4 sm:$0xff]   ;;  %v14708_v22 = vld [vmem:[#allocation3 + $0xdf0] ss:$8 sps:$4 sm:$0xff]  }
 0x5a1   : > { %8498 = vmatpush1.bf16.msra.mxu0 %v14621_v23  ;;  %7884 = vmatprep.subr.bf16.mxu1 %v14626_v12  ;;  %v14711_v23 = vld [vmem:[#allocation3 + $0x1cf0] ss:$8 sps:$4 sm:$0xff]   ;;  %v14718_v12 = vld [vmem:[#allocation3 + $0xe04] ss:$8 sps:$4 sm:$0xff]  }
 0x5a2   : > { %8499 = vmatprep.subr.bf16.mxu0 %v14629_v26  ;;  %7914 = vmatprep.mubr.bf16.mxu1 %v11540_v13  ;;  %v14723_v26 = vld [vmem:[#allocation3 + $0x1d04] ss:$8 sps:$4 sm:$0xff]   ;;  %v11539_v13 = vcombine.low %v16844_v19, %v16844_v19  ;;  %v14726_v19 = vld [vmem:[#allocation3 + $0xe14] ss:$8 sps:$4 sm:$0xff]  }
 0x5a3   : > { %8529 = vmatprep.mubr.bf16.mxu0 %v11570_v27  ;;  %v11569_v27 = vcombine.low %v16849_v21, %v16849_v21 }
 0x5a4   : > { %7885 = vmatpush1.bf16.msra.mxu1 %v14624_v20  ;;  %v16862_v20 = vld [vmem:[%s17373_s6 + $0x70] sm:$0xff] }
 0x5a5   : > { %8500 = vmatpush1.bf16.msra.mxu0 %v14627_v28  ;;  %7886 = vmatprep.subr.bf16.mxu1 %v14632_v30  ;;  %v16867_v28 = vld [vmem:[%s17373_s6 + $0xe8] sm:$0xff]  ;;  %v14716_v30 = vld [vmem:[#allocation3 + $0xe00] ss:$8 sps:$4 sm:$0xff]   ;;  %v11542_v21 = vcombine.high %v16862_v20, %v16862_v20 }
 0x5a6   : > { %8501 = vmatprep.subr.bf16.mxu0 %v14635_v31  ;;  %v14721_v31 = vld [vmem:[#allocation3 + $0x1d00] ss:$8 sps:$4 sm:$0xff]  }
 0x5a8   : > { %7887 = vmatpush1.bf16.msra.mxu1 %v14630_v32  ;;  %v14729_v32 = vld [vmem:[#allocation3 + $0x1d14] ss:$8 sps:$4 sm:$0xff]  }
 0x5a9   : > { %8502 = vmatpush1.bf16.msra.mxu0 %v14633_v33  ;;  %7888 = vmatprep.subr.bf16.mxu1 %v14638_v25  ;;  %v11572_v33 = vcombine.high %v16867_v28, %v16867_v28  ;;  %v14724_v25 = vld [vmem:[#allocation3 + $0xe10] ss:$8 sps:$4 sm:$0xff]  }
 0x5aa   : > { %8503 = vmatprep.subr.bf16.mxu0 %v14641_v35  ;;  %v14727_v35 = vld [vmem:[#allocation3 + $0x1d10] ss:$8 sps:$4 sm:$0xff]  }
 0x5ac   : > { %7889 = vmatpush1.bf16.msra.mxu1 %v14636_v36  ;;  %v14732_v36 = vld [vmem:[#allocation3 + $0xe24] ss:$8 sps:$4 sm:$0xff]  }
 0x5ad   : > { %8504 = vmatpush1.bf16.msra.mxu0 %v14639_v37  ;;  %7890 = vmatprep.subr.bf16.mxu1 %v14644_v38  ;;  %v14735_v37 = vld [vmem:[#allocation3 + $0x1d24] ss:$8 sps:$4 sm:$0xff]   ;;  %v14730_v38 = vld [vmem:[#allocation3 + $0xe20] ss:$8 sps:$4 sm:$0xff]  }
 0x5ae   : > { %8505 = vmatprep.subr.bf16.mxu0 %v14647_v39  ;;  %v14733_v39 = vld [vmem:[#allocation3 + $0x1d20] ss:$8 sps:$4 sm:$0xff]  }
 0x5b0   : > { %7891 = vmatpush1.bf16.msra.mxu1 %v14642_v18  ;;  %v14738_v18 = vld [vmem:[#allocation3 + $0xe34] ss:$8 sps:$4 sm:$0xff]  }
 0x5b1   : > { %8506 = vmatpush1.bf16.msra.mxu0 %v14645_v29  ;;  %7892 = vmatprep.subr.bf16.mxu1 %v14650_v42  ;;  %v14741_v29 = vld [vmem:[#allocation3 + $0x1d34] ss:$8 sps:$4 sm:$0xff]   ;;  %v14736_v42 = vld [vmem:[#allocation3 + $0xe30] ss:$8 sps:$4 sm:$0xff]  }
 0x5b2   : > { %8507 = vmatprep.subr.bf16.mxu0 %v14653_v43  ;;  %v14739_v43 = vld [vmem:[#allocation3 + $0x1d30] ss:$8 sps:$4 sm:$0xff]  }
 0x5b4   : > { %7893 = vmatpush1.bf16.msra.mxu1 %v14648_v44  ;;  %v14744_v44 = vld [vmem:[#allocation3 + $0xe44] ss:$8 sps:$4 sm:$0xff]  }
 0x5b5   : > { %8508 = vmatpush1.bf16.msra.mxu0 %v14651_v45  ;;  %7894 = vmatprep.subr.bf16.mxu1 %v14656_v34  ;;  %v14747_v45 = vld [vmem:[#allocation3 + $0x1d44] ss:$8 sps:$4 sm:$0xff]   ;;  %v14742_v34 = vld [vmem:[#allocation3 + $0xe40] ss:$8 sps:$4 sm:$0xff]  }
 0x5b6   : > { %8509 = vmatprep.subr.bf16.mxu0 %v14659_v24  ;;  %v14745_v24 = vld [vmem:[#allocation3 + $0x1d40] ss:$8 sps:$4 sm:$0xff]  }
 0x5b8   : > { %7895 = vmatpush1.bf16.msra.mxu1 %v14654_v48  ;;  %v14750_v48 = vld [vmem:[#allocation3 + $0xe54] ss:$8 sps:$4 sm:$0xff]  }
 0x5b9   : > { %8510 = vmatpush1.bf16.msra.mxu0 %v14657_v49  ;;  %7896 = vmatprep.subr.bf16.mxu1 %v14662_v50  ;;  %v14753_v49 = vld [vmem:[#allocation3 + $0x1d54] ss:$8 sps:$4 sm:$0xff]   ;;  %v14748_v50 = vld [vmem:[#allocation3 + $0xe50] ss:$8 sps:$4 sm:$0xff]  }
 0x5ba   : > { %8511 = vmatprep.subr.bf16.mxu0 %v14665_v51  ;;  %v14751_v51 = vld [vmem:[#allocation3 + $0x1d50] ss:$8 sps:$4 sm:$0xff]  }
 0x5bc   : > { %7897 = vmatpush1.bf16.msra.mxu1 %v14660_v40  ;;  %v14756_v40 = vld [vmem:[#allocation3 + $0xe64] ss:$8 sps:$4 sm:$0xff]  }
 0x5bd   : > { %8512 = vmatpush1.bf16.msra.mxu0 %v14663_v41  ;;  %7898 = vmatprep.subr.bf16.mxu1 %v14668_v54  ;;  %v14759_v41 = vld [vmem:[#allocation3 + $0x1d64] ss:$8 sps:$4 sm:$0xff]   ;;  %v14754_v54 = vld [vmem:[#allocation3 + $0xe60] ss:$8 sps:$4 sm:$0xff]  }
 0x5be   : > { %8513 = vmatprep.subr.bf16.mxu0 %v14671_v55  ;;  %v14757_v55 = vld [vmem:[#allocation3 + $0x1d60] ss:$8 sps:$4 sm:$0xff]  }
 0x5c0   : > { %7899 = vmatpush1.bf16.msra.mxu1 %v14666_v56  ;;  %v14762_v56 = vld [vmem:[#allocation3 + $0xe74] ss:$8 sps:$4 sm:$0xff]  }
 0x5c1   : > { %8514 = vmatpush1.bf16.msra.mxu0 %v14669_v57  ;;  %7900 = vmatprep.subr.bf16.mxu1 %v14674_v46  ;;  %v14765_v57 = vld [vmem:[#allocation3 + $0x1d74] ss:$8 sps:$4 sm:$0xff]   ;;  %v14760_v46 = vld [vmem:[#allocation3 + $0xe70] ss:$8 sps:$4 sm:$0xff]  }
 0x5c2   : > { %8515 = vmatprep.subr.bf16.mxu0 %v14677_v47  ;;  %v14763_v47 = vld [vmem:[#allocation3 + $0x1d70] ss:$8 sps:$4 sm:$0xff]  }
 0x5c4   : > { %7901 = vmatpush1.bf16.msra.mxu1 %v14672_v60  ;;  %v14768_v60 = vld [vmem:[#allocation3 + $0xe84] ss:$8 sps:$4 sm:$0xff]  }
 0x5c5   : > { %8516 = vmatpush1.bf16.msra.mxu0 %v14675_v61  ;;  %7902 = vmatprep.subr.bf16.mxu1 %v14680_v62  ;;  %v14771_v61 = vld [vmem:[#allocation3 + $0x1d84] ss:$8 sps:$4 sm:$0xff]   ;;  %v14766_v62 = vld [vmem:[#allocation3 + $0xe80] ss:$8 sps:$4 sm:$0xff]  }
 0x5c6   : > { %8517 = vmatprep.subr.bf16.mxu0 %v14683_v63  ;;  %v14769_v63 = vld [vmem:[#allocation3 + $0x1d80] ss:$8 sps:$4 sm:$0xff]  }
 0x5c8   : > { %7903 = vmatpush1.bf16.msra.mxu1 %v14678_v0  ;;  %v14774_v0 = vld [vmem:[#allocation3 + $0xe94] ss:$8 sps:$4 sm:$0xff]  }
 0x5c9   : > { %8518 = vmatpush1.bf16.msra.mxu0 %v14681_v1  ;;  %7904 = vmatprep.subr.bf16.mxu1 %v14686_v2  ;;  %v14777_v1 = vld [vmem:[#allocation3 + $0x1d94] ss:$8 sps:$4 sm:$0xff]   ;;  %v14772_v2 = vld [vmem:[#allocation3 + $0xe90] ss:$8 sps:$4 sm:$0xff]  }
 0x5ca   : > { %8519 = vmatprep.subr.bf16.mxu0 %v14689_v3  ;;  %v14775_v3 = vld [vmem:[#allocation3 + $0x1d90] ss:$8 sps:$4 sm:$0xff]  }
 0x5cc   : > { %7905 = vmatpush1.bf16.msra.mxu1 %v14684_v58  ;;  %v14780_v58 = vld [vmem:[#allocation3 + $0xea4] ss:$8 sps:$4 sm:$0xff]  }
 0x5cd   : > { %8520 = vmatpush1.bf16.msra.mxu0 %v14687_v4  ;;  %7906 = vmatprep.subr.bf16.mxu1 %v14692_v59  ;;  %v14783_v4 = vld [vmem:[#allocation3 + $0x1da4] ss:$8 sps:$4 sm:$0xff]   ;;  %v14778_v59 = vld [vmem:[#allocation3 + $0xea0] ss:$8 sps:$4 sm:$0xff]  }
 0x5ce   : > { %8521 = vmatprep.subr.bf16.mxu0 %v14695_v5  ;;  %v14781_v5 = vld [vmem:[#allocation3 + $0x1da0] ss:$8 sps:$4 sm:$0xff]  }
 0x5d0   : > { %7907 = vmatpush1.bf16.msra.mxu1 %v14690_v8  ;;  %v14786_v8 = vld [vmem:[#allocation3 + $0xeb4] ss:$8 sps:$4 sm:$0xff]  }
 0x5d1   : > { %8522 = vmatpush1.bf16.msra.mxu0 %v14693_v9  ;;  %7908 = vmatprep.subr.bf16.mxu1 %v14698_v52  ;;  %v14789_v9 = vld [vmem:[#allocation3 + $0x1db4] ss:$8 sps:$4 sm:$0xff]   ;;  %v14784_v52 = vld [vmem:[#allocation3 + $0xeb0] ss:$8 sps:$4 sm:$0xff]  }
 0x5d2   : > { %8523 = vmatprep.subr.bf16.mxu0 %v14701_v10  ;;  %v14787_v10 = vld [vmem:[#allocation3 + $0x1db0] ss:$8 sps:$4 sm:$0xff]  }
 0x5d4   : > { %7909 = vmatpush1.bf16.msra.mxu1 %v14696_v53  ;;  %v14792_v53 = vld [vmem:[#allocation3 + $0xec4] ss:$8 sps:$4 sm:$0xff]  }
 0x5d5   : > { %8524 = vmatpush1.bf16.msra.mxu0 %v14699_v11  ;;  %7910 = vmatprep.subr.bf16.mxu1 %v14704_v14  ;;  %v14795_v11 = vld [vmem:[#allocation3 + $0x1dc4] ss:$8 sps:$4 sm:$0xff]   ;;  %v14790_v14 = vld [vmem:[#allocation3 + $0xec0] ss:$8 sps:$4 sm:$0xff]  }
 0x5d6   : > { %8525 = vmatprep.subr.bf16.mxu0 %v14707_v15  ;;  %v14793_v15 = vld [vmem:[#allocation3 + $0x1dc0] ss:$8 sps:$4 sm:$0xff]  }
 0x5d8   : > { %7911 = vmatpush1.bf16.msra.mxu1 %v14702_v6  ;;  %v14798_v6 = vld [vmem:[#allocation3 + $0xed4] ss:$8 sps:$4 sm:$0xff]  }
 0x5d9   : > { %8526 = vmatpush1.bf16.msra.mxu0 %v14705_v16  ;;  %7912 = vmatprep.subr.bf16.mxu1 %v14710_v7  ;;  %v14801_v16 = vld [vmem:[#allocation3 + $0x1dd4] ss:$8 sps:$4 sm:$0xff]   ;;  %v14796_v7 = vld [vmem:[#allocation3 + $0xed0] ss:$8 sps:$4 sm:$0xff]  }
 0x5da   : > { %8527 = vmatprep.subr.bf16.mxu0 %v14713_v17  ;;  %v14799_v17 = vld [vmem:[#allocation3 + $0x1dd0] ss:$8 sps:$4 sm:$0xff]  }
 0x5dc   : > { %7913 = vmatpush1.bf16.msra.mxu1 %v14708_v22  ;;  %v14804_v22 = vld [vmem:[#allocation3 + $0xee4] ss:$8 sps:$4 sm:$0xff]  }
 0x5dd   : > { %8528 = vmatpush1.bf16.msra.mxu0 %v14711_v23  ;;  %7923 = vmatprep.subr.bf16.mxu1 %v14718_v12  ;;  %v14807_v23 = vld [vmem:[#allocation3 + $0x1de4] ss:$8 sps:$4 sm:$0xff]   ;;  %v14802_v12 = vld [vmem:[#allocation3 + $0xee0] ss:$8 sps:$4 sm:$0xff]  }
 0x5de   : > { %8538 = vmatprep.subr.bf16.mxu0 %v14723_v26  ;;  %v14805_v26 = vld [vmem:[#allocation3 + $0x1de0] ss:$8 sps:$4 sm:$0xff]  }
 0x5df   : > { %7915 = vmatmul.mubr.bf16.vlgmr.msra.gmra.mrb[0].mxu1 %v11539_v13  ;;  %v14810_v13 = vld [vmem:[#allocation3 + $0xef4] ss:$8 sps:$4 sm:$0xff]  }
 0x5e0   : > { %8530 = vmatmul.mubr.bf16.vlgmr.msra.gmra.mrb[0].mxu0 %v11569_v27  ;;  %7924 = vmatpush1.bf16.msra.mxu1 %v14716_v30  ;;  %v14813_v27 = vld [vmem:[#allocation3 + $0x1df4] ss:$8 sps:$4 sm:$0xff]   ;;  %v14808_v30 = vld [vmem:[#allocation3 + $0xef0] ss:$8 sps:$4 sm:$0xff]  }
 0x5e1   : > { %8539 = vmatpush1.bf16.msra.mxu0 %v14721_v31  ;;  %7925 = vmatprep.subr.bf16.mxu1 %v14726_v19  ;;  %v14811_v31 = vld [vmem:[#allocation3 + $0x1df0] ss:$8 sps:$4 sm:$0xff]   ;;  %v14820_v19 = vld [vmem:[#allocation3 + $0x1e04] ss:$8 sps:$4 sm:$0xff]  }
 0x5e2   : > { %8540 = vmatprep.subr.bf16.mxu0 %v14729_v32  ;;  %7955 = vmatprep.mubr.bf16.mxu1 %v11542_v21  ;;  %v16876_v32 = vld [vmem:[%s17373_s6 + $0xf0] sm:$0xff]  ;;  %v11541_v21 = vcombine.low %v16862_v20, %v16862_v20 }
 0x5e3   : > { %8570 = vmatprep.mubr.bf16.mxu0 %v11572_v33  ;;  %v11571_v33 = vcombine.low %v16867_v28, %v16867_v28  ;;  %v14824_v20 = vld [vmem:[#allocation3 + $0x1e20] ss:$8 sps:$4 sm:$0xff]   ;;  %v14827_v28 = vld [vmem:[#allocation3 + $0x1e30] ss:$8 sps:$4 sm:$0xff]  }
 0x5e4   : > { %7926 = vmatpush1.bf16.msra.mxu1 %v14724_v25  ;;  %v14818_v25 = vld [vmem:[#allocation3 + $0x1e00] ss:$8 sps:$4 sm:$0xff]  }
 0x5e5   : > { %8541 = vmatpush1.bf16.msra.mxu0 %v14727_v35  ;;  %7927 = vmatprep.subr.bf16.mxu1 %v14732_v36  ;;  %v11574_v35 = vcombine.high %v16876_v32, %v16876_v32  ;;  %v14823_v36 = vld [vmem:[#allocation3 + $0x1e14] ss:$8 sps:$4 sm:$0xff]  }
 0x5e6   : > { %8542 = vmatprep.subr.bf16.mxu0 %v14735_v37  ;;  %v14821_v37 = vld [vmem:[#allocation3 + $0x1e10] ss:$8 sps:$4 sm:$0xff]  }
 0x5e8   : > { %7928 = vmatpush1.bf16.msra.mxu1 %v14730_v38  ;;  %v14826_v38 = vld [vmem:[#allocation3 + $0x1e24] ss:$8 sps:$4 sm:$0xff]  }
 0x5e9   : > { %8543 = vmatpush1.bf16.msra.mxu0 %v14733_v39  ;;  %7929 = vmatprep.subr.bf16.mxu1 %v14738_v18  ;;  %v14829_v39 = vld [vmem:[#allocation3 + $0x1e34] ss:$8 sps:$4 sm:$0xff]   ;;  %v14832_v18 = vld [vmem:[#allocation3 + $0x1e44] ss:$8 sps:$4 sm:$0xff]  }
 0x5ea   : > { %8544 = vmatprep.subr.bf16.mxu0 %v14741_v29  ;;  %v14830_v29 = vld [vmem:[#allocation3 + $0x1e40] ss:$8 sps:$4 sm:$0xff]  }
 0x5ec   : > { %7930 = vmatpush1.bf16.msra.mxu1 %v14736_v42  ;;  %v14835_v42 = vld [vmem:[#allocation3 + $0x1e54] ss:$8 sps:$4 sm:$0xff]  }
 0x5ed   : > { %8545 = vmatpush1.bf16.msra.mxu0 %v14739_v43  ;;  %7931 = vmatprep.subr.bf16.mxu1 %v14744_v44  ;;  %v14833_v43 = vld [vmem:[#allocation3 + $0x1e50] ss:$8 sps:$4 sm:$0xff]   ;;  %v14838_v44 = vld [vmem:[#allocation3 + $0x1e64] ss:$8 sps:$4 sm:$0xff]  }
 0x5ee   : > { %8546 = vmatprep.subr.bf16.mxu0 %v14747_v45  ;;  %v14836_v45 = vld [vmem:[#allocation3 + $0x1e60] ss:$8 sps:$4 sm:$0xff]  }
 0x5f0   : > { %7932 = vmatpush1.bf16.msra.mxu1 %v14742_v34  ;;  %v14841_v34 = vld [vmem:[#allocation3 + $0x1e74] ss:$8 sps:$4 sm:$0xff]  }
 0x5f1   : > { %8547 = vmatpush1.bf16.msra.mxu0 %v14745_v24  ;;  %7933 = vmatprep.subr.bf16.mxu1 %v14750_v48  ;;  %v14839_v24 = vld [vmem:[#allocation3 + $0x1e70] ss:$8 sps:$4 sm:$0xff]   ;;  %v14844_v48 = vld [vmem:[#allocation3 + $0x1e84] ss:$8 sps:$4 sm:$0xff]  }
 0x5f2   : > { %8548 = vmatprep.subr.bf16.mxu0 %v14753_v49  ;;  %v14842_v49 = vld [vmem:[#allocation3 + $0x1e80] ss:$8 sps:$4 sm:$0xff]  }
 0x5f4   : > { %7934 = vmatpush1.bf16.msra.mxu1 %v14748_v50  ;;  %v14847_v50 = vld [vmem:[#allocation3 + $0x1e94] ss:$8 sps:$4 sm:$0xff]  }
 0x5f5   : > { %8549 = vmatpush1.bf16.msra.mxu0 %v14751_v51  ;;  %7935 = vmatprep.subr.bf16.mxu1 %v14756_v40  ;;  %v14845_v51 = vld [vmem:[#allocation3 + $0x1e90] ss:$8 sps:$4 sm:$0xff]   ;;  %v14850_v40 = vld [vmem:[#allocation3 + $0x1ea4] ss:$8 sps:$4 sm:$0xff]  }
 0x5f6   : > { %8550 = vmatprep.subr.bf16.mxu0 %v14759_v41  ;;  %v14848_v41 = vld [vmem:[#allocation3 + $0x1ea0] ss:$8 sps:$4 sm:$0xff]  }
 0x5f8   : > { %7936 = vmatpush1.bf16.msra.mxu1 %v14754_v54  ;;  %v14853_v54 = vld [vmem:[#allocation3 + $0x1eb4] ss:$8 sps:$4 sm:$0xff]  }
 0x5f9   : > { %8551 = vmatpush1.bf16.msra.mxu0 %v14757_v55  ;;  %7937 = vmatprep.subr.bf16.mxu1 %v14762_v56  ;;  %v14851_v55 = vld [vmem:[#allocation3 + $0x1eb0] ss:$8 sps:$4 sm:$0xff]   ;;  %v14856_v56 = vld [vmem:[#allocation3 + $0x1ec4] ss:$8 sps:$4 sm:$0xff]  }
 0x5fa   : > { %8552 = vmatprep.subr.bf16.mxu0 %v14765_v57  ;;  %v14854_v57 = vld [vmem:[#allocation3 + $0x1ec0] ss:$8 sps:$4 sm:$0xff]  }
 0x5fc   : > { %7938 = vmatpush1.bf16.msra.mxu1 %v14760_v46  ;;  %v14859_v46 = vld [vmem:[#allocation3 + $0x1ed4] ss:$8 sps:$4 sm:$0xff]  }
 0x5fd   : > { %8553 = vmatpush1.bf16.msra.mxu0 %v14763_v47  ;;  %7939 = vmatprep.subr.bf16.mxu1 %v14768_v60  ;;  %v14857_v47 = vld [vmem:[#allocation3 + $0x1ed0] ss:$8 sps:$4 sm:$0xff]   ;;  %v14862_v60 = vld [vmem:[#allocation3 + $0x1ee4] ss:$8 sps:$4 sm:$0xff]  }
 0x5fe   : > { %8554 = vmatprep.subr.bf16.mxu0 %v14771_v61  ;;  %v14860_v61 = vld [vmem:[#allocation3 + $0x1ee0] ss:$8 sps:$4 sm:$0xff]  }
 0x600   : > { %7940 = vmatpush1.bf16.msra.mxu1 %v14766_v62  ;;  %v14865_v62 = vld [vmem:[#allocation3 + $0x1ef4] ss:$8 sps:$4 sm:$0xff]  }
 0x601   : > { %8555 = vmatpush1.bf16.msra.mxu0 %v14769_v63  ;;  %7941 = vmatprep.subr.bf16.mxu1 %v14774_v0  ;;  %v14863_v63 = vld [vmem:[#allocation3 + $0x1ef0] ss:$8 sps:$4 sm:$0xff]   ;;  %v14870_v0 = vld [vmem:[#allocation3 + $0x1f04] ss:$8 sps:$4 sm:$0xff]  }
 0x602   : > { %8556 = vmatprep.subr.bf16.mxu0 %v14777_v1  ;;  %v16887_v1 = vld [vmem:[%s17373_s6 + $0xf8] sm:$0xff] }
 0x604   : > { %7942 = vmatpush1.bf16.msra.mxu1 %v14772_v2  ;;  %v11573_v2 = vcombine.low %v16876_v32, %v16876_v32  ;;  %v14909_v32 = vld [vmem:[#allocation3 + $0x1fd4] ss:$8 sps:$4 sm:$0xff]  }
 0x605   : > { %8557 = vmatpush1.bf16.msra.mxu0 %v14775_v3  ;;  %7943 = vmatprep.subr.bf16.mxu1 %v14780_v58  ;;  %v14868_v3 = vld [vmem:[#allocation3 + $0x1f00] ss:$8 sps:$4 sm:$0xff]   ;;  %v11576_v58 = vcombine.high %v16887_v1, %v16887_v1 }
 0x606   : > { %8558 = vmatprep.subr.bf16.mxu0 %v14783_v4  ;;  %v14873_v4 = vld [vmem:[#allocation3 + $0x1f14] ss:$8 sps:$4 sm:$0xff]  }
 0x608   : > { %7944 = vmatpush1.bf16.msra.mxu1 %v14778_v59  ;;  %v14871_v59 = vld [vmem:[#allocation3 + $0x1f10] ss:$8 sps:$4 sm:$0xff]  }
 0x609   : > { %8559 = vmatpush1.bf16.msra.mxu0 %v14781_v5  ;;  %7945 = vmatprep.subr.bf16.mxu1 %v14786_v8  ;;  %v14876_v5 = vld [vmem:[#allocation3 + $0x1f24] ss:$8 sps:$4 sm:$0xff]   ;;  %v14874_v8 = vld [vmem:[#allocation3 + $0x1f20] ss:$8 sps:$4 sm:$0xff]  }
 0x60a   : > { %8560 = vmatprep.subr.bf16.mxu0 %v14789_v9  ;;  %v14879_v9 = vld [vmem:[#allocation3 + $0x1f34] ss:$8 sps:$4 sm:$0xff]  }
 0x60c   : > { %7946 = vmatpush1.bf16.msra.mxu1 %v14784_v52  ;;  %v14877_v52 = vld [vmem:[#allocation3 + $0x1f30] ss:$8 sps:$4 sm:$0xff]  }
 0x60d   : > { %8561 = vmatpush1.bf16.msra.mxu0 %v14787_v10  ;;  %7947 = vmatprep.subr.bf16.mxu1 %v14792_v53  ;;  %v14882_v10 = vld [vmem:[#allocation3 + $0x1f44] ss:$8 sps:$4 sm:$0xff]   ;;  %v14880_v53 = vld [vmem:[#allocation3 + $0x1f40] ss:$8 sps:$4 sm:$0xff]  }
 0x60e   : > { %8562 = vmatprep.subr.bf16.mxu0 %v14795_v11  ;;  %v14885_v11 = vld [vmem:[#allocation3 + $0x1f54] ss:$8 sps:$4 sm:$0xff]  }
 0x610   : > { %7948 = vmatpush1.bf16.msra.mxu1 %v14790_v14  ;;  %v14883_v14 = vld [vmem:[#allocation3 + $0x1f50] ss:$8 sps:$4 sm:$0xff]  }
 0x611   : > { %8563 = vmatpush1.bf16.msra.mxu0 %v14793_v15  ;;  %7949 = vmatprep.subr.bf16.mxu1 %v14798_v6  ;;  %v14888_v15 = vld [vmem:[#allocation3 + $0x1f64] ss:$8 sps:$4 sm:$0xff]   ;;  %v14886_v6 = vld [vmem:[#allocation3 + $0x1f60] ss:$8 sps:$4 sm:$0xff]  }
 0x612   : > { %8564 = vmatprep.subr.bf16.mxu0 %v14801_v16  ;;  %v14891_v16 = vld [vmem:[#allocation3 + $0x1f74] ss:$8 sps:$4 sm:$0xff]  }
 0x614   : > { %7950 = vmatpush1.bf16.msra.mxu1 %v14796_v7  ;;  %v14889_v7 = vld [vmem:[#allocation3 + $0x1f70] ss:$8 sps:$4 sm:$0xff]  }
 0x615   : > { %8565 = vmatpush1.bf16.msra.mxu0 %v14799_v17  ;;  %7951 = vmatprep.subr.bf16.mxu1 %v14804_v22  ;;  %v14894_v17 = vld [vmem:[#allocation3 + $0x1f84] ss:$8 sps:$4 sm:$0xff]   ;;  %v14892_v22 = vld [vmem:[#allocation3 + $0x1f80] ss:$8 sps:$4 sm:$0xff]  }
 0x616   : > { %8566 = vmatprep.subr.bf16.mxu0 %v14807_v23  ;;  %v14897_v23 = vld [vmem:[#allocation3 + $0x1f94] ss:$8 sps:$4 sm:$0xff]  }
 0x618   : > { %7952 = vmatpush1.bf16.msra.mxu1 %v14802_v12  ;;  %v14895_v12 = vld [vmem:[#allocation3 + $0x1f90] ss:$8 sps:$4 sm:$0xff]  }
 0x619   : > { %8567 = vmatpush1.bf16.msra.mxu0 %v14805_v26  ;;  %7953 = vmatprep.subr.bf16.mxu1 %v14810_v13  ;;  %v14900_v26 = vld [vmem:[#allocation3 + $0x1fa4] ss:$8 sps:$4 sm:$0xff]   ;;  %v14898_v13 = vld [vmem:[#allocation3 + $0x1fa0] ss:$8 sps:$4 sm:$0xff]  }
 0x61a   : > { %8568 = vmatprep.subr.bf16.mxu0 %v14813_v27  ;;  %v14903_v27 = vld [vmem:[#allocation3 + $0x1fb4] ss:$8 sps:$4 sm:$0xff]  }
 0x61c   : > { %7954 = vmatpush1.bf16.msra.mxu1 %v14808_v30  ;;  %v14901_v30 = vld [vmem:[#allocation3 + $0x1fb0] ss:$8 sps:$4 sm:$0xff]  }
 0x61d   : > { %8569 = vmatpush1.bf16.msra.mxu0 %v14811_v31  ;;  %v14906_v31 = vld [vmem:[#allocation3 + $0x1fc4] ss:$8 sps:$4 sm:$0xff]  }
 0x61e   : > { %8579 = vmatprep.subr.bf16.mxu0 %v14820_v19  ;;  %v14904_v19 = vld [vmem:[#allocation3 + $0x1fc0] ss:$8 sps:$4 sm:$0xff]  }
 0x61f   : > { %7956 = vmatmul.mubr.bf16.vlgmr.msra.gmra.mrb[0].mxu1 %v11541_v21  ;;  %v14907_v21 = vld [vmem:[#allocation3 + $0x1fd0] ss:$8 sps:$4 sm:$0xff]  }
 0x620   : > { %8571 = vmatmul.mubr.bf16.vlgmr.msra.gmra.mrb[0].mxu0 %v11571_v33  ;;  %v14912_v33 = vld [vmem:[#allocation3 + $0x1fe4] ss:$8 sps:$4 sm:$0xff]  }
 0x621   : > { %8580 = vmatpush1.bf16.msra.mxu0 %v14818_v25  ;;  %8611 = vmatprep.mubr.bf16.mxu0 %v11574_v35  ;;  %v14910_v25 = vld [vmem:[#allocation3 + $0x1fe0] ss:$8 sps:$4 sm:$0xff]   ;;  %v14915_v35 = vld [vmem:[#allocation3 + $0x1ff4] ss:$8 sps:$4 sm:$0xff]  }
 0x622   : > { %8581 = vmatprep.subr.bf16.mxu0 %v14823_v36  ;;  %v14913_v36 = vld [vmem:[#allocation3 + $0x1ff0] ss:$8 sps:$4 sm:$0xff]  }
 0x625   : > { %8582 = vmatpush1.bf16.msra.mxu0 %v14821_v37  ;;  %v11575_v37 = vcombine.low %v16887_v1, %v16887_v1 }
 0x626   : > { %8583 = vmatprep.subr.bf16.mxu0 %v14826_v38 }
 0x629   : > { %8584 = vmatpush1.bf16.msra.mxu0 %v14824_v20 }
 0x62a   : > { %8585 = vmatprep.subr.bf16.mxu0 %v14829_v39 }
 0x62d   : > { %8586 = vmatpush1.bf16.msra.mxu0 %v14827_v28 }
 0x62e   : > { %8587 = vmatprep.subr.bf16.mxu0 %v14832_v18  ;;  %v14918_v18 = vld [vmem:[#allocation8 + $0x40] sm:$0xff]  }
 0x62f   : > { %12847 = vmatprep.subr.bf16.mxu1 %v14918_v18 }
 0x631   : > { %8588 = vmatpush1.bf16.msra.mxu0 %v14830_v29  ;;  %v14919_v29 = vld [vmem:[#allocation8] sm:$0xff]  }
 0x632   : > { %8589 = vmatprep.subr.bf16.mxu0 %v14835_v42  ;;  %12848 = vmatpush3.bf16.msra.mxu1 %v14919_v29  ;;  %v14920_v42 = vld [vmem:[#allocation8 + $0x48] sm:$0xff]  }
 0x633   : > { %12849 = vmatprep.subr.bf16.mxu1 %v14920_v42 }
 0x635   : > { %8590 = vmatpush1.bf16.msra.mxu0 %v14833_v43  ;;  %v14921_v43 = vld [vmem:[#allocation8 + $0x8] sm:$0xff]  }
 0x636   : > { %8591 = vmatprep.subr.bf16.mxu0 %v14838_v44  ;;  %12850 = vmatpush3.bf16.msra.mxu1 %v14921_v43  ;;  %v14922_v44 = vld [vmem:[#allocation8 + $0x50] sm:$0xff]  }
 0x637   : > { %12851 = vmatprep.subr.bf16.mxu1 %v14922_v44 }
 0x639   : > { %8592 = vmatpush1.bf16.msra.mxu0 %v14836_v45  ;;  %v14923_v45 = vld [vmem:[#allocation8 + $0x10] sm:$0xff]  }
 0x63a   : > { %8593 = vmatprep.subr.bf16.mxu0 %v14841_v34  ;;  %12852 = vmatpush3.bf16.msra.mxu1 %v14923_v45  ;;  %v14924_v34 = vld [vmem:[#allocation8 + $0x58] sm:$0xff]  }
 0x63b   : > { %12853 = vmatprep.subr.bf16.mxu1 %v14924_v34 }
 0x63d   : > { %8594 = vmatpush1.bf16.msra.mxu0 %v14839_v24  ;;  %v14925_v24 = vld [vmem:[#allocation8 + $0x18] sm:$0xff]  }
 0x63e   : > { %8595 = vmatprep.subr.bf16.mxu0 %v14844_v48  ;;  %12854 = vmatpush3.bf16.msra.mxu1 %v14925_v24  ;;  %v14926_v48 = vld [vmem:[#allocation8 + $0x60] sm:$0xff]  }
 0x63f   : > { %12855 = vmatprep.subr.bf16.mxu1 %v14926_v48 }
 0x641   : > { %8596 = vmatpush1.bf16.msra.mxu0 %v14842_v49  ;;  %v14927_v49 = vld [vmem:[#allocation8 + $0x20] sm:$0xff]  }
 0x642   : > { %8597 = vmatprep.subr.bf16.mxu0 %v14847_v50  ;;  %12856 = vmatpush3.bf16.msra.mxu1 %v14927_v49  ;;  %v14928_v50 = vld [vmem:[#allocation8 + $0x68] sm:$0xff]  }
 0x643   : > { %12857 = vmatprep.subr.bf16.mxu1 %v14928_v50 }
 0x645   : > { %8598 = vmatpush1.bf16.msra.mxu0 %v14845_v51  ;;  %v14929_v51 = vld [vmem:[#allocation8 + $0x28] sm:$0xff]  }
 0x646   : > { %8599 = vmatprep.subr.bf16.mxu0 %v14850_v40  ;;  %12858 = vmatpush3.bf16.msra.mxu1 %v14929_v51  ;;  %v14930_v40 = vld [vmem:[#allocation8 + $0x70] sm:$0xff]  }
 0x647   : > { %12859 = vmatprep.subr.bf16.mxu1 %v14930_v40 }
 0x649   : > { %8600 = vmatpush1.bf16.msra.mxu0 %v14848_v41  ;;  %v14931_v41 = vld [vmem:[#allocation8 + $0x30] sm:$0xff]  }
 0x64a   : > { %8601 = vmatprep.subr.bf16.mxu0 %v14853_v54  ;;  %v14932_v54 = vld [vmem:[#allocation8 + $0x78] sm:$0xff]   ;;  %12860 = vmatpush3.bf16.msra.mxu1 %v14931_v41 }
 0x64b   : > { %12861 = vmatprep.subr.bf16.mxu1 %v14932_v54  ;;  %v14934_v54 = vld [vmem:[#allocation13] sm:$0xff]  }
 0x64d   : > { %8602 = vmatpush1.bf16.msra.mxu0 %v14851_v55  ;;  %v14933_v55 = vld [vmem:[#allocation8 + $0x38] sm:$0xff]  }
 0x64e   : > { %8603 = vmatprep.subr.bf16.mxu0 %v14856_v56  ;;  %12862 = vmatpush3.bf16.msra.mxu1 %v14933_v55  ;;  %v15949_v55 = vmov 0.0  }
 0x64f   : > { %12909 = vmatprep.subr.bf16.mxu1 %v15949_v55 }
 0x651   : > { %8604 = vmatpush1.bf16.msra.mxu0 %v14854_v57 }
 0x652   : > { %8605 = vmatprep.subr.bf16.mxu0 %v14859_v46 }
 0x655   : > { %8606 = vmatpush1.bf16.msra.mxu0 %v14857_v47 }
 0x656   : > { %8607 = vmatprep.subr.bf16.mxu0 %v14862_v60 }
 0x659   : > { %8608 = vmatpush1.bf16.msra.mxu0 %v14860_v61 }
 0x65a   : > { %8609 = vmatprep.subr.bf16.mxu0 %v14865_v62 }
 0x65d   : > { %8610 = vmatpush1.bf16.msra.mxu0 %v14863_v63 }
 0x65e   : > { %8620 = vmatprep.subr.bf16.mxu0 %v14870_v0 }
 0x660   : > { %8612 = vmatmul.mubr.bf16.vlgmr.msra.gmra.mrb[0].mxu0 %v11573_v2 }
 0x661   : > { %8621 = vmatpush1.bf16.msra.mxu0 %v14868_v3  ;;  %8652 = vmatprep.mubr.bf16.mxu0 %v11576_v58 }
 0x662   : > { %8622 = vmatprep.subr.bf16.mxu0 %v14873_v4 }
 0x665   : > { %8623 = vmatpush1.bf16.msra.mxu0 %v14871_v59 }
 0x666   : > { %8624 = vmatprep.subr.bf16.mxu0 %v14876_v5 }
 0x669   : > { %8625 = vmatpush1.bf16.msra.mxu0 %v14874_v8 }
 0x66a   : > { %8626 = vmatprep.subr.bf16.mxu0 %v14879_v9 }
 0x66d   : > { %8627 = vmatpush1.bf16.msra.mxu0 %v14877_v52 }
 0x66e   : > { %8628 = vmatprep.subr.bf16.mxu0 %v14882_v10 }
 0x671   : > { %8629 = vmatpush1.bf16.msra.mxu0 %v14880_v53 }
 0x672   : > { %8630 = vmatprep.subr.bf16.mxu0 %v14885_v11 }
 0x675   : > { %8631 = vmatpush1.bf16.msra.mxu0 %v14883_v14 }
 0x676   : > { %8632 = vmatprep.subr.bf16.mxu0 %v14888_v15 }
 0x679   : > { %8633 = vmatpush1.bf16.msra.mxu0 %v14886_v6 }
 0x67a   : > { %8634 = vmatprep.subr.bf16.mxu0 %v14891_v16 }
 0x67d   : > { %8635 = vmatpush1.bf16.msra.mxu0 %v14889_v7 }
 0x67e   : > { %8636 = vmatprep.subr.bf16.mxu0 %v14894_v17 }
 0x681   : > { %8637 = vmatpush1.bf16.msra.mxu0 %v14892_v22 }
 0x682   : > { %8638 = vmatprep.subr.bf16.mxu0 %v14897_v23 }
 0x685   : > { %8639 = vmatpush1.bf16.msra.mxu0 %v14895_v12 }
 0x686   : > { %8640 = vmatprep.subr.bf16.mxu0 %v14900_v26 }
 0x689   : > { %8641 = vmatpush1.bf16.msra.mxu0 %v14898_v13 }
 0x68a   : > { %8642 = vmatprep.subr.bf16.mxu0 %v14903_v27 }
 0x68d   : > { %8643 = vmatpush1.bf16.msra.mxu0 %v14901_v30 }
 0x68e   : > { %8644 = vmatprep.subr.bf16.mxu0 %v14906_v31 }
 0x691   : > { %8645 = vmatpush1.bf16.msra.mxu0 %v14904_v19 }
 0x692   : > { %8646 = vmatprep.subr.bf16.mxu0 %v14909_v32  ;;  %v8703_v32 = vlaneseq }
 0x695   : > { %8647 = vmatpush1.bf16.msra.mxu0 %v14907_v21 }
 0x696   : > { %8648 = vmatprep.subr.bf16.mxu0 %v14912_v33 }
 0x699   : > { %8649 = vmatpush1.bf16.msra.mxu0 %v14910_v25 }
 0x69a   : > { %8650 = vmatprep.subr.bf16.mxu0 %v14915_v35  ;;  %v8704_v35 = vshrl.u32 %v8703_v32, 7  ;;  %v14942_v32 = vld [vmem:[#allocation17] sm:$0xff]  }
 0x69d   : > { %8651 = vmatpush1.bf16.msra.mxu0 %v14913_v36  ;;  %v16895_v36 = vsub.s32 0, %v8704_v35 }
 0x6a0   : > { %8653 = vmatmul.mubr.bf16.vlgmr.msra.gmra.mrb[0].mxu0 %v11575_v37  ;;  %v8661_v37 = vld [vmem:[#allocation5] sm:$0x3] }
 0x6f2   : > { %v7957_v38 = vpop.f32.mrb[0].mxu1 }
 0x6f3   : > { %v7959_v20 = vpop.f32.mrb[1].mxu1 }
 0x6f4   : > { %v7961_v39 = vpop.f32.mrb[2].mxu1 }
 0x6f5   : > { %v7962_v28 = vpop.f32.mrb[3].mxu1  ;;  %v8706_v39 = vrot.slane %v8661_v37, %v16895_v36 }
 0x773   : > { %v8654_v56 = vpop.f32.mrb[0].mxu0 }
 0x774   : > { %v12949_v57 = vadd.f32 %v8654_v56, %v7957_v38  ;;  %v8656_v46 = vpop.f32.mrb[1].mxu0  ;;  %v16897_v38 = vsub.s32 1, %v8704_v35  ;;  %v14935_v56 = vld [vmem:[#allocation13 + $0x8] sm:$0xff]  }
 0x775   : > { %v12950_v47 = vadd.f32 %v8656_v46, %v7959_v20  ;;  %v8658_v60 = vpop.f32.mrb[2].mxu0  ;;  %v8662_v20 = vld [vmem:[#allocation7] sm:$0x3]  ;;  %v14946_v35 = vld [vmem:[#allocation17 + $0x20] sm:$0xff]  }
 0x776   : > { %v8663_v61 = vrot.slane %v12949_v57, 4  ;;  %v8659_v62 = vpop.f32.mrb[3].mxu0  ;;  %v8710_v18 = vrot.slane %v8661_v37, %v16897_v38  ;;  %v8719_v43 = vrot.slane %v8662_v20, %v16895_v36  ;;  %v8723_v45 = vrot.slane %v8662_v20, %v16897_v38  ;;  %v14937_v46 = vld [vmem:[#allocation13 + $0x18] sm:$0xff]   ;;  %v14939_v60 = vld [vmem:[#allocation13 + $0x28] sm:$0xff]  }
 0x777   : > { %v8669_v63 = vrot.slane %v12950_v47, 4  ;;  %v14941_v62 = vld [vmem:[#allocation13 + $0x38] sm:$0xff]   ;;  %v14947_v37 = vld [vmem:[#allocation17 + $0x28] sm:$0xff]  }
 0x778   : > { %v8664_v0 = vadd.f32 %v12949_v57, %v8663_v61  ;;  %v14940_v61 = vld [vmem:[#allocation13 + $0x30] sm:$0xff]  }
 0x779   : > { %v8670_v1 = vadd.f32 %v12950_v47, %v8669_v63  ;;  %v14948_v20 = vld [vmem:[#allocation17 + $0x30] sm:$0xff]  }
 0x77a   : > { %v8665_v2 = vrot.slane %v8664_v0, 2 }
 0x77b   : > { %v8671_v3 = vrot.slane %v8670_v1, 2 }
 0x77c   : > { %v8666_v58 = vadd.f32 %v8665_v2, %v8664_v0 }
 0x77d   : > { %v8672_v4 = vadd.f32 %v8671_v3, %v8670_v1 }
 0x77e   : > { %v8667_v59 = vrot.slane %v8666_v58, 1 }
 0x77f   : > { %v8673_v5 = vrot.slane %v8672_v4, 1 }
 0x780   : > { %v8668_v8 = vadd.f32 %v8667_v59, %v8666_v58 }
 0x781   : > { %v8674_v9 = vadd.f32 %v8673_v5, %v8672_v4 }
 0x782   : > { %v8676_v52 = vmul.f32 0.125, %v8668_v8 }
 0x783   : > { %v8677_v10 = vmul.f32 0.125, %v8674_v9 }
 0x784   : > { %v8678_v53 = vsub.f32 %v12949_v57, %v8676_v52  ;;  %v14936_v57 = vld [vmem:[#allocation13 + $0x10] sm:$0xff]  }
 0x785   : > { %v8679_v11 = vsub.f32 %v12950_v47, %v8677_v10  ;;  %v14938_v47 = vld [vmem:[#allocation13 + $0x20] sm:$0xff]  }
 0x786   : > { %v8680_v14 = vmul.f32 %v8678_v53, %v8678_v53 }
 0x787   : > { %v8681_v15 = vmul.f32 %v8679_v11, %v8679_v11 }
 0x788   : > { %v8682_v6 = vrot.slane %v8680_v14, 4 }
 0x789   : > { %v8688_v16 = vrot.slane %v8681_v15, 4 }
 0x78a   : > { %v8683_v7 = vadd.f32 %v8682_v6, %v8680_v14 }
 0x78b   : > { %v8689_v17 = vadd.f32 %v8688_v16, %v8681_v15 }
 0x78c   : > { %v8684_v22 = vrot.slane %v8683_v7, 2 }
 0x78d   : > { %v8690_v23 = vrot.slane %v8689_v17, 2 }
 0x78e   : > { %v8685_v12 = vadd.f32 %v8684_v22, %v8683_v7 }
 0x78f   : > { %v8691_v26 = vadd.f32 %v8690_v23, %v8689_v17 }
 0x790   : > { %v8686_v13 = vrot.slane %v8685_v12, 1 }
 0x791   : > { %v8692_v27 = vrot.slane %v8691_v26, 1 }
 0x792   : > { %v8687_v30 = vadd.f32 %v8686_v13, %v8685_v12  ;;  %v12617_v12 = vld [vmem:[#allocation10] ss:$0 sm:$0xff]  ;;  %v12618_v13 = vld [vmem:[#allocation11] ss:$0 sm:$0xff] }
 0x793   : > { %v8693_v31 = vadd.f32 %v8692_v27, %v8691_v26 }
 0x794   : > { %v8694_v19 = vmul.f32 0.125, %v8687_v30 }
 0x795   : > { %v8695_v21 = vmul.f32 0.125, %v8693_v31 }
 0x796   : > { %v8696_v33 = vadd.f32 1e-05, %v8694_v19 }
 0x797   : > { %v8697_v25 = vadd.f32 1e-05, %v8695_v21  ;;  %v14943_v21 = vld [vmem:[#allocation17 + $0x8] sm:$0xff]  }
 0x798   : > { %14974 = vrsqrt.f32 %v8696_v33  ;;  %v14944_v33 = vld [vmem:[#allocation17 + $0x10] sm:$0xff]  }
 0x799   : > { %14976 = vrsqrt.f32 %v8697_v25  ;;  %v14945_v25 = vld [vmem:[#allocation17 + $0x18] sm:$0xff]  }
 0x7a2   : > { %v14975_v28 = vpop.eup %14974 }
 0x7a3   : > { %v14977_v29 = vpop.eup %14976  ;;  %v8700_v42 = vmul.f32 %v14975_v28, %v8678_v53 }
 0x7a4   : > { %v8701_v44 = vmul.f32 %v14977_v29, %v8679_v11 }
 0x7a5   : > { %v8713_v34 = vmul.f32 %v8706_v39, %v8700_v42  ;;  %v14949_v39 = vld [vmem:[#allocation17 + $0x38] sm:$0xff]  }
 0x7a6   : > { %v8714_v24 = vmul.f32 %v8710_v18, %v8701_v44 }
 0x7a7   : > { %v8726_v48 = vadd.f32 %v8719_v43, %v8713_v34 }
 0x7a8   : > { %v8727_v49 = vadd.f32 %v8723_v45, %v8714_v24 }
 0x7a9   : > { %v8728_v50 = vmax.f32 %v8726_v48, 0.0 }
 0x7aa   : > { %v8729_v51 = vmax.f32 %v8727_v49, 0.0 }
 0x7ab   : > { %v8730_v41 = vpack.c.bf16 %v8728_v50, %v8728_v50 }
 0x7ac   : > { %v8731_v40 = vpack.c.bf16 %v8729_v51, %v8729_v51 }
 0x7ae   : > { %8892 = vmatprep.mubr.bf16.mxu1 %v8731_v40 }
 0x7af   : > { %8893 = vmatmul.mubr.bf16.vlgmr.msra.gmra.mrb[4].mxu1 %v8730_v41 }
 0x7b0   : > { %12910 = vmatpush3.bf16.msra.mxu1 %v14934_v54  ;;  %12925 = vmatprep.mubr.msk.bf16.mxu1 %vm15950_vm0, %v15949_v55 }
 0x7b1   : > { %12911 = vmatprep.subr.bf16.mxu1 %v15949_v55 }
 0x7b4   : > { %12912 = vmatpush3.bf16.msra.mxu1 %v14935_v56 }
 0x7b5   : > { %12913 = vmatprep.subr.bf16.mxu1 %v15949_v55 }
 0x7b8   : > { %12914 = vmatpush3.bf16.msra.mxu1 %v14936_v57 }
 0x7b9   : > { %12915 = vmatprep.subr.bf16.mxu1 %v15949_v55 }
 0x7bc   : > { %12916 = vmatpush3.bf16.msra.mxu1 %v14937_v46 }
 0x7bd   : > { %12917 = vmatprep.subr.bf16.mxu1 %v15949_v55 }
 0x7c0   : > { %12918 = vmatpush3.bf16.msra.mxu1 %v14938_v47 }
 0x7c1   : > { %12919 = vmatprep.subr.bf16.mxu1 %v15949_v55 }
 0x7c4   : > { %12920 = vmatpush3.bf16.msra.mxu1 %v14939_v60 }
 0x7c5   : > { %12921 = vmatprep.subr.bf16.mxu1 %v15949_v55 }
 0x7c8   : > { %12922 = vmatpush3.bf16.msra.mxu1 %v14940_v61  ;;  %v12627_v61 = vld [vmem:[#allocation14] ss:$0 sm:$0xff] }
 0x7c9   : > { %12923 = vmatprep.subr.bf16.mxu1 %v15949_v55 }
 0x7cc   : > { %12924 = vmatpush3.bf16.msra.mxu1 %v14941_v62 }
 0x7cd   : > { %12929 = vmatprep.subr.bf16.mxu1 %v15949_v55 }
 0x882   : > { %v12863_v63 = vpop.f32.mrb[4].mxu1 }
 0x883   : > { %v12864_v0 = vpop.f32.mrb[5].mxu1 }
 0x884   : > { %v12865_v1 = vadd.f32 %v12864_v0, %v12863_v63  ;;  %v12866_v2 = vpop.f32.mrb[6].mxu1  ;;  %v12628_v63 = vld [vmem:[#allocation16] ss:$0 sm:$0xff] }
 0x885   : > { %v12867_v3 = vpop.f32.mrb[7].mxu1 }
 0x886   : > { %v8902_v58 = vrot.slane %v12865_v1, 4 }
 0x888   : > { %v8903_v4 = vadd.f32 %v12865_v1, %v8902_v58  ;;  %v14952_v58 = vld [vmem:[#allocation22 + $0x4] ss:$8 sps:$4 sm:$0xff]  }
 0x88a   : > { %v8904_v59 = vrot.slane %v8903_v4, 2 }
 0x88c   : > { %v8905_v5 = vadd.f32 %v8904_v59, %v8903_v4  ;;  %v14950_v4 = vld [vmem:[#allocation22] ss:$8 sps:$4 sm:$0xff]   ;;  %v14955_v59 = vld [vmem:[#allocation22 + $0x14] ss:$8 sps:$4 sm:$0xff]  }
 0x88e   : > { %v8906_v8 = vrot.slane %v8905_v5, 1 }
 0x890   : > { %v8907_v9 = vadd.f32 %v8906_v8, %v8905_v5  ;;  %v14953_v5 = vld [vmem:[#allocation22 + $0x10] ss:$8 sps:$4 sm:$0xff]   ;;  %v14958_v8 = vld [vmem:[#allocation22 + $0x24] ss:$8 sps:$4 sm:$0xff]  }
 0x892   : > { %v8908_v52 = vmul.f32 0.125, %v8907_v9  ;;  %v14956_v9 = vld [vmem:[#allocation22 + $0x20] ss:$8 sps:$4 sm:$0xff]  }
 0x894   : > { %v8909_v10 = vsub.f32 %v12865_v1, %v8908_v52  ;;  %v14961_v52 = vld [vmem:[#allocation22 + $0x34] ss:$8 sps:$4 sm:$0xff]  }
 0x896   : > { %v8910_v53 = vmul.f32 %v8909_v10, %v8909_v10 }
 0x898   : > { %v8911_v11 = vrot.slane %v8910_v53, 4 }
 0x89a   : > { %v8912_v14 = vadd.f32 %v8911_v11, %v8910_v53  ;;  %v14964_v53 = vld [vmem:[#allocation22 + $0x44] ss:$8 sps:$4 sm:$0xff]   ;;  %v14962_v11 = vld [vmem:[#allocation22 + $0x40] ss:$8 sps:$4 sm:$0xff]  }
 0x89c   : > { %v8913_v15 = vrot.slane %v8912_v14, 2 }
 0x89e   : > { %v8914_v6 = vadd.f32 %v8913_v15, %v8912_v14  ;;  %v14967_v14 = vld [vmem:[#allocation22 + $0x54] ss:$8 sps:$4 sm:$0xff]   ;;  %v14965_v15 = vld [vmem:[#allocation22 + $0x50] ss:$8 sps:$4 sm:$0xff]  }
 0x8a0   : > { %v8915_v16 = vrot.slane %v8914_v6, 1 }
 0x8a2   : > { %v8916_v7 = vadd.f32 %v8915_v16, %v8914_v6  ;;  %v14970_v6 = vld [vmem:[#allocation22 + $0x64] ss:$8 sps:$4 sm:$0xff]   ;;  %v14968_v16 = vld [vmem:[#allocation22 + $0x60] ss:$8 sps:$4 sm:$0xff]  }
 0x8a4   : > { %v8917_v17 = vmul.f32 0.125, %v8916_v7  ;;  %v14973_v7 = vld [vmem:[#allocation22 + $0x74] ss:$8 sps:$4 sm:$0xff]  }
 0x8a6   : > { %v8918_v22 = vadd.f32 1e-05, %v8917_v17  ;;  %v14971_v17 = vld [vmem:[#allocation22 + $0x70] ss:$8 sps:$4 sm:$0xff]  }
 0x8a8   : > { %14978 = vrsqrt.f32 %v8918_v22  ;;  %v15951_v22 = vmov 0  }
 0x8b2   : > { %v14979_v23 = vpop.eup %14978 }
 0x8b3   : > { %v8920_v26 = vmul.f32 %v14979_v23, %v8909_v10  ;;  %v14959_v10 = vld [vmem:[#allocation22 + $0x30] ss:$8 sps:$4 sm:$0xff]  }
 0x8b5   : > { %v8927_v27 = vmul.f32 %v12617_v12, %v8920_v26 }
 0x8b7   : > { %v8934_v30 = vadd.f32 %v12618_v13, %v8927_v27 }
 0x8b9   : > { %v8935_v31 = vmax.f32 %v8934_v30, 0.0 }
 0x8bb   : > { %v8936_v19 = vpack.c.bf16 %v8935_v31, %v8935_v31 }
 0x8bd   : > { %12926 = vmatmul.mubr.bf16.vlgmr.msra.gmra.mrb[8].mxu1 %v8936_v19 }
 0x8be   : > { %12945 = vmatprep.mubr.msk.bf16.mxu1 %vm15950_vm0, %v15949_v55  ;;  %12930 = vmatpush3.bf16.msra.mxu1 %v14942_v32 }
 0x8bf   : > { %12931 = vmatprep.subr.bf16.mxu1 %v15949_v55 }
 0x8c2   : > { %12932 = vmatpush3.bf16.msra.mxu1 %v14943_v21 }
 0x8c3   : > { %12933 = vmatprep.subr.bf16.mxu1 %v15949_v55 }
 0x8c6   : > { %12934 = vmatpush3.bf16.msra.mxu1 %v14944_v33 }
 0x8c7   : > { %12935 = vmatprep.subr.bf16.mxu1 %v15949_v55 }
 0x8ca   : > { %12936 = vmatpush3.bf16.msra.mxu1 %v14945_v25 }
 0x8cb   : > { %12937 = vmatprep.subr.bf16.mxu1 %v15949_v55 }
 0x8ce   : > { %12938 = vmatpush3.bf16.msra.mxu1 %v14946_v35 }
 0x8cf   : > { %12939 = vmatprep.subr.bf16.mxu1 %v15949_v55 }
 0x8d2   : > { %12940 = vmatpush3.bf16.msra.mxu1 %v14947_v37 }
 0x8d3   : > { %12941 = vmatprep.subr.bf16.mxu1 %v15949_v55 }
 0x8d6   : > { %12942 = vmatpush3.bf16.msra.mxu1 %v14948_v20 }
 0x8d7   : > { %12943 = vmatprep.subr.bf16.mxu1 %v15949_v55 }
 0x8da   : > { %12944 = vmatpush3.bf16.msra.mxu1 %v14949_v39 }
 0x8db   : > { %9315 = vmatprep.subr.bf16.mxu1 %v14952_v58 }
 0x990   : > { %v9035_v28 = vpop.f32.mrb[8].mxu1 }
 0x991   : > { %v9043_v18 = vrot.slane %v9035_v28, 4  ;;  %v12927_v29 = vpop.f32.mrb[9].mxu1 }
 0x992   : > { %v9038_v42 = vpop.f32.mrb[10].mxu1 }
 0x993   : > { %v9044_v43 = vadd.f32 %v9043_v18, %v9035_v28  ;;  %v12928_v44 = vpop.f32.mrb[11].mxu1 }
 0x995   : > { %v9045_v45 = vrot.slane %v9044_v43, 2 }
 0x997   : > { %v9046_v34 = vadd.f32 %v9045_v45, %v9044_v43  ;;  %v12637_v45 = vld [vmem:[#allocation19] ss:$0 sm:$0xff] }
 0x999   : > { %v9047_v24 = vrot.slane %v9046_v34, 1 }
 0x99b   : > { %v9048_v48 = vadd.f32 %v9047_v24, %v9046_v34  ;;  %v12638_v24 = vld [vmem:[#allocation20] ss:$0 sm:$0xff] }
 0x99d   : > { %v9049_v49 = vmul.f32 0.125, %v9048_v48 }
 0x99f   : > { %v9050_v50 = vsub.f32 %v9035_v28, %v9049_v49 }
 0x9a1   : > { %v9051_v51 = vmul.f32 %v9050_v50, %v9050_v50 }
 0x9a3   : > { %v9052_v40 = vrot.slane %v9051_v51, 4 }
 0x9a5   : > { %v9053_v41 = vadd.f32 %v9052_v40, %v9051_v51 }
 0x9a7   : > { %v9054_v54 = vrot.slane %v9053_v41, 2 }
 0x9a9   : > { %v9055_v56 = vadd.f32 %v9054_v54, %v9053_v41 }
 0x9ab   : > { %v9056_v57 = vrot.slane %v9055_v56, 1 }
 0x9ad   : > { %v9057_v55 = vadd.f32 %v9056_v57, %v9055_v56 }
 0x9af   : > { %v9058_v46 = vmul.f32 0.125, %v9057_v55 }
 0x9b1   : > { %v9059_v47 = vadd.f32 1e-05, %v9058_v46 }
 0x9b3   : > { %14980 = vrsqrt.f32 %v9059_v47 }
 0x9bd   : > { %v14981_v60 = vpop.eup %14980 }
 0x9be   : > { %v9061_v62 = vmul.f32 %v14981_v60, %v9050_v50 }
 0x9c0   : > { %v9068_v0 = vmul.f32 %v12627_v61, %v9061_v62 }
 0x9c2   : > { %v9075_v1 = vadd.f32 %v12628_v63, %v9068_v0 }
 0x9c4   : > { %v9076_v2 = vmax.f32 %v9075_v1, 0.0 }
 0x9c6   : > { %v9077_v3 = vpack.c.bf16 %v9076_v2, %v9076_v2 }
 0x9c8   : > { %12946 = vmatmul.mubr.bf16.vlgmr.msra.gmra.mrb[12].mxu1 %v9077_v3 }
 0x9c9   : > { %9316 = vmatpush1.bf16.msra.mxu1 %v14950_v4  ;;  %9347 = vmatprep.mubr.bf16.mxu1 %v15951_v22 }
 0x9ca   : > { %9317 = vmatprep.subr.bf16.mxu1 %v14955_v59 }
 0x9cd   : > { %9318 = vmatpush1.bf16.msra.mxu1 %v14953_v5 }
 0x9ce   : > { %9319 = vmatprep.subr.bf16.mxu1 %v14958_v8 }
 0x9d1   : > { %9320 = vmatpush1.bf16.msra.mxu1 %v14956_v9 }
 0x9d2   : > { %9321 = vmatprep.subr.bf16.mxu1 %v14961_v52 }
 0x9d5   : > { %9322 = vmatpush1.bf16.msra.mxu1 %v14959_v10 }
 0x9d6   : > { %9323 = vmatprep.subr.bf16.mxu1 %v14964_v53 }
 0x9d9   : > { %9324 = vmatpush1.bf16.msra.mxu1 %v14962_v11 }
 0x9da   : > { %9325 = vmatprep.subr.bf16.mxu1 %v14967_v14 }
 0x9dd   : > { %9326 = vmatpush1.bf16.msra.mxu1 %v14965_v15 }
 0x9de   : > { %9327 = vmatprep.subr.bf16.mxu1 %v14970_v6 }
 0x9e1   : > { %9328 = vmatpush1.bf16.msra.mxu1 %v14968_v16 }
 0x9e2   : > { %9329 = vmatprep.subr.bf16.mxu1 %v14973_v7 }
 0x9e5   : > { %9330 = vmatpush1.bf16.msra.mxu1 %v14971_v17 }
 0xa9b   : > { %v9176_v23 = vpop.f32.mrb[12].mxu1 }
 0xa9c   : > { %v9184_v12 = vrot.slane %v9176_v23, 4  ;;  %v12947_v26 = vpop.f32.mrb[13].mxu1 }
 0xa9d   : > { %v9179_v13 = vpop.f32.mrb[14].mxu1 }
 0xa9e   : > { %v9185_v27 = vadd.f32 %v9184_v12, %v9176_v23  ;;  %v12948_v30 = vpop.f32.mrb[15].mxu1 }
 0xa9f   : > { %v9356_v30 = vld [vmem:[#allocation23] sm:$0x3] }
 0xaa0   : > { %v9186_v31 = vrot.slane %v9185_v27, 2 }
 0xaa2   : > { %v9187_v19 = vadd.f32 %v9186_v31, %v9185_v27  ;;  %v9357_v31 = vld [vmem:[#allocation25] sm:$0x3] }
 0xaa4   : > { %v9188_v32 = vrot.slane %v9187_v19, 1 }
 0xaa6   : > { %v9189_v21 = vadd.f32 %v9188_v32, %v9187_v19  ;;  %v9400_v19 = vrot.slane %v9356_v30, %v16895_v36 }
 0xaa8   : > { %v9190_v33 = vmul.f32 0.125, %v9189_v21  ;;  %v9404_v21 = vrot.slane %v9356_v30, %v16897_v38 }
 0xaaa   : > { %v9191_v25 = vsub.f32 %v9176_v23, %v9190_v33 }
 0xaac   : > { %v9192_v35 = vmul.f32 %v9191_v25, %v9191_v25 }
 0xaae   : > { %v9193_v37 = vrot.slane %v9192_v35, 4 }
 0xab0   : > { %v9194_v20 = vadd.f32 %v9193_v37, %v9192_v35  ;;  %v9413_v35 = vrot.slane %v9357_v31, %v16895_v36 }
 0xab2   : > { %v9195_v39 = vrot.slane %v9194_v20, 2 }
 0xab4   : > { %v9196_v28 = vadd.f32 %v9195_v39, %v9194_v20  ;;  %v9417_v20 = vrot.slane %v9357_v31, %v16897_v38 }
 0xab6   : > { %v9197_v18 = vrot.slane %v9196_v28, 1 }
 0xab8   : > { %v9198_v29 = vadd.f32 %v9197_v18, %v9196_v28 }
 0xaba   : > { %v9199_v42 = vmul.f32 0.125, %v9198_v29 }
 0xabc   : > { %v9200_v43 = vadd.f32 1e-05, %v9199_v42 }
 0xabe   : > { %14982 = vrsqrt.f32 %v9200_v43 }
 0xac8   : > { %v14983_v44 = vpop.eup %14982 }
 0xac9   : > { %v9202_v34 = vmul.f32 %v14983_v44, %v9191_v25 }
 0xacb   : > { %v9209_v48 = vmul.f32 %v12637_v45, %v9202_v34 }
 0xacd   : > { %v9216_v49 = vadd.f32 %v12638_v24, %v9209_v48 }
 0xacf   : > { %v9217_v50 = vmax.f32 %v9216_v49, 0.0 }
 0xad1   : > { %v9218_v51 = vpack.c.bf16 %v9217_v50, %v9217_v50 }
 0xad3   : > { %9348 = vmatmul.mubr.bf16.vlgmr.msra.gmra.mrb[16].mxu1 %v9218_v51 }
 0xba6   : > { %v9349_v40 = vpop.f32.mrb[16].mxu1 }
 0xba7   : > { %v9358_v41 = vrot.slane %v9349_v40, 4  ;;  %v9351_v54 = vpop.f32.mrb[17].mxu1 }
 0xba8   : > { %v9364_v56 = vrot.slane %v9351_v54, 4  ;;  %v9353_v57 = vpop.f32.mrb[18].mxu1 }
 0xba9   : > { %v9359_v55 = vadd.f32 %v9358_v41, %v9349_v40  ;;  %v9354_v46 = vpop.f32.mrb[19].mxu1 }
 0xbaa   : > { %v9365_v47 = vadd.f32 %v9364_v56, %v9351_v54 }
 0xbab   : > { %v9360_v60 = vrot.slane %v9359_v55, 2 }
 0xbac   : > { %v9366_v61 = vrot.slane %v9365_v47, 2 }
 0xbad   : > { %v9361_v62 = vadd.f32 %v9360_v60, %v9359_v55 }
 0xbae   : > { %v9367_v63 = vadd.f32 %v9366_v61, %v9365_v47 }
 0xbaf   : > { %v9362_v0 = vrot.slane %v9361_v62, 1 }
 0xbb0   : > { %v9368_v1 = vrot.slane %v9367_v63, 1 }
 0xbb1   : > { %v9363_v2 = vadd.f32 %v9362_v0, %v9361_v62 }
 0xbb2   : > { %v9369_v3 = vadd.f32 %v9368_v1, %v9367_v63 }
 0xbb3   : > { %v9370_v58 = vmul.f32 0.125, %v9363_v2 }
 0xbb4   : > { %v9371_v4 = vmul.f32 0.125, %v9369_v3 }
 0xbb5   : > { %v9372_v59 = vsub.f32 %v9349_v40, %v9370_v58 }
 0xbb6   : > { %v9373_v5 = vsub.f32 %v9351_v54, %v9371_v4 }
 0xbb7   : > { %v9374_v8 = vmul.f32 %v9372_v59, %v9372_v59 }
 0xbb8   : > { %v9375_v9 = vmul.f32 %v9373_v5, %v9373_v5 }
 0xbb9   : > { %v9376_v52 = vrot.slane %v9374_v8, 4 }
 0xbba   : > { %v9382_v10 = vrot.slane %v9375_v9, 4 }
 0xbbb   : > { %v9377_v53 = vadd.f32 %v9376_v52, %v9374_v8 }
 0xbbc   : > { %v9383_v11 = vadd.f32 %v9382_v10, %v9375_v9 }
 0xbbd   : > { %v9378_v14 = vrot.slane %v9377_v53, 2 }
 0xbbe   : > { %v9384_v15 = vrot.slane %v9383_v11, 2 }
 0xbbf   : > { %v9379_v6 = vadd.f32 %v9378_v14, %v9377_v53 }
 0xbc0   : > { %v9385_v16 = vadd.f32 %v9384_v15, %v9383_v11 }
 0xbc1   : > { %v9380_v7 = vrot.slane %v9379_v6, 1 }
 0xbc2   : > { %v9386_v17 = vrot.slane %v9385_v16, 1 }
 0xbc3   : > { %v9381_v22 = vadd.f32 %v9380_v7, %v9379_v6 }
 0xbc4   : > { %v9387_v23 = vadd.f32 %v9386_v17, %v9385_v16 }
 0xbc5   : > { %v9388_v12 = vmul.f32 0.125, %v9381_v22 }
 0xbc6   : > { %v9389_v26 = vmul.f32 0.125, %v9387_v23 }
 0xbc7   : > { %v9390_v13 = vadd.f32 1e-05, %v9388_v12 }
 0xbc8   : > { %v9391_v27 = vadd.f32 1e-05, %v9389_v26 }
 0xbc9   : > { %14984 = vrsqrt.f32 %v9390_v13 }
 0xbca   : > { %14986 = vrsqrt.f32 %v9391_v27 }
 0xbd3   : > { %v14985_v32 = vpop.eup %14984 }
 0xbd4   : > { %v14987_v33 = vpop.eup %14986  ;;  %v9394_v25 = vmul.f32 %v14985_v32, %v9372_v59 }
 0xbd5   : > { %v9395_v37 = vmul.f32 %v14987_v33, %v9373_v5 }
 0xbd6   : > { %v9407_v39 = vmul.f32 %v9400_v19, %v9394_v25 }
 0xbd7   : > { %v9408_v28 = vmul.f32 %v9404_v21, %v9395_v37 }
 0xbd8   : > { %v9420_v18 = vadd.f32 %v9413_v35, %v9407_v39 }
 0xbd9   : > { %v9421_v29 = vadd.f32 %v9417_v20, %v9408_v28 }
 0xbda   : > { %v9422_v42 = vmax.f32 %v9420_v18, 0.0 }
 0xbdb   : > { %v9423_v43 = vmax.f32 %v9421_v29, 0.0 }
 0xbdc   : > { %v9424_v44 = vpack.c.bf16 %v9422_v42, %v9422_v42 }
 0xbdd   : > { %v9425_v45 = vpack.c.bf16 %v9423_v43, %v9423_v43 }
 0xbde   : > { %v9426_v34 = vunpack.c.l.bf16 %v9424_v44 }
 0xbdf   : > { %v9427_v24 = vunpack.c.l.bf16 %v9425_v45 }
 0xbe0   : > { %9428 = vst [vmem:[#allocation2] sm:$0xff] %v9426_v34 }
 0xbe1   : > { %9429 = vst [vmem:[#allocation2 + $0x8] sm:$0xff] %v9427_v24 }
 0xbe2 PF: > { %v14988_v36 = vld [vmem:[%s16597_s10 + $0x4] ss:$44 sps:$4 sm:$0xff]   ;;  %v14990_v38 = vld [vmem:[%s16597_s10 + $0xc] ss:$44 sps:$4 sm:$0xff]   ;;  %v14993_v49 = vld [vmem:[%s16597_s10 + $0x8] ss:$44 sps:$4 sm:$0xff]  }
 0xbe3   : > { %10522 = vmatprep.subr.bf16.mxu0 %v14988_v36  ;;  %v14992_v48 = vld [vmem:[%s16597_s10] ss:$44 sps:$4 sm:$0xff]   ;;  %10563 = vmatprep.subr.bf16.mxu1 %v14990_v38  ;;  %v14994_v50 = vld [vmem:[%s16597_s10 + $0x5c] ss:$44 sps:$4 sm:$0xff]   ;;  %v14996_v51 = vld [vmem:[%s16597_s10 + $0x64] ss:$44 sps:$4 sm:$0xff]  }
 0xbe4   : > { %10523 = vmatpush1.bf16.msra.mxu0 %v14992_v48  ;;  %10564 = vmatpush1.bf16.msra.mxu1 %v14993_v49  ;;  %v14998_v40 = vld [vmem:[%s16597_s10 + $0x58] ss:$44 sps:$4 sm:$0xff]   ;;  %v14999_v41 = vld [vmem:[%s16597_s10 + $0x60] ss:$44 sps:$4 sm:$0xff]   ;;  %v15002_v56 = vld [vmem:[%s16597_s10 + $0xbc] ss:$44 sps:$4 sm:$0xff]  }
 0xbe5   : > { %10524 = vmatprep.subr.bf16.mxu0 %v14994_v50  ;;  %10565 = vmatprep.subr.bf16.mxu1 %v14996_v51  ;;  %v15000_v54 = vld [vmem:[%s16597_s10 + $0xb4] ss:$44 sps:$4 sm:$0xff]   ;;  %v15004_v57 = vld [vmem:[%s16597_s10 + $0xb0] ss:$44 sps:$4 sm:$0xff]   ;;  %v15005_v55 = vld [vmem:[%s16597_s10 + $0xb8] ss:$44 sps:$4 sm:$0xff]  }
 0xbe6   : > { %v15006_v46 = vld [vmem:[%s16597_s10 + $0x10c] ss:$44 sps:$4 sm:$0xff]   ;;  %v15008_v47 = vld [vmem:[%s16597_s10 + $0x114] ss:$44 sps:$4 sm:$0xff]   ;;  %v15011_v61 = vld [vmem:[%s16597_s10 + $0x110] ss:$44 sps:$4 sm:$0xff]  }
 0xbe7   : > { %v15010_v60 = vld [vmem:[%s16597_s10 + $0x108] ss:$44 sps:$4 sm:$0xff]   ;;  %v15012_v62 = vld [vmem:[%s16597_s10 + $0x164] ss:$44 sps:$4 sm:$0xff]   ;;  %v15014_v63 = vld [vmem:[%s16597_s10 + $0x16c] ss:$44 sps:$4 sm:$0xff]  }
 0xbe8   : > { %10525 = vmatpush1.bf16.msra.mxu0 %v14998_v40  ;;  %10566 = vmatpush1.bf16.msra.mxu1 %v14999_v41  ;;  %v15016_v0 = vld [vmem:[%s16597_s10 + $0x160] ss:$44 sps:$4 sm:$0xff]   ;;  %v15017_v1 = vld [vmem:[%s16597_s10 + $0x168] ss:$44 sps:$4 sm:$0xff]   ;;  %v15020_v3 = vld [vmem:[%s16597_s10 + $0x1c4] ss:$44 sps:$4 sm:$0xff]  }
 0xbe9   : > { %10526 = vmatprep.subr.bf16.mxu0 %v15000_v54  ;;  %10567 = vmatprep.subr.bf16.mxu1 %v15002_v56  ;;  %v15018_v2 = vld [vmem:[%s16597_s10 + $0x1bc] ss:$44 sps:$4 sm:$0xff]   ;;  %v15022_v58 = vld [vmem:[%s16597_s10 + $0x1b8] ss:$44 sps:$4 sm:$0xff]   ;;  %v15023_v4 = vld [vmem:[%s16597_s10 + $0x1c0] ss:$44 sps:$4 sm:$0xff]  }
 0xbea   : > { %v15024_v59 = vld [vmem:[%s16597_s10 + $0x214] ss:$44 sps:$4 sm:$0xff]   ;;  %v15026_v5 = vld [vmem:[%s16597_s10 + $0x21c] ss:$44 sps:$4 sm:$0xff]   ;;  %v15029_v9 = vld [vmem:[%s16597_s10 + $0x218] ss:$44 sps:$4 sm:$0xff]  }
 0xbeb   : > { %v15028_v8 = vld [vmem:[%s16597_s10 + $0x210] ss:$44 sps:$4 sm:$0xff]   ;;  %v15030_v52 = vld [vmem:[%s16597_s10 + $0x26c] ss:$44 sps:$4 sm:$0xff]   ;;  %v15032_v10 = vld [vmem:[%s16597_s10 + $0x274] ss:$44 sps:$4 sm:$0xff]  }
 0xbec   : > { %10527 = vmatpush1.bf16.msra.mxu0 %v15004_v57  ;;  %10568 = vmatpush1.bf16.msra.mxu1 %v15005_v55  ;;  %v15034_v53 = vld [vmem:[%s16597_s10 + $0x268] ss:$44 sps:$4 sm:$0xff]   ;;  %v15035_v11 = vld [vmem:[%s16597_s10 + $0x270] ss:$44 sps:$4 sm:$0xff]   ;;  %v15038_v15 = vld [vmem:[%s16597_s10 + $0x2cc] ss:$44 sps:$4 sm:$0xff]  }
 0xbed   : > { %10528 = vmatprep.subr.bf16.mxu0 %v15006_v46  ;;  %10569 = vmatprep.subr.bf16.mxu1 %v15008_v47  ;;  %v15036_v14 = vld [vmem:[%s16597_s10 + $0x2c4] ss:$44 sps:$4 sm:$0xff]   ;;  %v15040_v6 = vld [vmem:[%s16597_s10 + $0x2c0] ss:$44 sps:$4 sm:$0xff]   ;;  %v15041_v16 = vld [vmem:[%s16597_s10 + $0x2c8] ss:$44 sps:$4 sm:$0xff]  }
 0xbee   : > { %v15042_v7 = vld [vmem:[%s16597_s10 + $0x31c] ss:$44 sps:$4 sm:$0xff]   ;;  %v15044_v17 = vld [vmem:[%s16597_s10 + $0x324] ss:$44 sps:$4 sm:$0xff]   ;;  %v15047_v23 = vld [vmem:[%s16597_s10 + $0x320] ss:$44 sps:$4 sm:$0xff]  }
 0xbef   : > { %v15046_v22 = vld [vmem:[%s16597_s10 + $0x318] ss:$44 sps:$4 sm:$0xff]   ;;  %v15048_v12 = vld [vmem:[%s16597_s10 + $0x374] ss:$44 sps:$4 sm:$0xff]   ;;  %v15050_v26 = vld [vmem:[%s16597_s10 + $0x37c] ss:$44 sps:$4 sm:$0xff]  }
 0xbf0   : > { %10529 = vmatpush1.bf16.msra.mxu0 %v15010_v60  ;;  %10570 = vmatpush1.bf16.msra.mxu1 %v15011_v61  ;;  %v15052_v13 = vld [vmem:[%s16597_s10 + $0x370] ss:$44 sps:$4 sm:$0xff]   ;;  %v15053_v27 = vld [vmem:[%s16597_s10 + $0x378] ss:$44 sps:$4 sm:$0xff]   ;;  %v15056_v31 = vld [vmem:[%s16597_s10 + $0x3d4] ss:$44 sps:$4 sm:$0xff]  }
 0xbf1   : > { %10530 = vmatprep.subr.bf16.mxu0 %v15012_v62  ;;  %10571 = vmatprep.subr.bf16.mxu1 %v15014_v63  ;;  %v15054_v30 = vld [vmem:[%s16597_s10 + $0x3cc] ss:$44 sps:$4 sm:$0xff]   ;;  %v9431_v19 = vld [vmem:[#allocation2 + $0x8] sm:$0xff]  ;;  %v15059_v33 = vld [vmem:[%s16597_s10 + $0x3d0] ss:$44 sps:$4 sm:$0xff]  }
 0xbf2   : > { %v16973_v32 = vpack.c.bf16 %v9431_v19, %v9431_v19  ;;  %v15058_v21 = vld [vmem:[%s16597_s10 + $0x3c8] ss:$44 sps:$4 sm:$0xff]   ;;  %v15060_v25 = vld [vmem:[%s16597_s10 + $0x424] ss:$44 sps:$4 sm:$0xff]   ;;  %v15062_v35 = vld [vmem:[%s16597_s10 + $0x42c] ss:$44 sps:$4 sm:$0xff]  }
 0xbf3   : > { %v15064_v37 = vld [vmem:[%s16597_s10 + $0x420] ss:$44 sps:$4 sm:$0xff]   ;;  %v15065_v20 = vld [vmem:[%s16597_s10 + $0x428] ss:$44 sps:$4 sm:$0xff]   ;;  %v15068_v28 = vld [vmem:[%s16597_s10 + $0x484] ss:$44 sps:$4 sm:$0xff]  }
 0xbf4   : > { %10531 = vmatpush1.bf16.msra.mxu0 %v15016_v0  ;;  %10572 = vmatpush1.bf16.msra.mxu1 %v15017_v1  ;;  %v15066_v39 = vld [vmem:[%s16597_s10 + $0x47c] ss:$44 sps:$4 sm:$0xff]   ;;  %v15070_v18 = vld [vmem:[%s16597_s10 + $0x478] ss:$44 sps:$4 sm:$0xff]   ;;  %v15071_v29 = vld [vmem:[%s16597_s10 + $0x480] ss:$44 sps:$4 sm:$0xff]  }
 0xbf5   : > { %10532 = vmatprep.subr.bf16.mxu0 %v15018_v2  ;;  %10573 = vmatprep.subr.bf16.mxu1 %v15020_v3  ;;  %v15072_v42 = vld [vmem:[%s16597_s10 + $0x4d4] ss:$44 sps:$4 sm:$0xff]   ;;  %v15074_v43 = vld [vmem:[%s16597_s10 + $0x4dc] ss:$44 sps:$4 sm:$0xff]   ;;  %v15077_v45 = vld [vmem:[%s16597_s10 + $0x4d8] ss:$44 sps:$4 sm:$0xff]  }
 0xbf6   : > { %10554 = vmatprep.mubr.bf16.mxu0 %v16973_v32  ;;  %10595 = vmatprep.mubr.bf16.mxu1 %v16973_v32  ;;  %v15076_v44 = vld [vmem:[%s16597_s10 + $0x4d0] ss:$44 sps:$4 sm:$0xff]   ;;  %v15078_v34 = vld [vmem:[%s16597_s10 + $0x52c] ss:$44 sps:$4 sm:$0xff]   ;;  %v15080_v24 = vld [vmem:[%s16597_s10 + $0x534] ss:$44 sps:$4 sm:$0xff]  }
 0xbf7   : > { %v15082_v36 = vld [vmem:[%s16597_s10 + $0x528] ss:$44 sps:$4 sm:$0xff]   ;;  %v15083_v38 = vld [vmem:[%s16597_s10 + $0x530] ss:$44 sps:$4 sm:$0xff]   ;;  %v15087_v41 = vld [vmem:[%s16597_s10 + $0x18] ss:$44 sps:$4 sm:$0xff]  }
 0xbf8   : > { %10533 = vmatpush1.bf16.msra.mxu0 %v15022_v58  ;;  %10574 = vmatpush1.bf16.msra.mxu1 %v15023_v4  ;;  %v9430_v48 = vld [vmem:[#allocation2] sm:$0xff]  ;;  %v15092_v54 = vld [vmem:[%s16597_s10 + $0x6c] ss:$44 sps:$4 sm:$0xff]   ;;  %v15090_v57 = vld [vmem:[%s16597_s10 + $0x68] ss:$44 sps:$4 sm:$0xff]  }
 0xbf9   : > { %10534 = vmatprep.subr.bf16.mxu0 %v15024_v59  ;;  %10575 = vmatprep.subr.bf16.mxu1 %v15026_v5  ;;  %v15086_v49 = vld [vmem:[%s16597_s10 + $0x14] ss:$44 sps:$4 sm:$0xff]   ;;  %v15089_v50 = vld [vmem:[%s16597_s10 + $0x1c] ss:$44 sps:$4 sm:$0xff]   ;;  %v16997_v51 = vpack.c.bf16 %v9430_v48, %v9430_v48  ;;  %v15098_v46 = vld [vmem:[%s16597_s10 + $0xc4] ss:$44 sps:$4 sm:$0xff]  }
 0xbfa   : > { %v15084_v40 = vld [vmem:[%s16597_s10 + $0x10] ss:$44 sps:$4 sm:$0xff]   ;;  %v15095_v56 = vld [vmem:[%s16597_s10 + $0x74] ss:$44 sps:$4 sm:$0xff]   ;;  %v15101_v47 = vld [vmem:[%s16597_s10 + $0xcc] ss:$44 sps:$4 sm:$0xff]  }
 0xbfb   : > { %v15093_v55 = vld [vmem:[%s16597_s10 + $0x70] ss:$44 sps:$4 sm:$0xff]   ;;  %v15096_v60 = vld [vmem:[%s16597_s10 + $0xc0] ss:$44 sps:$4 sm:$0xff]   ;;  %v15099_v61 = vld [vmem:[%s16597_s10 + $0xc8] ss:$44 sps:$4 sm:$0xff]  }
 0xbfc   : > { %10535 = vmatpush1.bf16.msra.mxu0 %v15028_v8  ;;  %10576 = vmatpush1.bf16.msra.mxu1 %v15029_v9  ;;  %v15104_v62 = vld [vmem:[%s16597_s10 + $0x11c] ss:$44 sps:$4 sm:$0xff]   ;;  %v15107_v63 = vld [vmem:[%s16597_s10 + $0x124] ss:$44 sps:$4 sm:$0xff]   ;;  %v15105_v1 = vld [vmem:[%s16597_s10 + $0x120] ss:$44 sps:$4 sm:$0xff]  }
 0xbfd   : > { %10536 = vmatprep.subr.bf16.mxu0 %v15030_v52  ;;  %10577 = vmatprep.subr.bf16.mxu1 %v15032_v10  ;;  %v15102_v0 = vld [vmem:[%s16597_s10 + $0x118] ss:$44 sps:$4 sm:$0xff]   ;;  %v15110_v2 = vld [vmem:[%s16597_s10 + $0x174] ss:$44 sps:$4 sm:$0xff]   ;;  %v15113_v3 = vld [vmem:[%s16597_s10 + $0x17c] ss:$44 sps:$4 sm:$0xff]  }
 0xbfe   : > { %v15108_v58 = vld [vmem:[%s16597_s10 + $0x170] ss:$44 sps:$4 sm:$0xff]   ;;  %v15111_v4 = vld [vmem:[%s16597_s10 + $0x178] ss:$44 sps:$4 sm:$0xff]   ;;  %v15119_v5 = vld [vmem:[%s16597_s10 + $0x1d4] ss:$44 sps:$4 sm:$0xff]  }
 0xbff   : > { %v15116_v59 = vld [vmem:[%s16597_s10 + $0x1cc] ss:$44 sps:$4 sm:$0xff]   ;;  %v15114_v8 = vld [vmem:[%s16597_s10 + $0x1c8] ss:$44 sps:$4 sm:$0xff]   ;;  %v15117_v9 = vld [vmem:[%s16597_s10 + $0x1d0] ss:$44 sps:$4 sm:$0xff]  }
 0xc00   : > { %10537 = vmatpush1.bf16.msra.mxu0 %v15034_v53  ;;  %10578 = vmatpush1.bf16.msra.mxu1 %v15035_v11  ;;  %v15122_v52 = vld [vmem:[%s16597_s10 + $0x224] ss:$44 sps:$4 sm:$0xff]   ;;  %v15125_v10 = vld [vmem:[%s16597_s10 + $0x22c] ss:$44 sps:$4 sm:$0xff]   ;;  %v15123_v11 = vld [vmem:[%s16597_s10 + $0x228] ss:$44 sps:$4 sm:$0xff]  }
 0xc01   : > { %10538 = vmatprep.subr.bf16.mxu0 %v15036_v14  ;;  %10579 = vmatprep.subr.bf16.mxu1 %v15038_v15  ;;  %v15120_v53 = vld [vmem:[%s16597_s10 + $0x220] ss:$44 sps:$4 sm:$0xff]   ;;  %v15128_v14 = vld [vmem:[%s16597_s10 + $0x27c] ss:$44 sps:$4 sm:$0xff]   ;;  %v15131_v15 = vld [vmem:[%s16597_s10 + $0x284] ss:$44 sps:$4 sm:$0xff]  }
 0xc02   : > { %v15144_v19 = vld [vmem:[%s16597_s10 + $0x380] ss:$44 sps:$4 sm:$0xff]   ;;  %v15179_v48 = vld [vmem:[%s16597_s10 + $0x544] ss:$44 sps:$4 sm:$0xff]  }
 0xc04   : > { %10539 = vmatpush1.bf16.msra.mxu0 %v15040_v6  ;;  %10580 = vmatpush1.bf16.msra.mxu1 %v15041_v16  ;;  %v15126_v6 = vld [vmem:[%s16597_s10 + $0x278] ss:$44 sps:$4 sm:$0xff]   ;;  %v15129_v16 = vld [vmem:[%s16597_s10 + $0x280] ss:$44 sps:$4 sm:$0xff]  }
 0xc05   : > { %10540 = vmatprep.subr.bf16.mxu0 %v15042_v7  ;;  %10581 = vmatprep.subr.bf16.mxu1 %v15044_v17  ;;  %v15134_v7 = vld [vmem:[%s16597_s10 + $0x2d4] ss:$44 sps:$4 sm:$0xff]   ;;  %v15137_v17 = vld [vmem:[%s16597_s10 + $0x2dc] ss:$44 sps:$4 sm:$0xff]  }
 0xc08   : > { %10541 = vmatpush1.bf16.msra.mxu0 %v15046_v22  ;;  %10582 = vmatpush1.bf16.msra.mxu1 %v15047_v23  ;;  %v15132_v22 = vld [vmem:[%s16597_s10 + $0x2d0] ss:$44 sps:$4 sm:$0xff]   ;;  %v15135_v23 = vld [vmem:[%s16597_s10 + $0x2d8] ss:$44 sps:$4 sm:$0xff]  }
 0xc09   : > { %10542 = vmatprep.subr.bf16.mxu0 %v15048_v12  ;;  %10583 = vmatprep.subr.bf16.mxu1 %v15050_v26  ;;  %v15140_v12 = vld [vmem:[%s16597_s10 + $0x32c] ss:$44 sps:$4 sm:$0xff]   ;;  %v15143_v26 = vld [vmem:[%s16597_s10 + $0x334] ss:$44 sps:$4 sm:$0xff]  }
 0xc0c   : > { %10543 = vmatpush1.bf16.msra.mxu0 %v15052_v13  ;;  %10584 = vmatpush1.bf16.msra.mxu1 %v15053_v27  ;;  %v15138_v13 = vld [vmem:[%s16597_s10 + $0x328] ss:$44 sps:$4 sm:$0xff]   ;;  %v15141_v27 = vld [vmem:[%s16597_s10 + $0x330] ss:$44 sps:$4 sm:$0xff]  }
 0xc0d   : > { %10544 = vmatprep.subr.bf16.mxu0 %v15054_v30  ;;  %10585 = vmatprep.subr.bf16.mxu1 %v15056_v31  ;;  %v15146_v30 = vld [vmem:[%s16597_s10 + $0x384] ss:$44 sps:$4 sm:$0xff]   ;;  %v15149_v31 = vld [vmem:[%s16597_s10 + $0x38c] ss:$44 sps:$4 sm:$0xff]  }
 0xc10   : > { %10545 = vmatpush1.bf16.msra.mxu0 %v15058_v21  ;;  %10586 = vmatpush1.bf16.msra.mxu1 %v15059_v33  ;;  %v15147_v21 = vld [vmem:[%s16597_s10 + $0x388] ss:$44 sps:$4 sm:$0xff]  }
 0xc11   : > { %10546 = vmatprep.subr.bf16.mxu0 %v15060_v25  ;;  %10587 = vmatprep.subr.bf16.mxu1 %v15062_v35  ;;  %v15152_v33 = vld [vmem:[%s16597_s10 + $0x3dc] ss:$44 sps:$4 sm:$0xff]   ;;  %v15155_v25 = vld [vmem:[%s16597_s10 + $0x3e4] ss:$44 sps:$4 sm:$0xff]  }
 0xc12   : > { %v15150_v35 = vld [vmem:[%s16597_s10 + $0x3d8] ss:$44 sps:$4 sm:$0xff]  }
 0xc14   : > { %10547 = vmatpush1.bf16.msra.mxu0 %v15064_v37  ;;  %10588 = vmatpush1.bf16.msra.mxu1 %v15065_v20  ;;  %v15153_v37 = vld [vmem:[%s16597_s10 + $0x3e0] ss:$44 sps:$4 sm:$0xff]  }
 0xc15   : > { %10548 = vmatprep.subr.bf16.mxu0 %v15066_v39  ;;  %10589 = vmatprep.subr.bf16.mxu1 %v15068_v28  ;;  %v15158_v20 = vld [vmem:[%s16597_s10 + $0x434] ss:$44 sps:$4 sm:$0xff]   ;;  %v15161_v39 = vld [vmem:[%s16597_s10 + $0x43c] ss:$44 sps:$4 sm:$0xff]  }
 0xc16   : > { %v15156_v28 = vld [vmem:[%s16597_s10 + $0x430] ss:$44 sps:$4 sm:$0xff]  }
 0xc18   : > { %10549 = vmatpush1.bf16.msra.mxu0 %v15070_v18  ;;  %10590 = vmatpush1.bf16.msra.mxu1 %v15071_v29  ;;  %v15159_v18 = vld [vmem:[%s16597_s10 + $0x438] ss:$44 sps:$4 sm:$0xff]  }
 0xc19   : > { %10550 = vmatprep.subr.bf16.mxu0 %v15072_v42  ;;  %10591 = vmatprep.subr.bf16.mxu1 %v15074_v43  ;;  %v15164_v29 = vld [vmem:[%s16597_s10 + $0x48c] ss:$44 sps:$4 sm:$0xff]   ;;  %v15167_v42 = vld [vmem:[%s16597_s10 + $0x494] ss:$44 sps:$4 sm:$0xff]  }
 0xc1a   : > { %v15162_v43 = vld [vmem:[%s16597_s10 + $0x488] ss:$44 sps:$4 sm:$0xff]  }
 0xc1c   : > { %10551 = vmatpush1.bf16.msra.mxu0 %v15076_v44  ;;  %10592 = vmatpush1.bf16.msra.mxu1 %v15077_v45  ;;  %v15165_v44 = vld [vmem:[%s16597_s10 + $0x490] ss:$44 sps:$4 sm:$0xff]  }
 0xc1d   : > { %10552 = vmatprep.subr.bf16.mxu0 %v15078_v34  ;;  %10593 = vmatprep.subr.bf16.mxu1 %v15080_v24  ;;  %v15170_v45 = vld [vmem:[%s16597_s10 + $0x4e4] ss:$44 sps:$4 sm:$0xff]   ;;  %v15173_v34 = vld [vmem:[%s16597_s10 + $0x4ec] ss:$44 sps:$4 sm:$0xff]  }
 0xc1e   : > { %v15168_v24 = vld [vmem:[%s16597_s10 + $0x4e0] ss:$44 sps:$4 sm:$0xff]  }
 0xc20   : > { %10553 = vmatpush1.bf16.msra.mxu0 %v15082_v36  ;;  %10594 = vmatpush1.bf16.msra.mxu1 %v15083_v38  ;;  %v15171_v36 = vld [vmem:[%s16597_s10 + $0x4e8] ss:$44 sps:$4 sm:$0xff]  }
 0xc21   : > { %10604 = vmatprep.subr.bf16.mxu0 %v15086_v49  ;;  %10645 = vmatprep.subr.bf16.mxu1 %v15089_v50  ;;  %v15176_v38 = vld [vmem:[%s16597_s10 + $0x53c] ss:$44 sps:$4 sm:$0xff]   ;;  %v15174_v49 = vld [vmem:[%s16597_s10 + $0x538] ss:$44 sps:$4 sm:$0xff]   ;;  %v15177_v50 = vld [vmem:[%s16597_s10 + $0x540] ss:$44 sps:$4 sm:$0xff]  }
 0xc23   : > { %10555 = vmatmul.mubr.bf16.vlgmr.msra.gmra.mrb[0].mxu0 %v16997_v51  ;;  %10596 = vmatmul.mubr.bf16.vlgmr.msra.gmra.mrb[0].mxu1 %v16997_v51 }
 0xc24   : > { %10605 = vmatpush1.bf16.msra.mxu0 %v15084_v40  ;;  %10646 = vmatpush1.bf16.msra.mxu1 %v15087_v41  ;;  %v15182_v40 = vld [vmem:[%s16597_s10 + $0x24] ss:$44 sps:$4 sm:$0xff]   ;;  %v15183_v41 = vld [vmem:[%s16597_s10 + $0x2e8] ss:$44 sps:$4 sm:$0xff]  }
 0xc25   : > { %10606 = vmatprep.subr.bf16.mxu0 %v15092_v54  ;;  %10647 = vmatprep.subr.bf16.mxu1 %v15095_v56  ;;  %v15180_v54 = vld [vmem:[%s16597_s10 + $0x20] ss:$44 sps:$4 sm:$0xff]   ;;  %v15184_v56 = vld [vmem:[%s16597_s10 + $0x28] ss:$44 sps:$4 sm:$0xff]  }
 0xc26   : > { %10636 = vmatprep.mubr.bf16.mxu0 %v16973_v32  ;;  %10677 = vmatprep.mubr.bf16.mxu1 %v16973_v32 }
 0xc28   : > { %10607 = vmatpush1.bf16.msra.mxu0 %v15090_v57  ;;  %10648 = vmatpush1.bf16.msra.mxu1 %v15093_v55  ;;  %v15187_v57 = vld [vmem:[%s16597_s10 + $0x7c] ss:$44 sps:$4 sm:$0xff]   ;;  %v15188_v55 = vld [vmem:[%s16597_s10 + $0x340] ss:$44 sps:$4 sm:$0xff]  }
 0xc29   : > { %10608 = vmatprep.subr.bf16.mxu0 %v15098_v46  ;;  %10649 = vmatprep.subr.bf16.mxu1 %v15101_v47  ;;  %v15185_v46 = vld [vmem:[%s16597_s10 + $0x78] ss:$44 sps:$4 sm:$0xff]   ;;  %v15189_v47 = vld [vmem:[%s16597_s10 + $0x80] ss:$44 sps:$4 sm:$0xff]  }
 0xc2c   : > { %10609 = vmatpush1.bf16.msra.mxu0 %v15096_v60  ;;  %10650 = vmatpush1.bf16.msra.mxu1 %v15099_v61  ;;  %v15192_v60 = vld [vmem:[%s16597_s10 + $0xd4] ss:$44 sps:$4 sm:$0xff]   ;;  %v15193_v61 = vld [vmem:[%s16597_s10 + $0x398] ss:$44 sps:$4 sm:$0xff]  }
 0xc2d   : > { %10610 = vmatprep.subr.bf16.mxu0 %v15104_v62  ;;  %10651 = vmatprep.subr.bf16.mxu1 %v15107_v63  ;;  %v15190_v62 = vld [vmem:[%s16597_s10 + $0xd0] ss:$44 sps:$4 sm:$0xff]   ;;  %v15194_v63 = vld [vmem:[%s16597_s10 + $0xd8] ss:$44 sps:$4 sm:$0xff]  }
 0xc30   : > { %10611 = vmatpush1.bf16.msra.mxu0 %v15102_v0  ;;  %10652 = vmatpush1.bf16.msra.mxu1 %v15105_v1  ;;  %v15197_v0 = vld [vmem:[%s16597_s10 + $0x12c] ss:$44 sps:$4 sm:$0xff]   ;;  %v15198_v1 = vld [vmem:[%s16597_s10 + $0x3f0] ss:$44 sps:$4 sm:$0xff]  }
 0xc31   : > { %10612 = vmatprep.subr.bf16.mxu0 %v15110_v2  ;;  %10653 = vmatprep.subr.bf16.mxu1 %v15113_v3  ;;  %v15195_v2 = vld [vmem:[%s16597_s10 + $0x128] ss:$44 sps:$4 sm:$0xff]   ;;  %v15199_v3 = vld [vmem:[%s16597_s10 + $0x130] ss:$44 sps:$4 sm:$0xff]  }
 0xc34   : > { %10613 = vmatpush1.bf16.msra.mxu0 %v15108_v58  ;;  %10654 = vmatpush1.bf16.msra.mxu1 %v15111_v4  ;;  %v15203_v58 = vld [vmem:[%s16597_s10 + $0x448] ss:$44 sps:$4 sm:$0xff]   ;;  %v15200_v4 = vld [vmem:[%s16597_s10 + $0x180] ss:$44 sps:$4 sm:$0xff]  }
 0xc35   : > { %10614 = vmatprep.subr.bf16.mxu0 %v15116_v59  ;;  %10655 = vmatprep.subr.bf16.mxu1 %v15119_v5  ;;  %v15204_v59 = vld [vmem:[%s16597_s10 + $0x188] ss:$44 sps:$4 sm:$0xff]  }
 0xc36   : > { %v15207_v5 = vld [vmem:[%s16597_s10 + $0x1dc] ss:$44 sps:$4 sm:$0xff]  }
 0xc38   : > { %10615 = vmatpush1.bf16.msra.mxu0 %v15114_v8  ;;  %10656 = vmatpush1.bf16.msra.mxu1 %v15117_v9  ;;  %v15208_v8 = vld [vmem:[%s16597_s10 + $0x4a0] ss:$44 sps:$4 sm:$0xff]   ;;  %v15205_v9 = vld [vmem:[%s16597_s10 + $0x1d8] ss:$44 sps:$4 sm:$0xff]  }
 0xc39   : > { %10616 = vmatprep.subr.bf16.mxu0 %v15122_v52  ;;  %10657 = vmatprep.subr.bf16.mxu1 %v15125_v10  ;;  %v15209_v52 = vld [vmem:[%s16597_s10 + $0x1e0] ss:$44 sps:$4 sm:$0xff]  }
 0xc3a   : > { %v15212_v10 = vld [vmem:[%s16597_s10 + $0x234] ss:$44 sps:$4 sm:$0xff]  }
 0xc3c   : > { %10617 = vmatpush1.bf16.msra.mxu0 %v15120_v53  ;;  %10658 = vmatpush1.bf16.msra.mxu1 %v15123_v11  ;;  %v15213_v53 = vld [vmem:[%s16597_s10 + $0x4f8] ss:$44 sps:$4 sm:$0xff]   ;;  %v15210_v11 = vld [vmem:[%s16597_s10 + $0x230] ss:$44 sps:$4 sm:$0xff]  }
 0xc3d   : > { %10618 = vmatprep.subr.bf16.mxu0 %v15128_v14  ;;  %10659 = vmatprep.subr.bf16.mxu1 %v15131_v15  ;;  %v15214_v14 = vld [vmem:[%s16597_s10 + $0x238] ss:$44 sps:$4 sm:$0xff]  }
 0xc3e   : > { %v15217_v15 = vld [vmem:[%s16597_s10 + $0x28c] ss:$44 sps:$4 sm:$0xff]  }
 0xc40   : > { %10619 = vmatpush1.bf16.msra.mxu0 %v15126_v6  ;;  %10660 = vmatpush1.bf16.msra.mxu1 %v15129_v16  ;;  %v15218_v6 = vld [vmem:[%s16597_s10 + $0x550] ss:$44 sps:$4 sm:$0xff]   ;;  %v15215_v16 = vld [vmem:[%s16597_s10 + $0x288] ss:$44 sps:$4 sm:$0xff]  }
 0xc41   : > { %10620 = vmatprep.subr.bf16.mxu0 %v15134_v7  ;;  %10661 = vmatprep.subr.bf16.mxu1 %v15137_v17  ;;  %v15219_v7 = vld [vmem:[%s16597_s10 + $0x290] ss:$44 sps:$4 sm:$0xff]  }
 0xc42   : > { %v15222_v17 = vld [vmem:[%s16597_s10 + $0x2e4] ss:$44 sps:$4 sm:$0xff]  }
 0xc44   : > { %10621 = vmatpush1.bf16.msra.mxu0 %v15132_v22  ;;  %10662 = vmatpush1.bf16.msra.mxu1 %v15135_v23  ;;  %v15220_v22 = vld [vmem:[%s16597_s10 + $0x2e0] ss:$44 sps:$4 sm:$0xff]   ;;  %v15225_v23 = vld [vmem:[%s16597_s10 + $0x33c] ss:$44 sps:$4 sm:$0xff]  }
 0xc45   : > { %10622 = vmatprep.subr.bf16.mxu0 %v15140_v12  ;;  %10663 = vmatprep.subr.bf16.mxu1 %v15143_v26  ;;  %v15223_v12 = vld [vmem:[%s16597_s10 + $0x338] ss:$44 sps:$4 sm:$0xff]   ;;  %v15228_v26 = vld [vmem:[%s16597_s10 + $0x394] ss:$44 sps:$4 sm:$0xff]  }
 0xc48   : > { %10623 = vmatpush1.bf16.msra.mxu0 %v15138_v13  ;;  %10664 = vmatpush1.bf16.msra.mxu1 %v15141_v27  ;;  %v15226_v13 = vld [vmem:[%s16597_s10 + $0x390] ss:$44 sps:$4 sm:$0xff]   ;;  %v15231_v27 = vld [vmem:[%s16597_s10 + $0x3ec] ss:$44 sps:$4 sm:$0xff]  }
 0xc49   : > { %10624 = vmatprep.subr.bf16.mxu0 %v15146_v30  ;;  %10665 = vmatprep.subr.bf16.mxu1 %v15149_v31  ;;  %v15229_v30 = vld [vmem:[%s16597_s10 + $0x3e8] ss:$44 sps:$4 sm:$0xff]   ;;  %v15234_v31 = vld [vmem:[%s16597_s10 + $0x444] ss:$44 sps:$4 sm:$0xff]  }
 0xc4c   : > { %10625 = vmatpush1.bf16.msra.mxu0 %v15144_v19  ;;  %10666 = vmatpush1.bf16.msra.mxu1 %v15147_v21  ;;  %v15232_v19 = vld [vmem:[%s16597_s10 + $0x440] ss:$44 sps:$4 sm:$0xff]   ;;  %v15237_v21 = vld [vmem:[%s16597_s10 + $0x49c] ss:$44 sps:$4 sm:$0xff]  }
 0xc4d   : > { %10626 = vmatprep.subr.bf16.mxu0 %v15152_v33  ;;  %10667 = vmatprep.subr.bf16.mxu1 %v15155_v25  ;;  %v15235_v33 = vld [vmem:[%s16597_s10 + $0x498] ss:$44 sps:$4 sm:$0xff]   ;;  %v15240_v25 = vld [vmem:[%s16597_s10 + $0x4f4] ss:$44 sps:$4 sm:$0xff]  }
 0xc50   : > { %10627 = vmatpush1.bf16.msra.mxu0 %v15150_v35  ;;  %10668 = vmatpush1.bf16.msra.mxu1 %v15153_v37  ;;  %v15238_v35 = vld [vmem:[%s16597_s10 + $0x4f0] ss:$44 sps:$4 sm:$0xff]   ;;  %v15243_v37 = vld [vmem:[%s16597_s10 + $0x54c] ss:$44 sps:$4 sm:$0xff]  }
 0xc51   : > { %10628 = vmatprep.subr.bf16.mxu0 %v15158_v20  ;;  %10669 = vmatprep.subr.bf16.mxu1 %v15161_v39  ;;  %v15241_v20 = vld [vmem:[%s16597_s10 + $0x548] ss:$44 sps:$4 sm:$0xff]  }
 0xc54   : > { %10629 = vmatpush1.bf16.msra.mxu0 %v15156_v28  ;;  %10670 = vmatpush1.bf16.msra.mxu1 %v15159_v18 }
 0xc55   : > { %10630 = vmatprep.subr.bf16.mxu0 %v15164_v29  ;;  %10671 = vmatprep.subr.bf16.mxu1 %v15167_v42 }
 0xc58   : > { %10631 = vmatpush1.bf16.msra.mxu0 %v15162_v43  ;;  %10672 = vmatpush1.bf16.msra.mxu1 %v15165_v44 }
 0xc59   : > { %10632 = vmatprep.subr.bf16.mxu0 %v15170_v45  ;;  %10673 = vmatprep.subr.bf16.mxu1 %v15173_v34 }
 0xc5c   : > { %10633 = vmatpush1.bf16.msra.mxu0 %v15168_v24  ;;  %10674 = vmatpush1.bf16.msra.mxu1 %v15171_v36 }
 0xc5d   : > { %10634 = vmatprep.subr.bf16.mxu0 %v15176_v38  ;;  %10675 = vmatprep.subr.bf16.mxu1 %v15179_v48 }
 0xc60   : > { %10635 = vmatpush1.bf16.msra.mxu0 %v15174_v49  ;;  %10676 = vmatpush1.bf16.msra.mxu1 %v15177_v50 }
 0xc61   : > { %10686 = vmatprep.subr.bf16.mxu0 %v15182_v40  ;;  %12887 = vmatprep.subr.bf16.mxu1 %v15183_v41 }
 0xc63   : > { %10637 = vmatmul.mubr.bf16.vlgmr.msra.gmra.mrb[4].mxu0 %v16997_v51  ;;  %10678 = vmatmul.mubr.bf16.vlgmr.msra.gmra.mrb[4].mxu1 %v16997_v51 }
 0xc64   : > { %10687 = vmatpush1.bf16.msra.mxu0 %v15180_v54  ;;  %12888 = vmatpush3.bf16.msra.mxu1 %v15184_v56 }
 0xc65   : > { %10688 = vmatprep.subr.bf16.mxu0 %v15187_v57  ;;  %12889 = vmatprep.subr.bf16.mxu1 %v15188_v55 }
 0xc66   : > { %10759 = vmatprep.mubr.bf16.mxu1 %v16973_v32  ;;  %10718 = vmatprep.mubr.bf16.mxu0 %v16973_v32  ;;  %v15202_v32 = vld [vmem:[%s16597_s10 + $0x184] ss:$44 sps:$4 sm:$0xff]  }
 0xc68   : > { %10689 = vmatpush1.bf16.msra.mxu0 %v15185_v46  ;;  %12890 = vmatpush3.bf16.msra.mxu1 %v15189_v47 }
 0xc69   : > { %10690 = vmatprep.subr.bf16.mxu0 %v15192_v60  ;;  %12891 = vmatprep.subr.bf16.mxu1 %v15193_v61 }
 0xc6c   : > { %10691 = vmatpush1.bf16.msra.mxu0 %v15190_v62  ;;  %12892 = vmatpush3.bf16.msra.mxu1 %v15194_v63 }
 0xc6d   : > { %10692 = vmatprep.subr.bf16.mxu0 %v15197_v0  ;;  %12893 = vmatprep.subr.bf16.mxu1 %v15198_v1 }
 0xc70   : > { %10693 = vmatpush1.bf16.msra.mxu0 %v15195_v2  ;;  %12894 = vmatpush3.bf16.msra.mxu1 %v15199_v3 }
 0xc71   : > { %10694 = vmatprep.subr.bf16.mxu0 %v15202_v32  ;;  %12895 = vmatprep.subr.bf16.mxu1 %v15203_v58 }
 0xc74   : > { %10695 = vmatpush1.bf16.msra.mxu0 %v15200_v4  ;;  %12896 = vmatpush3.bf16.msra.mxu1 %v15204_v59 }
 0xc75   : > { %10696 = vmatprep.subr.bf16.mxu0 %v15207_v5  ;;  %12897 = vmatprep.subr.bf16.mxu1 %v15208_v8 }
 0xc78   : > { %10697 = vmatpush1.bf16.msra.mxu0 %v15205_v9  ;;  %12898 = vmatpush3.bf16.msra.mxu1 %v15209_v52 }
 0xc79   : > { %10698 = vmatprep.subr.bf16.mxu0 %v15212_v10  ;;  %12899 = vmatprep.subr.bf16.mxu1 %v15213_v53 }
 0xc7c   : > { %10699 = vmatpush1.bf16.msra.mxu0 %v15210_v11  ;;  %12900 = vmatpush3.bf16.msra.mxu1 %v15214_v14 }
 0xc7d   : > { %10700 = vmatprep.subr.bf16.mxu0 %v15217_v15  ;;  %12901 = vmatprep.subr.bf16.mxu1 %v15218_v6 }
 0xc80   : > { %10701 = vmatpush1.bf16.msra.mxu0 %v15215_v16  ;;  %12902 = vmatpush3.bf16.msra.mxu1 %v15219_v7 }
 0xc81   : > { %10702 = vmatprep.subr.bf16.mxu0 %v15222_v17 }
 0xc83   : > { %10760 = vmatmul.mubr.bf16.vlgmr.msra.gmra.mrb[8].mxu1 %v16997_v51 }
 0xc84   : > { %10703 = vmatpush1.bf16.msra.mxu0 %v15220_v22 }
 0xc85   : > { %10704 = vmatprep.subr.bf16.mxu0 %v15225_v23 }
 0xc88   : > { %10705 = vmatpush1.bf16.msra.mxu0 %v15223_v12 }
 0xc89   : > { %10706 = vmatprep.subr.bf16.mxu0 %v15228_v26 }
 0xc8c   : > { %10707 = vmatpush1.bf16.msra.mxu0 %v15226_v13 }
 0xc8d   : > { %10708 = vmatprep.subr.bf16.mxu0 %v15231_v27 }
 0xc90   : > { %10709 = vmatpush1.bf16.msra.mxu0 %v15229_v30 }
 0xc91   : > { %10710 = vmatprep.subr.bf16.mxu0 %v15234_v31 }
 0xc94   : > { %10711 = vmatpush1.bf16.msra.mxu0 %v15232_v19 }
 0xc95   : > { %10712 = vmatprep.subr.bf16.mxu0 %v15237_v21 }
 0xc98   : > { %10713 = vmatpush1.bf16.msra.mxu0 %v15235_v33 }
 0xc99   : > { %10714 = vmatprep.subr.bf16.mxu0 %v15240_v25 }
 0xc9c   : > { %10715 = vmatpush1.bf16.msra.mxu0 %v15238_v35 }
 0xc9d   : > { %10716 = vmatprep.subr.bf16.mxu0 %v15243_v37 }
 0xca0   : > { %10717 = vmatpush1.bf16.msra.mxu0 %v15241_v20 }
 0xca3   : > { %10719 = vmatmul.mubr.bf16.vlgmr.msra.gmra.mrb[8].mxu0 %v16997_v51 }
 0xcf6   : > { %v10556_v39 = vpop.f32.mrb[0].mxu0  ;;  %v10597_v28 = vpop.f32.mrb[0].mxu1 }
 0xcf7   : > { %v10771_v18 = vrot.slane %v10556_v39, 4  ;;  %v10783_v29 = vrot.slane %v10597_v28, 4  ;;  %v10558_v42 = vpop.f32.mrb[1].mxu0  ;;  %v10599_v43 = vpop.f32.mrb[1].mxu1 }
 0xcf8   : > { %v10777_v44 = vrot.slane %v10558_v42, 4  ;;  %v10789_v45 = vrot.slane %v10599_v43, 4  ;;  %v10560_v34 = vpop.f32.mrb[2].mxu0  ;;  %v10601_v24 = vpop.f32.mrb[2].mxu1 }
 0xcf9   : > { %v10772_v36 = vadd.f32 %v10771_v18, %v10556_v39  ;;  %v10784_v38 = vadd.f32 %v10783_v29, %v10597_v28  ;;  %v10561_v48 = vpop.f32.mrb[3].mxu0  ;;  %v10602_v49 = vpop.f32.mrb[3].mxu1 }
 0xcfa   : > { %v10778_v50 = vadd.f32 %v10777_v44, %v10558_v42  ;;  %v10790_v40 = vadd.f32 %v10789_v45, %v10599_v43  ;;  %v10983_v44 = vlaneseq }
 0xcfb   : > { %v10773_v41 = vrot.slane %v10772_v36, 2  ;;  %v10785_v54 = vrot.slane %v10784_v38, 2 }
 0xcfc   : > { %v10779_v56 = vrot.slane %v10778_v50, 2  ;;  %v10791_v51 = vrot.slane %v10790_v40, 2  ;;  %v17127_v49 = vshrl.u32 %v10983_v44, 7 }
 0xcfd   : > { %v10774_v57 = vadd.f32 %v10773_v41, %v10772_v36  ;;  %v10786_v55 = vadd.f32 %v10785_v54, %v10784_v38 }
 0xcfe   : > { %v10780_v46 = vadd.f32 %v10779_v56, %v10778_v50  ;;  %v10792_v47 = vadd.f32 %v10791_v51, %v10790_v40  ;;  %v17130_v50 = vsub.s32 0, %v17127_v49  ;;  %v17133_v40 = vld [vmem:[%s16603_s14] sm:$0xff]  ;;  %v17136_v41 = vsub.s32 2, %v17127_v49  ;;  %v17142_v56 = vld [vmem:[%s16605_s29] sm:$0xff] }
 0xcff   : > { %v10775_v60 = vrot.slane %v10774_v57, 1  ;;  %v10787_v61 = vrot.slane %v10786_v55, 1  ;;  %v17139_v54 = vsub.s32 1, %v17127_v49  ;;  %v10997_v51 = vsub.s32 3, %v17127_v49 }
 0xd00   : > { %v10781_v62 = vrot.slane %v10780_v46, 1  ;;  %v10793_v63 = vrot.slane %v10792_v47, 1 }
 0xd01   : > { %v10776_v0 = vadd.f32 %v10775_v60, %v10774_v57  ;;  %v10788_v1 = vadd.f32 %v10787_v61, %v10786_v55  ;;  %v10986_v57 = vrot.slane %v17133_v40, %v17130_v50  ;;  %v11054_v61 = vrot.slane %v17142_v56, %v17130_v50 }
 0xd02   : > { %v10782_v2 = vadd.f32 %v10781_v62, %v10780_v46  ;;  %v10794_v3 = vadd.f32 %v10793_v63, %v10792_v47  ;;  %v10994_v46 = vrot.slane %v17133_v40, %v17136_v41  ;;  %v10990_v62 = vrot.slane %v17133_v40, %v17139_v54 }
 0xd03   : > { %v10838_v32 = vmul.f32 0.125, %v10776_v0  ;;  %v10840_v58 = vmul.f32 0.125, %v10788_v1  ;;  %v11062_v1 = vrot.slane %v17142_v56, %v17136_v41 }
 0xd04   : > { %v10839_v4 = vmul.f32 0.125, %v10782_v2  ;;  %v10841_v59 = vmul.f32 0.125, %v10794_v3  ;;  %v10998_v2 = vrot.slane %v17133_v40, %v10997_v51 }
 0xd05   : > { %v10849_v5 = vsub.f32 %v10556_v39, %v10838_v32  ;;  %v10851_v8 = vsub.f32 %v10597_v28, %v10840_v58 }
 0xd06   : > { %v17119_v9 = vsub.f32 %v10558_v42, %v10839_v4  ;;  %v17121_v52 = vsub.f32 %v10599_v43, %v10841_v59  ;;  %v11058_v4 = vrot.slane %v17142_v56, %v17139_v54 }
 0xd07   : > { %v10860_v10 = vmul.f32 %v10849_v5, %v10849_v5  ;;  %v10862_v53 = vmul.f32 %v10851_v8, %v10851_v8 }
 0xd08   : > { %v10861_v11 = vmul.f32 %v17119_v9, %v17119_v9  ;;  %v10863_v14 = vmul.f32 %v17121_v52, %v17121_v52 }
 0xd09   : > { %v10871_v15 = vrot.slane %v10860_v10, 4  ;;  %v10883_v6 = vrot.slane %v10862_v53, 4 }
 0xd0a   : > { %v10877_v16 = vrot.slane %v10861_v11, 4  ;;  %v10889_v7 = vrot.slane %v10863_v14, 4 }
 0xd0b   : > { %v10872_v17 = vadd.f32 %v10871_v15, %v10860_v10  ;;  %v10884_v22 = vadd.f32 %v10883_v6, %v10862_v53  ;;  %v11066_v10 = vrot.slane %v17142_v56, %v10997_v51 }
 0xd0c   : > { %v10878_v23 = vadd.f32 %v10877_v16, %v10861_v11  ;;  %v10890_v12 = vadd.f32 %v10889_v7, %v10863_v14 }
 0xd0d   : > { %v10873_v26 = vrot.slane %v10872_v17, 2  ;;  %v10885_v13 = vrot.slane %v10884_v22, 2 }
 0xd0e   : > { %v10879_v27 = vrot.slane %v10878_v23, 2  ;;  %v10891_v30 = vrot.slane %v10890_v12, 2 }
 0xd0f   : > { %v10874_v31 = vadd.f32 %v10873_v26, %v10872_v17  ;;  %v10886_v19 = vadd.f32 %v10885_v13, %v10884_v22 }
 0xd10   : > { %v10880_v21 = vadd.f32 %v10879_v27, %v10878_v23  ;;  %v10892_v33 = vadd.f32 %v10891_v30, %v10890_v12 }
 0xd11   : > { %v10875_v25 = vrot.slane %v10874_v31, 1  ;;  %v10887_v35 = vrot.slane %v10886_v19, 1 }
 0xd12   : > { %v10881_v37 = vrot.slane %v10880_v21, 1  ;;  %v10893_v20 = vrot.slane %v10892_v33, 1 }
 0xd13   : > { %v10876_v39 = vadd.f32 %v10875_v25, %v10874_v31  ;;  %v10888_v28 = vadd.f32 %v10887_v35, %v10886_v19 }
 0xd14   : > { %v10882_v18 = vadd.f32 %v10881_v37, %v10880_v21  ;;  %v10894_v29 = vadd.f32 %v10893_v20, %v10892_v33 }
 0xd15   : > { %v10937_v42 = vmul.f32 0.125, %v10876_v39  ;;  %v10939_v43 = vmul.f32 0.125, %v10888_v28 }
 0xd16   : > { %v10938_v45 = vmul.f32 0.125, %v10882_v18  ;;  %v10940_v34 = vmul.f32 0.125, %v10894_v29 }
 0xd17   : > { %v10948_v24 = vadd.f32 1e-05, %v10937_v42  ;;  %v10950_v36 = vadd.f32 1e-05, %v10939_v43 }
 0xd18   : > { %v10949_v38 = vadd.f32 1e-05, %v10938_v45  ;;  %v10951_v48 = vadd.f32 1e-05, %v10940_v34 }
 0xd19   : > { %15244 = vrsqrt.f32 %v10948_v24 }
 0xd1a   : > { %15246 = vrsqrt.f32 %v10950_v36 }
 0xd1b   : > { %15248 = vrsqrt.f32 %v10949_v38 }
 0xd1c   : > { %15250 = vrsqrt.f32 %v10951_v48 }
 0xd23   : > { %v15245_v55 = vpop.eup %15244 }
 0xd24   : > { %v15247_v47 = vpop.eup %15246  ;;  %v10970_v60 = vmul.f32 %v15245_v55, %v10849_v5 }
 0xd25   : > { %v15249_v63 = vpop.eup %15248  ;;  %v10972_v0 = vmul.f32 %v15247_v47, %v10851_v8 }
 0xd26   : > { %v15251_v3 = vpop.eup %15250  ;;  %v11038_v32 = vmul.f32 %v10986_v57, %v10970_v60  ;;  %v10971_v58 = vmul.f32 %v15249_v63, %v17119_v9 }
 0xd27   : > { %v11040_v59 = vmul.f32 %v10994_v46, %v10972_v0  ;;  %v10973_v5 = vmul.f32 %v15251_v3, %v17121_v52 }
 0xd28   : > { %v11106_v53 = vadd.f32 %v11054_v61, %v11038_v32  ;;  %v11039_v11 = vmul.f32 %v10990_v62, %v10971_v58 }
 0xd29   : > { %v11108_v8 = vadd.f32 %v11062_v1, %v11040_v59  ;;  %v11041_v14 = vmul.f32 %v10998_v2, %v10973_v5 }
 0xd2a   : > { %v12831_v15 = vmul.f32 -1.442695, %v11106_v53  ;;  %v11107_v6 = vadd.f32 %v11058_v4, %v11039_v11 }
 0xd2b   : > { %v12833_v16 = vmul.f32 -1.442695, %v11108_v8  ;;  %v11109_v7 = vadd.f32 %v11066_v10, %v11041_v14 }
 0xd2c   : > { %15252 = vpow2.f32 %v12831_v15  ;;  %v12832_v17 = vmul.f32 -1.442695, %v11107_v6 }
 0xd2d   : > { %15254 = vpow2.f32 %v12833_v16  ;;  %v12834_v9 = vmul.f32 -1.442695, %v11109_v7 }
 0xd2e   : > { %15256 = vpow2.f32 %v12832_v17 }
 0xd2f   : > { %15258 = vpow2.f32 %v12834_v9 }
 0xd36   : > { %v15253_v22 = vpop.eup %15252  ;;  %v10638_v23 = vpop.f32.mrb[4].mxu0 }
 0xd37   : > { %v10679_v12 = vpop.f32.mrb[4].mxu1  ;;  %v15255_v52 = vpop.eup %15254  ;;  %v11150_v26 = vadd.f32 1.0, %v15253_v22  ;;  %v10795_v13 = vrot.slane %v10638_v23, 4 }
 0xd38   : > { %v10807_v27 = vrot.slane %v10679_v12, 4  ;;  %v10640_v30 = vpop.f32.mrb[5].mxu0  ;;  %v10681_v31 = vpop.f32.mrb[5].mxu1  ;;  %v11152_v21 = vadd.f32 1.0, %v15255_v52 }
 0xd39   : > { %v15257_v19 = vpop.eup %15256  ;;  %v10801_v33 = vrot.slane %v10640_v30, 4  ;;  %v10813_v25 = vrot.slane %v10681_v31, 4  ;;  %v10642_v35 = vpop.f32.mrb[6].mxu0  ;;  %15260 = vrcp.f32 %v11150_v26  ;;  %v10796_v28 = vadd.f32 %v10795_v13, %v10638_v23 }
 0xd3a   : > { %v10683_v37 = vpop.f32.mrb[6].mxu1  ;;  %v15259_v20 = vpop.eup %15258  ;;  %v11151_v39 = vadd.f32 1.0, %v15257_v19  ;;  %v10808_v18 = vadd.f32 %v10807_v27, %v10679_v12  ;;  %15262 = vrcp.f32 %v11152_v21 }
 0xd3b   : > { %v10643_v29 = vpop.f32.mrb[7].mxu0  ;;  %v10684_v42 = vpop.f32.mrb[7].mxu1  ;;  %v11153_v43 = vadd.f32 1.0, %v15259_v20  ;;  %v10802_v44 = vadd.f32 %v10801_v33, %v10640_v30  ;;  %v10814_v45 = vadd.f32 %v10813_v25, %v10681_v31  ;;  %v10797_v34 = vrot.slane %v10796_v28, 2 }
 0xd3c   : > { %15264 = vrcp.f32 %v11151_v39  ;;  %v10809_v24 = vrot.slane %v10808_v18, 2 }
 0xd3d   : > { %15266 = vrcp.f32 %v11153_v43  ;;  %v10803_v36 = vrot.slane %v10802_v44, 2  ;;  %v10815_v38 = vrot.slane %v10814_v45, 2  ;;  %v10798_v48 = vadd.f32 %v10797_v34, %v10796_v28 }
 0xd3e   : > { %v10810_v51 = vadd.f32 %v10809_v24, %v10808_v18 }
 0xd3f   : > { %v10804_v57 = vadd.f32 %v10803_v36, %v10802_v44  ;;  %v10816_v55 = vadd.f32 %v10815_v38, %v10814_v45  ;;  %v10799_v46 = vrot.slane %v10798_v48, 1 }
 0xd40   : > { %v10811_v47 = vrot.slane %v10810_v51, 1 }
 0xd41   : > { %v10805_v60 = vrot.slane %v10804_v57, 1  ;;  %v10817_v61 = vrot.slane %v10816_v55, 1  ;;  %v10800_v62 = vadd.f32 %v10799_v46, %v10798_v48 }
 0xd42   : > { %v10812_v63 = vadd.f32 %v10811_v47, %v10810_v51 }
 0xd43   : > { %v10806_v0 = vadd.f32 %v10805_v60, %v10804_v57  ;;  %v10818_v1 = vadd.f32 %v10817_v61, %v10816_v55  ;;  %v15261_v2 = vpop.eup %15260  ;;  %v10842_v3 = vmul.f32 0.125, %v10800_v62 }
 0xd44   : > { %v10844_v32 = vmul.f32 0.125, %v10812_v63  ;;  %v15263_v58 = vpop.eup %15262  ;;  %11183 = vst [vmem:[%s16616_s18] sm:$0xff] %v15261_v2  ;;  %v11001_v63 = vsub.s32 4, %v17127_v49  ;;  %v11005_v2 = vsub.s32 5, %v17127_v49 }
 0xd45   : > { %v10843_v4 = vmul.f32 0.125, %v10806_v0  ;;  %v10845_v59 = vmul.f32 0.125, %v10818_v1  ;;  %11185 = vst [vmem:[%s16616_s18 + $0x10] sm:$0xff] %v15263_v58  ;;  %v17163_v10 = vsub.f32 %v10638_v23, %v10842_v3  ;;  %v11009_v1 = vsub.s32 6, %v17127_v49 }
 0xd46   : > { %v15265_v5 = vpop.eup %15264  ;;  %v17165_v53 = vsub.f32 %v10679_v12, %v10844_v32  ;;  %v11013_v32 = vsub.s32 7, %v17127_v49  ;;  %v11002_v58 = vrot.slane %v17133_v40, %v11001_v63 }
 0xd47   : > { %v15267_v11 = vpop.eup %15266  ;;  %11184 = vst [vmem:[%s16616_s18 + $0x8] sm:$0xff] %v15265_v5  ;;  %v17168_v8 = vsub.f32 %v10640_v30, %v10843_v4  ;;  %v17170_v14 = vsub.f32 %v10681_v31, %v10845_v59  ;;  %v10864_v15 = vmul.f32 %v17163_v10, %v17163_v10  ;;  %v11010_v5 = vrot.slane %v17133_v40, %v11009_v1 }
 0xd48   : > { %11186 = vst [vmem:[%s16616_s18 + $0x18] sm:$0xff] %v15267_v11  ;;  %v10866_v6 = vmul.f32 %v17165_v53, %v17165_v53  ;;  %v11014_v49 = vrot.slane %v17133_v40, %v11013_v32 }
 0xd49   : > { %v10865_v16 = vmul.f32 %v17168_v8, %v17168_v8  ;;  %v10867_v7 = vmul.f32 %v17170_v14, %v17170_v14  ;;  %v10895_v17 = vrot.slane %v10864_v15, 4 }
 0xd4a   : > { %v10907_v9 = vrot.slane %v10866_v6, 4 }
 0xd4b   : > { %v10901_v22 = vrot.slane %v10865_v16, 4  ;;  %v10913_v23 = vrot.slane %v10867_v7, 4  ;;  %v10896_v12 = vadd.f32 %v10895_v17, %v10864_v15 }
 0xd4c   : > { %v10908_v52 = vadd.f32 %v10907_v9, %v10866_v6  ;;  %v11070_v6 = vrot.slane %v17142_v56, %v11001_v63 }
 0xd4d   : > { %v10902_v26 = vadd.f32 %v10901_v22, %v10865_v16  ;;  %v10914_v13 = vadd.f32 %v10913_v23, %v10867_v7  ;;  %v10897_v27 = vrot.slane %v10896_v12, 2  ;;  %v11006_v16 = vrot.slane %v17133_v40, %v11005_v2 }
 0xd4e   : > { %v10909_v30 = vrot.slane %v10908_v52, 2  ;;  %v11078_v22 = vrot.slane %v17142_v56, %v11009_v1 }
 0xd4f   : > { %v10903_v31 = vrot.slane %v10902_v26, 2  ;;  %v10915_v19 = vrot.slane %v10914_v13, 2  ;;  %v10898_v21 = vadd.f32 %v10897_v27, %v10896_v12 }
 0xd50   : > { %v10910_v33 = vadd.f32 %v10909_v30, %v10908_v52  ;;  %v11082_v30 = vrot.slane %v17142_v56, %v11013_v32 }
 0xd51   : > { %v10904_v25 = vadd.f32 %v10903_v31, %v10902_v26  ;;  %v10916_v35 = vadd.f32 %v10915_v19, %v10914_v13  ;;  %v10899_v37 = vrot.slane %v10898_v21, 1  ;;  %v11074_v26 = vrot.slane %v17142_v56, %v11005_v2 }
 0xd52   : > { %v10911_v20 = vrot.slane %v10910_v33, 1 }
 0xd53   : > { %v10905_v39 = vrot.slane %v10904_v25, 1  ;;  %v10917_v28 = vrot.slane %v10916_v35, 1  ;;  %v10900_v18 = vadd.f32 %v10899_v37, %v10898_v21 }
 0xd54   : > { %v10912_v29 = vadd.f32 %v10911_v20, %v10910_v33 }
 0xd55   : > { %v10906_v42 = vadd.f32 %v10905_v39, %v10904_v25  ;;  %v10918_v43 = vadd.f32 %v10917_v28, %v10916_v35  ;;  %v10941_v44 = vmul.f32 0.125, %v10900_v18 }
 0xd56   : > { %v10943_v45 = vmul.f32 0.125, %v10912_v29  ;;  %v12903_v36 = vpop.f32.mrb[8].mxu1 }
 0xd57   : > { %v10942_v34 = vmul.f32 0.125, %v10906_v42  ;;  %v10944_v24 = vmul.f32 0.125, %v10918_v43  ;;  %v10952_v38 = vadd.f32 1e-05, %v10941_v44  ;;  %v12904_v51 = vpop.f32.mrb[9].mxu1 }
 0xd58   : > { %v10954_v48 = vadd.f32 1e-05, %v10943_v45  ;;  %v12905_v46 = vadd.f32 %v12904_v51, %v12903_v36  ;;  %v12906_v47 = vpop.f32.mrb[10].mxu1 }
 0xd59   : > { %v10953_v57 = vadd.f32 1e-05, %v10942_v34  ;;  %v10955_v55 = vadd.f32 1e-05, %v10944_v24  ;;  %15268 = vrsqrt.f32 %v10952_v38  ;;  %v12907_v60 = vpop.f32.mrb[11].mxu1 }
 0xd5a   : > { %15270 = vrsqrt.f32 %v10954_v48  ;;  %v10831_v61 = vrot.slane %v12905_v46, 4 }
 0xd5b   : > { %15272 = vrsqrt.f32 %v10953_v57 }
 0xd5c   : > { %15274 = vrsqrt.f32 %v10955_v55  ;;  %v10832_v62 = vadd.f32 %v12905_v46, %v10831_v61 }
 0xd5e   : > { %v10833_v0 = vrot.slane %v10832_v62, 2 }
 0xd60   : > { %v10834_v3 = vadd.f32 %v10833_v0, %v10832_v62 }
 0xd62   : > { %v10835_v4 = vrot.slane %v10834_v3, 1 }
 0xd63   : > { %v15269_v59 = vpop.eup %15268 }
 0xd64   : > { %v15271_v11 = vpop.eup %15270  ;;  %v10974_v15 = vmul.f32 %v15269_v59, %v17163_v10  ;;  %v10836_v7 = vadd.f32 %v10835_v4, %v10834_v3 }
 0xd65   : > { %v15273_v17 = vpop.eup %15272  ;;  %v10976_v9 = vmul.f32 %v15271_v11, %v17165_v53 }
 0xd66   : > { %v15275_v23 = vpop.eup %15274  ;;  %v11042_v12 = vmul.f32 %v11002_v58, %v10974_v15  ;;  %v10975_v52 = vmul.f32 %v15273_v17, %v17168_v8  ;;  %v10848_v13 = vmul.f32 0.125, %v10836_v7  ;;  %v10768_v15 = vld [vmem:[%s16603_s14 + $0x8] sm:$0x7] }
 0xd67   : > { %v11044_v10 = vmul.f32 %v11010_v5, %v10976_v9  ;;  %v10977_v27 = vmul.f32 %v15275_v23, %v17170_v14  ;;  %v10770_v9 = vld [vmem:[%s16605_s29 + $0x8] sm:$0x7]  ;;  %v11026_v23 = vrot.slane %v10768_v15, %v17136_v41 }
 0xd68   : > { %v11110_v31 = vadd.f32 %v11070_v6, %v11042_v12  ;;  %v11043_v19 = vmul.f32 %v11006_v16, %v10975_v52  ;;  %v17197_v21 = vsub.f32 %v12905_v46, %v10848_v13 }
 0xd69   : > { %v11112_v53 = vadd.f32 %v11078_v22, %v11044_v10  ;;  %v11045_v33 = vmul.f32 %v11014_v49, %v10977_v27  ;;  %v11094_v10 = vrot.slane %v10770_v9, %v17136_v41 }
 0xd6a   : > { %v12835_v25 = vmul.f32 -1.442695, %v11110_v31  ;;  %v11111_v40 = vadd.f32 %v11074_v26, %v11043_v19  ;;  %v10870_v35 = vmul.f32 %v17197_v21, %v17197_v21 }
 0xd6b   : > { %v12837_v8 = vmul.f32 -1.442695, %v11112_v53  ;;  %v11113_v37 = vadd.f32 %v11082_v30, %v11045_v33 }
 0xd6c   : > { %15276 = vpow2.f32 %v12835_v25  ;;  %v12836_v20 = vmul.f32 -1.442695, %v11111_v40  ;;  %v10931_v39 = vrot.slane %v10870_v35, 4 }
 0xd6d   : > { %15278 = vpow2.f32 %v12837_v8  ;;  %v12838_v14 = vmul.f32 -1.442695, %v11113_v37 }
 0xd6e   : > { %15280 = vpow2.f32 %v12836_v20  ;;  %v10932_v56 = vadd.f32 %v10931_v39, %v10870_v35 }
 0xd6f   : > { %15282 = vpow2.f32 %v12838_v14 }
 0xd70   : > { %v10933_v28 = vrot.slane %v10932_v56, 2 }
 0xd72   : > { %v10934_v18 = vadd.f32 %v10933_v28, %v10932_v56 }
 0xd74   : > { %v10935_v29 = vrot.slane %v10934_v18, 1 }
 0xd76   : > { %v15277_v42 = vpop.eup %15276  ;;  %v10936_v43 = vadd.f32 %v10935_v29, %v10934_v18  ;;  %v10720_v44 = vpop.f32.mrb[8].mxu0 }
 0xd77   : > { %v15279_v45 = vpop.eup %15278  ;;  %v11154_v34 = vadd.f32 1.0, %v15277_v42  ;;  %v10819_v24 = vrot.slane %v10720_v44, 4  ;;  %v10722_v36 = vpop.f32.mrb[9].mxu0 }
 0xd78   : > { %v15281_v38 = vpop.eup %15280  ;;  %v11156_v48 = vadd.f32 1.0, %v15279_v45  ;;  %v10947_v51 = vmul.f32 0.125, %v10936_v43  ;;  %v10825_v57 = vrot.slane %v10722_v36, 4  ;;  %v10724_v55 = vpop.f32.mrb[10].mxu0 }
 0xd79   : > { %v15283_v46 = vpop.eup %15282  ;;  %15284 = vrcp.f32 %v11154_v34  ;;  %v11155_v47 = vadd.f32 1.0, %v15281_v38  ;;  %v10820_v60 = vadd.f32 %v10819_v24, %v10720_v44  ;;  %v10725_v61 = vpop.f32.mrb[11].mxu0  ;;  %v11022_v34 = vrot.slane %v10768_v15, %v17139_v54 }
 0xd7a   : > { %15286 = vrcp.f32 %v11156_v48  ;;  %v11157_v62 = vadd.f32 1.0, %v15283_v46  ;;  %v10958_v63 = vadd.f32 1e-05, %v10947_v51  ;;  %v10826_v0 = vadd.f32 %v10825_v57, %v10722_v36 }
 0xd7b   : > { %15288 = vrcp.f32 %v11155_v47  ;;  %v10821_v1 = vrot.slane %v10820_v60, 2  ;;  %v11086_v38 = vrot.slane %v10770_v9, %v17130_v50  ;;  %v11090_v51 = vrot.slane %v10770_v9, %v17139_v54 }
 0xd7c   : > { %15290 = vrcp.f32 %v11157_v62  ;;  %v10827_v2 = vrot.slane %v10826_v0, 2 }
 0xd7d   : > { %15292 = vrsqrt.f32 %v10958_v63  ;;  %v10822_v3 = vadd.f32 %v10821_v1, %v10820_v60 }
 0xd7e   : > { %v10828_v32 = vadd.f32 %v10827_v2, %v10826_v0 }
 0xd7f   : > { %v10823_v58 = vrot.slane %v10822_v3, 1 }
 0xd80   : > { %v10829_v4 = vrot.slane %v10828_v32, 1 }
 0xd81   : > { %v10824_v59 = vadd.f32 %v10823_v58, %v10822_v3 }
 0xd82   : > { %v10830_v5 = vadd.f32 %v10829_v4, %v10828_v32 }
 0xd83   : > { %v15285_v11 = vpop.eup %15284  ;;  %v10846_v6 = vmul.f32 0.125, %v10824_v59 }
 0xd84   : > { %v15287_v16 = vpop.eup %15286  ;;  %11187 = vst [vmem:[%s16616_s18 + $0x20] sm:$0xff] %v15285_v11  ;;  %v10847_v7 = vmul.f32 0.125, %v10830_v5 }
 0xd85   : > { %v15289_v17 = vpop.eup %15288  ;;  %11189 = vst [vmem:[%s16616_s18 + $0x30] sm:$0xff] %v15287_v16  ;;  %v10857_v22 = vsub.f32 %v10720_v44, %v10846_v6  ;;  %v11018_v44 = vrot.slane %v10768_v15, %v17130_v50 }
 0xd86   : > { %v15291_v49 = vpop.eup %15290  ;;  %11188 = vst [vmem:[%s16616_s18 + $0x28] sm:$0xff] %v15289_v17  ;;  %v10858_v12 = vsub.f32 %v10722_v36, %v10847_v7 }
 0xd87   : > { %v15293_v52 = vpop.eup %15292  ;;  %11190 = vst [vmem:[%s16616_s18 + $0x38] sm:$0xff] %v15291_v49  ;;  %v10868_v26 = vmul.f32 %v10857_v22, %v10857_v22 }
 0xd88   : > { %v10980_v13 = vmul.f32 %v15293_v52, %v17197_v21  ;;  %v10869_v27 = vmul.f32 %v10858_v12, %v10858_v12 }
 0xd89   : > { %v10919_v30 = vrot.slane %v10868_v26, 4 }
 0xd8a   : > { %v11048_v31 = vmul.f32 %v11026_v23, %v10980_v13  ;;  %v10925_v19 = vrot.slane %v10869_v27, 4 }
 0xd8b   : > { %v10920_v53 = vadd.f32 %v10919_v30, %v10868_v26 }
 0xd8c   : > { %v11116_v33 = vadd.f32 %v11094_v10, %v11048_v31  ;;  %v10926_v25 = vadd.f32 %v10925_v19, %v10869_v27 }
 0xd8d   : > { %v10921_v40 = vrot.slane %v10920_v53, 2 }
 0xd8e   : > { %v12841_v35 = vmul.f32 -1.442695, %v11116_v33  ;;  %v10927_v8 = vrot.slane %v10926_v25, 2 }
 0xd8f   : > { %v10922_v37 = vadd.f32 %v10921_v40, %v10920_v53 }
 0xd90   : > { %15294 = vpow2.f32 %v12841_v35  ;;  %v10928_v20 = vadd.f32 %v10927_v8, %v10926_v25 }
 0xd91   : > { %v10923_v39 = vrot.slane %v10922_v37, 1 }
 0xd92   : > { %v10929_v14 = vrot.slane %v10928_v20, 1 }
 0xd93   : > { %v10924_v56 = vadd.f32 %v10923_v39, %v10922_v37 }
 0xd94   : > { %v10930_v28 = vadd.f32 %v10929_v14, %v10928_v20 }
 0xd95   : > { %v10945_v21 = vmul.f32 0.125, %v10924_v56 }
 0xd96   : > { %v10946_v18 = vmul.f32 0.125, %v10930_v28 }
 0xd97   : > { %v10956_v41 = vadd.f32 1e-05, %v10945_v21 }
 0xd98   : > { %v10957_v29 = vadd.f32 1e-05, %v10946_v18 }
 0xd99   : > { %15296 = vrsqrt.f32 %v10956_v41 }
 0xd9a   : > { %v15295_v42 = vpop.eup %15294  ;;  %15298 = vrsqrt.f32 %v10957_v29 }
 0xd9b   : > { %v11160_v43 = vadd.f32 1.0, %v15295_v42 }
 0xd9d   : > { %15300 = vrcp.f32 %v11160_v43 }
 0xda3   : > { %v15297_v45 = vpop.eup %15296 }
 0xda4   : > { %v15299_v24 = vpop.eup %15298  ;;  %v10978_v36 = vmul.f32 %v15297_v45, %v10857_v22 }
 0xda5   : > { %v10979_v48 = vmul.f32 %v15299_v24, %v10858_v12 }
 0xda6   : > { %v11046_v57 = vmul.f32 %v11018_v44, %v10978_v36 }
 0xda7   : > { %v15301_v55 = vpop.eup %15300  ;;  %v11047_v46 = vmul.f32 %v11022_v34, %v10979_v48 }
 0xda8   : > { %11193 = vst [vmem:[%s16616_s18 + $0x50] sm:$0xff] %v15301_v55  ;;  %v11114_v47 = vadd.f32 %v11086_v38, %v11046_v57 }
 0xda9   : > { %v11115_v60 = vadd.f32 %v11090_v51, %v11047_v46 }
 0xdaa   : > { %v12839_v61 = vmul.f32 -1.442695, %v11114_v47 }
 0xdab   : > { %v12840_v62 = vmul.f32 -1.442695, %v11115_v60 }
 0xdac   : > { %15302 = vpow2.f32 %v12839_v61 }
 0xdad   : > { %15304 = vpow2.f32 %v12840_v62 }
 0xdb6   : > { %v15303_v63 = vpop.eup %15302 }
 0xdb7   : > { %v15305_v0 = vpop.eup %15304  ;;  %v11158_v1 = vadd.f32 1.0, %v15303_v63 }
 0xdb8   : > { %v11159_v2 = vadd.f32 1.0, %v15305_v0 }
 0xdb9   : > { %15306 = vrcp.f32 %v11158_v1 }
 0xdba   : > { %15308 = vrcp.f32 %v11159_v2 }
 0xdc3   : > { %v15307_v50 = vpop.eup %15306 }
 0xdc4   : > { %v15309_v54 = vpop.eup %15308  ;;  %11191 = vst [vmem:[%s16616_s18 + $0x40] sm:$0xff] %v15307_v50 }
 0xdc5   : > { %11192 = vst [vmem:[%s16616_s18 + $0x48] sm:$0xff] %v15309_v54 }
 0xdc6 PF: > { %s43_s23 = sadd.s32 1, %s15922_s23   ;;  %s17374_s0 = sld [smem:[#allocation41_spill]] }
 0xdc7   : > { %p40_p1 = scmp.ge.s32.totalorder %s43_s23, 8   ;;  %s17375_s30 = sld [smem:[#allocation42_spill]] }
 0xdc8   : > { %s17376_s20 = sld [smem:[#allocation51_spill]]  ;;  %s17377_s21 = sld [smem:[#allocation45_spill]] }
 0xdc9   : > { %s17378_s1 = sld [smem:[#allocation46_spill]]  ;;  %s17379_s22 = sld [smem:[#allocation48_spill]] }
 0xdca   : > { %s17380_s2 = sld [smem:[#allocation49_spill]]  ;;  %42 = sbr.rel (!%p40_p1) target bundleno = 34 (0x22), region = 225 }
 0xdd1   :  { %11222 = vsyncpa [#allocation4], 1 }
 0xdd2   :  { %11224 = vsyncpa [#allocation4 + $0x1], 1 }
 0xdd3   :  { %11225 = vsyncpa [#allocation6], 1 }
 0xdd4   :  { %11226 = vsyncpa [#allocation9], 1 }
 0xdd5   :  { %11227 = vsyncpa [#allocation12], 1 }
 0xdd6   :  { %11228 = vsyncpa [#allocation15], 1 }
 0xdd7   :  { %11229 = vsyncpa [#allocation18], 1 }
 0xdd8   :  { %11230 = vsyncpa [#allocation21], 1 }
 0xdd9   :  { %11231 = vsyncpa [#allocation24], 1 }
 0xdda   :  { %11232 = vsyncpa [#allocation27], 1 }
 0xddb   :  { %11234 = vsyncpa [#allocation27 + $0x1], 1 }
 0xddc   :  { %11235 = vsyncpa [#allocation30], 1 }
 0xddd   :  { %11237 = vsyncpa [#allocation30 + $0x1], 1 }

</bundles_post_ra>
